<compile_context>
chip_gen: v7x
topology: tpu7x:2x2x1
jax: 0.10.0
libtpu: 0.0.40
codegen_flags: <defaults>
</compile_context>

<pallas_src>
import functools

import jax
import jax.numpy as jnp
from jax import lax
from jax.experimental import pallas as pl
from jax.experimental.pallas import tpu as pltpu


# ---------------------- pltpu.roll behaviour probe / helpers ----------------------

_ROLL_MODE_CACHE = {}


def _probe_roll_mode(dtype):
    """Determine how pltpu.roll behaves on this backend for `dtype`.

    Returns:
      'np'  -> pltpu.roll(x, s, axis) == jnp.roll(x, s, axis)
      'inv' -> pltpu.roll(x, s, axis) == jnp.roll(x, -s, axis)
      'off' -> unsupported / unexpected -> use jnp.roll inside the kernel.
    """
    key = str(dtype)
    if key in _ROLL_MODE_CACHE:
        return _ROLL_MODE_CACHE[key]

    mode = "off"
    try:
        def probe_kernel(x_ref, o_ref):
            o_ref[...] = pltpu.roll(x_ref[...], 1, axis=1)

        x = lax.broadcasted_iota(jnp.float32, (16, 128), 1).astype(dtype)
        y = pl.pallas_call(
            probe_kernel,
            out_shape=jax.ShapeDtypeStruct((16, 128), x.dtype),
        )(x)
        v = float(y[0, 0])
        if v == 127.0:
            mode = "np"
        elif v == 1.0:
            mode = "inv"
    except Exception:
        mode = "off"
    _ROLL_MODE_CACHE[key] = mode
    return mode


def _make_lane_roll(n, roll_mode):
    """lane_roll(v, k): out[:, p] = v[:, (p - k) % n]  (== jnp.roll(v, k, axis=1))."""

    def lane_roll(v, k):
        s = k % n
        if s == 0:
            return v
        if roll_mode == "np":
            return pltpu.roll(v, s, axis=1)
        if roll_mode == "inv":
            return pltpu.roll(v, n - s, axis=1)
        return jnp.roll(v, k, axis=1)   # known-good fallback (slice+concat path)

    return lane_roll


# --------------------------------- kernel body ---------------------------------

def _dw3(x, w, masks, W, lane_roll):
    """Depthwise 3x3 conv, stride 1, exact zero padding, on (C, N) lane-packed data.

    x     : (C, N) where N = Bt*H*W, spatial position p = b*H*W + i*W + j on lanes
    w     : (3, 3, C, 1) taps (any per-channel BN scale already folded in)
    masks : (left, right, up, down) validity masks of shape (1, N), broadcast over C
    """
    m_l, m_r, m_u, m_d = masks
    zero = jnp.zeros((1, 1), x.dtype)
    # Column (j +/- 1) neighbours: lane rotations, image/row wrap-around masked out.
    x_l = jnp.where(m_l, lane_roll(x, 1), zero)      # x[p - 1]
    x_r = jnp.where(m_r, lane_roll(x, -1), zero)     # x[p + 1]
    # Partial sums over the column taps for each row offset.
    z_u = x_l * w[0, 0] + x * w[0, 1] + x_r * w[0, 2]     # needs row i-1
    z_c = x_l * w[1, 0] + x * w[1, 1] + x_r * w[1, 2]     # row i
    z_d = x_l * w[2, 0] + x * w[2, 1] + x_r * w[2, 2]     # needs row i+1
    # Row (i +/- 1) combination: lane rotations by +/-W, wrap-around masked out.
    t_u = jnp.where(m_u, lane_roll(z_u, W), zero)          # z_u[p - W]
    t_d = jnp.where(m_d, lane_roll(z_d, -W), zero)         # z_d[p + W]
    return t_u + z_c + t_d


def _gltb_kernel(x_ref, n1s_ref, n1b_ref, l1dw_ref, l2s_ref, wloc_ref,
                 gdw_ref, gbnb_ref, gpw_ref, pdw_ref, pbnb_ref, ppw_ref,
                 o_ref, loc_ref, *, W, HW, compute_dtype, roll_mode):
    x = x_ref[...]                                 # (C, N) f32, N = Bt*H*W
    C, N = x.shape
    cdt = compute_dtype
    lane_roll = _make_lane_roll(N, roll_mode)

    # Per-image boundary masks, shape (1, N); broadcast over channel sublanes.
    p = lax.broadcasted_iota(jnp.int32, (1, N), 1)
    q = p % HW                                     # position within each image
    col = p % W                                    # column within each row (HW % W == 0)
    masks = (col != 0, col != W - 1, q >= W, q < HW - W)

    def pw(w_bf16, t):
        # 1x1 conv as (Cout, Cin) @ (Cin, N); bf16 operands, f32 accumulation.
        return jnp.dot(w_bf16, t.astype(jnp.bfloat16),
                       preferred_element_type=jnp.float32)

    # GLTB.norm1 (inference BatchNorm folded into per-channel scale/bias), then
    # drop to the activation compute dtype (bf16 on v6e/v7x, f32 on v5e).
    xn = (x * n1s_ref[...] + n1b_ref[...]).astype(cdt)

    # GlobalLocal local branch: local1 (dw3 -> pw) + local2 (per-channel scale -> pw),
    # the two pointwise convs fused into a single (C, 2C) @ (2C, N) matmul staged
    # through a VMEM scratch (no concatenate copy).
    loc_ref[:C, :] = _dw3(xn, l1dw_ref[...], masks, W, lane_roll)
    loc_ref[C:, :] = xn * l2s_ref[...]
    local = pw(wloc_ref[...], loc_ref[...])        # (C, N) f32

    # GlobalLocal.glb: Bottleneck = 3x (dw3 -> BN -> pw -> ReLU6),
    # BN scales pre-folded into the depthwise taps; only the biases remain.
    g = xn
    for k in range(3):
        g = _dw3(g, gdw_ref[k], masks, W, lane_roll) + gbnb_ref[k]
        g = jnp.clip(pw(gpw_ref[k], g), 0.0, 6.0).astype(cdt)      # ReLU6

    # GlobalLocal.proj: SeparableConvBN = dw3 -> BN -> pw (scale folded into taps).
    out = _dw3(g + local.astype(cdt), pdw_ref[...], masks, W, lane_roll) + pbnb_ref[...]
    out = pw(ppw_ref[...], out)

    # GLTB residual (DropPath(0.0) == Identity); out[:, :, :H, :W] is a no-op.
    o_ref[...] = (x + out).astype(o_ref.dtype)


# ----------------------------------- wrapper -----------------------------------

def _default_batch_tile(B, C, HW):
    """Largest batch tile that keeps >=2 grid steps (v7x: 2 TensorCores) and a
    modest (<~4 MiB) f32 input block so double-buffered blocks + intermediates
    stay well inside v7x's 64 MiB VMEM."""
    if B <= 1:
        return 1
    cap = max(1, (4 << 20) // (C * HW * 4))
    target = min((B + 1) // 2, cap)
    for bt in range(max(target, 1), 0, -1):
        if B % bt == 0:
            return bt
    return 1


def gltb_forward(x_nchw, kparams, *, batch_tile=None):
    """x_nchw: (B, C, H, W) float32; kparams: tuple from prep_params()."""
    B, C, H, Wd = x_nchw.shape
    HW = H * Wd
    cdt = kparams[2].dtype            # dw-tap dtype == activation compute dtype

    if batch_tile is None:
        batch_tile = _default_batch_tile(B, C, HW)
    assert B % batch_tile == 0, "batch_tile must divide B"
    steps = B // batch_tile
    n = batch_tile * HW
    if steps > 1 and n % 128 != 0:    # keep blocks lane-aligned; else one full block
        batch_tile, steps, n = B, 1, B * HW

    roll_mode = _probe_roll_mode(cdt)

    # (B, C, H, W) -> (C, B*HW): channels on sublanes, batch*space packed on lanes.
    x2 = jnp.transpose(x_nchw.reshape(B, C, HW), (1, 0, 2)).reshape(C, B * HW)

    def rep(arr):
        nd = arr.ndim
        return pl.BlockSpec(arr.shape, lambda i, _n=nd: (0,) * _n)

    in_specs = [pl.BlockSpec((C, n), lambda i: (0, i))]
    in_specs += [rep(a) for a in kparams]
    out_spec = pl.BlockSpec((C, n), lambda i: (0, i))

    # Explicit VMEM budget (v5e's scoped default is only 16 MiB) and a cost hint.
    param_bytes = sum(int(a.size) * a.dtype.itemsize for a in kparams)
    block_bytes = 2 * C * n * 4                       # in + out block (f32)
    scratch_bytes = 2 * C * n * cdt.itemsize
    need = 2 * block_bytes + 2 * param_bytes + scratch_bytes + 8 * C * n * 4
    vmem_limit = int(min(max(32 << 20, 2 * need), 64 << 20))

    flops = 12 * B * HW * C * C + 90 * B * HW * C     # 6 pointwise matmuls + 5 dw3
    bytes_accessed = 2 * B * C * HW * 4 + param_bytes

    y2 = pl.pallas_call(
        functools.partial(_gltb_kernel, W=Wd, HW=HW,
                          compute_dtype=cdt, roll_mode=roll_mode),
        out_shape=jax.ShapeDtypeStruct((C, B * HW), x_nchw.dtype),
        grid_spec=pltpu.PrefetchScalarGridSpec(
            num_scalar_prefetch=0,
            grid=(steps,),
            in_specs=in_specs,
            out_specs=out_spec,
            scratch_shapes=[pltpu.VMEM((2 * C, n), cdt)],   # fused-local staging
        ),
        compiler_params=pltpu.CompilerParams(
            dimension_semantics=("parallel",),
            vmem_limit_bytes=vmem_limit,
        ),
        cost_estimate=pl.CostEstimate(
            flops=int(flops), transcendentals=0, bytes_accessed=int(bytes_accessed)),
    )(x2, *kparams)

    return jnp.transpose(y2.reshape(C, B, HW), (1, 0, 2)).reshape(B, C, H, Wd)


def _prefers_bf16_activations():
    """bf16 elementwise path is a win only where the VPU has packed bf16 (v6e/v7x)."""
    try:
        kind = jax.devices()[0].device_kind.lower()
    except Exception:
        return False
    return any(t in kind for t in ("v6", "v7", "7x", "trillium", "ironwood"))


# ----------------------------- parameter plumbing -----------------------------

def make_raw_params(key, C):
    """PyTorch-style raw parameters (BN stats + conv weights)."""
    cnt = [0]

    def nk():
        cnt[0] += 1
        return jax.random.fold_in(key, cnt[0])

    def bn():
        return dict(
            gamma=jax.random.uniform(nk(), (C,), jnp.float32, 0.5, 1.5),
            beta=0.1 * jax.random.normal(nk(), (C,), jnp.float32),
            mean=0.1 * jax.random.normal(nk(), (C,), jnp.float32),
            var=jax.random.uniform(nk(), (C,), jnp.float32, 0.5, 1.5),
        )

    def dw3w():                                   # depthwise 3x3: (C, 3, 3)
        return 0.3 * jax.random.normal(nk(), (C, 3, 3), jnp.float32)

    def pww():                                    # pointwise 1x1: (Cout, Cin)
        return jax.random.normal(nk(), (C, C), jnp.float32) / jnp.sqrt(C * 1.0)

    return dict(
        n1=bn(),
        l1dw=dw3w(), l1pw=pww(),
        l2dw=0.3 * jax.random.normal(nk(), (C,), jnp.float32), l2pw=pww(),
        gdw=[dw3w() for _ in range(3)],
        gbn=[bn() for _ in range(3)],
        gpw=[pww() for _ in range(3)],
        pdw=dw3w(), pbn=bn(), ppw=pww(),
    )


def prep_params(raw, eps=1e-5, compute_dtype=jnp.float32):
    """Fold BNs, fuse the local pointwise convs, reshape for the (C, N) layout.

    Depthwise taps / BN biases / l2 scale are stored in `compute_dtype`
    (bf16 on v6e/v7x, f32 on v5e); matmul weights are always bf16.
    """
    cdt = jnp.dtype(compute_dtype)

    def fold(p):
        s = p['gamma'] / jnp.sqrt(p['var'] + eps)
        return s, p['beta'] - p['mean'] * s

    def dwk(w_c33, scale=None):                   # (C,3,3) -> (3,3,C,1), optional BN scale fold
        w = jnp.transpose(w_c33, (1, 2, 0))
        if scale is not None:
            w = w * scale[None, None, :]
        return w[..., None].astype(cdt)

    n1s, n1b = fold(raw['n1'])
    gfold = [fold(p) for p in raw['gbn']]
    ps, pb = fold(raw['pbn'])

    return (
        n1s[:, None], n1b[:, None],                                              # norm1 scale/bias (f32)
        dwk(raw['l1dw']),                                                        # local1 dw taps
        raw['l2dw'][:, None].astype(cdt),                                        # local2 per-chan scale
        jnp.concatenate([raw['l1pw'], raw['l2pw']], axis=1).astype(jnp.bfloat16),  # fused local pw (C,2C)
        jnp.stack([dwk(raw['gdw'][k], gfold[k][0]) for k in range(3)]),          # glb dw, BN scale folded
        jnp.stack([gfold[k][1][:, None].astype(cdt) for k in range(3)]),         # glb BN biases
        jnp.stack(raw['gpw']).astype(jnp.bfloat16),                              # glb pw (3,C,C)
        dwk(raw['pdw'], ps),                                                     # proj dw, BN scale folded
        pb[:, None].astype(cdt),                                                 # proj BN bias
        raw['ppw'].astype(jnp.bfloat16),                                         # proj pw (C,C)
    )


# --------------------------------- reference ----------------------------------

def gltb_ref(x, raw, eps=1e-5):
    """Plain-JAX reference in NCHW from raw params (matmuls in bf16 like the kernel)."""
    C = x.shape[1]

    def bn(t, p):
        s = p['gamma'] / jnp.sqrt(p['var'] + eps)
        b = p['beta'] - p['mean'] * s
        return t * s[None, :, None, None] + b[None, :, None, None]

    def dw3(t, w):                                # w: (C,3,3), groups = C
        return lax.conv_general_dilated(
            t, w[:, None, :, :], (1, 1), 'SAME',
            dimension_numbers=('NCHW', 'OIHW', 'NCHW'),
            feature_group_count=C)

    def pw(t, w):                                 # w: (Cout, Cin); bf16 in, f32 accumulate
        return jnp.einsum('oc,bchw->bohw',
                          w.astype(jnp.bfloat16), t.astype(jnp.bfloat16),
                          preferred_element_type=jnp.float32)

    relu6 = lambda t: jnp.clip(t, 0.0, 6.0)

    xn = bn(x, raw['n1'])
    local = pw(dw3(xn, raw['l1dw']), raw['l1pw']) \
          + pw(xn * raw['l2dw'][None, :, None, None], raw['l2pw'])
    g = xn
    for k in range(3):
        g = relu6(pw(bn(dw3(g, raw['gdw'][k]), raw['gbn'][k]), raw['gpw'][k]))
    out = pw(bn(dw3(g + local, raw['pdw']), raw['pbn']), raw['ppw'])
    return x + out


if __name__ == "__main__":
    # B=4 so the default batch tile packs 2 images per lane-dense block and the
    # grid still has 2 steps (both TensorCores used on v7x).
    B, C, H, W = 4, 32, 16, 16
    key = jax.random.PRNGKey(0)
    kx, kp = jax.random.split(key)

    x = jax.random.normal(kx, (B, C, H, W), jnp.float32)   # PyTorch-style NCHW input
    raw = make_raw_params(kp, C)
    y_ref = gltb_ref(x, raw)

    # f32 activation path: the right choice for v5e, and the strict correctness gate.
    y32 = gltb_forward(x, prep_params(raw, compute_dtype=jnp.float32))
    jax.block_until_ready(y32)
    err32 = float(jnp.max(jnp.abs(y32 - y_ref)))
    assert jnp.allclose(y32, y_ref, atol=2e-2, rtol=2e-2), \
        f"f32 path mismatch vs reference (max abs err {err32})"

    # bf16 activation path: preferred on v6e / v7x (packed-bf16 VALU). The reference
    # keeps f32 elementwise math, so check with a norm-based tolerance.
    if _prefers_bf16_activations():
        ybf = gltb_forward(x, prep_params(raw, compute_dtype=jnp.bfloat16))
        jax.block_until_ready(ybf)
        rel = float(jnp.linalg.norm((ybf - y_ref).astype(jnp.float32))
                    / jnp.linalg.norm(y_ref.astype(jnp.float32)))
        assert rel < 0.1, f"bf16 path relative error too large: {rel}"

    print("KERNEL_OK")
</pallas_src>

<mosaic_0001>
module attributes {stable_mosaic.version = 11 : i64} {
  func.func @probe_kernel(%arg0: memref<16x128xf32, #tpu.memory_space<vmem>>, %arg1: memref<16x128xf32, #tpu.memory_space<vmem>>) attributes {dimension_semantics = [], scalar_prefetch = 0 : i64, scratch_operands = 0 : i64, tpu.core_type = #tpu.core_type<tc>} {
    %c0 = arith.constant 0 : index
    %c0_0 = arith.constant 0 : index
    %0 = vector.load %arg0[%c0, %c0_0] : memref<16x128xf32, #tpu.memory_space<vmem>>, vector<16x128xf32>
    %c1_i32 = arith.constant 1 : i32
    %1 = tpu.dynamic_rotate %0 by %c1_i32 dim 1 : vector<16x128xf32>, i32 -> vector<16x128xf32>
    %c0_1 = arith.constant 0 : index
    %c0_2 = arith.constant 0 : index
    %2 = vector.load %arg1[%c0_1, %c0_2] : memref<16x128xf32, #tpu.memory_space<vmem>>, vector<16x128xf32>
    tpu.vector_store %arg1[%c0_1, %c0_2], %1 {strides = array<i32>} : memref<16x128xf32, #tpu.memory_space<vmem>>, vector<16x128xf32>,
    return
  }
}

module attributes {stable_mosaic.version = 11 : i64} {
  func.func @_gltb_kernel(%arg0: i32, %arg1: memref<32x512xf32, #tpu.memory_space<vmem>>, %arg2: memref<32x1xf32, #tpu.memory_space<vmem>>, %arg3: memref<32x1xf32, #tpu.memory_space<vmem>>, %arg4: memref<3x3x32x1xf32, #tpu.memory_space<vmem>>, %arg5: memref<32x1xf32, #tpu.memory_space<vmem>>, %arg6: memref<32x64xbf16, #tpu.memory_space<vmem>>, %arg7: memref<3x3x3x32x1xf32, #tpu.memory_space<vmem>>, %arg8: memref<3x32x1xf32, #tpu.memory_space<vmem>>, %arg9: memref<3x32x32xbf16, #tpu.memory_space<vmem>>, %arg10: memref<3x3x32x1xf32, #tpu.memory_space<vmem>>, %arg11: memref<32x1xf32, #tpu.memory_space<vmem>>, %arg12: memref<32x32xbf16, #tpu.memory_space<vmem>>, %arg13: memref<32x512xf32, #tpu.memory_space<vmem>>, %arg14: memref<64x512xf32, #tpu.memory_space<vmem>>) attributes {dimension_semantics = [#tpu.dimension_semantics<parallel>], iteration_bounds = array<i64: 2>, scalar_prefetch = 0 : i64, scratch_operands = 1 : i64, tpu.core_type = #tpu.core_type<tc>, window_params = [{transform_indices = @transform_0, window_bounds = array<i64: 32, 512>}, {pipeline_mode = #tpu.pipeline_mode<synchronous>, transform_indices = @transform_1, window_bounds = array<i64: 32, 1>}, {pipeline_mode = #tpu.pipeline_mode<synchronous>, transform_indices = @transform_2, window_bounds = array<i64: 32, 1>}, {pipeline_mode = #tpu.pipeline_mode<synchronous>, transform_indices = @transform_3, window_bounds = array<i64: 3, 3, 32, 1>}, {pipeline_mode = #tpu.pipeline_mode<synchronous>, transform_indices = @transform_4, window_bounds = array<i64: 32, 1>}, {pipeline_mode = #tpu.pipeline_mode<synchronous>, transform_indices = @transform_5, window_bounds = array<i64: 32, 64>}, {pipeline_mode = #tpu.pipeline_mode<synchronous>, transform_indices = @transform_6, window_bounds = array<i64: 3, 3, 3, 32, 1>}, {pipeline_mode = #tpu.pipeline_mode<synchronous>, transform_indices = @transform_7, window_bounds = array<i64: 3, 32, 1>}, {pipeline_mode = #tpu.pipeline_mode<synchronous>, transform_indices = @transform_8, window_bounds = array<i64: 3, 32, 32>}, {pipeline_mode = #tpu.pipeline_mode<synchronous>, transform_indices = @transform_9, window_bounds = array<i64: 3, 3, 32, 1>}, {pipeline_mode = #tpu.pipeline_mode<synchronous>, transform_indices = @transform_10, window_bounds = array<i64: 32, 1>}, {pipeline_mode = #tpu.pipeline_mode<synchronous>, transform_indices = @transform_11, window_bounds = array<i64: 32, 32>}, {transform_indices = @transform_12, window_bounds = array<i64: 32, 512>}]} {
    %c0 = arith.constant 0 : index
    %c0_0 = arith.constant 0 : index
    %0 = vector.load %arg1[%c0, %c0_0] : memref<32x512xf32, #tpu.memory_space<vmem>>, vector<32x512xf32>
    %1 = tpu.iota {dimensions = array<i32: 1>} : vector<1x512xi32>
    %c256_i32 = arith.constant 256 : i32
    %c0_i32 = arith.constant 0 : i32
    %2 = arith.cmpi eq, %c256_i32, %c0_i32 : i32
    %c1_i32 = arith.constant 1 : i32
    %3 = arith.select %2, %c1_i32, %c256_i32 : i32
    %4 = vector.broadcast %3 : i32 to vector<1x512xi32>
    %5 = arith.remsi %1, %4 : vector<1x512xi32>
    %c0_i32_1 = arith.constant 0 : i32
    %6 = vector.broadcast %c0_i32_1 : i32 to vector<1x512xi32>
    %7 = arith.cmpi ne, %5, %6 : vector<1x512xi32>
    %c0_i32_2 = arith.constant 0 : i32
    %8 = vector.broadcast %c0_i32_2 : i32 to vector<1x512xi32>
    %9 = arith.cmpi slt, %5, %8 : vector<1x512xi32>
    %c0_i32_3 = arith.constant 0 : i32
    %10 = arith.cmpi slt, %3, %c0_i32_3 : i32
    %11 = vector.broadcast %10 : i1 to vector<1x512xi1>
    %12 = vector.broadcast %11 : vector<1x512xi1> to vector<1x512xi1>
    %13 = arith.xori %9, %12 : vector<1x512xi1>
    %14 = arith.andi %13, %7 : vector<1x512xi1>
    %15 = vector.broadcast %3 : i32 to vector<1x512xi32>
    %16 = arith.addi %5, %15 : vector<1x512xi32>
    %17 = arith.select %14, %16, %5 : vector<1x512xi1>, vector<1x512xi32>
    %c16_i32 = arith.constant 16 : i32
    %c0_i32_4 = arith.constant 0 : i32
    %18 = arith.cmpi eq, %c16_i32, %c0_i32_4 : i32
    %c1_i32_5 = arith.constant 1 : i32
    %19 = arith.select %18, %c1_i32_5, %c16_i32 : i32
    %20 = vector.broadcast %19 : i32 to vector<1x512xi32>
    %21 = arith.remsi %1, %20 : vector<1x512xi32>
    %c0_i32_6 = arith.constant 0 : i32
    %22 = vector.broadcast %c0_i32_6 : i32 to vector<1x512xi32>
    %23 = arith.cmpi ne, %21, %22 : vector<1x512xi32>
    %c0_i32_7 = arith.constant 0 : i32
    %24 = vector.broadcast %c0_i32_7 : i32 to vector<1x512xi32>
    %25 = arith.cmpi slt, %21, %24 : vector<1x512xi32>
    %c0_i32_8 = arith.constant 0 : i32
    %26 = arith.cmpi slt, %19, %c0_i32_8 : i32
    %27 = vector.broadcast %26 : i1 to vector<1x512xi1>
    %28 = vector.broadcast %27 : vector<1x512xi1> to vector<1x512xi1>
    %29 = arith.xori %25, %28 : vector<1x512xi1>
    %30 = arith.andi %29, %23 : vector<1x512xi1>
    %31 = vector.broadcast %19 : i32 to vector<1x512xi32>
    %32 = arith.addi %21, %31 : vector<1x512xi32>
    %33 = arith.select %30, %32, %21 : vector<1x512xi1>, vector<1x512xi32>
    %c0_i32_9 = arith.constant 0 : i32
    %34 = vector.broadcast %c0_i32_9 : i32 to vector<1x512xi32>
    %35 = arith.cmpi ne, %33, %34 : vector<1x512xi32>
    %c15_i32 = arith.constant 15 : i32
    %36 = vector.broadcast %c15_i32 : i32 to vector<1x512xi32>
    %37 = arith.cmpi ne, %33, %36 : vector<1x512xi32>
    %c16_i32_10 = arith.constant 16 : i32
    %38 = vector.broadcast %c16_i32_10 : i32 to vector<1x512xi32>
    %39 = arith.cmpi sge, %17, %38 : vector<1x512xi32>
    %c240_i32 = arith.constant 240 : i32
    %40 = vector.broadcast %c240_i32 : i32 to vector<1x512xi32>
    %41 = arith.cmpi slt, %17, %40 : vector<1x512xi32>
    %c0_11 = arith.constant 0 : index
    %c0_12 = arith.constant 0 : index
    %42 = vector.load %arg2[%c0_11, %c0_12] : memref<32x1xf32, #tpu.memory_space<vmem>>, vector<32x1xf32>
    %43 = vector.broadcast %42 : vector<32x1xf32> to vector<32x512xf32>
    %44 = arith.mulf %0, %43 : vector<32x512xf32>
    %c0_13 = arith.constant 0 : index
    %c0_14 = arith.constant 0 : index
    %45 = vector.load %arg3[%c0_13, %c0_14] : memref<32x1xf32, #tpu.memory_space<vmem>>, vector<32x1xf32>
    %46 = vector.broadcast %45 : vector<32x1xf32> to vector<32x512xf32>
    %47 = arith.addf %44, %46 : vector<32x512xf32>
    %c0_15 = arith.constant 0 : index
    %c0_16 = arith.constant 0 : index
    %c0_17 = arith.constant 0 : index
    %c0_18 = arith.constant 0 : index
    %48 = vector.load %arg4[%c0_15, %c0_16, %c0_17, %c0_18] : memref<3x3x32x1xf32, #tpu.memory_space<vmem>>, vector<3x3x32x1xf32>
    %cst = arith.constant 0.000000e+00 : f32
    %49 = vector.broadcast %cst : f32 to vector<1x1xf32>
    %50 = vector.extract_strided_slice %47 {offsets = [0, 511], sizes = [32, 1], strides = [1, 1]} : vector<32x512xf32> to vector<32x1xf32>
    %51 = vector.extract_strided_slice %47 {offsets = [0, 0], sizes = [32, 511], strides = [1, 1]} : vector<32x512xf32> to vector<32x511xf32>
    %52 = tpu.concatenate %50, %51 in 1 : vector<32x1xf32>, vector<32x511xf32> -> vector<32x512xf32>
    %53 = vector.shape_cast %35 : vector<1x512xi1> to vector<1x512xi1>
    %54 = vector.broadcast %53 : vector<1x512xi1> to vector<32x512xi1>
    %55 = vector.shape_cast %49 : vector<1x1xf32> to vector<1x1xf32>
    %56 = vector.broadcast %55 : vector<1x1xf32> to vector<32x512xf32>
    %57 = arith.select %54, %52, %56 : vector<32x512xi1>, vector<32x512xf32>
    %58 = vector.extract_strided_slice %47 {offsets = [0, 1], sizes = [32, 511], strides = [1, 1]} : vector<32x512xf32> to vector<32x511xf32>
    %59 = vector.extract_strided_slice %47 {offsets = [0, 0], sizes = [32, 1], strides = [1, 1]} : vector<32x512xf32> to vector<32x1xf32>
    %60 = tpu.concatenate %58, %59 in 1 : vector<32x511xf32>, vector<32x1xf32> -> vector<32x512xf32>
    %61 = vector.shape_cast %37 : vector<1x512xi1> to vector<1x512xi1>
    %62 = vector.broadcast %61 : vector<1x512xi1> to vector<32x512xi1>
    %63 = vector.shape_cast %49 : vector<1x1xf32> to vector<1x1xf32>
    %64 = vector.broadcast %63 : vector<1x1xf32> to vector<32x512xf32>
    %65 = arith.select %62, %60, %64 : vector<32x512xi1>, vector<32x512xf32>
    %66 = vector.extract_strided_slice %48 {offsets = [0, 0, 0, 0], sizes = [1, 1, 32, 1], strides = [1, 1, 1, 1]} : vector<3x3x32x1xf32> to vector<1x1x32x1xf32>
    %67 = vector.shape_cast %66 : vector<1x1x32x1xf32> to vector<32x1xf32>
    %68 = vector.broadcast %67 : vector<32x1xf32> to vector<32x512xf32>
    %69 = arith.mulf %57, %68 : vector<32x512xf32>
    %70 = vector.extract_strided_slice %48 {offsets = [0, 1, 0, 0], sizes = [1, 1, 32, 1], strides = [1, 1, 1, 1]} : vector<3x3x32x1xf32> to vector<1x1x32x1xf32>
    %71 = vector.shape_cast %70 : vector<1x1x32x1xf32> to vector<32x1xf32>
    %72 = vector.broadcast %71 : vector<32x1xf32> to vector<32x512xf32>
    %73 = arith.mulf %47, %72 : vector<32x512xf32>
    %74 = arith.addf %69, %73 : vector<32x512xf32>
    %75 = vector.extract_strided_slice %48 {offsets = [0, 2, 0, 0], sizes = [1, 1, 32, 1], strides = [1, 1, 1, 1]} : vector<3x3x32x1xf32> to vector<1x1x32x1xf32>
    %76 = vector.shape_cast %75 : vector<1x1x32x1xf32> to vector<32x1xf32>
    %77 = vector.broadcast %76 : vector<32x1xf32> to vector<32x512xf32>
    %78 = arith.mulf %65, %77 : vector<32x512xf32>
    %79 = arith.addf %74, %78 : vector<32x512xf32>
    %80 = vector.extract_strided_slice %48 {offsets = [1, 0, 0, 0], sizes = [1, 1, 32, 1], strides = [1, 1, 1, 1]} : vector<3x3x32x1xf32> to vector<1x1x32x1xf32>
    %81 = vector.shape_cast %80 : vector<1x1x32x1xf32> to vector<32x1xf32>
    %82 = vector.broadcast %81 : vector<32x1xf32> to vector<32x512xf32>
    %83 = arith.mulf %57, %82 : vector<32x512xf32>
    %84 = vector.extract_strided_slice %48 {offsets = [1, 1, 0, 0], sizes = [1, 1, 32, 1], strides = [1, 1, 1, 1]} : vector<3x3x32x1xf32> to vector<1x1x32x1xf32>
    %85 = vector.shape_cast %84 : vector<1x1x32x1xf32> to vector<32x1xf32>
    %86 = vector.broadcast %85 : vector<32x1xf32> to vector<32x512xf32>
    %87 = arith.mulf %47, %86 : vector<32x512xf32>
    %88 = arith.addf %83, %87 : vector<32x512xf32>
    %89 = vector.extract_strided_slice %48 {offsets = [1, 2, 0, 0], sizes = [1, 1, 32, 1], strides = [1, 1, 1, 1]} : vector<3x3x32x1xf32> to vector<1x1x32x1xf32>
    %90 = vector.shape_cast %89 : vector<1x1x32x1xf32> to vector<32x1xf32>
    %91 = vector.broadcast %90 : vector<32x1xf32> to vector<32x512xf32>
    %92 = arith.mulf %65, %91 : vector<32x512xf32>
    %93 = arith.addf %88, %92 : vector<32x512xf32>
    %94 = vector.extract_strided_slice %48 {offsets = [2, 0, 0, 0], sizes = [1, 1, 32, 1], strides = [1, 1, 1, 1]} : vector<3x3x32x1xf32> to vector<1x1x32x1xf32>
    %95 = vector.shape_cast %94 : vector<1x1x32x1xf32> to vector<32x1xf32>
    %96 = vector.broadcast %95 : vector<32x1xf32> to vector<32x512xf32>
    %97 = arith.mulf %57, %96 : vector<32x512xf32>
    %98 = vector.extract_strided_slice %48 {offsets = [2, 1, 0, 0], sizes = [1, 1, 32, 1], strides = [1, 1, 1, 1]} : vector<3x3x32x1xf32> to vector<1x1x32x1xf32>
    %99 = vector.shape_cast %98 : vector<1x1x32x1xf32> to vector<32x1xf32>
    %100 = vector.broadcast %99 : vector<32x1xf32> to vector<32x512xf32>
    %101 = arith.mulf %47, %100 : vector<32x512xf32>
    %102 = arith.addf %97, %101 : vector<32x512xf32>
    %103 = vector.extract_strided_slice %48 {offsets = [2, 2, 0, 0], sizes = [1, 1, 32, 1], strides = [1, 1, 1, 1]} : vector<3x3x32x1xf32> to vector<1x1x32x1xf32>
    %104 = vector.shape_cast %103 : vector<1x1x32x1xf32> to vector<32x1xf32>
    %105 = vector.broadcast %104 : vector<32x1xf32> to vector<32x512xf32>
    %106 = arith.mulf %65, %105 : vector<32x512xf32>
    %107 = arith.addf %102, %106 : vector<32x512xf32>
    %108 = vector.extract_strided_slice %79 {offsets = [0, 496], sizes = [32, 16], strides = [1, 1]} : vector<32x512xf32> to vector<32x16xf32>
    %109 = vector.extract_strided_slice %79 {offsets = [0, 0], sizes = [32, 496], strides = [1, 1]} : vector<32x512xf32> to vector<32x496xf32>
    %110 = tpu.concatenate %108, %109 in 1 : vector<32x16xf32>, vector<32x496xf32> -> vector<32x512xf32>
    %111 = vector.shape_cast %39 : vector<1x512xi1> to vector<1x512xi1>
    %112 = vector.broadcast %111 : vector<1x512xi1> to vector<32x512xi1>
    %113 = vector.shape_cast %49 : vector<1x1xf32> to vector<1x1xf32>
    %114 = vector.broadcast %113 : vector<1x1xf32> to vector<32x512xf32>
    %115 = arith.select %112, %110, %114 : vector<32x512xi1>, vector<32x512xf32>
    %116 = vector.extract_strided_slice %107 {offsets = [0, 16], sizes = [32, 496], strides = [1, 1]} : vector<32x512xf32> to vector<32x496xf32>
    %117 = vector.extract_strided_slice %107 {offsets = [0, 0], sizes = [32, 16], strides = [1, 1]} : vector<32x512xf32> to vector<32x16xf32>
    %118 = tpu.concatenate %116, %117 in 1 : vector<32x496xf32>, vector<32x16xf32> -> vector<32x512xf32>
    %119 = vector.shape_cast %41 : vector<1x512xi1> to vector<1x512xi1>
    %120 = vector.broadcast %119 : vector<1x512xi1> to vector<32x512xi1>
    %121 = vector.shape_cast %49 : vector<1x1xf32> to vector<1x1xf32>
    %122 = vector.broadcast %121 : vector<1x1xf32> to vector<32x512xf32>
    %123 = arith.select %120, %118, %122 : vector<32x512xi1>, vector<32x512xf32>
    %124 = arith.addf %115, %93 : vector<32x512xf32>
    %125 = arith.addf %124, %123 : vector<32x512xf32>
    %c0_19 = arith.constant 0 : index
    %c0_20 = arith.constant 0 : index
    %126 = vector.load %arg14[%c0_19, %c0_20] : memref<64x512xf32, #tpu.memory_space<vmem>>, vector<32x512xf32>
    tpu.vector_store %arg14[%c0_19, %c0_20], %125 {strides = array<i32>} : memref<64x512xf32, #tpu.memory_space<vmem>>, vector<32x512xf32>,
    %c0_21 = arith.constant 0 : index
    %c0_22 = arith.constant 0 : index
    %127 = vector.load %arg5[%c0_21, %c0_22] : memref<32x1xf32, #tpu.memory_space<vmem>>, vector<32x1xf32>
    %128 = vector.broadcast %127 : vector<32x1xf32> to vector<32x512xf32>
    %129 = arith.mulf %47, %128 : vector<32x512xf32>
    %c32 = arith.constant 32 : index
    %c0_23 = arith.constant 0 : index
    %130 = vector.load %arg14[%c32, %c0_23] : memref<64x512xf32, #tpu.memory_space<vmem>>, vector<32x512xf32>
    tpu.vector_store %arg14[%c32, %c0_23], %129 {strides = array<i32>} : memref<64x512xf32, #tpu.memory_space<vmem>>, vector<32x512xf32>,
    %c0_24 = arith.constant 0 : index
    %c0_25 = arith.constant 0 : index
    %131 = vector.load %arg6[%c0_24, %c0_25] : memref<32x64xbf16, #tpu.memory_space<vmem>>, vector<32x64xbf16>
    %c0_26 = arith.constant 0 : index
    %c0_27 = arith.constant 0 : index
    %132 = vector.load %arg14[%c0_26, %c0_27] : memref<64x512xf32, #tpu.memory_space<vmem>>, vector<64x512xf32>
    %133 = arith.truncf %132 : vector<64x512xf32> to vector<64x512xbf16>
    %cst_28 = arith.constant dense<0.000000e+00> : vector<32x512xf32>
    %134 = tpu.matmul %131, %133, %cst_28 {dimension_numbers = #tpu.dot_dimension_numbers<[1], [0], [0], [1], [0, 0, 1, 1], [], []>} : vector<32x64xbf16>, vector<64x512xbf16>, vector<32x512xf32> -> vector<32x512xf32>
    %c0_29 = arith.constant 0 : index
    %c0_30 = arith.constant 0 : index
    %c0_31 = arith.constant 0 : index
    %c0_32 = arith.constant 0 : index
    %c0_33 = arith.constant 0 : index
    %135 = vector.load %arg7[%c0_29, %c0_30, %c0_31, %c0_32, %c0_33] : memref<3x3x3x32x1xf32, #tpu.memory_space<vmem>>, vector<1x3x3x32x1xf32>
    %136 = vector.shape_cast %135 : vector<1x3x3x32x1xf32> to vector<3x3x32x1xf32>
    %cst_34 = arith.constant 0.000000e+00 : f32
    %137 = vector.broadcast %cst_34 : f32 to vector<1x1xf32>
    %138 = vector.extract_strided_slice %47 {offsets = [0, 511], sizes = [32, 1], strides = [1, 1]} : vector<32x512xf32> to vector<32x1xf32>
    %139 = vector.extract_strided_slice %47 {offsets = [0, 0], sizes = [32, 511], strides = [1, 1]} : vector<32x512xf32> to vector<32x511xf32>
    %140 = tpu.concatenate %138, %139 in 1 : vector<32x1xf32>, vector<32x511xf32> -> vector<32x512xf32>
    %141 = vector.shape_cast %35 : vector<1x512xi1> to vector<1x512xi1>
    %142 = vector.broadcast %141 : vector<1x512xi1> to vector<32x512xi1>
    %143 = vector.shape_cast %137 : vector<1x1xf32> to vector<1x1xf32>
    %144 = vector.broadcast %143 : vector<1x1xf32> to vector<32x512xf32>
    %145 = arith.select %142, %140, %144 : vector<32x512xi1>, vector<32x512xf32>
    %146 = vector.extract_strided_slice %47 {offsets = [0, 1], sizes = [32, 511], strides = [1, 1]} : vector<32x512xf32> to vector<32x511xf32>
    %147 = vector.extract_strided_slice %47 {offsets = [0, 0], sizes = [32, 1], strides = [1, 1]} : vector<32x512xf32> to vector<32x1xf32>
    %148 = tpu.concatenate %146, %147 in 1 : vector<32x511xf32>, vector<32x1xf32> -> vector<32x512xf32>
    %149 = vector.shape_cast %37 : vector<1x512xi1> to vector<1x512xi1>
    %150 = vector.broadcast %149 : vector<1x512xi1> to vector<32x512xi1>
    %151 = vector.shape_cast %137 : vector<1x1xf32> to vector<1x1xf32>
    %152 = vector.broadcast %151 : vector<1x1xf32> to vector<32x512xf32>
    %153 = arith.select %150, %148, %152 : vector<32x512xi1>, vector<32x512xf32>
    %154 = vector.extract_strided_slice %136 {offsets = [0, 0, 0, 0], sizes = [1, 1, 32, 1], strides = [1, 1, 1, 1]} : vector<3x3x32x1xf32> to vector<1x1x32x1xf32>
    %155 = vector.shape_cast %154 : vector<1x1x32x1xf32> to vector<32x1xf32>
    %156 = vector.broadcast %155 : vector<32x1xf32> to vector<32x512xf32>
    %157 = arith.mulf %145, %156 : vector<32x512xf32>
    %158 = vector.extract_strided_slice %136 {offsets = [0, 1, 0, 0], sizes = [1, 1, 32, 1], strides = [1, 1, 1, 1]} : vector<3x3x32x1xf32> to vector<1x1x32x1xf32>
    %159 = vector.shape_cast %158 : vector<1x1x32x1xf32> to vector<32x1xf32>
    %160 = vector.broadcast %159 : vector<32x1xf32> to vector<32x512xf32>
    %161 = arith.mulf %47, %160 : vector<32x512xf32>
    %162 = arith.addf %157, %161 : vector<32x512xf32>
    %163 = vector.extract_strided_slice %136 {offsets = [0, 2, 0, 0], sizes = [1, 1, 32, 1], strides = [1, 1, 1, 1]} : vector<3x3x32x1xf32> to vector<1x1x32x1xf32>
    %164 = vector.shape_cast %163 : vector<1x1x32x1xf32> to vector<32x1xf32>
    %165 = vector.broadcast %164 : vector<32x1xf32> to vector<32x512xf32>
    %166 = arith.mulf %153, %165 : vector<32x512xf32>
    %167 = arith.addf %162, %166 : vector<32x512xf32>
    %168 = vector.extract_strided_slice %136 {offsets = [1, 0, 0, 0], sizes = [1, 1, 32, 1], strides = [1, 1, 1, 1]} : vector<3x3x32x1xf32> to vector<1x1x32x1xf32>
    %169 = vector.shape_cast %168 : vector<1x1x32x1xf32> to vector<32x1xf32>
    %170 = vector.broadcast %169 : vector<32x1xf32> to vector<32x512xf32>
    %171 = arith.mulf %145, %170 : vector<32x512xf32>
    %172 = vector.extract_strided_slice %136 {offsets = [1, 1, 0, 0], sizes = [1, 1, 32, 1], strides = [1, 1, 1, 1]} : vector<3x3x32x1xf32> to vector<1x1x32x1xf32>
    %173 = vector.shape_cast %172 : vector<1x1x32x1xf32> to vector<32x1xf32>
    %174 = vector.broadcast %173 : vector<32x1xf32> to vector<32x512xf32>
    %175 = arith.mulf %47, %174 : vector<32x512xf32>
    %176 = arith.addf %171, %175 : vector<32x512xf32>
    %177 = vector.extract_strided_slice %136 {offsets = [1, 2, 0, 0], sizes = [1, 1, 32, 1], strides = [1, 1, 1, 1]} : vector<3x3x32x1xf32> to vector<1x1x32x1xf32>
    %178 = vector.shape_cast %177 : vector<1x1x32x1xf32> to vector<32x1xf32>
    %179 = vector.broadcast %178 : vector<32x1xf32> to vector<32x512xf32>
    %180 = arith.mulf %153, %179 : vector<32x512xf32>
    %181 = arith.addf %176, %180 : vector<32x512xf32>
    %182 = vector.extract_strided_slice %136 {offsets = [2, 0, 0, 0], sizes = [1, 1, 32, 1], strides = [1, 1, 1, 1]} : vector<3x3x32x1xf32> to vector<1x1x32x1xf32>
    %183 = vector.shape_cast %182 : vector<1x1x32x1xf32> to vector<32x1xf32>
    %184 = vector.broadcast %183 : vector<32x1xf32> to vector<32x512xf32>
    %185 = arith.mulf %145, %184 : vector<32x512xf32>
    %186 = vector.extract_strided_slice %136 {offsets = [2, 1, 0, 0], sizes = [1, 1, 32, 1], strides = [1, 1, 1, 1]} : vector<3x3x32x1xf32> to vector<1x1x32x1xf32>
    %187 = vector.shape_cast %186 : vector<1x1x32x1xf32> to vector<32x1xf32>
    %188 = vector.broadcast %187 : vector<32x1xf32> to vector<32x512xf32>
    %189 = arith.mulf %47, %188 : vector<32x512xf32>
    %190 = arith.addf %185, %189 : vector<32x512xf32>
    %191 = vector.extract_strided_slice %136 {offsets = [2, 2, 0, 0], sizes = [1, 1, 32, 1], strides = [1, 1, 1, 1]} : vector<3x3x32x1xf32> to vector<1x1x32x1xf32>
    %192 = vector.shape_cast %191 : vector<1x1x32x1xf32> to vector<32x1xf32>
    %193 = vector.broadcast %192 : vector<32x1xf32> to vector<32x512xf32>
    %194 = arith.mulf %153, %193 : vector<32x512xf32>
    %195 = arith.addf %190, %194 : vector<32x512xf32>
    %196 = vector.extract_strided_slice %167 {offsets = [0, 496], sizes = [32, 16], strides = [1, 1]} : vector<32x512xf32> to vector<32x16xf32>
    %197 = vector.extract_strided_slice %167 {offsets = [0, 0], sizes = [32, 496], strides = [1, 1]} : vector<32x512xf32> to vector<32x496xf32>
    %198 = tpu.concatenate %196, %197 in 1 : vector<32x16xf32>, vector<32x496xf32> -> vector<32x512xf32>
    %199 = vector.shape_cast %39 : vector<1x512xi1> to vector<1x512xi1>
    %200 = vector.broadcast %199 : vector<1x512xi1> to vector<32x512xi1>
    %201 = vector.shape_cast %137 : vector<1x1xf32> to vector<1x1xf32>
    %202 = vector.broadcast %201 : vector<1x1xf32> to vector<32x512xf32>
    %203 = arith.select %200, %198, %202 : vector<32x512xi1>, vector<32x512xf32>
    %204 = vector.extract_strided_slice %195 {offsets = [0, 16], sizes = [32, 496], strides = [1, 1]} : vector<32x512xf32> to vector<32x496xf32>
    %205 = vector.extract_strided_slice %195 {offsets = [0, 0], sizes = [32, 16], strides = [1, 1]} : vector<32x512xf32> to vector<32x16xf32>
    %206 = tpu.concatenate %204, %205 in 1 : vector<32x496xf32>, vector<32x16xf32> -> vector<32x512xf32>
    %207 = vector.shape_cast %41 : vector<1x512xi1> to vector<1x512xi1>
    %208 = vector.broadcast %207 : vector<1x512xi1> to vector<32x512xi1>
    %209 = vector.shape_cast %137 : vector<1x1xf32> to vector<1x1xf32>
    %210 = vector.broadcast %209 : vector<1x1xf32> to vector<32x512xf32>
    %211 = arith.select %208, %206, %210 : vector<32x512xi1>, vector<32x512xf32>
    %212 = arith.addf %203, %181 : vector<32x512xf32>
    %213 = arith.addf %212, %211 : vector<32x512xf32>
    %c0_35 = arith.constant 0 : index
    %c0_36 = arith.constant 0 : index
    %c0_37 = arith.constant 0 : index
    %214 = vector.load %arg8[%c0_35, %c0_36, %c0_37] : memref<3x32x1xf32, #tpu.memory_space<vmem>>, vector<1x32x1xf32>
    %215 = vector.shape_cast %214 : vector<1x32x1xf32> to vector<32x1xf32>
    %216 = vector.broadcast %215 : vector<32x1xf32> to vector<32x512xf32>
    %217 = arith.addf %213, %216 : vector<32x512xf32>
    %c0_38 = arith.constant 0 : index
    %c0_39 = arith.constant 0 : index
    %c0_40 = arith.constant 0 : index
    %218 = vector.load %arg9[%c0_38, %c0_39, %c0_40] : memref<3x32x32xbf16, #tpu.memory_space<vmem>>, vector<1x32x32xbf16>
    %219 = vector.shape_cast %218 : vector<1x32x32xbf16> to vector<32x32xbf16>
    %220 = arith.truncf %217 : vector<32x512xf32> to vector<32x512xbf16>
    %cst_41 = arith.constant dense<0.000000e+00> : vector<32x512xf32>
    %221 = tpu.matmul %219, %220, %cst_41 {dimension_numbers = #tpu.dot_dimension_numbers<[1], [0], [0], [1], [0, 0, 1, 1], [], []>} : vector<32x32xbf16>, vector<32x512xbf16>, vector<32x512xf32> -> vector<32x512xf32>
    %cst_42 = arith.constant 0.000000e+00 : f32
    %cst_43 = arith.constant 6.000000e+00 : f32
    %222 = vector.broadcast %cst_42 : f32 to vector<32x512xf32>
    %223 = arith.maximumf %222, %221 : vector<32x512xf32>
    %224 = vector.broadcast %cst_43 : f32 to vector<32x512xf32>
    %225 = arith.minimumf %224, %223 : vector<32x512xf32>
    %c1 = arith.constant 1 : index
    %c0_44 = arith.constant 0 : index
    %c0_45 = arith.constant 0 : index
    %c0_46 = arith.constant 0 : index
    %c0_47 = arith.constant 0 : index
    %226 = vector.load %arg7[%c1, %c0_44, %c0_45, %c0_46, %c0_47] : memref<3x3x3x32x1xf32, #tpu.memory_space<vmem>>, vector<1x3x3x32x1xf32>
    %227 = vector.shape_cast %226 : vector<1x3x3x32x1xf32> to vector<3x3x32x1xf32>
    %cst_48 = arith.constant 0.000000e+00 : f32
    %228 = vector.broadcast %cst_48 : f32 to vector<1x1xf32>
    %229 = vector.extract_strided_slice %225 {offsets = [0, 511], sizes = [32, 1], strides = [1, 1]} : vector<32x512xf32> to vector<32x1xf32>
    %230 = vector.extract_strided_slice %225 {offsets = [0, 0], sizes = [32, 511], strides = [1, 1]} : vector<32x512xf32> to vector<32x511xf32>
    %231 = tpu.concatenate %229, %230 in 1 : vector<32x1xf32>, vector<32x511xf32> -> vector<32x512xf32>
    %232 = vector.shape_cast %35 : vector<1x512xi1> to vector<1x512xi1>
    %233 = vector.broadcast %232 : vector<1x512xi1> to vector<32x512xi1>
    %234 = vector.shape_cast %228 : vector<1x1xf32> to vector<1x1xf32>
    %235 = vector.broadcast %234 : vector<1x1xf32> to vector<32x512xf32>
    %236 = arith.select %233, %231, %235 : vector<32x512xi1>, vector<32x512xf32>
    %237 = vector.extract_strided_slice %225 {offsets = [0, 1], sizes = [32, 511], strides = [1, 1]} : vector<32x512xf32> to vector<32x511xf32>
    %238 = vector.extract_strided_slice %225 {offsets = [0, 0], sizes = [32, 1], strides = [1, 1]} : vector<32x512xf32> to vector<32x1xf32>
    %239 = tpu.concatenate %237, %238 in 1 : vector<32x511xf32>, vector<32x1xf32> -> vector<32x512xf32>
    %240 = vector.shape_cast %37 : vector<1x512xi1> to vector<1x512xi1>
    %241 = vector.broadcast %240 : vector<1x512xi1> to vector<32x512xi1>
    %242 = vector.shape_cast %228 : vector<1x1xf32> to vector<1x1xf32>
    %243 = vector.broadcast %242 : vector<1x1xf32> to vector<32x512xf32>
    %244 = arith.select %241, %239, %243 : vector<32x512xi1>, vector<32x512xf32>
    %245 = vector.extract_strided_slice %227 {offsets = [0, 0, 0, 0], sizes = [1, 1, 32, 1], strides = [1, 1, 1, 1]} : vector<3x3x32x1xf32> to vector<1x1x32x1xf32>
    %246 = vector.shape_cast %245 : vector<1x1x32x1xf32> to vector<32x1xf32>
    %247 = vector.broadcast %246 : vector<32x1xf32> to vector<32x512xf32>
    %248 = arith.mulf %236, %247 : vector<32x512xf32>
    %249 = vector.extract_strided_slice %227 {offsets = [0, 1, 0, 0], sizes = [1, 1, 32, 1], strides = [1, 1, 1, 1]} : vector<3x3x32x1xf32> to vector<1x1x32x1xf32>
    %250 = vector.shape_cast %249 : vector<1x1x32x1xf32> to vector<32x1xf32>
    %251 = vector.broadcast %250 : vector<32x1xf32> to vector<32x512xf32>
    %252 = arith.mulf %225, %251 : vector<32x512xf32>
    %253 = arith.addf %248, %252 : vector<32x512xf32>
    %254 = vector.extract_strided_slice %227 {offsets = [0, 2, 0, 0], sizes = [1, 1, 32, 1], strides = [1, 1, 1, 1]} : vector<3x3x32x1xf32> to vector<1x1x32x1xf32>
    %255 = vector.shape_cast %254 : vector<1x1x32x1xf32> to vector<32x1xf32>
    %256 = vector.broadcast %255 : vector<32x1xf32> to vector<32x512xf32>
    %257 = arith.mulf %244, %256 : vector<32x512xf32>
    %258 = arith.addf %253, %257 : vector<32x512xf32>
    %259 = vector.extract_strided_slice %227 {offsets = [1, 0, 0, 0], sizes = [1, 1, 32, 1], strides = [1, 1, 1, 1]} : vector<3x3x32x1xf32> to vector<1x1x32x1xf32>
    %260 = vector.shape_cast %259 : vector<1x1x32x1xf32> to vector<32x1xf32>
    %261 = vector.broadcast %260 : vector<32x1xf32> to vector<32x512xf32>
    %262 = arith.mulf %236, %261 : vector<32x512xf32>
    %263 = vector.extract_strided_slice %227 {offsets = [1, 1, 0, 0], sizes = [1, 1, 32, 1], strides = [1, 1, 1, 1]} : vector<3x3x32x1xf32> to vector<1x1x32x1xf32>
    %264 = vector.shape_cast %263 : vector<1x1x32x1xf32> to vector<32x1xf32>
    %265 = vector.broadcast %264 : vector<32x1xf32> to vector<32x512xf32>
    %266 = arith.mulf %225, %265 : vector<32x512xf32>
    %267 = arith.addf %262, %266 : vector<32x512xf32>
    %268 = vector.extract_strided_slice %227 {offsets = [1, 2, 0, 0], sizes = [1, 1, 32, 1], strides = [1, 1, 1, 1]} : vector<3x3x32x1xf32> to vector<1x1x32x1xf32>
    %269 = vector.shape_cast %268 : vector<1x1x32x1xf32> to vector<32x1xf32>
    %270 = vector.broadcast %269 : vector<32x1xf32> to vector<32x512xf32>
    %271 = arith.mulf %244, %270 : vector<32x512xf32>
    %272 = arith.addf %267, %271 : vector<32x512xf32>
    %273 = vector.extract_strided_slice %227 {offsets = [2, 0, 0, 0], sizes = [1, 1, 32, 1], strides = [1, 1, 1, 1]} : vector<3x3x32x1xf32> to vector<1x1x32x1xf32>
    %274 = vector.shape_cast %273 : vector<1x1x32x1xf32> to vector<32x1xf32>
    %275 = vector.broadcast %274 : vector<32x1xf32> to vector<32x512xf32>
    %276 = arith.mulf %236, %275 : vector<32x512xf32>
    %277 = vector.extract_strided_slice %227 {offsets = [2, 1, 0, 0], sizes = [1, 1, 32, 1], strides = [1, 1, 1, 1]} : vector<3x3x32x1xf32> to vector<1x1x32x1xf32>
    %278 = vector.shape_cast %277 : vector<1x1x32x1xf32> to vector<32x1xf32>
    %279 = vector.broadcast %278 : vector<32x1xf32> to vector<32x512xf32>
    %280 = arith.mulf %225, %279 : vector<32x512xf32>
    %281 = arith.addf %276, %280 : vector<32x512xf32>
    %282 = vector.extract_strided_slice %227 {offsets = [2, 2, 0, 0], sizes = [1, 1, 32, 1], strides = [1, 1, 1, 1]} : vector<3x3x32x1xf32> to vector<1x1x32x1xf32>
    %283 = vector.shape_cast %282 : vector<1x1x32x1xf32> to vector<32x1xf32>
    %284 = vector.broadcast %283 : vector<32x1xf32> to vector<32x512xf32>
    %285 = arith.mulf %244, %284 : vector<32x512xf32>
    %286 = arith.addf %281, %285 : vector<32x512xf32>
    %287 = vector.extract_strided_slice %258 {offsets = [0, 496], sizes = [32, 16], strides = [1, 1]} : vector<32x512xf32> to vector<32x16xf32>
    %288 = vector.extract_strided_slice %258 {offsets = [0, 0], sizes = [32, 496], strides = [1, 1]} : vector<32x512xf32> to vector<32x496xf32>
    %289 = tpu.concatenate %287, %288 in 1 : vector<32x16xf32>, vector<32x496xf32> -> vector<32x512xf32>
    %290 = vector.shape_cast %39 : vector<1x512xi1> to vector<1x512xi1>
    %291 = vector.broadcast %290 : vector<1x512xi1> to vector<32x512xi1>
    %292 = vector.shape_cast %228 : vector<1x1xf32> to vector<1x1xf32>
    %293 = vector.broadcast %292 : vector<1x1xf32> to vector<32x512xf32>
    %294 = arith.select %291, %289, %293 : vector<32x512xi1>, vector<32x512xf32>
    %295 = vector.extract_strided_slice %286 {offsets = [0, 16], sizes = [32, 496], strides = [1, 1]} : vector<32x512xf32> to vector<32x496xf32>
    %296 = vector.extract_strided_slice %286 {offsets = [0, 0], sizes = [32, 16], strides = [1, 1]} : vector<32x512xf32> to vector<32x16xf32>
    %297 = tpu.concatenate %295, %296 in 1 : vector<32x496xf32>, vector<32x16xf32> -> vector<32x512xf32>
    %298 = vector.shape_cast %41 : vector<1x512xi1> to vector<1x512xi1>
    %299 = vector.broadcast %298 : vector<1x512xi1> to vector<32x512xi1>
    %300 = vector.shape_cast %228 : vector<1x1xf32> to vector<1x1xf32>
    %301 = vector.broadcast %300 : vector<1x1xf32> to vector<32x512xf32>
    %302 = arith.select %299, %297, %301 : vector<32x512xi1>, vector<32x512xf32>
    %303 = arith.addf %294, %272 : vector<32x512xf32>
    %304 = arith.addf %303, %302 : vector<32x512xf32>
    %c1_49 = arith.constant 1 : index
    %c0_50 = arith.constant 0 : index
    %c0_51 = arith.constant 0 : index
    %305 = vector.load %arg8[%c1_49, %c0_50, %c0_51] : memref<3x32x1xf32, #tpu.memory_space<vmem>>, vector<1x32x1xf32>
    %306 = vector.shape_cast %305 : vector<1x32x1xf32> to vector<32x1xf32>
    %307 = vector.broadcast %306 : vector<32x1xf32> to vector<32x512xf32>
    %308 = arith.addf %304, %307 : vector<32x512xf32>
    %c1_52 = arith.constant 1 : index
    %c0_53 = arith.constant 0 : index
    %c0_54 = arith.constant 0 : index
    %309 = vector.load %arg9[%c1_52, %c0_53, %c0_54] : memref<3x32x32xbf16, #tpu.memory_space<vmem>>, vector<1x32x32xbf16>
    %310 = vector.shape_cast %309 : vector<1x32x32xbf16> to vector<32x32xbf16>
    %311 = arith.truncf %308 : vector<32x512xf32> to vector<32x512xbf16>
    %cst_55 = arith.constant dense<0.000000e+00> : vector<32x512xf32>
    %312 = tpu.matmul %310, %311, %cst_55 {dimension_numbers = #tpu.dot_dimension_numbers<[1], [0], [0], [1], [0, 0, 1, 1], [], []>} : vector<32x32xbf16>, vector<32x512xbf16>, vector<32x512xf32> -> vector<32x512xf32>
    %cst_56 = arith.constant 0.000000e+00 : f32
    %cst_57 = arith.constant 6.000000e+00 : f32
    %313 = vector.broadcast %cst_56 : f32 to vector<32x512xf32>
    %314 = arith.maximumf %313, %312 : vector<32x512xf32>
    %315 = vector.broadcast %cst_57 : f32 to vector<32x512xf32>
    %316 = arith.minimumf %315, %314 : vector<32x512xf32>
    %c2 = arith.constant 2 : index
    %c0_58 = arith.constant 0 : index
    %c0_59 = arith.constant 0 : index
    %c0_60 = arith.constant 0 : index
    %c0_61 = arith.constant 0 : index
    %317 = vector.load %arg7[%c2, %c0_58, %c0_59, %c0_60, %c0_61] : memref<3x3x3x32x1xf32, #tpu.memory_space<vmem>>, vector<1x3x3x32x1xf32>
    %318 = vector.shape_cast %317 : vector<1x3x3x32x1xf32> to vector<3x3x32x1xf32>
    %cst_62 = arith.constant 0.000000e+00 : f32
    %319 = vector.broadcast %cst_62 : f32 to vector<1x1xf32>
    %320 = vector.extract_strided_slice %316 {offsets = [0, 511], sizes = [32, 1], strides = [1, 1]} : vector<32x512xf32> to vector<32x1xf32>
    %321 = vector.extract_strided_slice %316 {offsets = [0, 0], sizes = [32, 511], strides = [1, 1]} : vector<32x512xf32> to vector<32x511xf32>
    %322 = tpu.concatenate %320, %321 in 1 : vector<32x1xf32>, vector<32x511xf32> -> vector<32x512xf32>
    %323 = vector.shape_cast %35 : vector<1x512xi1> to vector<1x512xi1>
    %324 = vector.broadcast %323 : vector<1x512xi1> to vector<32x512xi1>
    %325 = vector.shape_cast %319 : vector<1x1xf32> to vector<1x1xf32>
    %326 = vector.broadcast %325 : vector<1x1xf32> to vector<32x512xf32>
    %327 = arith.select %324, %322, %326 : vector<32x512xi1>, vector<32x512xf32>
    %328 = vector.extract_strided_slice %316 {offsets = [0, 1], sizes = [32, 511], strides = [1, 1]} : vector<32x512xf32> to vector<32x511xf32>
    %329 = vector.extract_strided_slice %316 {offsets = [0, 0], sizes = [32, 1], strides = [1, 1]} : vector<32x512xf32> to vector<32x1xf32>
    %330 = tpu.concatenate %328, %329 in 1 : vector<32x511xf32>, vector<32x1xf32> -> vector<32x512xf32>
    %331 = vector.shape_cast %37 : vector<1x512xi1> to vector<1x512xi1>
    %332 = vector.broadcast %331 : vector<1x512xi1> to vector<32x512xi1>
    %333 = vector.shape_cast %319 : vector<1x1xf32> to vector<1x1xf32>
    %334 = vector.broadcast %333 : vector<1x1xf32> to vector<32x512xf32>
    %335 = arith.select %332, %330, %334 : vector<32x512xi1>, vector<32x512xf32>
    %336 = vector.extract_strided_slice %318 {offsets = [0, 0, 0, 0], sizes = [1, 1, 32, 1], strides = [1, 1, 1, 1]} : vector<3x3x32x1xf32> to vector<1x1x32x1xf32>
    %337 = vector.shape_cast %336 : vector<1x1x32x1xf32> to vector<32x1xf32>
    %338 = vector.broadcast %337 : vector<32x1xf32> to vector<32x512xf32>
    %339 = arith.mulf %327, %338 : vector<32x512xf32>
    %340 = vector.extract_strided_slice %318 {offsets = [0, 1, 0, 0], sizes = [1, 1, 32, 1], strides = [1, 1, 1, 1]} : vector<3x3x32x1xf32> to vector<1x1x32x1xf32>
    %341 = vector.shape_cast %340 : vector<1x1x32x1xf32> to vector<32x1xf32>
    %342 = vector.broadcast %341 : vector<32x1xf32> to vector<32x512xf32>
    %343 = arith.mulf %316, %342 : vector<32x512xf32>
    %344 = arith.addf %339, %343 : vector<32x512xf32>
    %345 = vector.extract_strided_slice %318 {offsets = [0, 2, 0, 0], sizes = [1, 1, 32, 1], strides = [1, 1, 1, 1]} : vector<3x3x32x1xf32> to vector<1x1x32x1xf32>
    %346 = vector.shape_cast %345 : vector<1x1x32x1xf32> to vector<32x1xf32>
    %347 = vector.broadcast %346 : vector<32x1xf32> to vector<32x512xf32>
    %348 = arith.mulf %335, %347 : vector<32x512xf32>
    %349 = arith.addf %344, %348 : vector<32x512xf32>
    %350 = vector.extract_strided_slice %318 {offsets = [1, 0, 0, 0], sizes = [1, 1, 32, 1], strides = [1, 1, 1, 1]} : vector<3x3x32x1xf32> to vector<1x1x32x1xf32>
    %351 = vector.shape_cast %350 : vector<1x1x32x1xf32> to vector<32x1xf32>
    %352 = vector.broadcast %351 : vector<32x1xf32> to vector<32x512xf32>
    %353 = arith.mulf %327, %352 : vector<32x512xf32>
    %354 = vector.extract_strided_slice %318 {offsets = [1, 1, 0, 0], sizes = [1, 1, 32, 1], strides = [1, 1, 1, 1]} : vector<3x3x32x1xf32> to vector<1x1x32x1xf32>
    %355 = vector.shape_cast %354 : vector<1x1x32x1xf32> to vector<32x1xf32>
    %356 = vector.broadcast %355 : vector<32x1xf32> to vector<32x512xf32>
    %357 = arith.mulf %316, %356 : vector<32x512xf32>
    %358 = arith.addf %353, %357 : vector<32x512xf32>
    %359 = vector.extract_strided_slice %318 {offsets = [1, 2, 0, 0], sizes = [1, 1, 32, 1], strides = [1, 1, 1, 1]} : vector<3x3x32x1xf32> to vector<1x1x32x1xf32>
    %360 = vector.shape_cast %359 : vector<1x1x32x1xf32> to vector<32x1xf32>
    %361 = vector.broadcast %360 : vector<32x1xf32> to vector<32x512xf32>
    %362 = arith.mulf %335, %361 : vector<32x512xf32>
    %363 = arith.addf %358, %362 : vector<32x512xf32>
    %364 = vector.extract_strided_slice %318 {offsets = [2, 0, 0, 0], sizes = [1, 1, 32, 1], strides = [1, 1, 1, 1]} : vector<3x3x32x1xf32> to vector<1x1x32x1xf32>
    %365 = vector.shape_cast %364 : vector<1x1x32x1xf32> to vector<32x1xf32>
    %366 = vector.broadcast %365 : vector<32x1xf32> to vector<32x512xf32>
    %367 = arith.mulf %327, %366 : vector<32x512xf32>
    %368 = vector.extract_strided_slice %318 {offsets = [2, 1, 0, 0], sizes = [1, 1, 32, 1], strides = [1, 1, 1, 1]} : vector<3x3x32x1xf32> to vector<1x1x32x1xf32>
    %369 = vector.shape_cast %368 : vector<1x1x32x1xf32> to vector<32x1xf32>
    %370 = vector.broadcast %369 : vector<32x1xf32> to vector<32x512xf32>
    %371 = arith.mulf %316, %370 : vector<32x512xf32>
    %372 = arith.addf %367, %371 : vector<32x512xf32>
    %373 = vector.extract_strided_slice %318 {offsets = [2, 2, 0, 0], sizes = [1, 1, 32, 1], strides = [1, 1, 1, 1]} : vector<3x3x32x1xf32> to vector<1x1x32x1xf32>
    %374 = vector.shape_cast %373 : vector<1x1x32x1xf32> to vector<32x1xf32>
    %375 = vector.broadcast %374 : vector<32x1xf32> to vector<32x512xf32>
    %376 = arith.mulf %335, %375 : vector<32x512xf32>
    %377 = arith.addf %372, %376 : vector<32x512xf32>
    %378 = vector.extract_strided_slice %349 {offsets = [0, 496], sizes = [32, 16], strides = [1, 1]} : vector<32x512xf32> to vector<32x16xf32>
    %379 = vector.extract_strided_slice %349 {offsets = [0, 0], sizes = [32, 496], strides = [1, 1]} : vector<32x512xf32> to vector<32x496xf32>
    %380 = tpu.concatenate %378, %379 in 1 : vector<32x16xf32>, vector<32x496xf32> -> vector<32x512xf32>
    %381 = vector.shape_cast %39 : vector<1x512xi1> to vector<1x512xi1>
    %382 = vector.broadcast %381 : vector<1x512xi1> to vector<32x512xi1>
    %383 = vector.shape_cast %319 : vector<1x1xf32> to vector<1x1xf32>
    %384 = vector.broadcast %383 : vector<1x1xf32> to vector<32x512xf32>
    %385 = arith.select %382, %380, %384 : vector<32x512xi1>, vector<32x512xf32>
    %386 = vector.extract_strided_slice %377 {offsets = [0, 16], sizes = [32, 496], strides = [1, 1]} : vector<32x512xf32> to vector<32x496xf32>
    %387 = vector.extract_strided_slice %377 {offsets = [0, 0], sizes = [32, 16], strides = [1, 1]} : vector<32x512xf32> to vector<32x16xf32>
    %388 = tpu.concatenate %386, %387 in 1 : vector<32x496xf32>, vector<32x16xf32> -> vector<32x512xf32>
    %389 = vector.shape_cast %41 : vector<1x512xi1> to vector<1x512xi1>
    %390 = vector.broadcast %389 : vector<1x512xi1> to vector<32x512xi1>
    %391 = vector.shape_cast %319 : vector<1x1xf32> to vector<1x1xf32>
    %392 = vector.broadcast %391 : vector<1x1xf32> to vector<32x512xf32>
    %393 = arith.select %390, %388, %392 : vector<32x512xi1>, vector<32x512xf32>
    %394 = arith.addf %385, %363 : vector<32x512xf32>
    %395 = arith.addf %394, %393 : vector<32x512xf32>
    %c2_63 = arith.constant 2 : index
    %c0_64 = arith.constant 0 : index
    %c0_65 = arith.constant 0 : index
    %396 = vector.load %arg8[%c2_63, %c0_64, %c0_65] : memref<3x32x1xf32, #tpu.memory_space<vmem>>, vector<1x32x1xf32>
    %397 = vector.shape_cast %396 : vector<1x32x1xf32> to vector<32x1xf32>
    %398 = vector.broadcast %397 : vector<32x1xf32> to vector<32x512xf32>
    %399 = arith.addf %395, %398 : vector<32x512xf32>
    %c2_66 = arith.constant 2 : index
    %c0_67 = arith.constant 0 : index
    %c0_68 = arith.constant 0 : index
    %400 = vector.load %arg9[%c2_66, %c0_67, %c0_68] : memref<3x32x32xbf16, #tpu.memory_space<vmem>>, vector<1x32x32xbf16>
    %401 = vector.shape_cast %400 : vector<1x32x32xbf16> to vector<32x32xbf16>
    %402 = arith.truncf %399 : vector<32x512xf32> to vector<32x512xbf16>
    %cst_69 = arith.constant dense<0.000000e+00> : vector<32x512xf32>
    %403 = tpu.matmul %401, %402, %cst_69 {dimension_numbers = #tpu.dot_dimension_numbers<[1], [0], [0], [1], [0, 0, 1, 1], [], []>} : vector<32x32xbf16>, vector<32x512xbf16>, vector<32x512xf32> -> vector<32x512xf32>
    %cst_70 = arith.constant 0.000000e+00 : f32
    %cst_71 = arith.constant 6.000000e+00 : f32
    %404 = vector.broadcast %cst_70 : f32 to vector<32x512xf32>
    %405 = arith.maximumf %404, %403 : vector<32x512xf32>
    %406 = vector.broadcast %cst_71 : f32 to vector<32x512xf32>
    %407 = arith.minimumf %406, %405 : vector<32x512xf32>
    %408 = arith.addf %407, %134 : vector<32x512xf32>
    %c0_72 = arith.constant 0 : index
    %c0_73 = arith.constant 0 : index
    %c0_74 = arith.constant 0 : index
    %c0_75 = arith.constant 0 : index
    %409 = vector.load %arg10[%c0_72, %c0_73, %c0_74, %c0_75] : memref<3x3x32x1xf32, #tpu.memory_space<vmem>>, vector<3x3x32x1xf32>
    %cst_76 = arith.constant 0.000000e+00 : f32
    %410 = vector.broadcast %cst_76 : f32 to vector<1x1xf32>
    %411 = vector.extract_strided_slice %408 {offsets = [0, 511], sizes = [32, 1], strides = [1, 1]} : vector<32x512xf32> to vector<32x1xf32>
    %412 = vector.extract_strided_slice %408 {offsets = [0, 0], sizes = [32, 511], strides = [1, 1]} : vector<32x512xf32> to vector<32x511xf32>
    %413 = tpu.concatenate %411, %412 in 1 : vector<32x1xf32>, vector<32x511xf32> -> vector<32x512xf32>
    %414 = vector.shape_cast %35 : vector<1x512xi1> to vector<1x512xi1>
    %415 = vector.broadcast %414 : vector<1x512xi1> to vector<32x512xi1>
    %416 = vector.shape_cast %410 : vector<1x1xf32> to vector<1x1xf32>
    %417 = vector.broadcast %416 : vector<1x1xf32> to vector<32x512xf32>
    %418 = arith.select %415, %413, %417 : vector<32x512xi1>, vector<32x512xf32>
    %419 = vector.extract_strided_slice %408 {offsets = [0, 1], sizes = [32, 511], strides = [1, 1]} : vector<32x512xf32> to vector<32x511xf32>
    %420 = vector.extract_strided_slice %408 {offsets = [0, 0], sizes = [32, 1], strides = [1, 1]} : vector<32x512xf32> to vector<32x1xf32>
    %421 = tpu.concatenate %419, %420 in 1 : vector<32x511xf32>, vector<32x1xf32> -> vector<32x512xf32>
    %422 = vector.shape_cast %37 : vector<1x512xi1> to vector<1x512xi1>
    %423 = vector.broadcast %422 : vector<1x512xi1> to vector<32x512xi1>
    %424 = vector.shape_cast %410 : vector<1x1xf32> to vector<1x1xf32>
    %425 = vector.broadcast %424 : vector<1x1xf32> to vector<32x512xf32>
    %426 = arith.select %423, %421, %425 : vector<32x512xi1>, vector<32x512xf32>
    %427 = vector.extract_strided_slice %409 {offsets = [0, 0, 0, 0], sizes = [1, 1, 32, 1], strides = [1, 1, 1, 1]} : vector<3x3x32x1xf32> to vector<1x1x32x1xf32>
    %428 = vector.shape_cast %427 : vector<1x1x32x1xf32> to vector<32x1xf32>
    %429 = vector.broadcast %428 : vector<32x1xf32> to vector<32x512xf32>
    %430 = arith.mulf %418, %429 : vector<32x512xf32>
    %431 = vector.extract_strided_slice %409 {offsets = [0, 1, 0, 0], sizes = [1, 1, 32, 1], strides = [1, 1, 1, 1]} : vector<3x3x32x1xf32> to vector<1x1x32x1xf32>
    %432 = vector.shape_cast %431 : vector<1x1x32x1xf32> to vector<32x1xf32>
    %433 = vector.broadcast %432 : vector<32x1xf32> to vector<32x512xf32>
    %434 = arith.mulf %408, %433 : vector<32x512xf32>
    %435 = arith.addf %430, %434 : vector<32x512xf32>
    %436 = vector.extract_strided_slice %409 {offsets = [0, 2, 0, 0], sizes = [1, 1, 32, 1], strides = [1, 1, 1, 1]} : vector<3x3x32x1xf32> to vector<1x1x32x1xf32>
    %437 = vector.shape_cast %436 : vector<1x1x32x1xf32> to vector<32x1xf32>
    %438 = vector.broadcast %437 : vector<32x1xf32> to vector<32x512xf32>
    %439 = arith.mulf %426, %438 : vector<32x512xf32>
    %440 = arith.addf %435, %439 : vector<32x512xf32>
    %441 = vector.extract_strided_slice %409 {offsets = [1, 0, 0, 0], sizes = [1, 1, 32, 1], strides = [1, 1, 1, 1]} : vector<3x3x32x1xf32> to vector<1x1x32x1xf32>
    %442 = vector.shape_cast %441 : vector<1x1x32x1xf32> to vector<32x1xf32>
    %443 = vector.broadcast %442 : vector<32x1xf32> to vector<32x512xf32>
    %444 = arith.mulf %418, %443 : vector<32x512xf32>
    %445 = vector.extract_strided_slice %409 {offsets = [1, 1, 0, 0], sizes = [1, 1, 32, 1], strides = [1, 1, 1, 1]} : vector<3x3x32x1xf32> to vector<1x1x32x1xf32>
    %446 = vector.shape_cast %445 : vector<1x1x32x1xf32> to vector<32x1xf32>
    %447 = vector.broadcast %446 : vector<32x1xf32> to vector<32x512xf32>
    %448 = arith.mulf %408, %447 : vector<32x512xf32>
    %449 = arith.addf %444, %448 : vector<32x512xf32>
    %450 = vector.extract_strided_slice %409 {offsets = [1, 2, 0, 0], sizes = [1, 1, 32, 1], strides = [1, 1, 1, 1]} : vector<3x3x32x1xf32> to vector<1x1x32x1xf32>
    %451 = vector.shape_cast %450 : vector<1x1x32x1xf32> to vector<32x1xf32>
    %452 = vector.broadcast %451 : vector<32x1xf32> to vector<32x512xf32>
    %453 = arith.mulf %426, %452 : vector<32x512xf32>
    %454 = arith.addf %449, %453 : vector<32x512xf32>
    %455 = vector.extract_strided_slice %409 {offsets = [2, 0, 0, 0], sizes = [1, 1, 32, 1], strides = [1, 1, 1, 1]} : vector<3x3x32x1xf32> to vector<1x1x32x1xf32>
    %456 = vector.shape_cast %455 : vector<1x1x32x1xf32> to vector<32x1xf32>
    %457 = vector.broadcast %456 : vector<32x1xf32> to vector<32x512xf32>
    %458 = arith.mulf %418, %457 : vector<32x512xf32>
    %459 = vector.extract_strided_slice %409 {offsets = [2, 1, 0, 0], sizes = [1, 1, 32, 1], strides = [1, 1, 1, 1]} : vector<3x3x32x1xf32> to vector<1x1x32x1xf32>
    %460 = vector.shape_cast %459 : vector<1x1x32x1xf32> to vector<32x1xf32>
    %461 = vector.broadcast %460 : vector<32x1xf32> to vector<32x512xf32>
    %462 = arith.mulf %408, %461 : vector<32x512xf32>
    %463 = arith.addf %458, %462 : vector<32x512xf32>
    %464 = vector.extract_strided_slice %409 {offsets = [2, 2, 0, 0], sizes = [1, 1, 32, 1], strides = [1, 1, 1, 1]} : vector<3x3x32x1xf32> to vector<1x1x32x1xf32>
    %465 = vector.shape_cast %464 : vector<1x1x32x1xf32> to vector<32x1xf32>
    %466 = vector.broadcast %465 : vector<32x1xf32> to vector<32x512xf32>
    %467 = arith.mulf %426, %466 : vector<32x512xf32>
    %468 = arith.addf %463, %467 : vector<32x512xf32>
    %469 = vector.extract_strided_slice %440 {offsets = [0, 496], sizes = [32, 16], strides = [1, 1]} : vector<32x512xf32> to vector<32x16xf32>
    %470 = vector.extract_strided_slice %440 {offsets = [0, 0], sizes = [32, 496], strides = [1, 1]} : vector<32x512xf32> to vector<32x496xf32>
    %471 = tpu.concatenate %469, %470 in 1 : vector<32x16xf32>, vector<32x496xf32> -> vector<32x512xf32>
    %472 = vector.shape_cast %39 : vector<1x512xi1> to vector<1x512xi1>
    %473 = vector.broadcast %472 : vector<1x512xi1> to vector<32x512xi1>
    %474 = vector.shape_cast %410 : vector<1x1xf32> to vector<1x1xf32>
    %475 = vector.broadcast %474 : vector<1x1xf32> to vector<32x512xf32>
    %476 = arith.select %473, %471, %475 : vector<32x512xi1>, vector<32x512xf32>
    %477 = vector.extract_strided_slice %468 {offsets = [0, 16], sizes = [32, 496], strides = [1, 1]} : vector<32x512xf32> to vector<32x496xf32>
    %478 = vector.extract_strided_slice %468 {offsets = [0, 0], sizes = [32, 16], strides = [1, 1]} : vector<32x512xf32> to vector<32x16xf32>
    %479 = tpu.concatenate %477, %478 in 1 : vector<32x496xf32>, vector<32x16xf32> -> vector<32x512xf32>
    %480 = vector.shape_cast %41 : vector<1x512xi1> to vector<1x512xi1>
    %481 = vector.broadcast %480 : vector<1x512xi1> to vector<32x512xi1>
    %482 = vector.shape_cast %410 : vector<1x1xf32> to vector<1x1xf32>
    %483 = vector.broadcast %482 : vector<1x1xf32> to vector<32x512xf32>
    %484 = arith.select %481, %479, %483 : vector<32x512xi1>, vector<32x512xf32>
    %485 = arith.addf %476, %454 : vector<32x512xf32>
    %486 = arith.addf %485, %484 : vector<32x512xf32>
    %c0_77 = arith.constant 0 : index
    %c0_78 = arith.constant 0 : index
    %487 = vector.load %arg11[%c0_77, %c0_78] : memref<32x1xf32, #tpu.memory_space<vmem>>, vector<32x1xf32>
    %488 = vector.broadcast %487 : vector<32x1xf32> to vector<32x512xf32>
    %489 = arith.addf %486, %488 : vector<32x512xf32>
    %c0_79 = arith.constant 0 : index
    %c0_80 = arith.constant 0 : index
    %490 = vector.load %arg12[%c0_79, %c0_80] : memref<32x32xbf16, #tpu.memory_space<vmem>>, vector<32x32xbf16>
    %491 = arith.truncf %489 : vector<32x512xf32> to vector<32x512xbf16>
    %cst_81 = arith.constant dense<0.000000e+00> : vector<32x512xf32>
    %492 = tpu.matmul %490, %491, %cst_81 {dimension_numbers = #tpu.dot_dimension_numbers<[1], [0], [0], [1], [0, 0, 1, 1], [], []>} : vector<32x32xbf16>, vector<32x512xbf16>, vector<32x512xf32> -> vector<32x512xf32>
    %493 = arith.addf %0, %492 : vector<32x512xf32>
    %c0_82 = arith.constant 0 : index
    %c0_83 = arith.constant 0 : index
    %494 = vector.load %arg13[%c0_82, %c0_83] : memref<32x512xf32, #tpu.memory_space<vmem>>, vector<32x512xf32>
    tpu.vector_store %arg13[%c0_82, %c0_83], %493 {strides = array<i32>} : memref<32x512xf32, #tpu.memory_space<vmem>>, vector<32x512xf32>,
    return
  }
  func.func @transform_0(%arg0: i32) -> (i32, i32) {
    %c0_i32 = arith.constant 0 : i32
    %c0_i32_0 = arith.constant 0 : i32
    return %c0_i32, %arg0 : i32, i32
  }
  func.func @transform_1(%arg0: i32) -> (i32, i32) {
    %c0_i32 = arith.constant 0 : i32
    %c0_i32_0 = arith.constant 0 : i32
    %c0_i32_1 = arith.constant 0 : i32
    return %c0_i32, %c0_i32_0 : i32, i32
  }
  func.func @transform_2(%arg0: i32) -> (i32, i32) {
    %c0_i32 = arith.constant 0 : i32
    %c0_i32_0 = arith.constant 0 : i32
    %c0_i32_1 = arith.constant 0 : i32
    return %c0_i32, %c0_i32_0 : i32, i32
  }
  func.func @transform_3(%arg0: i32) -> (i32, i32, i32, i32) {
    %c0_i32 = arith.constant 0 : i32
    %c0_i32_0 = arith.constant 0 : i32
    %c0_i32_1 = arith.constant 0 : i32
    %c0_i32_2 = arith.constant 0 : i32
    %c0_i32_3 = arith.constant 0 : i32
    return %c0_i32, %c0_i32_0, %c0_i32_1, %c0_i32_2 : i32, i32, i32, i32
  }
  func.func @transform_4(%arg0: i32) -> (i32, i32) {
    %c0_i32 = arith.constant 0 : i32
    %c0_i32_0 = arith.constant 0 : i32
    %c0_i32_1 = arith.constant 0 : i32
    return %c0_i32, %c0_i32_0 : i32, i32
  }
  func.func @transform_5(%arg0: i32) -> (i32, i32) {
    %c0_i32 = arith.constant 0 : i32
    %c0_i32_0 = arith.constant 0 : i32
    %c0_i32_1 = arith.constant 0 : i32
    return %c0_i32, %c0_i32_0 : i32, i32
  }
  func.func @transform_6(%arg0: i32) -> (i32, i32, i32, i32, i32) {
    %c0_i32 = arith.constant 0 : i32
    %c0_i32_0 = arith.constant 0 : i32
    %c0_i32_1 = arith.constant 0 : i32
    %c0_i32_2 = arith.constant 0 : i32
    %c0_i32_3 = arith.constant 0 : i32
    %c0_i32_4 = arith.constant 0 : i32
    return %c0_i32, %c0_i32_0, %c0_i32_1, %c0_i32_2, %c0_i32_3 : i32, i32, i32, i32, i32
  }
  func.func @transform_7(%arg0: i32) -> (i32, i32, i32) {
    %c0_i32 = arith.constant 0 : i32
    %c0_i32_0 = arith.constant 0 : i32
    %c0_i32_1 = arith.constant 0 : i32
    %c0_i32_2 = arith.constant 0 : i32
    return %c0_i32, %c0_i32_0, %c0_i32_1 : i32, i32, i32
  }
  func.func @transform_8(%arg0: i32) -> (i32, i32, i32) {
    %c0_i32 = arith.constant 0 : i32
    %c0_i32_0 = arith.constant 0 : i32
    %c0_i32_1 = arith.constant 0 : i32
    %c0_i32_2 = arith.constant 0 : i32
    return %c0_i32, %c0_i32_0, %c0_i32_1 : i32, i32, i32
  }
  func.func @transform_9(%arg0: i32) -> (i32, i32, i32, i32) {
    %c0_i32 = arith.constant 0 : i32
    %c0_i32_0 = arith.constant 0 : i32
    %c0_i32_1 = arith.constant 0 : i32
    %c0_i32_2 = arith.constant 0 : i32
    %c0_i32_3 = arith.constant 0 : i32
    return %c0_i32, %c0_i32_0, %c0_i32_1, %c0_i32_2 : i32, i32, i32, i32
  }
  func.func @transform_10(%arg0: i32) -> (i32, i32) {
    %c0_i32 = arith.constant 0 : i32
    %c0_i32_0 = arith.constant 0 : i32
    %c0_i32_1 = arith.constant 0 : i32
    return %c0_i32, %c0_i32_0 : i32, i32
  }
  func.func @transform_11(%arg0: i32) -> (i32, i32) {
    %c0_i32 = arith.constant 0 : i32
    %c0_i32_0 = arith.constant 0 : i32
    %c0_i32_1 = arith.constant 0 : i32
    return %c0_i32, %c0_i32_0 : i32, i32
  }
  func.func @transform_12(%arg0: i32) -> (i32, i32) {
    %c0_i32 = arith.constant 0 : i32
    %c0_i32_0 = arith.constant 0 : i32
    return %c0_i32, %arg0 : i32, i32
  }
}

</mosaic_0001>

<bundles_post_ra>
// kernel: tpu_custom_call.1
= control target key start
LH: loop header
LB: loop body
LE: loop exit
PB: predicated region body
PF: predicated region fallthrough
CT: control target
= control target key end

     0   :  { %6 = vsyncpa [#allocation3], 0  ;;  %s146_s0 = inlined_call_operand.hbm [shape: f32[16,128], index: 0, kind: input, shape index: {}]   ;;  %s147_s1 = inlined_call_operand.hbm [shape: f32[16,128], index: 1, kind: output, shape index: {}]  }
   0x1   :  { %7 = vsyncpa [#allocation4], 0  ;;  %s101_s6 = smov [#allocation2]   ;;  %s53_s10 = scalar_lea.hbm %s146_s0, 256 }
   0x2   :  { %s13_s7 = sshll.u32 %s101_s6, 4  ;;  %p54_p0 = scmp.ne.s32.totalorder %s146_s0, %s53_s10  ;;  %s14_s7 = int_to_ptr.vmem [resolvable:$true] %s13_s7 }
   0x3   :  { %p57_p1 = scmp.lt.u32.totalorder %s53_s10, %s146_s0 }
   0x5   :  { %p59_p2 = pnand %p57_p1, %p54_p0 }
   0x7   :  { %62 = shalt.err (!%p59_p2)
}
   0x8   :  { %s63_s15 = scalar_lea.vmem %s14_s7, 256  ;;  %p68_p4 = scmp.lt.s32.totalorder %s14_s7, %s14_s7 }
   0x9   :  { %p64_p3 = scmp.ne.s32.totalorder %s14_s7, %s63_s15  ;;  %p69_p5 = scmp.lt.s32.totalorder %s63_s15, %s63_s15 }
   0xb   :  { %p70_p6 = por %p69_p5, %p68_p4 }
   0xd   :  { %p71_p7 = pnand %p70_p6, %p64_p3 }
   0xf   :  { %74 = shalt.err (!%p71_p7)
}
  0x10   :  { %s102_s16 = smov 128   ;;  %s103_s17 = smov 8  }
  0x11   :  { %19 = dma.hbm_to_vmem [thread:$0]  %s146_s0, 256, %s14_s7, [#allocation3], %s102_s16, %s102_s16, %s103_s17  }
  0x12   :  { %97 = dma.done.wait [#allocation3], 256  }
  0x13   :  { %98 = vsyncadd [#allocation3], 4294967040  ;;  %v23_v0 = vld [vmem:[#allocation2] sm:$0xff]  ;;  %s104_s20 = smov 1   ;;  %v24_v1 = vld [vmem:[#allocation2 + $0x8] sm:$0xff]  ;;  %s105_s21 = smov [#allocation5]  }
  0x14   :  { %25 = vrot.lane.b32.xlu0 %v23_v0, %s104_s20  ;;  %s36_s22 = sshll.u32 %s105_s21, 4  ;;  %s37_s22 = int_to_ptr.vmem [resolvable:$true] %s36_s22 }
  0x15   :  { %s75_s23 = scalar_lea.vmem %s37_s22, 256  ;;  %p80_p9 = scmp.lt.s32.totalorder %s37_s22, %s37_s22 }
  0x16   :  { %p76_p8 = scmp.ne.s32.totalorder %s37_s22, %s75_s23  ;;  %p81_p10 = scmp.lt.s32.totalorder %s75_s23, %s75_s23 }
  0x18   :  { %27 = vrot.lane.b32.xlu0 %v24_v1, %s104_s20  ;;  %p82_p11 = por %p81_p10, %p80_p9 }
  0x1a   :  { %p83_p12 = pnand %p82_p11, %p76_p8 }
  0x86   :  { %v26_v2 = vpop.permute.xlu0 %25 }
  0x87   :  { %29 = vst [vmem:[#allocation5] sm:$0xff] %v26_v2 }
  0x8a   :  { %v28_v3 = vpop.permute.xlu0 %27 }
  0x8b   :  { %30 = vst [vmem:[#allocation5 + $0x8] sm:$0xff] %v28_v3 }
  0x8c   :  { %86 = shalt.err (!%p83_p12)
}
  0x8d   :  { %s87_s25 = scalar_lea.hbm %s147_s1, 256 }
  0x8e   :  { %p88_p13 = scmp.ne.s32.totalorder %s147_s1, %s87_s25  ;;  %p91_p0 = scmp.lt.u32.totalorder %s87_s25, %s147_s1 }
  0x90   :  { %p93_p1 = pnand %p91_p0, %p88_p13 }
  0x92   :  { %96 = shalt.err (!%p93_p1)
}
  0x93   :  { %42 = dma.vmem_to_hbm [thread:$0]  %s37_s22, 256, %s147_s1, [#allocation4], %s102_s16, %s102_s16, %s103_s17  }
  0x94   :  { %99 = dma.done.wait [#allocation4], 256  }
  0x95   :  { %100 = vsyncadd [#allocation4], 4294967040 }
  0x96   :  { %46 = vsyncpa [#allocation3], 1 }
  0x97   :  { %47 = vsyncpa [#allocation4], 1 }

// kernel: tpu_custom_call.1
= control target key start
LH: loop header
LB: loop body
LE: loop exit
PB: predicated region body
PF: predicated region fallthrough
CT: control target
= control target key end

     0   :  { %s11349_s0 = inlined_call_operand.vmem [shape: f32[32,1024], index: 0, kind: input, shape index: {}]   ;;  %s11350_s1 = inlined_call_operand.vmem [shape: f32[32,1], index: 1, kind: input, shape index: {}]   ;;  %s11351_s2 = inlined_call_operand.vmem [shape: f32[32,1], index: 2, kind: input, shape index: {}]   ;;  %s11352_s3 = inlined_call_operand.vmem [shape: f32[3,3,32,1], index: 3, kind: input, shape index: {}]   ;;  %s11353_s4 = inlined_call_operand.vmem [shape: f32[32,1], index: 4, kind: input, shape index: {}]   ;;  %s11354_s5 = inlined_call_operand.vmem [shape: bf16[32,64], index: 5, kind: input, shape index: {}]   ;;  %s11355_s6 = inlined_call_operand.vmem [shape: f32[3,3,3,32,1], index: 6, kind: input, shape index: {}]   ;;  %s11356_s7 = inlined_call_operand.vmem [shape: f32[3,32,1], index: 7, kind: input, shape index: {}]   ;;  %s11357_s8 = inlined_call_operand.vmem [shape: bf16[3,32,32], index: 8, kind: input, shape index: {}]   ;;  %s11358_s9 = inlined_call_operand.vmem [shape: f32[3,3,32,1], index: 9, kind: input, shape index: {}]   ;;  %s11359_s10 = inlined_call_operand.vmem [shape: f32[32,1], index: 10, kind: input, shape index: {}]   ;;  %s11360_s11 = inlined_call_operand.vmem [shape: bf16[32,32], index: 11, kind: input, shape index: {}]   ;;  %s11361_s12 = inlined_call_operand.hbm [shape: f32[32,1024], index: 12, kind: output, shape index: {}]  }
   0x1   :  { %11660 = sst [smem:[#allocation85_spill]] %s11349_s0 }
   0x2   :  { %11661 = sst [smem:[#allocation86_spill]] %s11350_s1 }
   0x3   :  { %11662 = sst [smem:[#allocation87_spill]] %s11351_s2 }
   0x4   :  { %11663 = sst [smem:[#allocation88_spill]] %s11352_s3 }
   0x5   :  { %11664 = sst [smem:[#allocation89_spill]] %s11353_s4 }
   0x6   :  { %11665 = sst [smem:[#allocation90_spill]] %s11354_s5 }
   0x7   :  { %17 = vsyncpa [#allocation5], 0 }
   0x8   :  { %19 = vsyncpa [#allocation5 + $0x1], 0  ;;  %s6413_s21 = smov 0   ;;  %s6415_s22 = smov 0  }
   0x9   :  { %s6417_s23 = smov 0   ;;  %s6419_s24 = smov 0  }
   0xa LB: > { %s11362_s25 = sadd.s32 4294967295, %s6337_s24   ;;  %s6066_s26 = sadd.s32 4294967294, %s6337_s24   ;;  %s6337_s24 = sphi %s6419_s24, %s12451_s24   ;;  %s6333_s23 = sphi %s6417_s23, %s12450_s23   ;;  %s6329_s22 = sphi %s6415_s22, %s12449_s22   ;;  %s6325_s21 = sphi %s6413_s21, %s12448_s21  }
   0xb   : > { %s6436_s27 = sadd.s32 1, %s6337_s24   ;;  %s32_s28 = sadd.s32 1, %s6333_s23 }
   0xc   : > { %s29_s29 = ssub.s32 %s6337_s24, %s6436_s27  ;;  %p39_p0 = scmp.ne.s32.totalorder %s6333_s23, %s6329_s22 }
   0xd   : > { %p30_p1 = scmp.eq.s32.totalorder %s29_s29, 0  ;;  %p40_p2 = scmp.eq.s32.totalorder %s6337_s24, 0 }
   0xe   : > { %p300_p3 = scmp.eq.s32.totalorder %s11362_s25, 1  ;;  %p305_p4 = scmp.ne.s32.totalorder %s6329_s22, %s6325_s21 }
   0xf   : > { %s6449_s30 = scalar_select %p30_p1, %s6333_s23, %s32_s28  }
  0x10   : > { %p41_p5 = por %p40_p2, %p39_p0  ;;  %p6451_p6 = por %p300_p3, %p39_p0 }
  0x11   : > { %p306_p7 = scmp.eq.s32.totalorder %s6066_s26, 1  ;;  %p6068_p9 = scmp.ge.s32.totalorder %s6337_s24, 2 }
  0x13   : > { %p6455_p8 = por %p306_p7, %p305_p4  ;;  %355 = sbr.rel (%p6068_p9) target bundleno = 44 (0x2c), region = 60 }
  0x1a   : > { %358 = sbr.rel (!%p41_p5) target bundleno = 44 (0x2c), region = 64  ;;  %s360_s15 = sand.u32 (%p41_p5), 1, %s6333_s23  }
  0x1b   : > { %s6198_s16 = sshll.u32 (%p41_p5), %s6337_s24, 5  ;;  %s6069_s17 = sshll.u32 (%p41_p5), %s360_s15, 7 }
  0x1c   : > { %s11668_s0 = sld [smem:[#allocation85_spill]] (%p41_p5)  ;;  %s362_s26 = scalar_lea.vmem (%p41_p5), [#allocation3], %s6069_s17 }
  0x22   : > { %s6467_s20 = scalar_lea.vmem %s11668_s0, %s6198_s16 }
  0x23   : > { %v378_v0 = vld [vmem:[%s6467_s20] sm:$0xff]  ;;  %v380_v1 = vld [vmem:[%s6467_s20 + $0x8] sm:$0xff]  ;;  %v382_v2 = vld [vmem:[%s6467_s20 + $0x10] sm:$0xff] }
  0x24   : > { %379 = vst [vmem:[%s362_s26] sm:$0xff] %v378_v0  ;;  %381 = vst [vmem:[%s362_s26 + $0x8] sm:$0xff] %v380_v1  ;;  %v384_v3 = vld [vmem:[%s6467_s20 + $0x18] sm:$0xff]  ;;  %v386_v4 = vld [vmem:[%s6467_s20 + $0x40] sm:$0xff] }
  0x25   : > { %383 = vst [vmem:[%s362_s26 + $0x10] sm:$0xff] %v382_v2  ;;  %v388_v5 = vld [vmem:[%s6467_s20 + $0x48] sm:$0xff]  ;;  %385 = vst [vmem:[%s362_s26 + $0x18] sm:$0xff] %v384_v3  ;;  %v390_v6 = vld [vmem:[%s6467_s20 + $0x50] sm:$0xff] }
  0x26   : > { %387 = vst [vmem:[%s362_s26 + $0x20] sm:$0xff] %v386_v4  ;;  %389 = vst [vmem:[%s362_s26 + $0x28] sm:$0xff] %v388_v5  ;;  %v392_v7 = vld [vmem:[%s6467_s20 + $0x58] sm:$0xff]  ;;  %v394_v8 = vld [vmem:[%s6467_s20 + $0x80] sm:$0xff] }
  0x27   : > { %391 = vst [vmem:[%s362_s26 + $0x30] sm:$0xff] %v390_v6  ;;  %393 = vst [vmem:[%s362_s26 + $0x38] sm:$0xff] %v392_v7  ;;  %v396_v9 = vld [vmem:[%s6467_s20 + $0x88] sm:$0xff]  ;;  %v398_v10 = vld [vmem:[%s6467_s20 + $0x90] sm:$0xff] }
  0x28   : > { %395 = vst [vmem:[%s362_s26 + $0x40] sm:$0xff] %v394_v8  ;;  %v400_v11 = vld [vmem:[%s6467_s20 + $0x98] sm:$0xff]  ;;  %397 = vst [vmem:[%s362_s26 + $0x48] sm:$0xff] %v396_v9  ;;  %v402_v12 = vld [vmem:[%s6467_s20 + $0xc0] sm:$0xff] }
  0x29   : > { %399 = vst [vmem:[%s362_s26 + $0x50] sm:$0xff] %v398_v10  ;;  %401 = vst [vmem:[%s362_s26 + $0x58] sm:$0xff] %v400_v11  ;;  %v404_v13 = vld [vmem:[%s6467_s20 + $0xc8] sm:$0xff]  ;;  %v406_v14 = vld [vmem:[%s6467_s20 + $0xd0] sm:$0xff] }
  0x2a   : > { %403 = vst [vmem:[%s362_s26 + $0x60] sm:$0xff] %v402_v12  ;;  %405 = vst [vmem:[%s362_s26 + $0x68] sm:$0xff] %v404_v13  ;;  %v408_v15 = vld [vmem:[%s6467_s20 + $0xd8] sm:$0xff] }
  0x2b   : > { %407 = vst [vmem:[%s362_s26 + $0x70] sm:$0xff] %v406_v14  ;;  %409 = vst [vmem:[%s362_s26 + $0x78] sm:$0xff] %v408_v15 }
  0x2c PF: > { %p6072_p10 = scmp.ge.s32.totalorder %s6337_s24, 1  ;;  %p414_p11 = scmp.lt.s32.totalorder %s6337_s24, 3 }
  0x2e   : > { %p415_p12 = pnand %p6072_p10, %p414_p11 }
  0x30   : > { %418 = sbr.rel (%p415_p12) target bundleno = 2516 (0x9d4), region = 87 }
  0x37   : > { %s11669_s2 = sld [smem:[#allocation87_spill]]  ;;  %s11670_s1 = sld [smem:[#allocation86_spill]]  ;;  %v11368_v18 = vmov 0   ;;  %v1834_v49 = vld [vmem:[%s11355_s6 + $0x8] sm:$0xff]  ;;  %v1833_v50 = vld [vmem:[%s11355_s6] sm:$0xff]  ;;  %vm11593_vm0 = vcmask 7168  }
  0x38   : > { %6248 = vset.pattern.permute.xlu1 %v11368_v18  ;;  %6247 = vset.pattern.permute.xlu0 %v11368_v18  ;;  %s11671_s3 = sld [smem:[#allocation88_spill]]  ;;  %v1838_v51 = vld [vmem:[%s11355_s6 + $0x28] sm:$0xff]  ;;  %v1837_v52 = vld [vmem:[%s11355_s6 + $0x20] sm:$0xff]  ;;  %s11363_s16 = sand.u32 1, %s6329_s22   ;;  %vm11554_vm3 = vcmask 1039360   ;;  %vm11586_vm10 = vcmask 130048  }
  0x39   : > { %1759 = vmatprep.mubr.bf16.mxu0 %v11368_v18  ;;  %1812 = vmatprep.mubr.bf16.mxu1 %v11368_v18  ;;  %s6602_s17 = sshll.u32 %s11363_s16, 7  ;;  %s11366_s19 = smov 1   ;;  %vm11585_vm11 = vcmask 916480  }
  0x3a   : > { %s6605_s18 = scalar_lea.vmem [#allocation3], %s6602_s17  ;;  %s11364_s25 = smov 127  }
  0x3b   : > { %v468_v53 = vld [vmem:[%s6605_s18 + $0x18] sm:$0xff]  ;;  %v465_v56 = vld [vmem:[%s6605_s18] sm:$0xff]  ;;  %v466_v60 = vld [vmem:[%s6605_s18 + $0x8] sm:$0xff]  ;;  %s11704_s4 = sld [smem:[#allocation89_spill]]  ;;  %s11443_s16 = smov 16  }
  0x3c   : > { %v472_v58 = vld [vmem:[%s6605_s18 + $0x38] sm:$0xff]  ;;  %v467_v63 = vld [vmem:[%s6605_s18 + $0x10] sm:$0xff]  ;;  %v469_v6 = vld [vmem:[%s6605_s18 + $0x20] sm:$0xff]  ;;  %s11441_s15 = smov 112   ;;  %s11796_s20 = smov 16  }
  0x3d   : > { %v638_v16 = vld [vmem:[%s11669_s2] sm:$0xff]  ;;  %v639_v19 = vld [vmem:[%s11669_s2 + $0x8] sm:$0xff]  ;;  %v601_v21 = vld [vmem:[%s11670_s1 + $0x18] sm:$0xff]  ;;  %s11926_s5 = sld [smem:[#allocation90_spill]]  ;;  %s11973_s0 = smov 1  }
  0x3e   : > { %v598_v17 = vld [vmem:[%s11670_s1] sm:$0xff]  ;;  %644 = vperm.xlu1 %6248, %v638_v16   ;;  %v599_v20 = vld [vmem:[%s11670_s1 + $0x8] sm:$0xff]  ;;  %v600_v22 = vld [vmem:[%s11670_s1 + $0x10] sm:$0xff]  ;;  %s11974_s1 = smov 127   ;;  %s12447_s26 = sand.u32 1, %s6329_s22  }
  0x3f   : > { %604 = vperm.xlu0 %6247, %v598_v17   ;;  %v641_v23 = vld [vmem:[%s11669_s2 + $0x18] sm:$0xff]  ;;  %v640_v24 = vld [vmem:[%s11669_s2 + $0x10] sm:$0xff]  ;;  %v679_v25 = vld [vmem:[%s11671_s3 + $0x8] sm:$0xff] }
  0x40   : > { %v678_v26 = vld [vmem:[%s11671_s3] sm:$0xff]  ;;  %v683_v27 = vld [vmem:[%s11671_s3 + $0x28] sm:$0xff]  ;;  %v681_v37 = vld [vmem:[%s11671_s3 + $0x18] sm:$0xff] }
  0x41   : > { %v682_v28 = vld [vmem:[%s11671_s3 + $0x20] sm:$0xff]  ;;  %v703_v29 = vld [vmem:[%s11671_s3 + $0xc8] sm:$0xff]  ;;  %v680_v38 = vld [vmem:[%s11671_s3 + $0x10] sm:$0xff] }
  0x42   : > { %649 = vperm.xlu1 %6248, %v639_v19   ;;  %v702_v30 = vld [vmem:[%s11671_s3 + $0xc0] sm:$0xff]  ;;  %v707_v31 = vld [vmem:[%s11671_s3 + $0xe8] sm:$0xff]  ;;  %v685_v39 = vld [vmem:[%s11671_s3 + $0x38] sm:$0xff] }
  0x43   : > { %609 = vperm.xlu0 %6247, %v599_v20   ;;  %v706_v32 = vld [vmem:[%s11671_s3 + $0xe0] sm:$0xff]  ;;  %v687_v33 = vld [vmem:[%s11671_s3 + $0x48] sm:$0xff]  ;;  %v684_v40 = vld [vmem:[%s11671_s3 + $0x30] sm:$0xff] }
  0x44   : > { %v686_v34 = vld [vmem:[%s11671_s3 + $0x40] sm:$0xff]  ;;  %v711_v35 = vld [vmem:[%s11671_s3 + $0x108] sm:$0xff]  ;;  %v705_v41 = vld [vmem:[%s11671_s3 + $0xd8] sm:$0xff] }
  0x45   : > { %v710_v36 = vld [vmem:[%s11671_s3 + $0x100] sm:$0xff]  ;;  %v704_v42 = vld [vmem:[%s11671_s3 + $0xd0] sm:$0xff]  ;;  %v709_v43 = vld [vmem:[%s11671_s3 + $0xf8] sm:$0xff] }
  0x46   : > { %619 = vperm.xlu1 %6248, %v601_v21   ;;  %v708_v44 = vld [vmem:[%s11671_s3 + $0xf0] sm:$0xff]  ;;  %v689_v45 = vld [vmem:[%s11671_s3 + $0x58] sm:$0xff]  ;;  %v470_v7 = vld [vmem:[%s6605_s18 + $0x28] sm:$0xff] }
  0x47   : > { %614 = vperm.xlu0 %6247, %v600_v22   ;;  %v688_v46 = vld [vmem:[%s11671_s3 + $0x50] sm:$0xff]  ;;  %v713_v47 = vld [vmem:[%s11671_s3 + $0x118] sm:$0xff] }
  0x48   : > { %v712_v48 = vld [vmem:[%s11671_s3 + $0x110] sm:$0xff]  ;;  %v476_v20 = vld [vmem:[%s6605_s18 + $0x58] sm:$0xff] }
  0x49   : > { %v471_v11 = vld [vmem:[%s6605_s18 + $0x30] sm:$0xff]  ;;  %v480_v22 = vld [vmem:[%s6605_s18 + $0x78] sm:$0xff] }
  0x4a   : > { %659 = vperm.xlu1 %6248, %v641_v23  }
  0x4b   : > { %654 = vperm.xlu0 %6247, %v640_v24   ;;  %v473_v24 = vld [vmem:[%s6605_s18 + $0x40] sm:$0xff] }
  0x4e   : > { %923 = vperm.xlu1 %6248, %v679_v25  }
  0x4f   : > { %918 = vperm.xlu0 %6247, %v678_v26  }
  0x52   : > { %959 = vperm.xlu1 %6248, %v683_v27  }
  0x53   : > { %954 = vperm.xlu0 %6247, %v682_v28  }
  0x56   : > { %1203 = vperm.xlu1 %6248, %v703_v29   ;;  %v474_v29 = vld [vmem:[%s6605_s18 + $0x48] sm:$0xff] }
  0x57   : > { %1198 = vperm.xlu0 %6247, %v702_v30  }
  0x5a   : > { %1239 = vperm.xlu1 %6248, %v707_v31   ;;  %v475_v31 = vld [vmem:[%s6605_s18 + $0x50] sm:$0xff] }
  0x5b   : > { %1234 = vperm.xlu0 %6247, %v706_v32  }
  0x5e   : > { %1011 = vperm.xlu1 %6248, %v687_v33  }
  0x5f   : > { %1006 = vperm.xlu0 %6247, %v686_v34  }
  0x62   : > { %1291 = vperm.xlu1 %6248, %v711_v35  }
  0x63   : > { %1286 = vperm.xlu0 %6247, %v710_v36   ;;  %v477_v36 = vld [vmem:[%s6605_s18 + $0x60] sm:$0xff] }
  0x66   : > { %933 = vperm.xlu1 %6248, %v681_v37  }
  0x67   : > { %928 = vperm.xlu0 %6247, %v680_v38   ;;  %v478_v38 = vld [vmem:[%s6605_s18 + $0x68] sm:$0xff] }
  0x6a   : > { %969 = vperm.xlu1 %6248, %v685_v39  }
  0x6b   : > { %964 = vperm.xlu0 %6247, %v684_v40  }
  0x6e   : > { %1213 = vperm.xlu1 %6248, %v705_v41  }
  0x6f   : > { %1208 = vperm.xlu0 %6247, %v704_v42  }
  0x72   : > { %1249 = vperm.xlu1 %6248, %v709_v43   ;;  %v479_v43 = vld [vmem:[%s6605_s18 + $0x70] sm:$0xff] }
  0x73   : > { %1244 = vperm.xlu0 %6247, %v708_v44  }
  0x76   : > { %1021 = vperm.xlu1 %6248, %v689_v45  }
  0x77   : > { %1016 = vperm.xlu0 %6247, %v688_v46  }
  0x7a   : > { %1301 = vperm.xlu1 %6248, %v713_v47  }
  0x7b   : > { %1296 = vperm.xlu0 %6247, %v712_v48  }
  0x7e   : > { %1876 = vperm.xlu1 %6248, %v1834_v49  }
  0x7f   : > { %1871 = vperm.xlu0 %6247, %v1833_v50  }
  0x82   : > { %1912 = vperm.xlu1 %6248, %v1838_v51  }
  0x83   : > { %1907 = vperm.xlu0 %6247, %v1837_v52  }
  0xbd   : > { %v645_v54 = vpop.permute.xlu1 %644 }
  0xbe   : > { %v605_v55 = vpop.permute.xlu0 %604 }
  0xbf   : > { %v625_v57 = vmul.f32 %v605_v55, %v468_v53  ;;  %v622_v61 = vmul.f32 %v605_v55, %v465_v56  ;;  %v623_v2 = vmul.f32 %v605_v55, %v466_v60  ;;  %v624_v4 = vmul.f32 %v605_v55, %v467_v63  ;;  %v1862_v63 = vld [vmem:[%s11355_s6 + $0xe8] sm:$0xff] }
  0xc1   : > { %v6610_v59 = vadd.f32 %v645_v54, %v625_v57  ;;  %v650_v1 = vpop.permute.xlu1 %649  ;;  %v6618_v5 = vadd.f32 %v645_v54, %v622_v61  ;;  %v6626_v8 = vadd.f32 %v645_v54, %v623_v2  ;;  %v6628_v10 = vadd.f32 %v645_v54, %v624_v4  ;;  %v1857_v57 = vld [vmem:[%s11355_s6 + $0xc0] sm:$0xff]  ;;  %v1842_v2 = vld [vmem:[%s11355_s6 + $0x48] sm:$0xff] }
  0xc2   : > { %v610_v62 = vpop.permute.xlu0 %609  ;;  %v1861_v61 = vld [vmem:[%s11355_s6 + $0xe0] sm:$0xff] }
  0xc3   : > { %11672 = vst [vmem:[#allocation7_spill] sm:$0xff] %v6610_v59  ;;  %v629_v0 = vmul.f32 %v610_v62, %v472_v58  ;;  %718 = vrot.lane.b32.xlu0 %v6610_v59, %s11366_s19  ;;  %11674 = vst [vmem:[#allocation9_spill] sm:$0xff] %v6618_v5  ;;  %v626_v9 = vmul.f32 %v610_v62, %v469_v6  ;;  %v627_v12 = vmul.f32 %v610_v62, %v470_v7  ;;  %v1858_v58 = vld [vmem:[%s11355_s6 + $0xc8] sm:$0xff]  ;;  %v1865_v6 = vld [vmem:[%s11355_s6 + $0x100] sm:$0xff] }
  0xc4   : > { %11675 = vst [vmem:[#allocation10_spill] sm:$0xff] %v6626_v8  ;;  %11676 = vst [vmem:[#allocation11_spill] sm:$0xff] %v6628_v10  ;;  %v628_v13 = vmul.f32 %v610_v62, %v471_v11  ;;  %v1866_v7 = vld [vmem:[%s11355_s6 + $0x108] sm:$0xff]  ;;  %v1835_v11 = vld [vmem:[%s11355_s6 + $0x10] sm:$0xff] }
  0xc5   : > { %v6616_v3 = vadd.f32 %v650_v1, %v629_v0  ;;  %v6635_v14 = vadd.f32 %v650_v1, %v626_v9  ;;  %v6637_v15 = vadd.f32 %v650_v1, %v627_v12  ;;  %v620_v19 = vpop.permute.xlu1 %619  ;;  %v1841_v0 = vld [vmem:[%s11355_s6 + $0x40] sm:$0xff] }
  0xc6   : > { %v6643_v16 = vadd.f32 %v650_v1, %v628_v13  ;;  %v615_v17 = vpop.permute.xlu0 %614  ;;  %v637_v27 = vmul.f32 %v620_v19, %v480_v22  ;;  %v634_v42 = vmul.f32 %v620_v19, %v477_v36  ;;  %v635_v44 = vmul.f32 %v620_v19, %v478_v38  ;;  %v1836_v13 = vld [vmem:[%s11355_s6 + $0x18] sm:$0xff]  ;;  %v1859_v22 = vld [vmem:[%s11355_s6 + $0xd0] sm:$0xff] }
  0xc7   : > { %11673 = vst [vmem:[#allocation8_spill] sm:$0xff] %v6616_v3  ;;  %720 = vrot.lane.b32.xlu1 %v6616_v3, %s11366_s19  ;;  %742 = vrot.lane.b32.xlu0 %v6618_v5, %s11366_s19  ;;  %11677 = vst [vmem:[#allocation12_spill] sm:$0xff] %v6635_v14  ;;  %v633_v23 = vmul.f32 %v615_v17, %v476_v20  ;;  %v630_v30 = vmul.f32 %v615_v17, %v473_v24  ;;  %v1840_v20 = vld [vmem:[%s11355_s6 + $0x38] sm:$0xff] }
  0xc8   : > { %11678 = vst [vmem:[#allocation13_spill] sm:$0xff] %v6637_v15  ;;  %11679 = vst [vmem:[#allocation14_spill] sm:$0xff] %v6643_v16  ;;  %v631_v34 = vmul.f32 %v615_v17, %v474_v29  ;;  %v632_v37 = vmul.f32 %v615_v17, %v475_v31  ;;  %v636_v48 = vmul.f32 %v620_v19, %v479_v43  ;;  %v1839_v17 = vld [vmem:[%s11355_s6 + $0x30] sm:$0xff]  ;;  %v1864_v29 = vld [vmem:[%s11355_s6 + $0xf8] sm:$0xff] }
  0xc9   : > { %v660_v25 = vpop.permute.xlu1 %659  ;;  %v1868_v38 = vld [vmem:[%s11355_s6 + $0x118] sm:$0xff]  ;;  %v690_v43 = vld [vmem:[%s11671_s3 + $0x60] sm:$0xff] }
  0xca   : > { %v655_v21 = vpop.permute.xlu0 %654  ;;  %v6674_v32 = vadd.f32 %v660_v25, %v637_v27  ;;  %v6697_v45 = vadd.f32 %v660_v25, %v634_v42  ;;  %v6701_v47 = vadd.f32 %v660_v25, %v635_v44  ;;  %v6709_v50 = vadd.f32 %v660_v25, %v636_v48  ;;  %v1863_v25 = vld [vmem:[%s11355_s6 + $0xf0] sm:$0xff]  ;;  %v691_v48 = vld [vmem:[%s11671_s3 + $0x68] sm:$0xff] }
  0xcb   : > { %744 = vrot.lane.b32.xlu1 %v6626_v8, %s11366_s19  ;;  %746 = vrot.lane.b32.xlu0 %v6628_v10, %s11366_s19  ;;  %v6664_v26 = vadd.f32 %v655_v21, %v633_v23  ;;  %v6676_v33 = vadd.f32 %v655_v21, %v630_v30  ;;  %v6686_v39 = vadd.f32 %v655_v21, %v631_v34  ;;  %v1860_v23 = vld [vmem:[%s11355_s6 + $0xd8] sm:$0xff]  ;;  %v1843_v30 = vld [vmem:[%s11355_s6 + $0x50] sm:$0xff] }
  0xcc   : > { %11681 = vst [vmem:[#allocation16_spill] sm:$0xff] %v6674_v32  ;;  %v6690_v41 = vadd.f32 %v655_v21, %v632_v37  ;;  %11685 = vst [vmem:[#allocation20_spill] sm:$0xff] %v6697_v45  ;;  %v1844_v34 = vld [vmem:[%s11355_s6 + $0x58] sm:$0xff]  ;;  %v1867_v37 = vld [vmem:[%s11355_s6 + $0x110] sm:$0xff] }
  0xcd   : > { %11680 = vst [vmem:[#allocation15_spill] sm:$0xff] %v6664_v26  ;;  %11682 = vst [vmem:[#allocation17_spill] sm:$0xff] %v6676_v33  ;;  %v6678_v35 = vpop.permute.xlu1 %923 }
  0xce   : > { %v6666_v28 = vpop.permute.xlu0 %918  ;;  %11683 = vst [vmem:[#allocation18_spill] sm:$0xff] %v6686_v39  ;;  %11684 = vst [vmem:[#allocation19_spill] sm:$0xff] %v6690_v41 }
  0xcf   : > { %748 = vrot.lane.b32.xlu1 %v6635_v14, %s11366_s19  ;;  %750 = vrot.lane.b32.xlu0 %v6637_v15, %s11366_s19  ;;  %11686 = vst [vmem:[#allocation21_spill] sm:$0xff] %v6701_v47  ;;  %11687 = vst [vmem:[#allocation22_spill] sm:$0xff] %v6709_v50 }
  0xd1   : > { %v6699_v46 = vpop.permute.xlu1 %959 }
  0xd2   : > { %v6688_v40 = vpop.permute.xlu0 %954 }
  0xd3   : > { %752 = vrot.lane.b32.xlu1 %v6643_v16, %s11366_s19  ;;  %823 = vrot.lane.b32.xlu0 %v6618_v5, %s11364_s25 }
  0xd5   : > { %v6711_v51 = vpop.permute.xlu1 %1203 }
  0xd6   : > { %v6703_v49 = vpop.permute.xlu0 %1198 }
  0xd7   : > { %825 = vrot.lane.b32.xlu1 %v6626_v8, %s11364_s25  ;;  %827 = vrot.lane.b32.xlu0 %v6628_v10, %s11364_s25 }
  0xd9   : > { %v6723_v53 = vpop.permute.xlu1 %1239 }
  0xda   : > { %v6717_v52 = vpop.permute.xlu0 %1234 }
  0xdb   : > { %829 = vrot.lane.b32.xlu1 %v6610_v59, %s11364_s25  ;;  %831 = vrot.lane.b32.xlu0 %v6635_v14, %s11364_s25 }
  0xdd   : > { %v6731_v55 = vpop.permute.xlu1 %1011 }
  0xde   : > { %v6725_v54 = vpop.permute.xlu0 %1006 }
  0xdf   : > { %833 = vrot.lane.b32.xlu1 %v6637_v15, %s11364_s25  ;;  %835 = vrot.lane.b32.xlu0 %v6643_v16, %s11364_s25 }
  0xe1   : > { %v6747_v60 = vpop.permute.xlu1 %1291 }
  0xe2   : > { %v6737_v56 = vpop.permute.xlu0 %1286 }
  0xe3   : > { %837 = vrot.lane.b32.xlu1 %v6616_v3, %s11364_s25  ;;  %722 = vrot.lane.b32.xlu0 %v6664_v26, %s11366_s19 }
  0xe5   : > { %v6760_v1 = vpop.permute.xlu1 %933 }
  0xe6   : > { %v6752_v62 = vpop.permute.xlu0 %928  ;;  %11688 = vst [vmem:[#allocation23_spill] sm:$0xff] %v6760_v1 }
  0xe7   : > { %724 = vrot.lane.b32.xlu1 %v6674_v32, %s11366_s19  ;;  %754 = vrot.lane.b32.xlu0 %v6676_v33, %s11366_s19 }
  0xe9   : > { %v6773_v9 = vpop.permute.xlu1 %969 }
  0xea   : > { %v6765_v4 = vpop.permute.xlu0 %964  ;;  %11689 = vst [vmem:[#allocation24_spill] sm:$0xff] %v6773_v9 }
  0xeb   : > { %756 = vrot.lane.b32.xlu1 %v6686_v39, %s11366_s19  ;;  %758 = vrot.lane.b32.xlu0 %v6690_v41, %s11366_s19 }
  0xed   : > { %v6786_v19 = vpop.permute.xlu1 %1213 }
  0xee   : > { %v6778_v12 = vpop.permute.xlu0 %1208  ;;  %11691 = vst [vmem:[#allocation26_spill] sm:$0xff] %v6786_v19  ;;  %v11727_v19 = vmov 0 }
  0xef   : > { %760 = vrot.lane.b32.xlu1 %v6697_v45, %s11366_s19  ;;  %762 = vrot.lane.b32.xlu0 %v6701_v47, %s11366_s19  ;;  %11690 = vst [vmem:[#allocation25_spill] sm:$0xff] %v6778_v12 }
  0xf1   : > { %v6799_v24 = vpop.permute.xlu1 %1249 }
  0xf2   : > { %v6791_v21 = vpop.permute.xlu0 %1244  ;;  %11693 = vst [vmem:[#allocation28_spill] sm:$0xff] %v6799_v24 }
  0xf3   : > { %764 = vrot.lane.b32.xlu1 %v6709_v50, %s11366_s19  ;;  %839 = vrot.lane.b32.xlu0 %v6676_v33, %s11364_s25  ;;  %11692 = vst [vmem:[#allocation27_spill] sm:$0xff] %v6791_v21 }
  0xf5   : > { %v6812_v31 = vpop.permute.xlu1 %1021 }
  0xf6   : > { %v6804_v27 = vpop.permute.xlu0 %1016  ;;  %11695 = vst [vmem:[#allocation30_spill] sm:$0xff] %v6812_v31  ;;  %v11734_v31 = vmov 0 }
  0xf7   : > { %841 = vrot.lane.b32.xlu1 %v6686_v39, %s11364_s25  ;;  %843 = vrot.lane.b32.xlu0 %v6690_v41, %s11364_s25  ;;  %11694 = vst [vmem:[#allocation29_spill] sm:$0xff] %v6804_v27 }
  0xf9   : > { %v6825_v42 = vpop.permute.xlu1 %1301 }
  0xfa   : > { %v6817_v36 = vpop.permute.xlu0 %1296  ;;  %11697 = vst [vmem:[#allocation32_spill] sm:$0xff] %v6825_v42 }
  0xfb   : > { %845 = vrot.lane.b32.xlu1 %v6664_v26, %s11364_s25  ;;  %847 = vrot.lane.b32.xlu0 %v6697_v45, %s11364_s25  ;;  %11696 = vst [vmem:[#allocation31_spill] sm:$0xff] %v6817_v36 }
  0xfe   : > { %v6830_v44 = vpop.permute.xlu0 %1871 }
  0xff   : > { %849 = vrot.lane.b32.xlu1 %v6701_v47, %s11364_s25  ;;  %851 = vrot.lane.b32.xlu0 %v6709_v50, %s11364_s25  ;;  %11698 = vst [vmem:[#allocation33_spill] sm:$0xff] %v6830_v44  ;;  %v11714_v44 = vmov 0 }
 0x103   : > { %853 = vrot.lane.b32.xlu1 %v6674_v32, %s11364_s25  ;;  %2151 = vperm.xlu0 %6247, %v1857_v57   ;;  %v694_v57 = vld [vmem:[%s11671_s3 + $0x80] sm:$0xff] }
 0x107   : > { %2156 = vperm.xlu1 %6248, %v1858_v58   ;;  %2187 = vperm.xlu0 %6247, %v1861_v61   ;;  %v6838_v58 = vpop.permute.xlu1 %1876  ;;  %v695_v61 = vld [vmem:[%s11671_s3 + $0x88] sm:$0xff] }
 0x108   : > { %11699 = vst [vmem:[#allocation34_spill] sm:$0xff] %v6838_v58 }
 0x10b   : > { %2192 = vperm.xlu1 %6248, %v1862_v63   ;;  %1959 = vperm.xlu0 %6247, %v1841_v0   ;;  %v6843_v63 = vpop.permute.xlu0 %1907  ;;  %v698_v0 = vld [vmem:[%s11671_s3 + $0xa0] sm:$0xff] }
 0x10c   : > { %11700 = vst [vmem:[#allocation35_spill] sm:$0xff] %v6843_v63 }
 0x10f   : > { %1964 = vperm.xlu1 %6248, %v1842_v2   ;;  %2239 = vperm.xlu0 %6247, %v1865_v6   ;;  %v699_v2 = vld [vmem:[%s11671_s3 + $0xa8] sm:$0xff]  ;;  %v6851_v6 = vpop.permute.xlu1 %1912 }
 0x110   : > { %11701 = vst [vmem:[#allocation36_spill] sm:$0xff] %v6851_v6 }
 0x113   : > { %2244 = vperm.xlu1 %6248, %v1866_v7   ;;  %1881 = vperm.xlu0 %6247, %v1835_v11   ;;  %v692_v11 = vld [vmem:[%s11671_s3 + $0x70] sm:$0xff] }
 0x117   : > { %1886 = vperm.xlu1 %6248, %v1836_v13   ;;  %1917 = vperm.xlu0 %6247, %v1839_v17   ;;  %v481_v13 = vlaneseq  ;;  %v693_v17 = vld [vmem:[%s11671_s3 + $0x78] sm:$0xff] }
 0x11b   : > { %1922 = vperm.xlu1 %6248, %v1840_v20   ;;  %2161 = vperm.xlu0 %6247, %v1859_v22   ;;  %v696_v22 = vld [vmem:[%s11671_s3 + $0x90] sm:$0xff] }
 0x11f   : > { %2166 = vperm.xlu1 %6248, %v1860_v23   ;;  %2197 = vperm.xlu0 %6247, %v1863_v25   ;;  %v6864_v25 = vand.u32 127, %v481_v13  ;;  %v1603_v13 = vld [vmem:[%s11704_s4 + $0x8] sm:$0xff] }
 0x121   : > { %11702 = vst [vmem:[#allocation37_spill] sm:$0xff] %v6864_v25 }
 0x123   : > { %2202 = vperm.xlu1 %6248, %v1864_v29   ;;  %1969 = vperm.xlu0 %6247, %v1843_v30   ;;  %v697_v29 = vld [vmem:[%s11671_s3 + $0x98] sm:$0xff] }
 0x127   : > { %1974 = vperm.xlu1 %6248, %v1844_v34   ;;  %2249 = vperm.xlu0 %6247, %v1867_v37   ;;  %v700_v34 = vld [vmem:[%s11671_s3 + $0xb0] sm:$0xff]  ;;  %v6873_v37 = vadd.s32 384, %v6864_v25 }
 0x129   : > { %11703 = vst [vmem:[#allocation38_spill] sm:$0xff] %v6873_v37 }
 0x12b   : > { %2254 = vperm.xlu1 %6248, %v1868_v38   ;;  %1058 = vperm.xlu0 %6247, %v690_v43   ;;  %v701_v43 = vld [vmem:[%s11671_s3 + $0xb8] sm:$0xff]  ;;  %s6344_s3 = smov [#allocation4]  }
 0x12f   : > { %1063 = vperm.xlu1 %6248, %v691_v48   ;;  %1094 = vperm.xlu0 %6247, %v694_v57   ;;  %v1602_v57 = vld [vmem:[%s11704_s4] sm:$0xff] }
 0x133   : > { %1099 = vperm.xlu1 %6248, %v695_v61   ;;  %1146 = vperm.xlu0 %6247, %v698_v0   ;;  %v559_v61 = vand.u32 15, %v6873_v37 }
 0x135   : > { %v719_v7 = vpop.permute.xlu0 %718  ;;  %vm6898_vm1 = vcmp.ne.s32.totalorder %v559_v61, 0  ;;  %vm6923_vm5 = vcmp.ne.s32.totalorder %v559_v61, 15  ;;  %v975_v61 = vmul.f32 %v6688_v40, %v6610_v59 }
 0x137   : > { %1151 = vperm.xlu1 %6248, %v699_v2   ;;  %1068 = vperm.xlu0 %6247, %v692_v11   ;;  %v538_v2 = vand.u32 15, %v6864_v25  ;;  %v6888_v11 = vadd.s32 128, %v6864_v25 }
 0x139   : > { %v6859_v20 = vpop.permute.xlu1 %720  ;;  %v743_v23 = vpop.permute.xlu0 %742  ;;  %11705 = vst [vmem:[#allocation39_spill] sm:$0xff] %v6888_v11  ;;  %vm6903_vm2 = vcmp.ne.s32.totalorder %v538_v2, 0  ;;  %v545_v18 = vand.u32 15, %v6888_v11  ;;  %vm6914_vm4 = vcmp.ne.s32.totalorder %v538_v2, 15  ;;  %v11724_v2 = vmov 0 }
 0x13a   : > { %v795_v37 = vsel %vm11593_vm0, %v719_v7, %v743_v23  ;;  %v11715_v44 = vsel %vm6914_vm4, 4294967295, %v11714_v44 }
 0x13b   : > { %1073 = vperm.xlu1 %6248, %v693_v17   ;;  %1104 = vperm.xlu0 %6247, %v696_v22   ;;  %v6894_v17 = vadd.s32 256, %v6864_v25  ;;  %11716 = vst [vmem:[#allocation44_spill] sm:$0xff] %v11715_v44  ;;  %vm6929_vm6 = vcmp.ne.s32.totalorder %v545_v18, 0  ;;  %vm6981_vm9 = vcmp.ne.s32.totalorder %v545_v18, 15 }
 0x13c   : > { %v11735_v31 = vsel %vm6981_vm9, 4294967295, %v11734_v31 }
 0x13d   : > { %v745_v30 = vpop.permute.xlu1 %744  ;;  %v747_v38 = vpop.permute.xlu0 %746  ;;  %11706 = vst [vmem:[#allocation40_spill] sm:$0xff] %v6894_v17  ;;  %v552_v25 = vand.u32 15, %v6894_v17  ;;  %v11721_v17 = vmov 0  ;;  %11736 = vst [vmem:[#allocation54_spill] sm:$0xff] %v11735_v31  ;;  %v973_v31 = vmul.f32 %v6688_v40, %v6626_v8 }
 0x13e   : > { %v11722_v17 = vsel %vm6929_vm6, 4294967295, %v11721_v17  ;;  %v767_v21 = vsel %vm11593_vm0, %v743_v23, %v745_v30 }
 0x13f   : > { %1109 = vperm.xlu1 %6248, %v697_v29   ;;  %1156 = vperm.xlu0 %6247, %v700_v34   ;;  %v11707_v29 = vmov 0  ;;  %v769_v34 = vsel %vm11593_vm0, %v747_v38, %v719_v7  ;;  %v11718_v7 = vmov 0  ;;  %11723 = vst [vmem:[#allocation47_spill] sm:$0xff] %v11722_v17  ;;  %vm6933_vm7 = vcmp.ne.s32.totalorder %v552_v25, 0 }
 0x140   : > { %v11708_v29 = vsel %vm6898_vm1, 4294967295, %v11707_v29  ;;  %v6912_v6 = vsel %vm6898_vm1, %v769_v34, 0.0  ;;  %v11719_v7 = vsel %vm6923_vm5, 4294967295, %v11718_v7  ;;  %v11725_v2 = vsel %vm6933_vm7, 4294967295, %v11724_v2 }
 0x141   : > { %v6878_v48 = vpop.permute.xlu1 %748  ;;  %v6884_v0 = vpop.permute.xlu0 %750  ;;  %11709 = vst [vmem:[#allocation41_spill] sm:$0xff] %v11708_v29  ;;  %11713 = vst [vmem:[#allocation43_spill] sm:$0xff] %v6912_v6  ;;  %v939_v34 = vmul.f32 %v6666_v28, %v6912_v6  ;;  %vm6943_vm8 = vcmp.ne.s32.totalorder %v552_v25, 15  ;;  %v6974_v47 = vsel %vm6929_vm6, %v767_v21, 0.0  ;;  %v11754_v29 = vld [vmem:[#allocation19_spill] sm:$0xff] }
 0x142   : > { %11720 = vst [vmem:[#allocation46_spill] sm:$0xff] %v11719_v7  ;;  %11726 = vst [vmem:[#allocation48_spill] sm:$0xff] %v11725_v2  ;;  %v11728_v19 = vsel %vm6943_vm8, 4294967295, %v11727_v19 }
 0x143   : > { %1161 = vperm.xlu1 %6248, %v701_v43   ;;  %1608 = vperm.xlu0 %6247, %v1602_v57   ;;  %v11710_v57 = vmov 0  ;;  %11729 = vst [vmem:[#allocation49_spill] sm:$0xff] %v11728_v19  ;;  %v991_v39 = vadd.f32 %v975_v61, %v939_v34  ;;  %11733 = vst [vmem:[#allocation53_spill] sm:$0xff] %v6974_v47 }
 0x144   : > { %v11711_v57 = vsel %vm6903_vm2, 4294967295, %v11710_v57 }
 0x145   : > { %v6896_v22 = vpop.permute.xlu1 %752  ;;  %v824_v43 = vpop.permute.xlu0 %823  ;;  %11712 = vst [vmem:[#allocation42_spill] sm:$0xff] %v11711_v57 }
 0x146   : > { %v772_v24 = vsel %vm11593_vm0, %v6896_v22, %v6859_v20 }
 0x147   : > { %1613 = vperm.xlu1 %6248, %v1603_v13   ;;  %v6920_v13 = vsel %vm6903_vm2, %v795_v37, 0.0  ;;  %v768_v37 = vsel %vm11593_vm0, %v745_v30, %v747_v38  ;;  %v972_v30 = vmul.f32 %v6688_v40, %v6618_v5 }
 0x148   : > { %11717 = vst [vmem:[#allocation45_spill] sm:$0xff] %v6920_v13  ;;  %v936_v12 = vmul.f32 %v6666_v28, %v6920_v13  ;;  %v6961_v25 = vsel %vm6933_vm7, %v768_v37, 0.0 }
 0x149   : > { %v826_v58 = vpop.permute.xlu1 %825  ;;  %v828_v63 = vpop.permute.xlu0 %827  ;;  %11731 = vst [vmem:[#allocation51_spill] sm:$0xff] %v6961_v25  ;;  %v938_v21 = vmul.f32 %v6666_v28, %v6961_v25 }
 0x14a   : > { %v856_v11 = vsel %vm11554_vm3, %v824_v43, %v826_v58  ;;  %v857_v9 = vsel %vm11554_vm3, %v826_v58, %v828_v63 }
 0x14b   : > { %v6951_v38 = vsel %vm6914_vm4, %v856_v11, 0.0 }
 0x14c   : > { %11730 = vst [vmem:[#allocation50_spill] sm:$0xff] %v6951_v38  ;;  %v1024_v61 = vmul.f32 %v6725_v54, %v6951_v38 }
 0x14d   : > { %v830_v42 = vpop.permute.xlu1 %829  ;;  %v832_v36 = vpop.permute.xlu0 %831 }
 0x14e   : > { %v888_v50 = vsel %vm11554_vm3, %v830_v42, %v824_v43  ;;  %v858_v43 = vsel %vm11554_vm3, %v828_v63, %v830_v42  ;;  %v770_v42 = vsel %vm11593_vm0, %v6878_v48, %v6884_v0  ;;  %v937_v63 = vmul.f32 %v6666_v28, %v6974_v47 }
 0x14f   : > { %v6955_v45 = vsel %vm6923_vm5, %v888_v50, 0.0  ;;  %v6970_v50 = vsel %vm6898_vm1, %v772_v24, 0.0  ;;  %v6987_v24 = vsel %vm6943_vm8, %v858_v43, 0.0  ;;  %v974_v43 = vmul.f32 %v6688_v40, %v6628_v10 }
 0x150   : > { %v1027_v23 = vmul.f32 %v6725_v54, %v6955_v45  ;;  %11732 = vst [vmem:[#allocation52_spill] sm:$0xff] %v6970_v50  ;;  %11737 = vst [vmem:[#allocation55_spill] sm:$0xff] %v6987_v24  ;;  %v943_v18 = vmul.f32 %v6678_v35, %v6970_v50  ;;  %v7002_v1 = vsel %vm6929_vm6, %v770_v42, 0.0  ;;  %v1026_v27 = vmul.f32 %v6725_v54, %v6987_v24 }
 0x151   : > { %v834_v11 = vpop.permute.xlu1 %833  ;;  %v836_v34 = vpop.permute.xlu0 %835  ;;  %11738 = vst [vmem:[#allocation56_spill] sm:$0xff] %v7002_v1  ;;  %v7016_v42 = vsel %vm6981_vm9, %v857_v9, 0.0  ;;  %v941_v9 = vmul.f32 %v6678_v35, %v7002_v1 }
 0x152   : > { %v1043_v37 = vadd.f32 %v1027_v23, %v991_v39  ;;  %v860_v32 = vsel %vm11554_vm3, %v834_v11, %v836_v34  ;;  %v988_v39 = vadd.f32 %v972_v30, %v936_v12  ;;  %v979_v23 = vmul.f32 %v6699_v46, %v6616_v3  ;;  %11739 = vst [vmem:[#allocation57_spill] sm:$0xff] %v7016_v42 }
 0x153   : > { %v796_v12 = vsel %vm11593_vm0, %v6859_v20, %v6878_v48  ;;  %v7020_v17 = vsel %vm6981_vm9, %v860_v32, 0.0  ;;  %v990_v20 = vadd.f32 %v974_v43, %v938_v21  ;;  %v859_v48 = vsel %vm11554_vm3, %v832_v36, %v834_v11 }
 0x154   : > { %1340 = vrot.lane.b32.xlu0 %v1043_v37, %s11443_s16  ;;  %v1040_v41 = vadd.f32 %v1024_v61, %v988_v39  ;;  %11740 = vst [vmem:[#allocation58_spill] sm:$0xff] %v7020_v17  ;;  %v995_v61 = vadd.f32 %v979_v23, %v943_v18  ;;  %v977_v32 = vmul.f32 %v6699_v46, %v6637_v15  ;;  %v7038_v21 = vsel %vm6903_vm2, %v796_v12, 0.0 }
 0x155   : > { %v838_v58 = vpop.permute.xlu1 %837  ;;  %v7010_v37 = vpop.permute.xlu0 %722  ;;  %11741 = vst [vmem:[#allocation59_spill] sm:$0xff] %v7038_v21  ;;  %v1042_v23 = vadd.f32 %v1026_v27, %v990_v20  ;;  %v1025_v43 = vmul.f32 %v6725_v54, %v7016_v42  ;;  %v1029_v40 = vmul.f32 %v6731_v55, %v7020_v17  ;;  %v7053_v12 = vsel %vm6914_vm4, %v859_v48, 0.0 }
 0x156   : > { %v889_v30 = vsel %vm11554_vm3, %v838_v58, %v832_v36  ;;  %11742 = vst [vmem:[#allocation60_spill] sm:$0xff] %v7053_v12  ;;  %v993_v27 = vadd.f32 %v977_v32, %v941_v9  ;;  %v940_v54 = vmul.f32 %v6678_v35, %v7038_v21  ;;  %v976_v20 = vmul.f32 %v6699_v46, %v6635_v14 }
 0x157   : > { %v7024_v28 = vsel %vm6923_vm5, %v889_v30, 0.0  ;;  %v989_v30 = vadd.f32 %v973_v31, %v937_v63  ;;  %v1252_v48 = vmul.f32 %v6717_v52, %v6618_v5  ;;  %v1304_v9 = vmul.f32 %v6737_v56, %v6951_v38 }
 0x158   : > { %1364 = vrot.lane.b32.xlu0 %v1040_v41, %s11443_s16  ;;  %v1031_v39 = vmul.f32 %v6731_v55, %v7024_v28  ;;  %v771_v41 = vsel %vm11593_vm0, %v6884_v0, %v6896_v22  ;;  %v1216_v0 = vmul.f32 %v6703_v49, %v6920_v13  ;;  %v861_v22 = vsel %vm11554_vm3, %v836_v34, %v838_v58 }
 0x159   : > { %v7043_v36 = vpop.permute.xlu1 %724  ;;  %v7045_v11 = vpop.permute.xlu0 %754  ;;  %v7068_v31 = vsel %vm6933_vm7, %v771_v41, 0.0  ;;  %v1041_v58 = vadd.f32 %v1025_v43, %v989_v30  ;;  %v7078_v32 = vsel %vm6943_vm8, %v861_v22, 0.0  ;;  %v992_v41 = vadd.f32 %v976_v20, %v940_v54 }
 0x15a   : > { %v1047_v18 = vadd.f32 %v1031_v39, %v995_v61  ;;  %11743 = vst [vmem:[#allocation61_spill] sm:$0xff] %v7068_v31  ;;  %v1045_v61 = vadd.f32 %v1029_v40, %v993_v27  ;;  %v1028_v39 = vmul.f32 %v6731_v55, %v7053_v12  ;;  %11744 = vst [vmem:[#allocation62_spill] sm:$0xff] %v7078_v32 }
 0x15b   : > { %v1218_v43 = vmul.f32 %v6703_v49, %v6961_v25  ;;  %v978_v40 = vmul.f32 %v6699_v46, %v6643_v16  ;;  %v1254_v30 = vmul.f32 %v6717_v52, %v6628_v10  ;;  %v1030_v54 = vmul.f32 %v6731_v55, %v7078_v32 }
 0x15c   : > { %1342 = vrot.lane.b32.xlu1 %v1047_v18, %s11443_s16  ;;  %1368 = vrot.lane.b32.xlu0 %v1042_v23, %s11443_s16  ;;  %v1268_v18 = vadd.f32 %v1252_v48, %v1216_v0  ;;  %v942_v23 = vmul.f32 %v6678_v35, %v7068_v31  ;;  %v1044_v27 = vadd.f32 %v1028_v39, %v992_v41 }
 0x15d   : > { %v7070_v63 = vpop.permute.xlu1 %756  ;;  %v759_v34 = vpop.permute.xlu0 %758  ;;  %v1306_v35 = vmul.f32 %v6737_v56, %v6987_v24  ;;  %v1217_v20 = vmul.f32 %v6703_v49, %v6974_v47  ;;  %v1256_v39 = vmul.f32 %v6723_v53, %v6635_v14  ;;  %v1257_v55 = vmul.f32 %v6723_v53, %v6637_v15 }
 0x15e   : > { %v1320_v48 = vadd.f32 %v1304_v9, %v1268_v18  ;;  %v994_v46 = vadd.f32 %v978_v40, %v942_v23  ;;  %v1253_v9 = vmul.f32 %v6717_v52, %v6626_v8  ;;  %v1305_v41 = vmul.f32 %v6737_v56, %v7016_v42  ;;  %v11758_v42 = vld [vmem:[#allocation16_spill] sm:$0xff] }
 0x15f   : > { %v775_v23 = vsel %vm11593_vm0, %v759_v34, %v7010_v37  ;;  %v1259_v14 = vmul.f32 %v6723_v53, %v6616_v3  ;;  %v1222_v15 = vmul.f32 %v6711_v51, %v7068_v31 }
 0x160   : > { %1366 = vrot.lane.b32.xlu1 %v1041_v58, %s11443_s16  ;;  %1372 = vrot.lane.b32.xlu0 %v1045_v61, %s11443_s16  ;;  %v1270_v58 = vadd.f32 %v1254_v30, %v1218_v43  ;;  %v1220_v61 = vmul.f32 %v6711_v51, %v7038_v21  ;;  %v1046_v40 = vadd.f32 %v1030_v54, %v994_v46 }
 0x161   : > { %v7090_v22 = vpop.permute.xlu1 %760  ;;  %v7092_v0 = vpop.permute.xlu0 %762  ;;  %v1219_v21 = vmul.f32 %v6703_v49, %v6912_v6  ;;  %v797_v54 = vsel %vm11593_vm0, %v7010_v37, %v7045_v11  ;;  %v1221_v37 = vmul.f32 %v6711_v51, %v7002_v1 }
 0x162   : > { %v1322_v30 = vadd.f32 %v1306_v35, %v1270_v58  ;;  %v1269_v35 = vadd.f32 %v1253_v9, %v1217_v20  ;;  %v1272_v46 = vadd.f32 %v1256_v39, %v1220_v61  ;;  %v1255_v58 = vmul.f32 %v6717_v52, %v6610_v59 }
 0x163   : > { %v1310_v52 = vmul.f32 %v6747_v60, %v7078_v32  ;;  %v983_v39 = vmul.f32 %v6765_v4, %v6664_v26  ;;  %v7149_v9 = vsel %vm6903_vm2, %v797_v54, 0.0  ;;  %v1309_v54 = vmul.f32 %v6747_v60, %v7020_v17  ;;  %v11757_v32 = vld [vmem:[#allocation23_spill] sm:$0xff] }
 0x164   : > { %1370 = vrot.lane.b32.xlu1 %v1044_v27, %s11443_s16  ;;  %1461 = vrot.lane.b32.xlu0 %v1320_v48, %s11441_s15  ;;  %v1308_v27 = vmul.f32 %v6747_v60, %v7053_v12  ;;  %v1258_v48 = vmul.f32 %v6723_v53, %v6643_v16  ;;  %v7135_v53 = vsel %vm6898_vm1, %v775_v23, 0.0  ;;  %v1307_v12 = vmul.f32 %v6737_v56, %v6955_v45 }
 0x165   : > { %v7110_v18 = vpop.permute.xlu1 %764  ;;  %v840_v43 = vpop.permute.xlu0 %839  ;;  %11745 = vst [vmem:[#allocation63_spill] sm:$0xff] %v7135_v53  ;;  %v1321_v20 = vadd.f32 %v1305_v41, %v1269_v35  ;;  %11746 = vst [vmem:[#allocation64_spill] sm:$0xff] %v7149_v9  ;;  %v1271_v56 = vadd.f32 %v1255_v58, %v1219_v21  ;;  %v774_v16 = vsel %vm11593_vm0, %v7070_v63, %v759_v34 }
 0x166   : > { %v1324_v61 = vadd.f32 %v1308_v27, %v1272_v46  ;;  %v1274_v23 = vadd.f32 %v1258_v48, %v1222_v15  ;;  %v947_v41 = vmul.f32 %v6752_v62, %v7135_v53  ;;  %v1273_v46 = vadd.f32 %v1257_v55, %v1221_v37 }
 0x167   : > { %v1323_v35 = vadd.f32 %v1307_v12, %v1271_v56  ;;  %v1223_v15 = vmul.f32 %v6711_v51, %v6970_v50  ;;  %v778_v21 = vsel %vm11593_vm0, %v7110_v18, %v7043_v36  ;;  %v773_v12 = vsel %vm11593_vm0, %v7045_v11, %v7070_v63  ;;  %v11750_v11 = vld [vmem:[#allocation29_spill] sm:$0xff] }
 0x168   : > { %1374 = vrot.lane.b32.xlu1 %v1046_v40, %s11443_s16  ;;  %1465 = vrot.lane.b32.xlu0 %v1322_v30, %s11441_s15  ;;  %v980_v40 = vmul.f32 %v6765_v4, %v6676_v33  ;;  %v1326_v58 = vadd.f32 %v1310_v52, %v1274_v23  ;;  %v7173_v55 = vsel %vm6933_vm7, %v774_v16, 0.0  ;;  %v776_v16 = vsel %vm11593_vm0, %v7090_v22, %v7092_v0 }
 0x169   : > { %v842_v49 = vpop.permute.xlu1 %841  ;;  %v844_v30 = vpop.permute.xlu0 %843  ;;  %11747 = vst [vmem:[#allocation65_spill] sm:$0xff] %v7173_v55  ;;  %v1325_v56 = vadd.f32 %v1309_v54, %v1273_v46  ;;  %v1311_v23 = vmul.f32 %v6747_v60, %v7024_v28  ;;  %v1275_v60 = vadd.f32 %v1259_v14, %v1223_v15  ;;  %v798_v14 = vsel %vm11593_vm0, %v7043_v36, %v7090_v22 }
 0x16a   : > { %v862_v31 = vsel %vm11554_vm3, %v840_v43, %v842_v49 }
 0x16b   : > { %v7177_v51 = vsel %vm6914_vm4, %v862_v31, 0.0  ;;  %v7193_v31 = vsel %vm6898_vm1, %v778_v21, 0.0  ;;  %v982_v21 = vmul.f32 %v6765_v4, %v11754_v29  ;;  %v1327_v15 = vadd.f32 %v1311_v23, %v1275_v60 }
 0x16c   : > { %1463 = vrot.lane.b32.xlu1 %v1321_v20, %s11441_s15  ;;  %1469 = vrot.lane.b32.xlu0 %v1324_v61, %s11441_s15  ;;  %v944_v20 = vmul.f32 %v6752_v62, %v7149_v9  ;;  %11748 = vst [vmem:[#allocation66_spill] sm:$0xff] %v7177_v51  ;;  %v999_v61 = vadd.f32 %v983_v39, %v947_v41  ;;  %11751 = vst [vmem:[#allocation29_spill] sm:$0xff] %v7193_v31 }
 0x16d   : > { %v846_v27 = vpop.permute.xlu1 %845  ;;  %v848_v48 = vpop.permute.xlu0 %847  ;;  %v951_v17 = vmul.f32 %v11757_v32, %v7193_v31 }
 0x16e   : > { %v890_v34 = vsel %vm11554_vm3, %v846_v27, %v840_v43  ;;  %v864_v37 = vsel %vm11554_vm3, %v844_v30, %v846_v27  ;;  %v996_v54 = vadd.f32 %v980_v40, %v944_v20 }
 0x16f   : > { %v7181_v43 = vsel %vm6923_vm5, %v890_v34, 0.0  ;;  %v1032_v34 = vmul.f32 %v11750_v11, %v7177_v51  ;;  %v7209_v46 = vsel %vm6943_vm8, %v864_v37, 0.0  ;;  %v11759_v37 = vld [vmem:[#allocation24_spill] sm:$0xff] }
 0x170   : > { %11749 = vst [vmem:[#allocation67_spill] sm:$0xff] %v7181_v43  ;;  %1467 = vrot.lane.b32.xlu1 %v1323_v35, %s11441_s15  ;;  %1473 = vrot.lane.b32.xlu0 %v1326_v58, %s11441_s15  ;;  %v1035_v63 = vmul.f32 %v11750_v11, %v7181_v43  ;;  %v7199_v35 = vsel %vm6929_vm6, %v773_v12, 0.0  ;;  %v946_v58 = vmul.f32 %v6752_v62, %v7173_v55  ;;  %11755 = vst [vmem:[#allocation69_spill] sm:$0xff] %v7209_v46 }
 0x171   : > { %v850_v52 = vpop.permute.xlu1 %849  ;;  %11753 = vst [vmem:[#allocation68_spill] sm:$0xff] %v7199_v35  ;;  %v852_v39 = vpop.permute.xlu0 %851  ;;  %v7213_v12 = vsel %vm6929_vm6, %v776_v16, 0.0  ;;  %v987_v8 = vmul.f32 %v11759_v37, %v11758_v42  ;;  %v1048_v20 = vadd.f32 %v1032_v34, %v996_v54  ;;  %v11764_v34 = vld [vmem:[#allocation30_spill] sm:$0xff] }
 0x172   : > { %v1051_v41 = vadd.f32 %v1035_v63, %v999_v61  ;;  %11756 = vst [vmem:[#allocation70_spill] sm:$0xff] %v7213_v12  ;;  %v863_v61 = vsel %vm11554_vm3, %v842_v49, %v844_v30  ;;  %v866_v63 = vsel %vm11554_vm3, %v850_v52, %v852_v39  ;;  %v945_v49 = vmul.f32 %v6752_v62, %v7199_v35  ;;  %v11766_v54 = vld [vmem:[#allocation18_spill] sm:$0xff] }
 0x173   : > { %v998_v16 = vadd.f32 %v982_v21, %v946_v58  ;;  %v7233_v27 = vsel %vm6981_vm9, %v863_v61, 0.0  ;;  %v7237_v1 = vsel %vm6981_vm9, %v866_v63, 0.0  ;;  %v949_v62 = vmul.f32 %v11757_v32, %v7213_v12  ;;  %v11765_v21 = vld [vmem:[#allocation21_spill] sm:$0xff] }
 0x174   : > { %1471 = vrot.lane.b32.xlu1 %v1325_v56, %s11441_s15  ;;  %1344 = vrot.lane.b32.xlu0 %v1051_v41, %s11443_s16  ;;  %v1034_v56 = vmul.f32 %v11750_v11, %v7209_v46  ;;  %11761 = vst [vmem:[#allocation23_spill] sm:$0xff] %v7233_v27  ;;  %11762 = vst [vmem:[#allocation24_spill] sm:$0xff] %v7237_v1  ;;  %v865_v22 = vsel %vm11554_vm3, %v848_v48, %v850_v52  ;;  %v7256_v63 = vsel %vm6903_vm2, %v798_v14, 0.0  ;;  %v1852_v41 = vld [vmem:[%s11355_s6 + $0x98] sm:$0xff] }
 0x175   : > { %v854_v40 = vpop.permute.xlu1 %853  ;;  %v1003_v23 = vadd.f32 %v987_v8, %v951_v17  ;;  %v985_v60 = vmul.f32 %v11759_v37, %v11765_v21  ;;  %v981_v61 = vmul.f32 %v6765_v4, %v11766_v54  ;;  %11767 = vst [vmem:[#allocation30_spill] sm:$0xff] %v7256_v63  ;;  %v1033_v8 = vmul.f32 %v11750_v11, %v7233_v27 }
 0x176   : > { %v891_v30 = vsel %vm11554_vm3, %v854_v40, %v848_v48  ;;  %v777_v48 = vsel %vm11593_vm0, %v7092_v0, %v7110_v18  ;;  %v1037_v17 = vmul.f32 %v11764_v34, %v7237_v1  ;;  %v867_v14 = vsel %vm11554_vm3, %v852_v39, %v854_v40 }
 0x177   : > { %v7241_v36 = vsel %vm6923_vm5, %v891_v30, 0.0  ;;  %v7267_v30 = vsel %vm6914_vm4, %v865_v22, 0.0  ;;  %v997_v4 = vadd.f32 %v981_v61, %v945_v49  ;;  %v1001_v0 = vadd.f32 %v985_v60, %v949_v62  ;;  %v11772_v62 = vld [vmem:[#allocation27_spill] sm:$0xff] }
 0x178   : > { %11763 = vst [vmem:[#allocation71_spill] sm:$0xff] %v7241_v36  ;;  %1475 = vrot.lane.b32.xlu1 %v1327_v15, %s11441_s15  ;;  %1376 = vrot.lane.b32.xlu0 %v1048_v20, %s11443_s16  ;;  %v1039_v58 = vmul.f32 %v11764_v34, %v7241_v36  ;;  %v1050_v15 = vadd.f32 %v1034_v56, %v998_v16  ;;  %11768 = vst [vmem:[#allocation72_spill] sm:$0xff] %v7267_v30  ;;  %v7276_v11 = vsel %vm6933_vm7, %v777_v48, 0.0  ;;  %v11770_v20 = vld [vmem:[#allocation25_spill] sm:$0xff]  ;;  %v11771_v56 = vld [vmem:[#allocation20_spill] sm:$0xff]  ;;  %vm1720_vm3 = vcmask 523264  }
 0x179   : > { %v948_v18 = vmul.f32 %v11757_v32, %v7256_v63  ;;  %11769 = vst [vmem:[#allocation73_spill] sm:$0xff] %v7276_v11  ;;  %v1224_v16 = vmul.f32 %v11770_v20, %v7149_v9  ;;  %v984_v49 = vmul.f32 %v11759_v37, %v11771_v56  ;;  %v1049_v22 = vadd.f32 %v1033_v8, %v997_v4  ;;  %v11774_v60 = vld [vmem:[#allocation31_spill] sm:$0xff] }
 0x17a   : > { %v1055_v52 = vadd.f32 %v1039_v58, %v1003_v23  ;;  %v1053_v39 = vadd.f32 %v1037_v17, %v1001_v0  ;;  %v1036_v40 = vmul.f32 %v11764_v34, %v7267_v30  ;;  %v1260_v23 = vmul.f32 %v11772_v62, %v6676_v33  ;;  %v11775_v17 = vld [vmem:[#allocation22_spill] sm:$0xff] }
 0x17b   : > { %v7288_v58 = vsel %vm6943_vm8, %v867_v14, 0.0  ;;  %v1312_v61 = vmul.f32 %v11774_v60, %v7177_v51  ;;  %v1000_v48 = vadd.f32 %v984_v49, %v948_v18  ;;  %v1226_v8 = vmul.f32 %v11770_v20, %v7173_v55  ;;  %v11800_v51 = vld [vmem:[#allocation56_spill] sm:$0xff] }
 0x17c   : > { %1346 = vrot.lane.b32.xlu1 %v1055_v52, %s11443_s16  ;;  %1380 = vrot.lane.b32.xlu0 %v1050_v15, %s11443_s16  ;;  %11773 = vst [vmem:[#allocation25_spill] sm:$0xff] %v7288_v58  ;;  %v950_v52 = vmul.f32 %v11757_v32, %v7276_v11  ;;  %v1276_v15 = vadd.f32 %v1260_v23, %v1224_v16 }
 0x17d   : > { %v986_v4 = vmul.f32 %v11759_v37, %v11775_v17  ;;  %v1052_v14 = vadd.f32 %v1036_v40, %v1000_v48  ;;  %v1038_v0 = vmul.f32 %v11764_v34, %v7288_v58  ;;  %v1314_v32 = vmul.f32 %v11774_v60, %v7209_v46  ;;  %v11776_v34 = vld [vmem:[#allocation26_spill] sm:$0xff] }
 0x17e   : > { %v1328_v18 = vadd.f32 %v1312_v61, %v1276_v15  ;;  %v1225_v49 = vmul.f32 %v11770_v20, %v7199_v35  ;;  %v1261_v40 = vmul.f32 %v11772_v62, %v11766_v54  ;;  %v1313_v48 = vmul.f32 %v11774_v60, %v7233_v27  ;;  %v11797_v27 = vld [vmem:[#allocation36_spill] sm:$0xff] }
 0x17f   : > { %v1002_v16 = vadd.f32 %v986_v4, %v950_v52  ;;  %v11777_v52 = vld [vmem:[#allocation28_spill] sm:$0xff]  ;;  %v1227_v57 = vmul.f32 %v11770_v20, %v7135_v53  ;;  %v1263_v7 = vmul.f32 %v11772_v62, %v6664_v26 }
 0x180   : > { %1378 = vrot.lane.b32.xlu1 %v1049_v22, %s11443_s16  ;;  %1384 = vrot.lane.b32.xlu0 %v1053_v39, %s11443_s16  ;;  %v1262_v22 = vmul.f32 %v11772_v62, %v11754_v29  ;;  %v1228_v39 = vmul.f32 %v11776_v34, %v7256_v63  ;;  %v1264_v15 = vmul.f32 %v11777_v52, %v11771_v56 }
 0x181   : > { %v1054_v61 = vadd.f32 %v1038_v0, %v1002_v16  ;;  %v1230_v16 = vmul.f32 %v11776_v34, %v7276_v11  ;;  %v1229_v62 = vmul.f32 %v11776_v34, %v7213_v12 }
 0x182   : > { %v7304_v44 = vpop.permute.xlu0 %2151  ;;  %v1278_v37 = vadd.f32 %v1262_v22, %v1226_v8  ;;  %v11778_v8 = vld [vmem:[#allocation32_spill] sm:$0xff]  ;;  %v1280_v0 = vadd.f32 %v1264_v15, %v1228_v39 }
 0x183   : > { %v1316_v22 = vmul.f32 %v11778_v8, %v7267_v30  ;;  %v1318_v39 = vmul.f32 %v11778_v8, %v7288_v58  ;;  %v2169_v12 = vmul.f32 %v7304_v44, %v6920_v13 }
 0x184   : > { %1382 = vrot.lane.b32.xlu1 %v1052_v14, %s11443_s16  ;;  %1477 = vrot.lane.b32.xlu0 %v1328_v18, %s11441_s15  ;;  %v1330_v14 = vadd.f32 %v1314_v32, %v1278_v37  ;;  %v1277_v18 = vadd.f32 %v1261_v40, %v1225_v49  ;;  %v1315_v37 = vmul.f32 %v11774_v60, %v7181_v43 }
 0x185   : > { %v1266_v49 = vmul.f32 %v11777_v52, %v11775_v17  ;;  %v1332_v20 = vadd.f32 %v1316_v22, %v1280_v0  ;;  %v1265_v60 = vmul.f32 %v11777_v52, %v11765_v21  ;;  %v1317_v22 = vmul.f32 %v11778_v8, %v7237_v1  ;;  %v11809_v17 = vld [vmem:[#allocation61_spill] sm:$0xff] }
 0x186   : > { %v7316_v23 = vpop.permute.xlu1 %2156  ;;  %v7322_v4 = vpop.permute.xlu0 %2187  ;;  %v1329_v32 = vadd.f32 %v1313_v48, %v1277_v18  ;;  %v1932_v43 = vmul.f32 %v11797_v27, %v6616_v3 }
 0x187   : > { %v1282_v48 = vadd.f32 %v1266_v49, %v1230_v16  ;;  %v1267_v16 = vmul.f32 %v11777_v52, %v11758_v42  ;;  %v1604_v49 = vld [vmem:[%s11704_s4 + $0x10] sm:$0xff]  ;;  %v1845_v52 = vld [vmem:[%s11355_s6 + $0x60] sm:$0xff]  ;;  %v2205_v63 = vmul.f32 %v7322_v4, %v6618_v5 }
 0x188   : > { %1386 = vrot.lane.b32.xlu1 %v1054_v61, %s11443_s16  ;;  %1481 = vrot.lane.b32.xlu0 %v1330_v14, %s11441_s15  ;;  %v1279_v61 = vadd.f32 %v1263_v7, %v1227_v57  ;;  %v1281_v57 = vadd.f32 %v1265_v60, %v1229_v62  ;;  %v1231_v7 = vmul.f32 %v11776_v34, %v7193_v31  ;;  %s11307_s16 = scalar_lea.sflag [#allocation5], %s12447_s26 }
 0x189   : > { %v1334_v0 = vadd.f32 %v1318_v39, %v1282_v48 }
 0x18a   : > { %v7334_v19 = vpop.permute.xlu1 %2192  ;;  %v7340_v40 = vpop.permute.xlu0 %1959  ;;  %v1331_v14 = vadd.f32 %v1315_v37, %v1279_v61  ;;  %v1333_v37 = vadd.f32 %v1317_v22, %v1281_v57  ;;  %v1283_v34 = vadd.f32 %v1267_v16, %v1231_v7  ;;  %v1853_v7 = vld [vmem:[%s11355_s6 + $0xa0] sm:$0xff] }
 0x18c   : > { %1479 = vrot.lane.b32.xlu1 %v1329_v32, %s11441_s15  ;;  %1485 = vrot.lane.b32.xlu0 %v1332_v20, %s11441_s15  ;;  %v1319_v20 = vmul.f32 %v11778_v8, %v7241_v36  ;;  %v1605_v8 = vld [vmem:[%s11704_s4 + $0x18] sm:$0xff]  ;;  %s11263_s4 = scalar_lea.vmem [#allocation4], %s6602_s17  ;;  %s12446_s17 = sadd.s32 4294967295, %s6337_s24  }
 0x18d   : > { %s5998_s19 = sshll.u32 %s11263_s4, 4  ;;  %s11298_s19 = int_to_ptr.vmem [resolvable:$true] %s5998_s19 }
 0x18e   : > { %v7350_v15 = vpop.permute.xlu1 %1964  ;;  %v7354_v18 = vpop.permute.xlu0 %2239  ;;  %v1335_v62 = vadd.f32 %v1319_v20, %v1283_v34  ;;  %v1847_v20 = vld [vmem:[%s11355_s6 + $0x70] sm:$0xff]  ;;  %s6275_s2 = scalar_lea.vmem %s11298_s19, 2048 }
 0x18f   : > { %p6276_p13 = scmp.ne.s32.totalorder %s11298_s19, %s6275_s2 }
 0x190   : > { %1483 = vrot.lane.b32.xlu1 %v1331_v14, %s11441_s15  ;;  %1489 = vrot.lane.b32.xlu0 %v1334_v0, %s11441_s15  ;;  %v1849_v14 = vld [vmem:[%s11355_s6 + $0x80] sm:$0xff]  ;;  %v1846_v0 = vld [vmem:[%s11355_s6 + $0x68] sm:$0xff] }
 0x191   : > { %p6277_p0 = pnand %p6276_p13, %p6451_p6 }
 0x192   : > { %v7362_v32 = vpop.permute.xlu1 %2244  ;;  %v7369_v39 = vpop.permute.xlu0 %1881 }
 0x193   : > { %p6278_p1 = pneg %p6277_p0 }
 0x194   : > { %1487 = vrot.lane.b32.xlu1 %v1333_v37, %s11441_s15  ;;  %1618 = vperm.xlu0 %6247, %v1604_v49   ;;  %v1850_v37 = vld [vmem:[%s11355_s6 + $0x88] sm:$0xff] }
 0x196   : > { %v7372_v61 = vpop.permute.xlu1 %1886  ;;  %v7377_v48 = vpop.permute.xlu0 %1917 }
 0x197   : > { %11779 = vst [vmem:[#allocation27_spill] sm:$0xff] %v7372_v61  ;;  %v2172_v61 = vmul.f32 %v7304_v44, %v6912_v6 }
 0x198   : > { %1491 = vrot.lane.b32.xlu1 %v1335_v62, %s11441_s15  ;;  %2011 = vperm.xlu0 %6247, %v1845_v52   ;;  %v1854_v62 = vld [vmem:[%s11355_s6 + $0xa8] sm:$0xff]  ;;  %s11821_s15 = smov 112  }
 0x19a   : > { %v7383_v60 = vpop.permute.xlu1 %1922  ;;  %v7388_v22 = vpop.permute.xlu0 %2161 }
 0x19b   : > { %11780 = vst [vmem:[#allocation31_spill] sm:$0xff] %v7388_v22  ;;  %v11802_v22 = vld [vmem:[#allocation57_spill] sm:$0xff] }
 0x19c   : > { %1623 = vperm.xlu1 %6248, %v1605_v8   ;;  %2047 = vperm.xlu0 %6247, %v1849_v14   ;;  %v1851_v8 = vld [vmem:[%s11355_s6 + $0x90] sm:$0xff]  ;;  %v1978_v31 = vmul.f32 %v7340_v40, %v11802_v22 }
 0x19e   : > { %v7393_v57 = vpop.permute.xlu1 %2166  ;;  %v7398_v16 = vpop.permute.xlu0 %2197 }
 0x19f   : > { %11781 = vst [vmem:[#allocation26_spill] sm:$0xff] %v7393_v57  ;;  %11782 = vst [vmem:[#allocation28_spill] sm:$0xff] %v7398_v16  ;;  %v11801_v57 = vld [vmem:[#allocation10_spill] sm:$0xff] }
 0x1a0   : > { %2016 = vperm.xlu1 %6248, %v1846_v0   ;;  %2099 = vperm.xlu0 %6247, %v1853_v7   ;;  %v1848_v0 = vld [vmem:[%s11355_s6 + $0x78] sm:$0xff] }
 0x1a2   : > { %v7403_v49 = vpop.permute.xlu1 %2202  ;;  %v7408_v34 = vpop.permute.xlu0 %1969 }
 0x1a3   : > { %11783 = vst [vmem:[#allocation32_spill] sm:$0xff] %v7403_v49  ;;  %11784 = vst [vmem:[#allocation74_spill] sm:$0xff] %v7408_v34  ;;  %v11791_v49 = vld [vmem:[#allocation35_spill] sm:$0xff] }
 0x1a4   : > { %2052 = vperm.xlu1 %6248, %v1850_v37   ;;  %2021 = vperm.xlu0 %6247, %v1847_v20   ;;  %v1855_v37 = vld [vmem:[%s11355_s6 + $0xb0] sm:$0xff]  ;;  %v1925_v36 = vmul.f32 %v11791_v49, %v6618_v5  ;;  %v1926_v16 = vmul.f32 %v11791_v49, %v11801_v57  ;;  %v2171_v5 = vmul.f32 %v7304_v44, %v6961_v25 }
 0x1a6   : > { %v7413_v52 = vpop.permute.xlu1 %1974  ;;  %v7418_v14 = vpop.permute.xlu0 %2249 }
 0x1a7   : > { %11785 = vst [vmem:[#allocation75_spill] sm:$0xff] %v7413_v52  ;;  %11786 = vst [vmem:[#allocation76_spill] sm:$0xff] %v7418_v14  ;;  %v1928_v14 = vmul.f32 %v11791_v49, %v6610_v59  ;;  %v1977_v52 = vmul.f32 %v7340_v40, %v6951_v38 }
 0x1a8   : > { %2104 = vperm.xlu1 %6248, %v1854_v62   ;;  %2057 = vperm.xlu0 %6247, %v1851_v8   ;;  %v11789_v62 = vld [vmem:[#allocation33_spill] sm:$0xff] }
 0x1a9   : > { %v1892_v8 = vmul.f32 %v11789_v62, %v6912_v6  ;;  %v1890_v46 = vmul.f32 %v11789_v62, %v6974_v47 }
 0x1aa   : > { %v7423_v7 = vpop.permute.xlu1 %2254  ;;  %v7428_v20 = vpop.permute.xlu0 %1058 }
 0x1ab   : > { %11787 = vst [vmem:[#allocation77_spill] sm:$0xff] %v7423_v7  ;;  %11788 = vst [vmem:[#allocation78_spill] sm:$0xff] %v7428_v20  ;;  %v2521_v7 = vld [vmem:[%s11356_s7] sm:$0xff]  ;;  %v1856_v20 = vld [vmem:[%s11355_s6 + $0xb8] sm:$0xff]  ;;  %v1944_v58 = vadd.f32 %v1928_v14, %v1892_v8 }
 0x1ac   : > { %2026 = vperm.xlu1 %6248, %v1848_v0   ;;  %2109 = vperm.xlu0 %6247, %v1855_v37   ;;  %v1980_v0 = vmul.f32 %v7340_v40, %v6955_v45  ;;  %v2522_v14 = vld [vmem:[%s11356_s7 + $0x8] sm:$0xff] }
 0x1ae   : > { %v7435_v2 = vpop.permute.xlu1 %1063  ;;  %v7444_v37 = vpop.permute.xlu0 %1094 }
 0x1af   : > { %11790 = vst [vmem:[#allocation33_spill] sm:$0xff] %v7435_v2  ;;  %11792 = vst [vmem:[#allocation35_spill] sm:$0xff] %v7444_v37  ;;  %v1889_v2 = vmul.f32 %v11789_v62, %v6920_v13 }
 0x1b0   : > { %2062 = vperm.xlu1 %6248, %v1852_v41   ;;  %2527 = vperm.xlu0 %6247, %v2521_v7   ;;  %v1996_v41 = vadd.f32 %v1980_v0, %v1944_v58  ;;  %v11795_v7 = vld [vmem:[#allocation34_spill] sm:$0xff]  ;;  %v1984_v58 = vmul.f32 %v7350_v15, %v7024_v28  ;;  %v1927_v0 = vmul.f32 %v11791_v49, %v6628_v10 }
 0x1b1   : > { %v1896_v37 = vmul.f32 %v11795_v7, %v6970_v50  ;;  %v1941_v8 = vadd.f32 %v1925_v36, %v1889_v2  ;;  %v1942_v49 = vadd.f32 %v1926_v16, %v1890_v46  ;;  %v11813_v46 = vld [vmem:[#allocation14_spill] sm:$0xff] }
 0x1b2   : > { %v7451_v30 = vpop.permute.xlu1 %1099  ;;  %v7457_v1 = vpop.permute.xlu0 %1146  ;;  %v1931_v16 = vmul.f32 %v11797_v27, %v11813_v46 }
 0x1b3   : > { %11793 = vst [vmem:[#allocation79_spill] sm:$0xff] %v7451_v30  ;;  %11794 = vst [vmem:[#allocation80_spill] sm:$0xff] %v7457_v1  ;;  %v1891_v30 = vmul.f32 %v11789_v62, %v6961_v25  ;;  %v1993_v2 = vadd.f32 %v1977_v52, %v1941_v8  ;;  %v1948_v36 = vadd.f32 %v1932_v43, %v1896_v37  ;;  %v11805_v37 = vld [vmem:[#allocation58_spill] sm:$0xff] }
 0x1b4   : > { %2114 = vperm.xlu1 %6248, %v1856_v20   ;;  %2293 = vrot.lane.b32.xlu0 %v1996_v41, %s11796_s20  ;;  %v1979_v41 = vmul.f32 %v7340_v40, %v6987_v24  ;;  %v1982_v62 = vmul.f32 %v7350_v15, %v11805_v37 }
 0x1b5   : > { %v1943_v34 = vadd.f32 %v1927_v0, %v1891_v30  ;;  %v2000_v52 = vadd.f32 %v1984_v58, %v1948_v36  ;;  %v11807_v0 = vld [vmem:[#allocation37_spill] sm:$0xff]  ;;  %v1895_v58 = vmul.f32 %v11795_v7, %v11809_v17 }
 0x1b6   : > { %v7471_v20 = vpop.permute.xlu1 %1151  ;;  %v7477_v1 = vpop.permute.xlu0 %1068 }
 0x1b7   : > { %11798 = vst [vmem:[#allocation34_spill] sm:$0xff] %v7471_v20  ;;  %11799 = vst [vmem:[#allocation36_spill] sm:$0xff] %v7477_v1  ;;  %v1894_v20 = vmul.f32 %v11795_v7, %v11800_v51  ;;  %v1995_v30 = vadd.f32 %v1979_v41, %v1943_v34  ;;  %v11808_v1 = vld [vmem:[#allocation59_spill] sm:$0xff]  ;;  %v11812_v41 = vld [vmem:[#allocation12_spill] sm:$0xff] }
 0x1b8   : > { %2532 = vperm.xlu1 %6248, %v2522_v14   ;;  %2317 = vrot.lane.b32.xlu0 %v1993_v2, %s11796_s20  ;;  %v11804_v14 = vld [vmem:[#allocation13_spill] sm:$0xff]  ;;  %v1893_v40 = vmul.f32 %v11795_v7, %v11808_v1  ;;  %v11814_v2 = vld [vmem:[#allocation60_spill] sm:$0xff] }
 0x1b9   : > { %v1930_v43 = vmul.f32 %v11797_v27, %v11804_v14  ;;  %v2210_v36 = vmul.f32 %v7334_v19, %v11804_v14 }
 0x1ba   : > { %v7488_v11 = vpop.permute.xlu1 %1073  ;;  %v7494_v8 = vpop.permute.xlu0 %1104 }
 0x1bb   : > { %11803 = vst [vmem:[#allocation81_spill] sm:$0xff] %v7488_v11  ;;  %11806 = vst [vmem:[#allocation58_spill] sm:$0xff] %v7494_v8  ;;  %v1946_v34 = vadd.f32 %v1930_v43, %v1894_v20  ;;  %v1981_v8 = vmul.f32 %v7350_v15, %v11814_v2  ;;  %v1994_v11 = vadd.f32 %v1978_v31, %v1942_v49 }
 0x1bc   : > { %2295 = vrot.lane.b32.xlu1 %v2000_v52, %s11796_s20  ;;  %2321 = vrot.lane.b32.xlu0 %v1995_v30, %s11796_s20  ;;  %v1929_v52 = vmul.f32 %v11797_v27, %v11812_v41  ;;  %v2257_v20 = vmul.f32 %v7354_v18, %v6951_v38  ;;  %v2170_v27 = vmul.f32 %v7304_v44, %v6974_v47 }
 0x1bd   : > { %v1998_v30 = vadd.f32 %v1982_v62, %v1946_v34  ;;  %v1947_v49 = vadd.f32 %v1931_v16, %v1895_v58  ;;  %v2221_v62 = vadd.f32 %v2205_v63, %v2169_v12  ;;  %v2208_v34 = vmul.f32 %v7322_v4, %v6610_v59 }
 0x1be   : > { %v7513_v7 = vpop.permute.xlu1 %1109  ;;  %v7520_v43 = vpop.permute.xlu0 %1156  ;;  %v1945_v31 = vadd.f32 %v1929_v52, %v1893_v40  ;;  %v11818_v40 = vld [vmem:[#allocation62_spill] sm:$0xff]  ;;  %v2173_v44 = vmul.f32 %v7316_v23, %v11808_v1  ;;  %v2211_v16 = vmul.f32 %v7334_v19, %v11813_v46 }
 0x1bf   : > { %11815 = vst [vmem:[#allocation37_spill] sm:$0xff] %v7513_v7  ;;  %11817 = vst [vmem:[#allocation60_spill] sm:$0xff] %v7520_v43  ;;  %v2206_v7 = vmul.f32 %v7322_v4, %v11801_v57  ;;  %v2207_v43 = vmul.f32 %v7322_v4, %v6628_v10  ;;  %v1983_v58 = vmul.f32 %v7350_v15, %v11818_v40 }
 0x1c0   : > { %2319 = vrot.lane.b32.xlu1 %v1994_v11, %s11796_s20  ;;  %2325 = vrot.lane.b32.xlu0 %v1998_v30, %s11796_s20  ;;  %v2209_v11 = vmul.f32 %v7334_v19, %v11812_v41  ;;  %v1997_v52 = vadd.f32 %v1981_v8, %v1945_v31  ;;  %v2259_v30 = vmul.f32 %v7354_v18, %v6987_v24 }
 0x1c1   : > { %v2273_v63 = vadd.f32 %v2257_v20, %v2221_v62  ;;  %v2174_v4 = vmul.f32 %v7316_v23, %v11800_v51  ;;  %v2212_v15 = vmul.f32 %v7334_v19, %v6616_v3  ;;  %v2258_v8 = vmul.f32 %v7354_v18, %v11802_v22 }
 0x1c2   : > { %v7546_v12 = vpop.permute.xlu0 %1608  ;;  %v7556_v31 = vpop.permute.xlu1 %1161  ;;  %v2176_v20 = vmul.f32 %v7316_v23, %v6970_v50  ;;  %v2260_v62 = vmul.f32 %v7354_v18, %v6955_v45  ;;  %v2223_v24 = vadd.f32 %v2207_v43, %v2171_v5  ;;  %v1999_v19 = vadd.f32 %v1983_v58, %v1947_v49 }
 0x1c3   : > { %11819 = vst [vmem:[#allocation82_spill] sm:$0xff] %v7546_v12  ;;  %11820 = vst [vmem:[#allocation83_spill] sm:$0xff] %v7556_v31  ;;  %v2175_v12 = vmul.f32 %v7316_v23, %v11809_v17  ;;  %v2222_v38 = vadd.f32 %v2206_v7, %v2170_v27  ;;  %v2225_v46 = vadd.f32 %v2209_v11, %v2173_v44 }
 0x1c4   : > { %2323 = vrot.lane.b32.xlu1 %v1997_v52, %s11796_s20  ;;  %2405 = vrot.lane.b32.xlu0 %v2273_v63, %s11821_s15  ;;  %v2224_v22 = vadd.f32 %v2208_v34, %v2172_v61  ;;  %v2261_v31 = vmul.f32 %v7362_v32, %v11814_v2  ;;  %v2263_v52 = vmul.f32 %v7362_v32, %v11818_v40 }
 0x1c5   : > { %v2275_v17 = vadd.f32 %v2259_v30, %v2223_v24  ;;  %v2227_v23 = vadd.f32 %v2211_v16, %v2175_v12  ;;  %v2262_v18 = vmul.f32 %v7362_v32, %v11805_v37  ;;  %v2274_v5 = vadd.f32 %v2258_v8, %v2222_v38 }
 0x1c6   : > { %v7570_v3 = vpop.permute.xlu0 %1340  ;;  %v2226_v43 = vadd.f32 %v2210_v36, %v2174_v4  ;;  %v2228_v7 = vadd.f32 %v2212_v15, %v2176_v20  ;;  %v2264_v61 = vmul.f32 %v7362_v32, %v7024_v28  ;;  %v1897_v27 = vmul.f32 %v7369_v39, %v7149_v9  ;;  %v7590_v11 = vpop.permute.xlu1 %1613  ;;  %v11823_v4 = vld [vmem:[#allocation30_spill] sm:$0xff]  ;;  %v11824_v15 = vld [vmem:[#allocation27_spill] sm:$0xff] }
 0x1c7   : > { %v1898_v49 = vmul.f32 %v7369_v39, %v7199_v35  ;;  %v2276_v24 = vadd.f32 %v2260_v62, %v2224_v22  ;;  %v1899_v34 = vmul.f32 %v7369_v39, %v7173_v55  ;;  %v1900_v38 = vmul.f32 %v7369_v39, %v7135_v53  ;;  %11822 = vst [vmem:[#allocation84_spill] sm:$0xff] %v7590_v11 }
 0x1c8   : > { %2327 = vrot.lane.b32.xlu1 %v1999_v19, %s11796_s20  ;;  %2409 = vrot.lane.b32.xlu0 %v2275_v17, %s11821_s15  ;;  %v1933_v36 = vmul.f32 %v7377_v48, %v6676_v33  ;;  %v1936_v32 = vmul.f32 %v7377_v48, %v6664_v26  ;;  %v1934_v58 = vmul.f32 %v7377_v48, %v11766_v54  ;;  %v11827_v19 = vld [vmem:[#allocation73_spill] sm:$0xff] }
 0x1c9   : > { %v1935_v17 = vmul.f32 %v7377_v48, %v11754_v29  ;;  %v2277_v44 = vadd.f32 %v2261_v31, %v2225_v46  ;;  %v2279_v16 = vadd.f32 %v2263_v52, %v2227_v23  ;;  %v1937_v39 = vmul.f32 %v7383_v60, %v11771_v56  ;;  %v11825_v48 = vld [vmem:[#allocation70_spill] sm:$0xff]  ;;  %v11828_v23 = vld [vmem:[#allocation29_spill] sm:$0xff] }
 0x1ca   : > { %v7596_v22 = vpop.permute.xlu0 %1364  ;;  %v1938_v30 = vmul.f32 %v7383_v60, %v11765_v21  ;;  %v1940_v12 = vmul.f32 %v7383_v60, %v11758_v42  ;;  %v2278_v63 = vadd.f32 %v2262_v18, %v2226_v43  ;;  %v1901_v8 = vmul.f32 %v11824_v15, %v11823_v4  ;;  %v11826_v46 = vld [vmem:[#allocation22_spill] sm:$0xff]  ;;  %v11829_v42 = vld [vmem:[#allocation31_spill] sm:$0xff] }
 0x1cb   : > { %v1902_v20 = vmul.f32 %v11824_v15, %v11825_v48  ;;  %v1939_v31 = vmul.f32 %v7383_v60, %v11826_v46  ;;  %v2280_v62 = vadd.f32 %v2264_v61, %v2228_v7  ;;  %v1903_v52 = vmul.f32 %v11824_v15, %v11827_v19 }
 0x1cc   : > { %2407 = vrot.lane.b32.xlu1 %v2274_v5, %s11821_s15  ;;  %2413 = vrot.lane.b32.xlu0 %v2277_v44, %s11821_s15  ;;  %v1904_v11 = vmul.f32 %v11824_v15, %v11828_v23  ;;  %v1952_v18 = vadd.f32 %v1936_v32, %v1900_v38  ;;  %v1949_v43 = vadd.f32 %v1933_v36, %v1897_v27  ;;  %v11831_v27 = vld [vmem:[#allocation28_spill] sm:$0xff] }
 0x1cd   : > { %v2177_v21 = vmul.f32 %v11829_v42, %v7149_v9  ;;  %v2178_v48 = vmul.f32 %v11829_v42, %v7199_v35  ;;  %v1951_v44 = vadd.f32 %v1935_v17, %v1899_v34  ;;  %v1950_v7 = vadd.f32 %v1934_v58, %v1898_v49  ;;  %v11832_v34 = vld [vmem:[#allocation26_spill] sm:$0xff] }
 0x1ce   : > { %v7616_v5 = vpop.permute.xlu1 %1342  ;;  %v7622_v60 = vpop.permute.xlu0 %1368  ;;  %v2179_v61 = vmul.f32 %v11829_v42, %v7173_v55  ;;  %v1956_v15 = vadd.f32 %v1940_v12, %v1904_v11  ;;  %v1954_v23 = vadd.f32 %v1938_v30, %v1902_v20  ;;  %v1953_v19 = vadd.f32 %v1937_v39, %v1901_v8  ;;  %v11835_v11 = vld [vmem:[#allocation74_spill] sm:$0xff]  ;;  %v11836_v39 = vld [vmem:[#allocation69_spill] sm:$0xff]  ;;  %v11837_v12 = vld [vmem:[#allocation67_spill] sm:$0xff] }
 0x1cf   : > { %11830 = vst [vmem:[#allocation27_spill] sm:$0xff] %v7622_v60  ;;  %v2213_v38 = vmul.f32 %v11831_v27, %v6676_v33  ;;  %v2214_v36 = vmul.f32 %v11831_v27, %v11766_v54  ;;  %v2215_v32 = vmul.f32 %v11831_v27, %v11754_v29  ;;  %v1955_v49 = vadd.f32 %v1939_v31, %v1903_v52  ;;  %v11839_v52 = vld [vmem:[#allocation23_spill] sm:$0xff]  ;;  %v11844_v42 = vld [vmem:[#allocation25_spill] sm:$0xff] }
 0x1d0   : > { %2411 = vrot.lane.b32.xlu1 %v2276_v24, %s11821_s15  ;;  %2417 = vrot.lane.b32.xlu0 %v2279_v16, %s11821_s15  ;;  %v7636_v58 = vmul.f32 %v11832_v34, %v11823_v4  ;;  %v11834_v24 = vld [vmem:[#allocation66_spill] sm:$0xff]  ;;  %v1987_v30 = vmul.f32 %v11835_v11, %v11836_v39  ;;  %v1988_v8 = vmul.f32 %v11835_v11, %v11837_v12  ;;  %v2523_v16 = vld [vmem:[%s11356_s7 + $0x10] sm:$0xff]  ;;  %v11840_v4 = vld [vmem:[#allocation24_spill] sm:$0xff] }
 0x1d1   : > { %v1985_v17 = vmul.f32 %v11835_v11, %v11834_v24  ;;  %v7651_v31 = vmul.f32 %v11831_v27, %v6664_v26  ;;  %v1986_v29 = vmul.f32 %v11835_v11, %v11839_v52  ;;  %v11841_v54 = vld [vmem:[#allocation75_spill] sm:$0xff]  ;;  %v11843_v34 = vld [vmem:[#allocation72_spill] sm:$0xff]  ;;  %v7674_v60 = vadd.f32 %v2214_v36, %v2178_v48 }
 0x1d2   : > { %11833 = vst [vmem:[#allocation28_spill] sm:$0xff] %v7636_v58  ;;  %v7644_v20 = vpop.permute.xlu1 %1366  ;;  %v1990_v55 = vmul.f32 %v11841_v54, %v11840_v4  ;;  %v11842_v33 = vld [vmem:[#allocation71_spill] sm:$0xff]  ;;  %v7659_v9 = vpop.permute.xlu0 %1372  ;;  %v1989_v12 = vmul.f32 %v11841_v54, %v11843_v34  ;;  %v1991_v53 = vmul.f32 %v11841_v54, %v11844_v42  ;;  %v11845_v27 = vld [vmem:[#allocation76_spill] sm:$0xff]  ;;  %v2231_v58 = vadd.f32 %v2215_v32, %v2179_v61 }
 0x1d3   : > { %11838 = vst [vmem:[#allocation74_spill] sm:$0xff] %v7651_v31  ;;  %v1992_v35 = vmul.f32 %v11841_v54, %v11842_v33  ;;  %v2265_v26 = vmul.f32 %v11845_v27, %v11834_v24  ;;  %v2267_v11 = vmul.f32 %v11845_v27, %v11836_v39  ;;  %v11846_v4 = vld [vmem:[#allocation32_spill] sm:$0xff]  ;;  %v2229_v33 = vadd.f32 %v2213_v38, %v2177_v21 }
 0x1d4   : > { %2415 = vrot.lane.b32.xlu1 %v2278_v63, %s11821_s15  ;;  %v7672_v31 = vmul.f32 %v11846_v4, %v11771_v56  ;;  %2537 = vperm.xlu0 %6247, %v2523_v16   ;;  %v7678_v54 = vmul.f32 %v11846_v4, %v11826_v46  ;;  %v2004_v42 = vadd.f32 %v1988_v8, %v1952_v18  ;;  %v11848_v32 = vmov 0  ;;  %v11874_v46 = vld [vmem:[#allocation38_spill] sm:$0xff] }
 0x1d5   : > { %v2001_v39 = vadd.f32 %v1985_v17, %v1949_v43  ;;  %v2003_v40 = vadd.f32 %v1987_v30, %v1951_v44  ;;  %v7684_v63 = vmul.f32 %v11845_v27, %v11839_v52  ;;  %v2008_v21 = vadd.f32 %v1992_v35, %v1956_v15  ;;  %v11852_v35 = vld [vmem:[#allocation78_spill] sm:$0xff]  ;;  %v11855_v17 = vld [vmem:[#allocation39_spill] sm:$0xff] }
 0x1d6   : > { %v7680_v24 = vpop.permute.xlu1 %1370  ;;  %v7686_v56 = vpop.permute.xlu0 %1461  ;;  %v7688_v61 = vadd.f32 %v1986_v29, %v1950_v7  ;;  %v7690_v48 = vadd.f32 %v1990_v55, %v1954_v23  ;;  %v7693_v38 = vadd.f32 %v1989_v12, %v1953_v19  ;;  %v7695_v36 = vadd.f32 %v2265_v26, %v2229_v33  ;;  %v11851_v29 = vld [vmem:[#allocation77_spill] sm:$0xff]  ;;  %v11853_v33 = vld [vmem:[#allocation35_spill] sm:$0xff] }
 0x1d7   : > { %v7697_v18 = vadd.f32 %v1991_v53, %v1955_v49  ;;  %v7699_v43 = vadd.f32 %v2267_v11, %v2231_v58  ;;  %v11847_v44 = vand.u32 255, %v11807_v0  ;;  %v7709_v55 = vmul.f32 %v11851_v29, %v11843_v34  ;;  %v2524_v0 = vld [vmem:[%s11356_s7 + $0x18] sm:$0xff]  ;;  %v11854_v7 = vld [vmem:[#allocation9_spill] sm:$0xff]  ;;  %v11861_v11 = vld [vmem:[#allocation79_spill] sm:$0xff] }
 0x1d8   : > { %2419 = vrot.lane.b32.xlu1 %v2280_v62, %s11821_s15  ;;  %v1076_v62 = vmul.f32 %v11852_v35, %v6920_v13  ;;  %v1077_v26 = vmul.f32 %v11852_v35, %v6974_v47  ;;  %v1113_v53 = vmul.f32 %v11853_v33, %v11801_v57  ;;  %2297 = vrot.lane.b32.xlu0 %v2004_v42, %s11796_s20  ;;  %v11856_v30 = vand.u32 255, %v11855_v17  ;;  %v11860_v12 = vld [vmem:[#allocation33_spill] sm:$0xff]  ;;  %v11864_v13 = vld [vmem:[#allocation40_spill] sm:$0xff] }
 0x1d9   : > { %vm7703_vm12 = vcmp.ge.s32.totalorder %v11847_v44, 16  ;;  %v1078_v19 = vmul.f32 %v11852_v35, %v6961_v25  ;;  %v1079_v23 = vmul.f32 %v11852_v35, %v6912_v6  ;;  %v1112_v15 = vmul.f32 %v11853_v33, %v11854_v7  ;;  %v11863_v6 = vld [vmem:[#allocation8_spill] sm:$0xff]  ;;  %v11869_v7 = vld [vmem:[#allocation14_spill] sm:$0xff] }
 0x1da   : > { %v11849_v32 = vsel %vm7703_vm12, 4294967295, %v11848_v32  ;;  %v1115_v49 = vmul.f32 %v11853_v33, %v6610_v59  ;;  %v1375_v58 = vpop.permute.xlu1 %1374  ;;  %vm7731_vm13 = vcmp.lt.s32.totalorder %v11856_v30, 240  ;;  %v11857_v42 = vmov 0  ;;  %v7743_v25 = vpop.permute.xlu0 %1465  ;;  %v11862_v30 = vld [vmem:[#allocation61_spill] sm:$0xff] }
 0x1db   : > { %11850 = vst [vmem:[#allocation75_spill] sm:$0xff] %v11849_v32  ;;  %v11858_v42 = vsel %vm7731_vm13, 4294967295, %v11857_v42  ;;  %v1080_v8 = vmul.f32 %v11860_v12, %v11808_v1  ;;  %v1114_v16 = vmul.f32 %v11853_v33, %v6628_v10  ;;  %v1116_v44 = vmul.f32 %v11861_v11, %v11812_v41 }
 0x1dc   : > { %11859 = vst [vmem:[#allocation76_spill] sm:$0xff] %v11858_v42  ;;  %v1117_v35 = vmul.f32 %v11861_v11, %v11804_v14  ;;  %v1081_v17 = vmul.f32 %v11860_v12, %v11800_v51  ;;  %v1082_v47 = vmul.f32 %v11860_v12, %v11862_v30  ;;  %v1083_v1 = vmul.f32 %v11860_v12, %v6970_v50  ;;  %v11870_v51 = vld [vmem:[#allocation50_spill] sm:$0xff]  ;;  %v11871_v14 = vld [vmem:[#allocation80_spill] sm:$0xff]  ;;  %v11872_v12 = vld [vmem:[#allocation57_spill] sm:$0xff] }
 0x1dd   : > { %v1119_v33 = vmul.f32 %v11861_v11, %v11863_v6  ;;  %2542 = vperm.xlu1 %6248, %v2524_v0   ;;  %v11865_v10 = vand.u32 255, %v11864_v13  ;;  %v11866_v59 = vmov 0  ;;  %v1118_v41 = vmul.f32 %v11861_v11, %v11869_v7  ;;  %2329 = vrot.lane.b32.xlu0 %v2001_v39, %s11796_s20  ;;  %v11873_v6 = vld [vmem:[#allocation55_spill] sm:$0xff] }
 0x1de   : > { %v1164_v57 = vmul.f32 %v11871_v14, %v11870_v51  ;;  %v1129_v30 = vadd.f32 %v1113_v53, %v1077_v26  ;;  %v1165_v50 = vmul.f32 %v11871_v14, %v11872_v12  ;;  %v1166_v0 = vmul.f32 %v11871_v14, %v11873_v6  ;;  %v1464_v13 = vpop.permute.xlu1 %1463  ;;  %v7776_v39 = vpop.permute.xlu0 %1469  ;;  %v11879_v53 = vld [vmem:[#allocation34_spill] sm:$0xff] }
 0x1df   : > { %vm7755_vm14 = vcmp.ge.s32.totalorder %v11865_v10, 16  ;;  %v1128_v10 = vadd.f32 %v1112_v15, %v1076_v62  ;;  %v1131_v34 = vadd.f32 %v1115_v49, %v1079_v23  ;;  %v1167_v52 = vmul.f32 %v11871_v14, %v6955_v45 }
 0x1e0   : > { %v11867_v59 = vsel %vm7755_vm14, 4294967295, %v11866_v59  ;;  %v11875_v11 = vand.u32 255, %v11874_v46  ;;  %v11876_v7 = vmov 0  ;;  %v1133_v26 = vadd.f32 %v1117_v35, %v1081_v17 }
 0x1e1   : > { %11868 = vst [vmem:[#allocation32_spill] sm:$0xff] %v11867_v59  ;;  %v1169_v12 = vmul.f32 %v11879_v53, %v11805_v37  ;;  %v1132_v51 = vadd.f32 %v1116_v44, %v1080_v8  ;;  %v1130_v6 = vadd.f32 %v1114_v16, %v1078_v19  ;;  %v1168_v62 = vmul.f32 %v11879_v53, %v11814_v2 }
 0x1e2   : > { %vm7772_vm15 = vcmp.lt.s32.totalorder %v11875_v11, 240  ;;  %v1418_v14 = vsel %vm11586_vm10, %v7616_v5, %v7680_v24  ;;  %2299 = vrot.lane.b32.xlu1 %v2008_v21, %s11796_s20  ;;  %v1135_v46 = vadd.f32 %v1119_v33, %v1083_v1  ;;  %v1171_v23 = vmul.f32 %v11879_v53, %v7024_v28  ;;  %2333 = vrot.lane.b32.xlu0 %v2003_v40, %s11796_s20  ;;  %v1468_v21 = vpop.permute.xlu1 %1467 }
 0x1e3   : > { %v11877_v7 = vsel %vm7772_vm15, 4294967295, %v11876_v7  ;;  %v1417_v15 = vsel %vm11586_vm10, %v7570_v3, %v7596_v22  ;;  %v1181_v19 = vadd.f32 %v1165_v50, %v1129_v30  ;;  %v1180_v49 = vadd.f32 %v1164_v57, %v1128_v10  ;;  %v1474_v50 = vpop.permute.xlu0 %1473 }
 0x1e4   : > { %11878 = vst [vmem:[#allocation77_spill] sm:$0xff] %v11877_v7  ;;  %v1134_v8 = vadd.f32 %v1118_v41, %v1082_v47  ;;  %v1389_v16 = vsel %vm11586_vm10, %v7596_v22, %v7644_v20  ;;  %v1392_v1 = vsel %vm11586_vm10, %v7680_v24, %v7659_v9  ;;  %v1183_v44 = vadd.f32 %v1167_v52, %v1131_v34  ;;  %v11880_v41 = vld [vmem:[#allocation62_spill] sm:$0xff]  ;;  %v11881_v52 = vld [vmem:[#allocation27_spill] sm:$0xff] }
 0x1e5   : > { %v1182_v35 = vadd.f32 %v1166_v0, %v1130_v6  ;;  %v1433_v17 = vsel %vm7703_vm12, %v1418_v14, 0.0  ;;  %v1393_v40 = vsel %vm11586_vm10, %v7659_v9, %v1375_v58  ;;  %v1495_v47 = vsel %vm11585_vm11, %v1464_v13, %v7743_v25 }
 0x1e6   : > { %v1185_v57 = vadd.f32 %v1169_v12, %v1133_v26  ;;  %v1170_v22 = vmul.f32 %v11879_v53, %v11880_v41  ;;  %v1429_v24 = vsel %vm7703_vm12, %v1417_v15, 0.0  ;;  %2331 = vrot.lane.b32.xlu1 %v7688_v61, %s11796_s20  ;;  %v1184_v6 = vadd.f32 %v1168_v62, %v1132_v51  ;;  %2337 = vrot.lane.b32.xlu0 %v7690_v48, %s11796_s20  ;;  %v1472_v61 = vpop.permute.xlu1 %1471 }
 0x1e7   : > { %v1187_v34 = vadd.f32 %v1171_v23, %v1135_v46  ;;  %v1391_v9 = vsel %vm11586_vm10, %v11881_v52, %v7570_v3  ;;  %v1390_v30 = vsel %vm11586_vm10, %v7644_v20, %v11881_v52  ;;  %v1555_v33 = vadd.f32 %v1389_v16, %v1181_v19  ;;  %v11885_v52 = vld [vmem:[#allocation67_spill] sm:$0xff] }
 0x1e8   : > { %v1559_v12 = vadd.f32 %v1392_v1, %v1185_v57  ;;  %v1394_v0 = vsel %vm11586_vm10, %v1375_v58, %v7616_v5  ;;  %v1435_v51 = vsel %vm7755_vm14, %v1393_v40, 0.0  ;;  %v1539_v10 = vsel %vm7731_vm13, %v1495_v47, 0.0  ;;  %v7831_v5 = vpop.permute.xlu0 %1344 }
 0x1e9   : > { %v1558_v3 = vadd.f32 %v1433_v17, %v1184_v6  ;;  %v1494_v11 = vsel %vm11585_vm11, %v7686_v56, %v1464_v13  ;;  %v1526_v20 = vsel %vm11585_vm11, %v1468_v21, %v7686_v56  ;;  %v1497_v48 = vsel %vm11585_vm11, %v7776_v39, %v1472_v61  ;;  %v11884_v6 = vld [vmem:[#allocation31_spill] sm:$0xff] }
 0x1ea   : > { %v1498_v26 = vsel %vm11585_vm11, %v1472_v61, %v1474_v50  ;;  %2335 = vrot.lane.b32.xlu1 %v7693_v38, %s11796_s20  ;;  %v1554_v53 = vadd.f32 %v1429_v24, %v1180_v49  ;;  %v1186_v14 = vadd.f32 %v1170_v22, %v1134_v8  ;;  %v1431_v13 = vsel %vm7755_vm14, %v1390_v30, 0.0  ;;  %2421 = vrot.lane.b32.xlu0 %v7695_v36, %s11821_s15  ;;  %v1476_v15 = vpop.permute.xlu1 %1475  ;;  %v11883_v24 = vld [vmem:[#allocation63_spill] sm:$0xff] }
 0x1eb   : > { %v1543_v58 = vsel %vm7731_vm13, %v1498_v26, 0.0  ;;  %v1574_v62 = vadd.f32 %v1558_v3, %v1497_v48  ;;  %v1571_v56 = vadd.f32 %v1555_v33, %v1539_v10  ;;  %v1557_v23 = vadd.f32 %v1391_v9, %v1183_v44  ;;  %v11887_v33 = vld [vmem:[#allocation26_spill] sm:$0xff]  ;;  %v11889_v3 = vld [vmem:[#allocation21_spill] sm:$0xff] }
 0x1ec   : > { %v1575_v46 = vadd.f32 %v1559_v12, %v1543_v58  ;;  %v1570_v19 = vadd.f32 %v1554_v53, %v1494_v11  ;;  %v1541_v38 = vsel %vm7772_vm15, %v1526_v20, 0.0  ;;  %v1561_v16 = vadd.f32 %v1394_v0, %v1187_v34  ;;  %v7848_v40 = vpop.permute.xlu0 %1376  ;;  %v11888_v0 = vld [vmem:[#allocation25_spill] sm:$0xff]  ;;  %v11890_v20 = vld [vmem:[#allocation74_spill] sm:$0xff]  ;;  %v11892_v58 = vld [vmem:[#allocation16_spill] sm:$0xff] }
 0x1ed   : > { %v1560_v1 = vadd.f32 %v1435_v51, %v1186_v14  ;;  %v1496_v49 = vsel %vm11585_vm11, %v7743_v25, %v1468_v21  ;;  %v1499_v8 = vsel %vm11585_vm11, %v1474_v50, %v1476_v15  ;;  %v1527_v17 = vsel %vm11585_vm11, %v1476_v15, %v7776_v39  ;;  %v11882_v25 = vld [vmem:[#allocation28_spill] sm:$0xff]  ;;  %v11891_v48 = vld [vmem:[#allocation70_spill] sm:$0xff] }
 0x1ee   : > { %v1695_v36 = vpack.c.bf16 %v1575_v46, %v1571_v56  ;;  %2339 = vrot.lane.b32.xlu1 %v7697_v18, %s11796_s20  ;;  %v1694_v44 = vpack.c.bf16 %v1574_v62, %v1570_v19  ;;  %v1545_v47 = vsel %vm7772_vm15, %v1527_v17, 0.0  ;;  %v1556_v57 = vadd.f32 %v1431_v13, %v1182_v35  ;;  %2425 = vrot.lane.b32.xlu0 %v7699_v43, %s11821_s15  ;;  %v7862_v9 = vpop.permute.xlu1 %1346  ;;  %v11886_v43 = vld [vmem:[#allocation73_spill] sm:$0xff]  ;;  %v11893_v53 = vld [vmem:[#allocation24_spill] sm:$0xff] }
 0x1ef   : > { %v1576_v22 = vadd.f32 %v1560_v1, %v1499_v8  ;;  %v2233_v21 = vadd.f32 %v7672_v31, %v11882_v25  ;;  %v1573_v39 = vadd.f32 %v1557_v23, %v1541_v38  ;;  %v1577_v50 = vadd.f32 %v1561_v16, %v1545_v47  ;;  %v11894_v23 = vld [vmem:[#allocation29_spill] sm:$0xff]  ;;  %v6087_v1 = vld [vmem:[%s11355_s6 + $0x120] sm:$0xff]  ;;  %v11896_v17 = vld [vmem:[#allocation64_spill] sm:$0xff] }
 0x1f0   : > { %1727 = vmatprep.subr.bf16.mxu0 %v1695_v36  ;;  %v2180_v34 = vmul.f32 %v11884_v6, %v11883_v24  ;;  %v2268_v18 = vmul.f32 %v11845_v27, %v11885_v52  ;;  %v2282_v35 = vadd.f32 %v7684_v63, %v7674_v60  ;;  %v1572_v30 = vadd.f32 %v1556_v57, %v1496_v49  ;;  %v7870_v51 = vpop.permute.xlu0 %1380  ;;  %v11897_v36 = vld [vmem:[#allocation36_spill] sm:$0xff]  ;;  %v11899_v57 = vld [vmem:[#allocation17_spill] sm:$0xff] }
 0x1f1   : > { %1728 = vmatpush1.bf16.msra.mxu0 %v1694_v44  ;;  %v2183_v12 = vmul.f32 %v11887_v33, %v11886_v43  ;;  %v2271_v31 = vmul.f32 %v11851_v29, %v11888_v0  ;;  %v2285_v61 = vadd.f32 %v7709_v55, %v2233_v21  ;;  %v1697_v10 = vpack.c.bf16 %v1577_v50, %v1573_v39  ;;  %v11898_v47 = vld [vmem:[#allocation68_spill] sm:$0xff]  ;;  %v11901_v39 = vld [vmem:[#allocation65_spill] sm:$0xff] }
 0x1f2   : > { %v2218_v27 = vmul.f32 %v11846_v4, %v11889_v3  ;;  %2423 = vrot.lane.b32.xlu1 %v2282_v35, %s11821_s15  ;;  %v1696_v11 = vpack.c.bf16 %v1576_v22, %v1572_v30  ;;  %v2232_v60 = vadd.f32 %v11890_v20, %v2180_v34  ;;  %v2182_v26 = vmul.f32 %v11887_v33, %v11891_v48  ;;  %v7885_v14 = vpop.permute.xlu1 %1378  ;;  %v11900_v22 = vld [vmem:[#allocation58_spill] sm:$0xff]  ;;  %v11903_v35 = vld [vmem:[#allocation15_spill] sm:$0xff]  ;;  %v11908_v20 = vld [vmem:[#allocation37_spill] sm:$0xff] }
 0x1f3   : > { %2429 = vrot.lane.b32.xlu0 %v2285_v61, %s11821_s15  ;;  %1780 = vmatprep.subr.bf16.mxu1 %v1697_v10  ;;  %v2235_v63 = vadd.f32 %v7678_v54, %v2183_v12  ;;  %v2220_v55 = vmul.f32 %v11846_v4, %v11892_v58  ;;  %v2270_v62 = vmul.f32 %v11851_v29, %v11893_v53  ;;  %v11895_v54 = vld [vmem:[#allocation71_spill] sm:$0xff]  ;;  %v11902_v34 = vld [vmem:[#allocation18_spill] sm:$0xff]  ;;  %v11905_v12 = vld [vmem:[#allocation81_spill] sm:$0xff] }
 0x1f4   : > { %1781 = vmatpush1.bf16.msra.mxu1 %v1696_v11  ;;  %v2284_v13 = vadd.f32 %v2268_v18, %v2232_v60  ;;  %v7887_v56 = vpop.permute.xlu0 %1384  ;;  %v2184_v15 = vmul.f32 %v11887_v33, %v11894_v23  ;;  %v2272_v19 = vmul.f32 %v11851_v29, %v11895_v54  ;;  %v2234_v38 = vadd.f32 %v2218_v27, %v2182_v26  ;;  %v11904_v33 = vld [vmem:[#allocation30_spill] sm:$0xff]  ;;  %v11906_v10 = vld [vmem:[#allocation19_spill] sm:$0xff]  ;;  %v11907_v11 = vld [vmem:[#allocation20_spill] sm:$0xff] }
 0x1f5   : > { %v2287_v46 = vadd.f32 %v2271_v31, %v2235_v63  ;;  %v1084_v44 = vmul.f32 %v11897_v36, %v11896_v17  ;;  %v1085_v29 = vmul.f32 %v11897_v36, %v11898_v47  ;;  %v1120_v25 = vmul.f32 %v11900_v22, %v11899_v57  ;;  %v6091_v26 = vld [vmem:[%s11355_s6 + $0x140] sm:$0xff] }
 0x1f6   : > { %2427 = vrot.lane.b32.xlu1 %v2284_v13, %s11821_s15  ;;  %v7895_v4 = vpop.permute.xlu1 %1382  ;;  %v2286_v16 = vadd.f32 %v2270_v62, %v2234_v38  ;;  %v2236_v49 = vadd.f32 %v2220_v55, %v2184_v15  ;;  %v1086_v50 = vmul.f32 %v11897_v36, %v11901_v39  ;;  %v1087_v6 = vmul.f32 %v11897_v36, %v11883_v24  ;;  %v11909_v13 = vld [vmem:[#allocation22_spill] sm:$0xff] }
 0x1f7   : > { %2433 = vrot.lane.b32.xlu0 %v2287_v46, %s11821_s15  ;;  %v1121_v18 = vmul.f32 %v11900_v22, %v11902_v34  ;;  %v1123_v30 = vmul.f32 %v11900_v22, %v11903_v35  ;;  %v1088_v31 = vmul.f32 %v11905_v12, %v11904_v33  ;;  %v1089_v61 = vmul.f32 %v11905_v12, %v11891_v48 }
 0x1f8   : > { %v7900_v8 = vpop.permute.xlu0 %1477  ;;  %v2288_v21 = vadd.f32 %v2272_v19, %v2236_v49  ;;  %v1122_v27 = vmul.f32 %v11900_v22, %v11906_v10  ;;  %v1124_v60 = vmul.f32 %v11908_v20, %v11907_v11  ;;  %v1090_v55 = vmul.f32 %v11905_v12, %v11886_v43  ;;  %v11912_v43 = vld [vmem:[#allocation69_spill] sm:$0xff] }
 0x1f9   : > { %v1125_v62 = vmul.f32 %v11908_v20, %v11889_v3  ;;  %v1126_v46 = vmul.f32 %v11908_v20, %v11909_v13  ;;  %v1127_v15 = vmul.f32 %v11908_v20, %v11892_v58  ;;  %v1091_v38 = vmul.f32 %v11905_v12, %v11894_v23  ;;  %v11913_v20 = vld [vmem:[#allocation23_spill] sm:$0xff]  ;;  %v6088_v12 = vld [vmem:[%s11355_s6 + $0x128] sm:$0xff] }
 0x1fa   : > { %2431 = vrot.lane.b32.xlu1 %v2286_v16, %s11821_s15  ;;  %v7925_v63 = vpop.permute.xlu1 %1386  ;;  %v11910_v16 = vld [vmem:[#allocation66_spill] sm:$0xff]  ;;  %v1136_v36 = vadd.f32 %v1120_v25, %v1084_v44  ;;  %v1139_v33 = vadd.f32 %v1123_v30, %v1087_v6  ;;  %v1137_v39 = vadd.f32 %v1121_v18, %v1085_v29  ;;  %v11914_v23 = vld [vmem:[#allocation72_spill] sm:$0xff]  ;;  %v11915_v44 = vld [vmem:[#allocation83_spill] sm:$0xff] }
 0x1fb   : > { %2951 = vperm.xlu0 %6247, %v6087_v1   ;;  %v11911_v1 = vld [vmem:[#allocation60_spill] sm:$0xff]  ;;  %v1176_v25 = vmul.f32 %v11915_v44, %v11914_v23  ;;  %v6111_v29 = vld [vmem:[%s11355_s6 + $0x1e0] sm:$0xff]  ;;  %v1178_v6 = vmul.f32 %v11915_v44, %v11888_v0  ;;  %v1141_v18 = vadd.f32 %v1125_v62, %v1089_v61  ;;  %v1142_v30 = vadd.f32 %v1126_v46, %v1090_v55  ;;  %v11916_v61 = vld [vmem:[#allocation10_spill] sm:$0xff] }
 0x1fc   : > { %v7938_v19 = vpop.permute.xlu0 %1481  ;;  %v1172_v49 = vmul.f32 %v11911_v1, %v11910_v16  ;;  %v1175_v22 = vmul.f32 %v11911_v1, %v11885_v52  ;;  %v1174_v48 = vmul.f32 %v11911_v1, %v11912_v43  ;;  %v1173_v47 = vmul.f32 %v11911_v1, %v11913_v20  ;;  %v11917_v55 = vld [vmem:[#allocation82_spill] sm:$0xff]  ;;  %v11938_v23 = vld [vmem:[#allocation55_spill] sm:$0xff] }
 0x1fd   : > { %v1138_v16 = vadd.f32 %v1122_v27, %v1086_v50  ;;  %v1140_v52 = vadd.f32 %v1124_v60, %v1088_v31  ;;  %v1420_v50 = vsel %vm11586_vm10, %v7862_v9, %v7895_v4  ;;  %v1179_v31 = vmul.f32 %v11915_v44, %v11895_v54 }
 0x1fe   : > { %2435 = vrot.lane.b32.xlu1 %v2288_v21, %s11821_s15  ;;  %v1177_v21 = vmul.f32 %v11915_v44, %v11893_v53  ;;  %v1480_v24 = vpop.permute.xlu1 %1479  ;;  %v1188_v1 = vadd.f32 %v1172_v49, %v1136_v36  ;;  %v1191_v20 = vadd.f32 %v1175_v22, %v1139_v33  ;;  %v1419_v60 = vsel %vm11586_vm10, %v7831_v5, %v7848_v40  ;;  %v6092_v33 = vld [vmem:[%s11355_s6 + $0x148] sm:$0xff]  ;;  %v11918_v22 = vld [vmem:[#allocation13_spill] sm:$0xff] }
 0x1ff   : > { %2987 = vperm.xlu0 %6247, %v6091_v26   ;;  %v1143_v26 = vadd.f32 %v1127_v15, %v1091_v38  ;;  %v1189_v53 = vadd.f32 %v1173_v47, %v1137_v39  ;;  %v1190_v0 = vadd.f32 %v1174_v48, %v1138_v16  ;;  %v7976_v62 = vmul.f32 %v11917_v55, %v11916_v61  ;;  %v6115_v39 = vld [vmem:[%s11355_s6 + $0x200] sm:$0xff] }
 0x200   : > { %v1486_v27 = vpop.permute.xlu0 %1485  ;;  %v1395_v46 = vsel %vm11586_vm10, %v7848_v40, %v7885_v14  ;;  %v1192_v15 = vadd.f32 %v1176_v25, %v1140_v52  ;;  %v1193_v38 = vadd.f32 %v1177_v21, %v1141_v18  ;;  %v1398_v47 = vsel %vm11586_vm10, %v7895_v4, %v7887_v56  ;;  %v11920_v25 = vld [vmem:[#allocation12_spill] sm:$0xff] }
 0x201   : > { %v1441_v16 = vsel %vm7703_vm12, %v1420_v50, 0.0  ;;  %v1194_v49 = vadd.f32 %v1178_v6, %v1142_v30  ;;  %v1399_v36 = vsel %vm11586_vm10, %v7887_v56, %v7925_v63  ;;  %v1501_v40 = vsel %vm11585_vm11, %v1480_v24, %v7938_v19  ;;  %v6112_v30 = vld [vmem:[%s11355_s6 + $0x1e8] sm:$0xff] }
 0x202   : > { %2956 = vperm.xlu1 %6248, %v6088_v12   ;;  %v1484_v48 = vpop.permute.xlu1 %1483  ;;  %v1437_v52 = vsel %vm7703_vm12, %v1419_v60, 0.0  ;;  %v1195_v4 = vadd.f32 %v1179_v31, %v1143_v26  ;;  %v11919_v12 = vld [vmem:[#allocation84_spill] sm:$0xff]  ;;  %v1396_v56 = vsel %vm11586_vm10, %v7885_v14, %v7870_v51  ;;  %v1563_v6 = vadd.f32 %v1395_v46, %v1189_v53  ;;  %v6095_v53 = vld [vmem:[%s11355_s6 + $0x160] sm:$0xff] }
 0x203   : > { %3231 = vperm.xlu0 %6247, %v6111_v29   ;;  %v1631_v44 = vmul.f32 %v11919_v12, %v11918_v22  ;;  %v8000_v21 = vmul.f32 %v11919_v12, %v11920_v25  ;;  %v1397_v29 = vsel %vm11586_vm10, %v7870_v51, %v7831_v5  ;;  %v1567_v18 = vadd.f32 %v1398_v47, %v1193_v38  ;;  %v11921_v47 = vld [vmem:[#allocation8_spill] sm:$0xff] }
 0x204   : > { %v1566_v26 = vadd.f32 %v1441_v16, %v1192_v15  ;;  %v1400_v50 = vsel %vm11586_vm10, %v7925_v63, %v7862_v9  ;;  %v1443_v31 = vsel %vm7755_vm14, %v1399_v36, 0.0  ;;  %v1547_v5 = vsel %vm7731_vm13, %v1501_v40, 0.0  ;;  %v1490_v60 = vpop.permute.xlu0 %1489 }
 0x205   : > { %v1500_v14 = vsel %vm11585_vm11, %v7900_v8, %v1480_v24  ;;  %v1562_v46 = vadd.f32 %v1437_v52, %v1188_v1  ;;  %v1565_v16 = vadd.f32 %v1397_v29, %v1191_v20  ;;  %v1439_v24 = vsel %vm7755_vm14, %v1396_v56, 0.0  ;;  %v6119_v20 = vld [vmem:[%s11355_s6 + $0x220] sm:$0xff] }
 0x206   : > { %2992 = vperm.xlu1 %6248, %v6092_v33   ;;  %v1488_v51 = vpop.permute.xlu1 %1487  ;;  %v1528_v33 = vsel %vm11585_vm11, %v1484_v48, %v7900_v8  ;;  %v1579_v36 = vadd.f32 %v1563_v6, %v1547_v5  ;;  %v6116_v8 = vld [vmem:[%s11355_s6 + $0x208] sm:$0xff]  ;;  %v1568_v1 = vadd.f32 %v1443_v31, %v1194_v49  ;;  %v1569_v52 = vadd.f32 %v1400_v50, %v1195_v4 }
 0x207   : > { %3267 = vperm.xlu0 %6247, %v6115_v39   ;;  %v1503_v9 = vsel %vm11585_vm11, %v1486_v27, %v1488_v51  ;;  %v1504_v63 = vsel %vm11585_vm11, %v1488_v51, %v1490_v60  ;;  %v1633_v39 = vmul.f32 %v11919_v12, %v11921_v47  ;;  %v1578_v51 = vadd.f32 %v1562_v46, %v1500_v14  ;;  %v11924_v46 = vld [vmem:[#allocation14_spill] sm:$0xff] }
 0x208   : > { %v1551_v15 = vsel %vm7731_vm13, %v1504_v63, 0.0  ;;  %v1582_v38 = vadd.f32 %v1566_v26, %v1503_v9  ;;  %v1502_v29 = vsel %vm11585_vm11, %v7938_v19, %v1484_v48  ;;  %v1564_v5 = vadd.f32 %v1439_v24, %v1190_v0  ;;  %v6096_v19 = vld [vmem:[%s11355_s6 + $0x168] sm:$0xff]  ;;  %v6089_v0 = vld [vmem:[%s11355_s6 + $0x130] sm:$0xff]  ;;  %v11923_v9 = vld [vmem:[#allocation7_spill] sm:$0xff] }
 0x209   : > { %v1583_v40 = vadd.f32 %v1567_v18, %v1551_v15  ;;  %v1703_v14 = vpack.c.bf16 %v1631_v44, %v7976_v62  ;;  %v1629_v63 = vmul.f32 %v11917_v55, %v11923_v9  ;;  %v1632_v15 = vmul.f32 %v11919_v12, %v11924_v46  ;;  %v6093_v24 = vld [vmem:[%s11355_s6 + $0x150] sm:$0xff] }
 0x20a   : > { %3236 = vperm.xlu1 %6248, %v6112_v30   ;;  %v1549_v30 = vsel %vm7772_vm15, %v1528_v33, 0.0  ;;  %v1492_v26 = vpop.permute.xlu1 %1491  ;;  %v1698_v50 = vpack.c.bf16 %v1582_v38, %v1578_v51  ;;  %v1580_v48 = vadd.f32 %v1564_v5, %v1502_v29 }
 0x20b   : > { %3039 = vperm.xlu0 %6247, %v6095_v53   ;;  %v1505_v56 = vsel %vm11585_vm11, %v1490_v60, %v1492_v26  ;;  %v1529_v6 = vsel %vm11585_vm11, %v1492_v26, %v1486_v27  ;;  %v1699_v18 = vpack.c.bf16 %v1583_v40, %v1579_v36  ;;  %v1581_v31 = vadd.f32 %v1565_v16, %v1549_v30  ;;  %v11922_v27 = vld [vmem:[#allocation9_spill] sm:$0xff]  ;;  %v6120_v16 = vld [vmem:[%s11355_s6 + $0x228] sm:$0xff]  ;;  %v11925_v36 = vld [vmem:[#allocation11_spill] sm:$0xff] }
 0x20c   : > { %v1553_v49 = vsel %vm7772_vm15, %v1529_v6, 0.0  ;;  %v1584_v4 = vadd.f32 %v1568_v1, %v1505_v56  ;;  %v1626_v60 = vmul.f32 %v11917_v55, %v11922_v27  ;;  %v1705_v38 = vpack.c.bf16 %v1633_v39, %v1629_v63  ;;  %v6090_v39 = vld [vmem:[%s11355_s6 + $0x138] sm:$0xff]  ;;  %v6249_v63 = vld [vmem:[%s11926_s5] sm:$0xff]  }
 0x20d   : > { %v1585_v53 = vadd.f32 %v1569_v52, %v1553_v49  ;;  %1729 = vmatprep.subr.bf16.mxu0 %v1699_v18  ;;  %v6117_v52 = vld [vmem:[%s11355_s6 + $0x210] sm:$0xff]  ;;  %v6114_v49 = vld [vmem:[%s11355_s6 + $0x1f8] sm:$0xff] }
 0x20e   : > { %3272 = vperm.xlu1 %6248, %v6116_v8   ;;  %1730 = vmatpush1.bf16.msra.mxu0 %v1698_v50  ;;  %v1702_v62 = vpack.c.bf16 %v8000_v21, %v1626_v60  ;;  %v1700_v44 = vpack.c.bf16 %v1584_v4, %v1580_v48  ;;  %v1628_v21 = vmul.f32 %v11917_v55, %v11925_v36  ;;  %v6113_v8 = vld [vmem:[%s11355_s6 + $0x1f0] sm:$0xff]  ;;  %v6094_v55 = vld [vmem:[%s11355_s6 + $0x158] sm:$0xff] }
 0x20f   : > { %3319 = vperm.xlu0 %6247, %v6119_v20   ;;  %1731 = vmatprep.subr.bf16.mxu0 %v1703_v14  ;;  %v1701_v33 = vpack.c.bf16 %v1585_v53, %v1581_v31  ;;  %v6097_v50 = vld [vmem:[%s11355_s6 + $0x170] sm:$0xff]  ;;  %v6118_v60 = vld [vmem:[%s11355_s6 + $0x218] sm:$0xff] }
 0x210   : > { %v1704_v12 = vpack.c.bf16 %v1632_v15, %v1628_v21  ;;  %v6098_v15 = vld [vmem:[%s11355_s6 + $0x178] sm:$0xff] }
 0x211   : > { %1782 = vmatprep.subr.bf16.mxu1 %v1701_v33  ;;  %v6121_v33 = vld [vmem:[%s11355_s6 + $0x230] sm:$0xff] }
 0x212   : > { %3044 = vperm.xlu1 %6248, %v6096_v19   ;;  %1732 = vmatpush1.bf16.msra.mxu0 %v1702_v62 }
 0x213   : > { %2961 = vperm.xlu0 %6247, %v6089_v0   ;;  %1783 = vmatpush1.bf16.msra.mxu1 %v1700_v44  ;;  %v1619_v40 = vpop.permute.xlu0 %1618 }
 0x214   : > { %1784 = vmatprep.subr.bf16.mxu1 %v1705_v38  ;;  %v1635_v30 = vmul.f32 %v1619_v40, %v11902_v34  ;;  %v1637_v26 = vmul.f32 %v1619_v40, %v11903_v35  ;;  %v1634_v20 = vmul.f32 %v1619_v40, %v11899_v57  ;;  %v1636_v4 = vmul.f32 %v1619_v40, %v11906_v10  ;;  %v6099_v38 = vld [vmem:[%s11355_s6 + $0x180] sm:$0xff]  ;;  %v6122_v40 = vld [vmem:[%s11355_s6 + $0x238] sm:$0xff] }
 0x216   : > { %3324 = vperm.xlu1 %6248, %v6120_v16  }
 0x217   : > { %2997 = vperm.xlu0 %6247, %v6093_v24   ;;  %1785 = vmatpush1.bf16.msra.mxu1 %v1704_v12  ;;  %v8075_v1 = vpop.permute.xlu0 %2011  ;;  %v11927_v24 = vmov 0   ;;  %v6103_v12 = vld [vmem:[%s11355_s6 + $0x1a0] sm:$0xff] }
 0x21a   : > { %2966 = vperm.xlu1 %6248, %v6090_v39   ;;  %v6250_v39 = vld [vmem:[%s11926_s5 + $0x8] sm:$0xff]   ;;  %s6199_s5 = sshll.u32 %s12446_s17, 9 }
 0x21b   : > { %3241 = vperm.xlu0 %6247, %v6113_v8   ;;  %v1624_v51 = vpop.permute.xlu1 %1623  ;;  %v8086_v29 = vpop.permute.xlu0 %2047  ;;  %s11293_s29 = scalar_lea.hbm %s11361_s12, %s6199_s5 }
 0x21c   : > { %v1639_v56 = vmul.f32 %v1624_v51, %v11889_v3  ;;  %v1641_v6 = vmul.f32 %v1624_v51, %v11892_v58  ;;  %v1638_v18 = vmul.f32 %v1624_v51, %v11907_v11  ;;  %v1640_v5 = vmul.f32 %v1624_v51, %v11909_v13  ;;  %v6107_v51 = vld [vmem:[%s11355_s6 + $0x1c0] sm:$0xff] }
 0x21e   : > { %3002 = vperm.xlu1 %6248, %v6094_v55   ;;  %v1707_v31 = vpack.c.bf16 %v1639_v56, %v1635_v30  ;;  %v1709_v53 = vpack.c.bf16 %v1641_v6, %v1637_v26  ;;  %v1706_v14 = vpack.c.bf16 %v1638_v18, %v1634_v20  ;;  %v1708_v48 = vpack.c.bf16 %v1640_v5, %v1636_v4  ;;  %v6104_v20 = vld [vmem:[%s11355_s6 + $0x1a8] sm:$0xff]  ;;  %v6101_v56 = vld [vmem:[%s11355_s6 + $0x190] sm:$0xff] }
 0x21f   : > { %3277 = vperm.xlu0 %6247, %v6117_v52   ;;  %v8099_v19 = vpop.permute.xlu1 %2016  ;;  %v8101_v0 = vpop.permute.xlu0 %2099  ;;  %v6100_v52 = vld [vmem:[%s11355_s6 + $0x188] sm:$0xff] }
 0x220   : > { %1733 = vmatprep.subr.bf16.mxu0 %v1707_v31  ;;  %1786 = vmatprep.subr.bf16.mxu1 %v1709_v53  ;;  %v6108_v5 = vld [vmem:[%s11355_s6 + $0x1c8] sm:$0xff]  ;;  %v6102_v31 = vld [vmem:[%s11355_s6 + $0x198] sm:$0xff]  ;;  %v6109_v53 = vld [vmem:[%s11355_s6 + $0x1d0] sm:$0xff] }
 0x221   : > { %1734 = vmatpush1.bf16.msra.mxu0 %v1706_v14  ;;  %1787 = vmatpush1.bf16.msra.mxu1 %v1708_v48 }
 0x222   : > { %3246 = vperm.xlu1 %6248, %v6114_v49   ;;  %v6105_v49 = vld [vmem:[%s11355_s6 + $0x1b0] sm:$0xff] }
 0x223   : > { %3049 = vperm.xlu0 %6247, %v6097_v50   ;;  %v8112_v62 = vpop.permute.xlu1 %2052  ;;  %v8114_v44 = vpop.permute.xlu0 %2021 }
 0x224   : > { %6077 = vmatmul.mubr.msk.bf16.vlgmr.msra.gmra.mrb[0].mxu0 %vm1720_vm3, %v6249_v63  ;;  %6079 = vmatmul.mubr.msk.bf16.vlgmr.msra.gmra.mrb[0].mxu1 %vm1720_vm3, %v6249_v63 }
 0x225   : > { %1769 = vmatprep.mubr.bf16.mxu0 %v11927_v24  ;;  %1822 = vmatprep.mubr.bf16.mxu1 %v11927_v24 }
 0x226   : > { %3282 = vperm.xlu1 %6248, %v6118_v60   ;;  %v6106_v60 = vld [vmem:[%s11355_s6 + $0x1b8] sm:$0xff] }
 0x227   : > { %3329 = vperm.xlu0 %6247, %v6121_v33   ;;  %v8123_v16 = vpop.permute.xlu1 %2104  ;;  %v8127_v21 = vpop.permute.xlu0 %2057  ;;  %v6123_v33 = vld [vmem:[%s11356_s7 + $0x20] sm:$0xff] }
 0x22a   : > { %3054 = vperm.xlu1 %6248, %v6098_v15  }
 0x22b   : > { %3091 = vperm.xlu0 %6247, %v6099_v38   ;;  %v8139_v8 = vpop.permute.xlu1 %2026  ;;  %v8141_v55 = vpop.permute.xlu0 %2109  ;;  %v6110_v38 = vld [vmem:[%s11355_s6 + $0x1d8] sm:$0xff] }
 0x22c   : > { %6078 = vmatmul.mubr.msk.bf16.gmra.mrb[4].mxu0 %vm1720_vm3, %v6250_v39  ;;  %6080 = vmatmul.mubr.msk.bf16.gmra.mrb[4].mxu1 %vm1720_vm3, %v6250_v39  ;;  %vm11584_vm3 = vcmask 261120  }
 0x22d   : > { %2622 = vmatprep.mubr.bf16.mxu0 %v11927_v24  ;;  %2675 = vmatprep.mubr.bf16.mxu1 %v11927_v24 }
 0x22e   : > { %3334 = vperm.xlu1 %6248, %v6122_v40   ;;  %v2065_v40 = vmul.f32 %v8086_v29, %v11922_v27  ;;  %v6124_v27 = vld [vmem:[%s11356_s7 + $0x28] sm:$0xff] }
 0x22f   : > { %3127 = vperm.xlu0 %6247, %v6103_v12   ;;  %v8150_v30 = vpop.permute.xlu1 %2062  ;;  %v8153_v26 = vpop.permute.xlu0 %2527  ;;  %v2068_v12 = vmul.f32 %v8086_v29, %v11923_v9  ;;  %v11931_v9 = vld [vmem:[#allocation53_spill] sm:$0xff] }
 0x232   : > { %3096 = vperm.xlu1 %6248, %v6100_v52   ;;  %v2066_v52 = vmul.f32 %v8086_v29, %v11916_v61 }
 0x233   : > { %3179 = vperm.xlu0 %6247, %v6107_v51   ;;  %v8163_v6 = vpop.permute.xlu1 %2114  ;;  %v8165_v18 = vpop.permute.xlu0 %2293 }
 0x234   : > { %11928 = vst [vmem:[#allocation78_spill] sm:$0xff] %v8163_v6 }
 0x236   : > { %3132 = vperm.xlu1 %6248, %v6104_v20   ;;  %v11929_v20 = vld [vmem:[#allocation45_spill] sm:$0xff] }
 0x237   : > { %3101 = vperm.xlu0 %6247, %v6101_v56   ;;  %v8173_v4 = vpop.permute.xlu1 %2532  ;;  %v8175_v50 = vpop.permute.xlu0 %2317  ;;  %v2029_v56 = vmul.f32 %v8075_v1, %v11929_v20 }
 0x239   : > { %v2081_v20 = vadd.f32 %v2065_v40, %v2029_v56 }
 0x23a   : > { %3184 = vperm.xlu1 %6248, %v6108_v5   ;;  %v11930_v5 = vld [vmem:[#allocation43_spill] sm:$0xff] }
 0x23b   : > { %3137 = vperm.xlu0 %6247, %v6105_v49   ;;  %v8183_v14 = vpop.permute.xlu1 %2295  ;;  %v8185_v48 = vpop.permute.xlu0 %2321  ;;  %v2032_v49 = vmul.f32 %v8075_v1, %v11930_v5  ;;  %v2069_v5 = vmul.f32 %v8112_v62, %v11920_v25 }
 0x23d   : > { %v2084_v24 = vadd.f32 %v2068_v12, %v2032_v49  ;;  %v11936_v12 = vld [vmem:[#allocation61_spill] sm:$0xff]  ;;  %v11937_v49 = vld [vmem:[#allocation52_spill] sm:$0xff] }
 0x23e   : > { %3106 = vperm.xlu1 %6248, %v6102_v31   ;;  %v2067_v31 = vmul.f32 %v8086_v29, %v11925_v36  ;;  %v2070_v36 = vmul.f32 %v8112_v62, %v11918_v22  ;;  %v2120_v29 = vmul.f32 %v8101_v0, %v6955_v45  ;;  %v2035_v56 = vmul.f32 %v8099_v19, %v11936_v12 }
 0x23f   : > { %3189 = vperm.xlu0 %6247, %v6109_v53   ;;  %v2320_v63 = vpop.permute.xlu1 %2319  ;;  %v8193_v15 = vpop.permute.xlu0 %2325  ;;  %v2030_v53 = vmul.f32 %v8075_v1, %v11931_v9  ;;  %v2036_v22 = vmul.f32 %v8099_v19, %v11937_v49  ;;  %v2119_v45 = vmul.f32 %v8101_v0, %v11938_v23  ;;  %v2369_v23 = vsel %vm11586_vm10, %v8165_v18, %v8175_v50 }
 0x241   : > { %v2082_v6 = vadd.f32 %v2066_v52, %v2030_v53  ;;  %v2071_v52 = vmul.f32 %v8112_v62, %v11924_v46 }
 0x242   : > { %3142 = vperm.xlu1 %6248, %v6106_v60   ;;  %v11932_v60 = vld [vmem:[#allocation51_spill] sm:$0xff] }
 0x243   : > { %3608 = vperm.xlu0 %6247, %v6123_v33   ;;  %v2324_v39 = vpop.permute.xlu1 %2323  ;;  %v2406_v51 = vpop.permute.xlu0 %2405  ;;  %v2031_v61 = vmul.f32 %v8075_v1, %v11932_v60  ;;  %v11933_v33 = vld [vmem:[#allocation50_spill] sm:$0xff]  ;;  %v11934_v1 = vld [vmem:[#allocation59_spill] sm:$0xff] }
 0x244   : > { %v2033_v60 = vmul.f32 %v8099_v19, %v11934_v1  ;;  %v2072_v1 = vmul.f32 %v8112_v62, %v11921_v47  ;;  %v2370_v47 = vsel %vm11586_vm10, %v8183_v14, %v2324_v39 }
 0x245   : > { %v2083_v25 = vadd.f32 %v2067_v31, %v2031_v61  ;;  %v2122_v31 = vmul.f32 %v8123_v16, %v11805_v37  ;;  %v2136_v61 = vadd.f32 %v2120_v29, %v2084_v24  ;;  %v2341_v24 = vsel %vm11586_vm10, %v8175_v50, %v2320_v63 }
 0x246   : > { %3194 = vperm.xlu1 %6248, %v6110_v38   ;;  %v2117_v38 = vmul.f32 %v8101_v0, %v11933_v33  ;;  %v11935_v33 = vld [vmem:[#allocation56_spill] sm:$0xff]  ;;  %v2085_v46 = vadd.f32 %v2069_v5, %v2033_v60  ;;  %v2373_v5 = vsel %vm7703_vm12, %v2369_v23, 0.0  ;;  %v2088_v29 = vadd.f32 %v2072_v1, %v2036_v22 }
 0x247   : > { %v2328_v54 = vpop.permute.xlu1 %2327  ;;  %v8225_v9 = vpop.permute.xlu0 %2409  ;;  %v2034_v40 = vmul.f32 %v8099_v19, %v11935_v33  ;;  %v2121_v33 = vmul.f32 %v8123_v16, %v11814_v2  ;;  %v2124_v2 = vmul.f32 %v8123_v16, %v7024_v28  ;;  %v2344_v28 = vsel %vm11586_vm10, %v2324_v39, %v8193_v15 }
 0x248   : > { %v2133_v12 = vadd.f32 %v2117_v38, %v2081_v20  ;;  %v2135_v38 = vadd.f32 %v2119_v45, %v2083_v25  ;;  %v2087_v20 = vadd.f32 %v2071_v52, %v2035_v56  ;;  %v2345_v22 = vsel %vm11586_vm10, %v8193_v15, %v2328_v54 }
 0x249   : > { %v2086_v49 = vadd.f32 %v2070_v36, %v2034_v40  ;;  %v2137_v36 = vadd.f32 %v2121_v33, %v2085_v46  ;;  %v2342_v40 = vsel %vm11586_vm10, %v2320_v63, %v8185_v48  ;;  %v2140_v45 = vadd.f32 %v2124_v2, %v2088_v29 }
 0x24a   : > { %3613 = vperm.xlu1 %6248, %v6124_v27   ;;  %v11939_v27 = vld [vmem:[#allocation57_spill] sm:$0xff]  ;;  %v2489_v52 = vadd.f32 %v2373_v5, %v2133_v12  ;;  %v2343_v63 = vsel %vm11586_vm10, %v8185_v48, %v8165_v18  ;;  %v2346_v46 = vsel %vm11586_vm10, %v2328_v54, %v8183_v14  ;;  %v2379_v15 = vsel %vm7755_vm14, %v2345_v22, 0.0 }
 0x24b   : > { %v2118_v53 = vmul.f32 %v8101_v0, %v11939_v27  ;;  %v2408_v19 = vpop.permute.xlu1 %2407  ;;  %v2414_v58 = vpop.permute.xlu0 %2413  ;;  %v2123_v0 = vmul.f32 %v8123_v16, %v11880_v41  ;;  %v2138_v41 = vadd.f32 %v2122_v31, %v2086_v49  ;;  %v2377_v16 = vsel %vm7703_vm12, %v2370_v47, 0.0 }
 0x24c   : > { %v2438_v37 = vsel %vm11585_vm11, %v2408_v19, %v8225_v9  ;;  %v2437_v39 = vsel %vm11585_vm11, %v2406_v51, %v2408_v19  ;;  %v2493_v1 = vadd.f32 %v2377_v16, %v2137_v36  ;;  %v2492_v47 = vadd.f32 %v2343_v63, %v2136_v61 }
 0x24d   : > { %v2134_v62 = vadd.f32 %v2118_v53, %v2082_v6  ;;  %v2474_v6 = vsel %vm7731_vm13, %v2438_v37, 0.0  ;;  %v2139_v25 = vadd.f32 %v2123_v0, %v2087_v20  ;;  %v2375_v53 = vsel %vm7755_vm14, %v2342_v40, 0.0 }
 0x24e   : > { %v2494_v33 = vadd.f32 %v2344_v28, %v2138_v41  ;;  %v2491_v2 = vadd.f32 %v2375_v53, %v2135_v38 }
 0x24f   : > { %v2412_v60 = vpop.permute.xlu1 %2411  ;;  %v2418_v50 = vpop.permute.xlu0 %2417  ;;  %v2490_v56 = vadd.f32 %v2341_v24, %v2134_v62  ;;  %v2495_v37 = vadd.f32 %v2379_v15, %v2139_v25  ;;  %v2496_v62 = vadd.f32 %v2346_v46, %v2140_v45  ;;  %v2037_v15 = vmul.f32 %v8114_v44, %v11896_v17 }
 0x250   : > { %v2469_v27 = vsel %vm11585_vm11, %v2412_v60, %v2406_v51  ;;  %v2505_v51 = vadd.f32 %v2489_v52, %v2437_v39  ;;  %v2439_v54 = vsel %vm11585_vm11, %v8225_v9, %v2412_v60  ;;  %v2077_v17 = vmul.f32 %v8150_v30, %v11907_v11 }
 0x251   : > { %v2506_v31 = vadd.f32 %v2490_v56, %v2474_v6  ;;  %v2476_v19 = vsel %vm7772_vm15, %v2469_v27, 0.0  ;;  %v2507_v9 = vadd.f32 %v2491_v2, %v2439_v54 }
 0x252   : > { %v2508_v36 = vadd.f32 %v2492_v47, %v2476_v19  ;;  %v2545_v38 = vadd.f32 %v8153_v26, %v2505_v51  ;;  %v2075_v51 = vmul.f32 %v8127_v21, %v11906_v10  ;;  %v11941_v19 = vld [vmem:[#allocation68_spill] sm:$0xff] }
 0x253   : > { %v2416_v23 = vpop.permute.xlu1 %2415  ;;  %v8285_v48 = vpop.permute.xlu0 %2537  ;;  %v2546_v5 = vadd.f32 %v8153_v26, %v2506_v31  ;;  %v2547_v52 = vadd.f32 %v8153_v26, %v2507_v9  ;;  %v2073_v31 = vmul.f32 %v8127_v21, %v11899_v57  ;;  %v2038_v57 = vmul.f32 %v8114_v44, %v11941_v19  ;;  %v11949_v9 = vld [vmem:[#allocation23_spill] sm:$0xff] }
 0x254   : > { %v2440_v12 = vsel %vm11585_vm11, %v2414_v58, %v2416_v23  ;;  %v2441_v18 = vsel %vm11585_vm11, %v2416_v23, %v2418_v50  ;;  %v2076_v23 = vmul.f32 %v8127_v21, %v11903_v35 }
 0x255   : > { %v2478_v49 = vsel %vm7731_vm13, %v2441_v18, 0.0  ;;  %v2509_v0 = vadd.f32 %v2493_v1, %v2440_v12  ;;  %v11940_v12 = vld [vmem:[#allocation63_spill] sm:$0xff] }
 0x256   : > { %v2510_v14 = vadd.f32 %v2494_v33, %v2478_v49  ;;  %v2040_v18 = vmul.f32 %v8114_v44, %v11940_v12  ;;  %v11942_v49 = vld [vmem:[#allocation65_spill] sm:$0xff] }
 0x257   : > { %v2549_v24 = vadd.f32 %v8173_v4, %v2509_v0  ;;  %v2420_v20 = vpop.permute.xlu1 %2419  ;;  %v8297_v40 = vpop.permute.xlu0 %2297  ;;  %v2039_v35 = vmul.f32 %v8114_v44, %v11942_v49  ;;  %v11943_v0 = vld [vmem:[#allocation66_spill] sm:$0xff] }
 0x258   : > { %v2442_v41 = vsel %vm11585_vm11, %v2418_v50, %v2420_v20  ;;  %v2470_v29 = vsel %vm11585_vm11, %v2420_v20, %v2414_v58  ;;  %v2550_v61 = vadd.f32 %v8173_v4, %v2510_v14  ;;  %v2548_v58 = vadd.f32 %v8153_v26, %v2508_v36  ;;  %v11946_v20 = vld [vmem:[#allocation70_spill] sm:$0xff]  ;;  %v11947_v36 = vld [vmem:[#allocation73_spill] sm:$0xff] }
 0x259   : > { %v2480_v60 = vsel %vm7772_vm15, %v2470_v29, 0.0  ;;  %v2511_v28 = vadd.f32 %v2495_v37, %v2442_v41  ;;  %v2565_v50 = vpack.c.bf16 %v2549_v24, %v2545_v38  ;;  %v2074_v26 = vmul.f32 %v8127_v21, %v11902_v34  ;;  %v11944_v37 = vld [vmem:[#allocation67_spill] sm:$0xff]  ;;  %v11945_v24 = vld [vmem:[#allocation30_spill] sm:$0xff] }
 0x25a   : > { %v2512_v16 = vadd.f32 %v2496_v62, %v2480_v60  ;;  %v2566_v6 = vpack.c.bf16 %v2550_v61, %v2546_v5  ;;  %v2125_v47 = vmul.f32 %v8141_v55, %v11943_v0  ;;  %v2089_v34 = vadd.f32 %v2073_v31, %v2037_v15  ;;  %v11948_v61 = vld [vmem:[#allocation29_spill] sm:$0xff] }
 0x25b   : > { %v2551_v56 = vadd.f32 %v8173_v4, %v2511_v28  ;;  %v2330_v45 = vpop.permute.xlu0 %2329  ;;  %v2092_v2 = vadd.f32 %v2076_v23, %v2040_v18  ;;  %v2078_v14 = vmul.f32 %v8150_v30, %v11889_v3  ;;  %v2128_v10 = vmul.f32 %v8141_v55, %v11944_v37  ;;  %v11950_v28 = vld [vmem:[#allocation16_spill] sm:$0xff]  ;;  %v11954_v31 = vld [vmem:[#allocation25_spill] sm:$0xff]  ;;  %v11955_v23 = vld [vmem:[#allocation71_spill] sm:$0xff] }
 0x25c   : > { %v8304_v25 = vpop.permute.xlu1 %2542  ;;  %2590 = vmatprep.subr.bf16.mxu0 %v2566_v6  ;;  %v2552_v22 = vadd.f32 %v8173_v4, %v2512_v16  ;;  %v2090_v21 = vadd.f32 %v2074_v26, %v2038_v57  ;;  %v2041_v44 = vmul.f32 %v8139_v8, %v11945_v24  ;;  %v2042_v5 = vmul.f32 %v8139_v8, %v11946_v20  ;;  %v11951_v6 = vld [vmem:[#allocation72_spill] sm:$0xff] }
 0x25d   : > { %2591 = vmatpush1.bf16.msra.mxu0 %v2565_v50  ;;  %v2567_v27 = vpack.c.bf16 %v2551_v56, %v2547_v52  ;;  %v2043_v41 = vmul.f32 %v8139_v8, %v11947_v36  ;;  %v2091_v29 = vadd.f32 %v2075_v51, %v2039_v35  ;;  %v2044_v11 = vmul.f32 %v8139_v8, %v11948_v61  ;;  %v11952_v56 = vld [vmem:[#allocation78_spill] sm:$0xff] }
 0x25e   : > { %v2568_v63 = vpack.c.bf16 %v2552_v22, %v2548_v58  ;;  %v2127_v3 = vmul.f32 %v8141_v55, %v11912_v43  ;;  %v2079_v38 = vmul.f32 %v8150_v30, %v11909_v13  ;;  %v2126_v60 = vmul.f32 %v8141_v55, %v11949_v9  ;;  %v11953_v22 = vld [vmem:[#allocation24_spill] sm:$0xff] }
 0x25f   : > { %v8311_v53 = vpop.permute.xlu0 %2333  ;;  %v2080_v16 = vmul.f32 %v8150_v30, %v11950_v28  ;;  %v2129_v50 = vmul.f32 %v11952_v56, %v11951_v6  ;;  %v2141_v58 = vadd.f32 %v2125_v47, %v2089_v34  ;;  %v2130_v52 = vmul.f32 %v11952_v56, %v11953_v22 }
 0x260   : > { %v8309_v39 = vpop.permute.xlu1 %2299  ;;  %2643 = vmatprep.subr.bf16.mxu1 %v2568_v63  ;;  %v2371_v43 = vsel %vm11586_vm10, %v8297_v40, %v2330_v45  ;;  %v2144_v63 = vadd.f32 %v2128_v10, %v2092_v2  ;;  %v2094_v13 = vadd.f32 %v2078_v14, %v2042_v5  ;;  %v2131_v55 = vmul.f32 %v11952_v56, %v11954_v31 }
 0x261   : > { %2644 = vmatpush1.bf16.msra.mxu1 %v2567_v27  ;;  %v2093_v27 = vadd.f32 %v2077_v17, %v2041_v44  ;;  %v2132_v26 = vmul.f32 %v11952_v56, %v11955_v23  ;;  %v2142_v18 = vadd.f32 %v2126_v60, %v2090_v21  ;;  %v2143_v51 = vadd.f32 %v2127_v3, %v2091_v29 }
 0x262   : > { %v2095_v57 = vadd.f32 %v2079_v38, %v2043_v41  ;;  %v2381_v49 = vsel %vm7703_vm12, %v2371_v43, 0.0  ;;  %v2146_v0 = vadd.f32 %v2130_v52, %v2094_v13  ;;  %v2096_v47 = vadd.f32 %v2080_v16, %v2044_v11 }
 0x263   : > { %v2338_v33 = vpop.permute.xlu0 %2337  ;;  %v2145_v35 = vadd.f32 %v2129_v50, %v2093_v27  ;;  %v2497_v44 = vadd.f32 %v2381_v49, %v2141_v58  ;;  %v2349_v20 = vsel %vm11586_vm10, %v8311_v53, %v8297_v40  ;;  %v11956_v49 = vmov 0  }
 0x264   : > { %v2332_v1 = vpop.permute.xlu1 %2331  ;;  %v2147_v10 = vadd.f32 %v2131_v55, %v2095_v57  ;;  %v2148_v21 = vadd.f32 %v2132_v26, %v2096_v47  ;;  %v2500_v28 = vadd.f32 %v2349_v20, %v2144_v63 }
 0x265   : > { %v2347_v19 = vsel %vm11586_vm10, %v2330_v45, %v2332_v1  ;;  %v2348_v2 = vsel %vm11586_vm10, %v2332_v1, %v8311_v53 }
 0x266   : > { %v2498_v45 = vadd.f32 %v2347_v19, %v2142_v18  ;;  %v2383_v5 = vsel %vm7755_vm14, %v2348_v2, 0.0 }
 0x267   : > { %v2422_v46 = vpop.permute.xlu0 %2421  ;;  %v2499_v16 = vadd.f32 %v2383_v5, %v2143_v51 }
 0x268   : > { %v2336_v4 = vpop.permute.xlu1 %2335 }
 0x269   : > { %v2372_v30 = vsel %vm11586_vm10, %v8309_v39, %v2336_v4  ;;  %v2350_v17 = vsel %vm11586_vm10, %v2336_v4, %v2338_v33 }
 0x26a   : > { %v2385_v14 = vsel %vm7703_vm12, %v2372_v30, 0.0  ;;  %v2502_v41 = vadd.f32 %v2350_v17, %v2146_v0 }
 0x26b   : > { %v2426_v62 = vpop.permute.xlu0 %2425  ;;  %v2501_v36 = vadd.f32 %v2385_v14, %v2145_v35  ;;  %v6252_v35 = vld [vmem:[%s11357_s8 + $0x8] sm:$0xff]  }
 0x26c   : > { %v2340_v54 = vpop.permute.xlu1 %2339 }
 0x26d   : > { %v2351_v24 = vsel %vm11586_vm10, %v2338_v33, %v2340_v54  ;;  %v2352_v33 = vsel %vm11586_vm10, %v2340_v54, %v8309_v39 }
 0x26e   : > { %v2387_v3 = vsel %vm7755_vm14, %v2351_v24, 0.0  ;;  %v2504_v56 = vadd.f32 %v2352_v33, %v2148_v21 }
 0x26f   : > { %v2430_v12 = vpop.permute.xlu0 %2429  ;;  %v2503_v54 = vadd.f32 %v2387_v3, %v2147_v10 }
 0x270   : > { %v2424_v8 = vpop.permute.xlu1 %2423 }
 0x271   : > { %v2444_v15 = vsel %vm11585_vm11, %v2424_v8, %v2426_v62  ;;  %v2443_v1 = vsel %vm11585_vm11, %v2422_v46, %v2424_v8 }
 0x272   : > { %v2482_v37 = vsel %vm7731_vm13, %v2444_v15, 0.0  ;;  %v2513_v38 = vadd.f32 %v2497_v44, %v2443_v1  ;;  %v6251_v15 = vld [vmem:[%s11357_s8] sm:$0xff]  }
 0x273   : > { %v2514_v29 = vadd.f32 %v2498_v45, %v2482_v37  ;;  %v2434_v61 = vpop.permute.xlu0 %2433 }
 0x274   : > { %v2428_v34 = vpop.permute.xlu1 %2427  ;;  %v2553_v63 = vadd.f32 %v8285_v48, %v2513_v38 }
 0x275   : > { %v2471_v4 = vsel %vm11585_vm11, %v2428_v34, %v2422_v46  ;;  %v2445_v6 = vsel %vm11585_vm11, %v2426_v62, %v2428_v34  ;;  %v2554_v22 = vadd.f32 %v8285_v48, %v2514_v29 }
 0x276   : > { %v2484_v46 = vsel %vm7772_vm15, %v2471_v4, 0.0  ;;  %v2515_v13 = vadd.f32 %v2499_v16, %v2445_v6 }
 0x277   : > { %v2516_v52 = vadd.f32 %v2500_v28, %v2484_v46 }
 0x278   : > { %v2432_v11 = vpop.permute.xlu1 %2431  ;;  %v2555_v51 = vadd.f32 %v8285_v48, %v2515_v13 }
 0x279   : > { %v2446_v40 = vsel %vm11585_vm11, %v2430_v12, %v2432_v11  ;;  %v2447_v53 = vsel %vm11585_vm11, %v2432_v11, %v2434_v61 }
 0x27a   : > { %v2486_v9 = vsel %vm7731_vm13, %v2447_v53, 0.0  ;;  %v2517_v60 = vadd.f32 %v2501_v36, %v2446_v40  ;;  %v8461_v46 = vpop.permute.xlu0 %2951 }
 0x27b   : > { %v2518_v39 = vadd.f32 %v2502_v41, %v2486_v9 }
 0x27c   : > { %v2557_v50 = vadd.f32 %v8304_v25, %v2517_v60  ;;  %v2436_v58 = vpop.permute.xlu1 %2435 }
 0x27d   : > { %v2448_v8 = vsel %vm11585_vm11, %v2434_v61, %v2436_v58  ;;  %v2472_v43 = vsel %vm11585_vm11, %v2436_v58, %v2430_v12  ;;  %v2558_v27 = vadd.f32 %v8304_v25, %v2518_v39  ;;  %v2556_v12 = vadd.f32 %v8285_v48, %v2516_v52 }
 0x27e   : > { %v2488_v62 = vsel %vm7772_vm15, %v2472_v43, 0.0  ;;  %v2519_v31 = vadd.f32 %v2503_v54, %v2448_v8  ;;  %v2569_v26 = vpack.c.bf16 %v2557_v50, %v2553_v63  ;;  %v8475_v52 = vpop.permute.xlu0 %2987 }
 0x27f   : > { %v2520_v55 = vadd.f32 %v2504_v56, %v2488_v62  ;;  %v2570_v30 = vpack.c.bf16 %v2558_v27, %v2554_v22 }
 0x280   : > { %v2559_v23 = vadd.f32 %v8304_v25, %v2519_v31 }
 0x281   : > { %2592 = vmatprep.subr.bf16.mxu0 %v2570_v30  ;;  %v2560_v18 = vadd.f32 %v8304_v25, %v2520_v55  ;;  %v8465_v28 = vpop.permute.xlu1 %2956 }
 0x282   : > { %2593 = vmatpush1.bf16.msra.mxu0 %v2569_v26  ;;  %v2571_v57 = vpack.c.bf16 %v2559_v23, %v2555_v51  ;;  %v8489_v31 = vpop.permute.xlu0 %3231 }
 0x283   : > { %v2572_v19 = vpack.c.bf16 %v2560_v18, %v2556_v12 }
 0x285   : > { %6083 = vmatmul.mubr.msk.bf16.vlgmr.msra.gmra.mrb[8].mxu0 %vm11584_vm3, %v6251_v15  ;;  %2645 = vmatprep.subr.bf16.mxu1 %v2572_v19  ;;  %v8479_v43 = vpop.permute.xlu1 %2992 }
 0x286   : > { %2646 = vmatpush1.bf16.msra.mxu1 %v2571_v57  ;;  %2632 = vmatprep.mubr.bf16.mxu0 %v11956_v49  ;;  %v8501_v12 = vpop.permute.xlu0 %3267 }
 0x289   : > { %6085 = vmatmul.mubr.msk.bf16.vlgmr.msra.gmra.mrb[8].mxu1 %vm11584_vm3, %v6251_v15  ;;  %v8491_v55 = vpop.permute.xlu1 %3236 }
 0x28a   : > { %2685 = vmatprep.mubr.bf16.mxu1 %v11956_v49  ;;  %v8515_v19 = vpop.permute.xlu0 %3039 }
 0x28d   : > { %6084 = vmatmul.mubr.msk.bf16.gmra.mrb[12].mxu0 %vm11584_vm3, %v6252_v35  ;;  %v8505_v18 = vpop.permute.xlu1 %3272 }
 0x28e   : > { %3703 = vmatprep.mubr.bf16.mxu0 %v11956_v49 }
 0x291   : > { %6086 = vmatmul.mubr.msk.bf16.gmra.mrb[12].mxu1 %vm11584_vm3, %v6252_v35  ;;  %v8517_v35 = vpop.permute.xlu1 %3044  ;;  %vm12015_vm3 = vcmask 1039360  }
 0x292   : > { %3756 = vmatprep.mubr.bf16.mxu1 %v11956_v49  ;;  %vm12016_vm11 = vmmov %vm12015_vm3 }
 0x293   : > { %vm12017_vm10 = vmmov %vm12015_vm3 }
 0x2f7   : > { %v8421_v48 = vpop.f32.mrb[0].mxu0  ;;  %v8425_v0 = vpop.f32.mrb[0].mxu1 }
 0x2f8   : > { %11957 = vst [vmem:[#allocation35_spill] sm:$0xff] %v8421_v48  ;;  %v8423_v25 = vpop.f32.mrb[1].mxu0  ;;  %11959 = vst [vmem:[#allocation33_spill] sm:$0xff] %v8425_v0  ;;  %v8429_v34 = vpop.f32.mrb[1].mxu1 }
 0x2f9   : > { %11958 = vst [vmem:[#allocation39_spill] sm:$0xff] %v8423_v25  ;;  %v8427_v47 = vpop.f32.mrb[2].mxu0  ;;  %11961 = vst [vmem:[#allocation40_spill] sm:$0xff] %v8429_v34  ;;  %v8433_v17 = vpop.f32.mrb[2].mxu1 }
 0x2fa   : > { %11960 = vst [vmem:[#allocation79_spill] sm:$0xff] %v8427_v47  ;;  %v8431_v2 = vpop.f32.mrb[3].mxu0  ;;  %11963 = vst [vmem:[#allocation38_spill] sm:$0xff] %v8433_v17  ;;  %v8435_v14 = vpop.f32.mrb[3].mxu1 }
 0x2fb   : > { %11962 = vst [vmem:[#allocation80_spill] sm:$0xff] %v8431_v2  ;;  %11964 = vst [vmem:[#allocation34_spill] sm:$0xff] %v8435_v14 }
 0x2ff   : > { %v8437_v37 = vpop.f32.mrb[4].mxu0  ;;  %v8441_v10 = vpop.f32.mrb[4].mxu1 }
 0x300   : > { %11965 = vst [vmem:[#allocation62_spill] sm:$0xff] %v8437_v37  ;;  %v8439_v45 = vpop.f32.mrb[5].mxu0  ;;  %11967 = vst [vmem:[#allocation28_spill] sm:$0xff] %v8441_v10  ;;  %v8445_v24 = vpop.f32.mrb[5].mxu1 }
 0x301   : > { %11966 = vst [vmem:[#allocation27_spill] sm:$0xff] %v8439_v45  ;;  %v8443_v21 = vpop.f32.mrb[6].mxu0  ;;  %11969 = vst [vmem:[#allocation26_spill] sm:$0xff] %v8445_v24  ;;  %v8449_v20 = vpop.f32.mrb[6].mxu1 }
 0x302   : > { %11968 = vst [vmem:[#allocation31_spill] sm:$0xff] %v8443_v21  ;;  %v8447_v44 = vpop.f32.mrb[7].mxu0  ;;  %11971 = vst [vmem:[#allocation74_spill] sm:$0xff] %v8449_v20  ;;  %v8451_v1 = vpop.f32.mrb[7].mxu1 }
 0x303   : > { %11970 = vst [vmem:[#allocation21_spill] sm:$0xff] %v8447_v44  ;;  %11972 = vst [vmem:[#allocation64_spill] sm:$0xff] %v8451_v1 }
 0x358   : > { %v2624_v4 = vpop.f32.mrb[8].mxu0 }
 0x359   : > { %v2696_v5 = vmax.f32 %v2624_v4, 0.0  ;;  %v2626_v36 = vpop.f32.mrb[9].mxu0 }
 0x35a   : > { %v2697_v41 = vmax.f32 %v2626_v36, 0.0  ;;  %v2628_v29 = vpop.f32.mrb[10].mxu0 }
 0x35b   : > { %v8453_v61 = vmin.f32 %v2696_v5, 6.0  ;;  %v2630_v11 = vpop.f32.mrb[11].mxu0  ;;  %v2700_v50 = vmax.f32 %v2628_v29, 0.0  ;;  %v8527_v29 = vpop.permute.xlu0 %3319 }
 0x35c   : > { %v8455_v33 = vmin.f32 %v2697_v41, 6.0  ;;  %v2677_v3 = vpop.f32.mrb[8].mxu1  ;;  %v2701_v26 = vmax.f32 %v2630_v11, 0.0  ;;  %v8531_v11 = vpop.permute.xlu1 %3324 }
 0x35d   : > { %v2698_v40 = vmax.f32 %v2677_v3, 0.0  ;;  %v2679_v53 = vpop.f32.mrb[9].mxu1  ;;  %2793 = vrot.lane.b32.xlu0 %v8453_v61, %s11973_s0  ;;  %v8483_v13 = vmin.f32 %v2700_v50, 6.0  ;;  %11975 = vst [vmem:[#allocation36_spill] sm:$0xff] %v8531_v11  ;;  %v8644_v42 = vmul.f32 %v8475_v52, %v8453_v61 }
 0x35e   : > { %v2681_v38 = vpop.f32.mrb[10].mxu1  ;;  %2795 = vrot.lane.b32.xlu1 %v8455_v33, %s11973_s0  ;;  %v2699_v16 = vmax.f32 %v2679_v53, 0.0  ;;  %v8509_v51 = vmin.f32 %v2701_v26, 6.0  ;;  %v3006_v49 = vmul.f32 %v8475_v52, %v8455_v33  ;;  %v8653_v7 = vmul.f32 %v8501_v12, %v8455_v33 }
 0x35f   : > { %v8463_v9 = vmin.f32 %v2698_v40, 6.0  ;;  %v2683_v60 = vpop.f32.mrb[11].mxu1  ;;  %v2702_v62 = vmax.f32 %v2681_v38, 0.0  ;;  %v8541_v53 = vpop.permute.xlu0 %2961 }
 0x360   : > { %v2634_v6 = vpop.f32.mrb[12].mxu0  ;;  %v8473_v58 = vmin.f32 %v2699_v16, 6.0  ;;  %v2703_v23 = vmax.f32 %v2683_v60, 0.0  ;;  %11976 = vst [vmem:[#allocation17_spill] sm:$0xff] %v8541_v53  ;;  %v8543_v38 = vpop.permute.xlu1 %2966 }
 0x361   : > { %2797 = vrot.lane.b32.xlu0 %v8463_v9, %s11973_s0  ;;  %v2636_v39 = vpop.f32.mrb[13].mxu0  ;;  %v8493_v30 = vmin.f32 %v2702_v62, 6.0  ;;  %v2704_v57 = vmax.f32 %v2634_v6, 0.0  ;;  %11977 = vst [vmem:[#allocation58_spill] sm:$0xff] %v8543_v38 }
 0x362   : > { %2867 = vrot.lane.b32.xlu1 %v8455_v33, %s11974_s1  ;;  %v2638_v54 = vpop.f32.mrb[14].mxu0  ;;  %v8499_v15 = vmin.f32 %v2703_v23, 6.0  ;;  %v2705_v4 = vmax.f32 %v2636_v39, 0.0 }
 0x363   : > { %v8471_v56 = vpop.f32.mrb[15].mxu0  ;;  %v8523_v5 = vmin.f32 %v2704_v57, 6.0  ;;  %v2708_v60 = vmax.f32 %v2638_v54, 0.0  ;;  %v8553_v50 = vpop.permute.xlu0 %2997  ;;  %v8724_v11 = vmul.f32 %v8505_v18, %v8493_v30 }
 0x364   : > { %v2687_v22 = vpop.f32.mrb[12].mxu1  ;;  %v8525_v41 = vmin.f32 %v2705_v4, 6.0  ;;  %v2709_v23 = vmax.f32 %v8471_v56, 0.0  ;;  %v6125_v56 = vld [vmem:[%s11356_s7 + $0x30] sm:$0xff] }
 0x365   : > { %v2689_v8 = vpop.f32.mrb[13].mxu1  ;;  %2865 = vrot.lane.b32.xlu0 %v8453_v61, %s11974_s1  ;;  %v2706_v36 = vmax.f32 %v2687_v22, 0.0  ;;  %v8551_v6 = vmin.f32 %v2708_v60, 6.0  ;;  %v8557_v22 = vpop.permute.xlu1 %3002  ;;  %12003 = vst [vmem:[#allocation51_spill] sm:$0xff] %v8724_v11 }
 0x366   : > { %v2691_v27 = vpop.f32.mrb[14].mxu1  ;;  %2871 = vrot.lane.b32.xlu1 %v8473_v58, %s11974_s1  ;;  %v2707_v40 = vmax.f32 %v2689_v8, 0.0 }
 0x367   : > { %v2693_v63 = vpop.f32.mrb[15].mxu1  ;;  %v8535_v3 = vmin.f32 %v2706_v36, 6.0  ;;  %11978 = vst [vmem:[#allocation18_spill] sm:$0xff] %v8551_v6  ;;  %v2710_v39 = vmax.f32 %v2691_v27, 0.0  ;;  %v8567_v27 = vpop.permute.xlu0 %3241  ;;  %v8769_v11 = vmul.f32 %v8557_v22, %v8551_v6 }
 0x368   : > { %v8545_v16 = vmin.f32 %v2707_v40, 6.0  ;;  %v2711_v8 = vmax.f32 %v2693_v63, 0.0  ;;  %11979 = vst [vmem:[#allocation15_spill] sm:$0xff] %v8567_v27  ;;  %v8578_v63 = vmin.f32 %v2709_v23, 6.0  ;;  %v6126_v40 = vld [vmem:[%s11356_s7 + $0x38] sm:$0xff] }
 0x369   : > { %2869 = vrot.lane.b32.xlu0 %v8463_v9, %s11974_s1  ;;  %v8561_v54 = vmin.f32 %v2710_v39, 6.0  ;;  %v8569_v62 = vpop.permute.xlu1 %3246  ;;  %12014 = vst [vmem:[#allocation66_spill] sm:$0xff] %v8769_v11 }
 0x36a   : > { %2799 = vrot.lane.b32.xlu1 %v8483_v13, %s11973_s0  ;;  %11980 = vst [vmem:[#allocation81_spill] sm:$0xff] %v8569_v62  ;;  %v8572_v26 = vmin.f32 %v2711_v8, 6.0  ;;  %11982 = vst [vmem:[#allocation20_spill] sm:$0xff] %v8578_v63  ;;  %v8664_v62 = vmul.f32 %v8479_v43, %v8483_v13 }
 0x36b   : > { %v8580_v57 = vpop.permute.xlu0 %3277 }
 0x36c   : > { %11981 = vst [vmem:[#allocation19_spill] sm:$0xff] %v8572_v26  ;;  %11996 = vst [vmem:[#allocation7_spill] sm:$0xff] %v8664_v62 }
 0x36d   : > { %2769 = vrot.lane.b32.xlu0 %v8473_v58, %s11973_s0  ;;  %v8584_v4 = vpop.permute.xlu1 %3282 }
 0x36e   : > { %2803 = vrot.lane.b32.xlu1 %v8493_v30, %s11973_s0  ;;  %11983 = vst [vmem:[#allocation37_spill] sm:$0xff] %v8584_v4 }
 0x36f   : > { %v8595_v36 = vpop.permute.xlu0 %3049 }
 0x370   : > { %11984 = vst [vmem:[#allocation22_spill] sm:$0xff] %v8595_v36  ;;  %v3008_v36 = vmul.f32 %v8475_v52, %v8473_v58 }
 0x371   : > { %2873 = vrot.lane.b32.xlu0 %v8483_v13, %s11974_s1  ;;  %v8600_v60 = vpop.permute.xlu1 %3054 }
 0x372   : > { %2771 = vrot.lane.b32.xlu1 %v8499_v15, %s11973_s0  ;;  %11985 = vst [vmem:[#allocation60_spill] sm:$0xff] %v8600_v60 }
 0x373   : > { %v8602_v39 = vpop.permute.xlu0 %3329 }
 0x374   : > { %11986 = vst [vmem:[#allocation69_spill] sm:$0xff] %v8602_v39  ;;  %v8688_v39 = vmul.f32 %v8501_v12, %v8463_v9 }
 0x375   : > { %2877 = vrot.lane.b32.xlu0 %v8493_v30, %s11974_s1  ;;  %v8604_v8 = vpop.permute.xlu1 %3334 }
 0x376   : > { %2875 = vrot.lane.b32.xlu1 %v8509_v51, %s11974_s1  ;;  %11987 = vst [vmem:[#allocation83_spill] sm:$0xff] %v8604_v8 }
 0x377   : > { %v8606_v23 = vpop.permute.xlu0 %3091 }
 0x379   : > { %2801 = vrot.lane.b32.xlu0 %v8509_v51, %s11973_s0  ;;  %v8608_v1 = vpop.permute.xlu1 %3096 }
 0x37a   : > { %2879 = vrot.lane.b32.xlu1 %v8499_v15, %s11974_s1 }
 0x37b   : > { %v8610_v44 = vpop.permute.xlu0 %3127 }
 0x37c   : > { %v3146_v32 = vmul.f32 %v8610_v44, %v8455_v33 }
 0x37d   : > { %2805 = vrot.lane.b32.xlu0 %v8523_v5, %s11973_s0  ;;  %v8612_v20 = vpop.permute.xlu1 %3132 }
 0x37e   : > { %2807 = vrot.lane.b32.xlu1 %v8525_v41, %s11973_s0  ;;  %v8668_v60 = vmul.f32 %v8612_v20, %v8483_v13  ;;  %v8716_v53 = vmul.f32 %v8612_v20, %v8493_v30 }
 0x37f   : > { %v8614_v21 = vpop.permute.xlu0 %3179 }
 0x381   : > { %2809 = vrot.lane.b32.xlu0 %v8535_v3, %s11973_s0  ;;  %v8616_v24 = vpop.permute.xlu1 %3184 }
 0x382   : > { %2883 = vrot.lane.b32.xlu1 %v8525_v41, %s11974_s1  ;;  %11988 = vst [vmem:[#allocation10_spill] sm:$0xff] %v8616_v24 }
 0x383   : > { %v8618_v45 = vpop.permute.xlu0 %3101 }
 0x384   : > { %11989 = vst [vmem:[#allocation82_spill] sm:$0xff] %v8618_v45  ;;  %v8720_v45 = vmul.f32 %v8505_v18, %v8509_v51 }
 0x385   : > { %2881 = vrot.lane.b32.xlu0 %v8523_v5, %s11974_s1 }
 0x386   : > { %2887 = vrot.lane.b32.xlu1 %v8545_v16, %s11974_s1  ;;  %12002 = vst [vmem:[#allocation53_spill] sm:$0xff] %v8720_v45 }
 0x389   : > { %2885 = vrot.lane.b32.xlu0 %v8535_v3, %s11974_s1 }
 0x38a   : > { %2811 = vrot.lane.b32.xlu1 %v8551_v6, %s11973_s0 }
 0x38d   : > { %2773 = vrot.lane.b32.xlu0 %v8545_v16, %s11973_s0 }
 0x38e   : > { %2815 = vrot.lane.b32.xlu1 %v8561_v54, %s11973_s0 }
 0x391   : > { %2889 = vrot.lane.b32.xlu0 %v8551_v6, %s11974_s1 }
 0x392   : > { %2775 = vrot.lane.b32.xlu1 %v8572_v26, %s11973_s0 }
 0x395   : > { %2893 = vrot.lane.b32.xlu0 %v8561_v54, %s11974_s1 }
 0x396   : > { %2891 = vrot.lane.b32.xlu1 %v8578_v63, %s11974_s1 }
 0x399   : > { %2813 = vrot.lane.b32.xlu0 %v8578_v63, %s11973_s0 }
 0x39a   : > { %2895 = vrot.lane.b32.xlu1 %v8572_v26, %s11974_s1 }
 0x39d   : > { %3618 = vperm.xlu0 %6247, %v6125_v56   ;;  %v8620_v56 = vpop.permute.xlu1 %3106 }
 0x39e   : > { %3623 = vperm.xlu1 %6248, %v6126_v40   ;;  %11990 = vst [vmem:[#allocation13_spill] sm:$0xff] %v8620_v56  ;;  %v8622_v40 = vpop.permute.xlu0 %3137 }
 0x3a1   : > { %v8624_v10 = vpop.permute.xlu1 %3142 }
 0x3a2   : > { %v8626_v37 = vpop.permute.xlu0 %3189 }
 0x3a3   : > { %11991 = vst [vmem:[#allocation84_spill] sm:$0xff] %v8626_v37  ;;  %v8696_v37 = vmul.f32 %v8501_v12, %v8473_v58 }
 0x3a5   : > { %v8628_v14 = vpop.permute.xlu1 %3194 }
 0x3a6   : > { %11992 = vst [vmem:[#allocation12_spill] sm:$0xff] %v8628_v14  ;;  %v8630_v2 = vpop.permute.xlu0 %3608  ;;  %v8672_v14 = vmul.f32 %v8505_v18, %v8483_v13 }
 0x3a7   : > { %11993 = vst [vmem:[#allocation8_spill] sm:$0xff] %v8630_v2  ;;  %v8648_v2 = vmul.f32 %v8610_v44, %v8453_v61 }
 0x3a8   : > { %11997 = vst [vmem:[#allocation14_spill] sm:$0xff] %v8672_v14  ;;  %v12027_v14 = vld [vmem:[#allocation41_spill] sm:$0xff] }
 0x3a9   : > { %v8632_v17 = vpop.permute.xlu1 %3613 }
 0x3aa   : > { %11994 = vst [vmem:[#allocation9_spill] sm:$0xff] %v8632_v17 }
 0x3cf   : > { %v8634_v47 = vpop.permute.xlu0 %2793 }
 0x3d0   : > { %v2796_v34 = vpop.permute.xlu1 %2795 }
 0x3d1   : > { %v2817_v25 = vsel %vm11593_vm0, %v8634_v47, %v2796_v34 }
 0x3d2   : > { %v2850_v48 = vsel %vm6929_vm6, %v2817_v25, 0.0  ;;  %v8657_v25 = vmul.f32 %v8501_v12, %v8453_v61  ;;  %v8676_v61 = vmul.f32 %v8475_v52, %v8463_v9 }
 0x3d3   : > { %v3110_v17 = vmul.f32 %v8606_v23, %v2850_v48  ;;  %v2798_v59 = vpop.permute.xlu0 %2797  ;;  %v2970_v45 = vmul.f32 %v8461_v46, %v2850_v48 }
 0x3d4   : > { %v2818_v8 = vsel %vm11593_vm0, %v2796_v34, %v2798_v59  ;;  %v2868_v4 = vpop.permute.xlu1 %2867  ;;  %v3147_v34 = vmul.f32 %v8610_v44, %v8463_v9  ;;  %v8712_v9 = vmul.f32 %v8479_v43, %v8493_v30  ;;  %v8745_v30 = vmul.f32 %v8553_v50, %v8535_v3 }
 0x3d5   : > { %v8682_v38 = vsel %vm6933_vm7, %v2818_v8, 0.0  ;;  %v8684_v56 = vadd.f32 %v3146_v32, %v3110_v17  ;;  %v8700_v8 = vmul.f32 %v8479_v43, %v8499_v15  ;;  %v8704_v32 = vmul.f32 %v8505_v18, %v8499_v15 }
 0x3d6   : > { %v3111_v13 = vmul.f32 %v8606_v23, %v8682_v38  ;;  %v8708_v17 = vmul.f32 %v8479_v43, %v8509_v51  ;;  %12001 = vst [vmem:[#allocation43_spill] sm:$0xff] %v8712_v9  ;;  %v8732_v43 = vmul.f32 %v8580_v57, %v8525_v41  ;;  %12008 = vst [vmem:[#allocation52_spill] sm:$0xff] %v8745_v30 }
 0x3d7   : > { %v2866_v27 = vpop.permute.xlu0 %2865  ;;  %11999 = vst [vmem:[#allocation11_spill] sm:$0xff] %v8704_v32  ;;  %v8749_v18 = vmul.f32 %v8622_v40, %v8535_v3  ;;  %v8765_v30 = vmul.f32 %v8580_v57, %v8545_v16  ;;  %v8787_v9 = vmul.f32 %v8557_v22, %v8578_v63  ;;  %v3022_v24 = vadd.f32 %v3006_v49, %v2970_v45 }
 0x3d8   : > { %12000 = vst [vmem:[#allocation45_spill] sm:$0xff] %v8708_v17  ;;  %v3163_v52 = vadd.f32 %v3147_v34, %v3111_v13  ;;  %v2872_v12 = vpop.permute.xlu1 %2871  ;;  %v8728_v17 = vmul.f32 %v8553_v50, %v8525_v41  ;;  %12005 = vst [vmem:[#allocation59_spill] sm:$0xff] %v8732_v43  ;;  %v8736_v34 = vmul.f32 %v8553_v50, %v8523_v5 }
 0x3d9   : > { %v8740_v13 = vmul.f32 %v8622_v40, %v8523_v5  ;;  %12009 = vst [vmem:[#allocation55_spill] sm:$0xff] %v8749_v18  ;;  %v8753_v43 = vmul.f32 %v8580_v57, %v8535_v3  ;;  %12013 = vst [vmem:[#allocation65_spill] sm:$0xff] %v8765_v30  ;;  %v2929_v3 = vsel %vm12015_vm3, %v2872_v12, %v2866_v27 }
 0x3da   : > { %12004 = vst [vmem:[#allocation50_spill] sm:$0xff] %v8728_v17  ;;  %12006 = vst [vmem:[#allocation56_spill] sm:$0xff] %v8736_v34  ;;  %v8757_v34 = vmul.f32 %v8553_v50, %v8545_v16  ;;  %v3148_v49 = vmul.f32 %v8610_v44, %v8473_v58 }
 0x3db   : > { %12007 = vst [vmem:[#allocation61_spill] sm:$0xff] %v8740_v13  ;;  %12010 = vst [vmem:[#allocation57_spill] sm:$0xff] %v8753_v43  ;;  %v2870_v17 = vpop.permute.xlu0 %2869  ;;  %v8761_v13 = vmul.f32 %v8580_v57, %v8523_v5  ;;  %v8778_v5 = vmul.f32 %v8624_v10, %v8551_v6 }
 0x3dc   : > { %12011 = vst [vmem:[#allocation63_spill] sm:$0xff] %v8757_v34  ;;  %v2898_v43 = vsel %vm12016_vm11, %v2868_v4, %v2870_v17  ;;  %v2899_v18 = vsel %vm12017_vm10, %v2870_v17, %v2872_v12  ;;  %v8774_v50 = vpop.permute.xlu1 %2799  ;;  %12021 = vst [vmem:[#allocation30_spill] sm:$0xff] %v8787_v9  ;;  %v8792_v12 = vmul.f32 %v8557_v22, %v8572_v26  ;;  %v12026_v34 = vld [vmem:[#allocation42_spill] sm:$0xff] }
 0x3dd   : > { %12012 = vst [vmem:[#allocation68_spill] sm:$0xff] %v8761_v13  ;;  %12018 = vst [vmem:[#allocation67_spill] sm:$0xff] %v8778_v5  ;;  %v3250_v13 = vmul.f32 %v8489_v31, %v2850_v48  ;;  %v2934_v30 = vsel %vm6981_vm9, %v2898_v43, 0.0  ;;  %v2935_v11 = vsel %vm6943_vm8, %v2899_v18, 0.0  ;;  %v8796_v48 = vmul.f32 %v8557_v22, %v8561_v54 }
 0x3de   : > { %v3058_v17 = vmul.f32 %v8515_v19, %v2934_v30  ;;  %12022 = vst [vmem:[#allocation70_spill] sm:$0xff] %v8792_v12  ;;  %v8800_v43 = vsel %vm6923_vm5, %v2929_v3, 0.0  ;;  %v3198_v18 = vmul.f32 %v8614_v21, %v2934_v30  ;;  %v3199_v63 = vmul.f32 %v8614_v21, %v2935_v11  ;;  %vm12025_vm10 = vmmov %vm12015_vm3 }
 0x3df   : > { %12023 = vst [vmem:[#allocation73_spill] sm:$0xff] %v8796_v48  ;;  %v2770_v9 = vpop.permute.xlu0 %2769  ;;  %v3338_v45 = vmul.f32 %v8527_v29, %v2934_v30  ;;  %v3302_v3 = vadd.f32 %v8653_v7, %v3250_v13  ;;  %v2897_v26 = vsel %vm12025_vm10, %v2866_v27, %v2868_v4  ;;  %v3060_v7 = vmul.f32 %v8515_v19, %v8800_v43  ;;  %vm12030_vm11 = vmmov %vm12015_vm3 }
 0x3e0   : > { %v2819_v12 = vsel %vm11593_vm0, %v2798_v59, %v2770_v9  ;;  %v2845_v22 = vsel %vm11593_vm0, %v2770_v9, %v8634_v47  ;;  %v8810_v48 = vpop.permute.xlu1 %2803  ;;  %v3074_v5 = vadd.f32 %v3058_v17, %v3022_v24  ;;  %v8827_v4 = vadd.f32 %v3198_v18, %v8684_v56  ;;  %vm12031_vm10 = vmmov %vm12015_vm3 }
 0x3e1   : > { %v2849_v32 = vsel %vm6903_vm2, %v2845_v22, 0.0  ;;  %v2852_v44 = vsel %vm6898_vm1, %v2819_v12, 0.0  ;;  %v8829_v9 = vadd.f32 %v3199_v63, %v3163_v52  ;;  %v3354_v22 = vadd.f32 %v3338_v45, %v3302_v3 }
 0x3e2   : > { %v2969_v58 = vmul.f32 %v8461_v46, %v2849_v32  ;;  %v2972_v59 = vmul.f32 %v8461_v46, %v2852_v44  ;;  %v3109_v30 = vmul.f32 %v8606_v23, %v2849_v32  ;;  %v3112_v47 = vmul.f32 %v8606_v23, %v2852_v44  ;;  %3399 = vrot.lane.b32.xlu1 %v3074_v5, %s11796_s20  ;;  %v12029_v5 = vld [vmem:[#allocation44_spill] sm:$0xff] }
 0x3e3   : > { %v3252_v24 = vmul.f32 %v8489_v31, %v2852_v44  ;;  %v2874_v27 = vpop.permute.xlu0 %2873  ;;  %12028 = vst [vmem:[#allocation29_spill] sm:$0xff] %v8829_v9  ;;  %v2933_v57 = vsel %vm6914_vm4, %v2897_v26, 0.0  ;;  %v8843_v63 = vmul.f32 %v8624_v10, %v8561_v54  ;;  %v3251_v52 = vmul.f32 %v8489_v31, %v8682_v38 }
 0x3e4   : > { %v3024_v13 = vadd.f32 %v3008_v36, %v2972_v59  ;;  %v8832_v17 = vadd.f32 %v8648_v2, %v3109_v30  ;;  %v2772_v12 = vpop.permute.xlu1 %2771  ;;  %v8834_v23 = vadd.f32 %v3148_v49, %v3112_v47  ;;  %v3340_v2 = vmul.f32 %v8527_v29, %v8800_v43 }
 0x3e5   : > { %v3304_v62 = vadd.f32 %v8696_v37, %v3252_v24  ;;  %v2846_v44 = vsel %vm11593_vm0, %v2772_v12, %v8774_v50  ;;  %v3021_v36 = vadd.f32 %v8644_v42, %v2969_v58  ;;  %v2971_v37 = vmul.f32 %v8461_v46, %v8682_v38 }
 0x3e6   : > { %v2853_v56 = vsel %vm6903_vm2, %v2846_v44, 0.0  ;;  %3487 = vrot.lane.b32.xlu1 %v3354_v22, %s11821_s15  ;;  %v3076_v26 = vadd.f32 %v3060_v7, %v3024_v13  ;;  %v2822_v18 = vsel %vm11593_vm0, %v8810_v48, %v2772_v12  ;;  %v3057_v42 = vmul.f32 %v8515_v19, %v2933_v57 }
 0x3e7   : > { %v3113_v49 = vmul.f32 %v8608_v1, %v2853_v56  ;;  %v2878_v45 = vpop.permute.xlu0 %2877  ;;  %v3249_v3 = vmul.f32 %v8489_v31, %v2849_v32  ;;  %v3356_v59 = vadd.f32 %v3340_v2, %v3304_v62  ;;  %v8863_v46 = vmul.f32 %v8612_v20, %v8499_v15 }
 0x3e8   : > { %v2876_v58 = vpop.permute.xlu1 %2875  ;;  %3373 = vrot.lane.b32.xlu0 %v3076_v26, %s11796_s20  ;;  %v3059_v38 = vmul.f32 %v8515_v19, %v2935_v11  ;;  %v8871_v47 = vmul.f32 %v8612_v20, %v8509_v51  ;;  %v8875_v31 = vmul.f32 %v8622_v40, %v8525_v41  ;;  %v3339_v32 = vmul.f32 %v8527_v29, %v2935_v11 }
 0x3e9   : > { %v8867_v30 = vadd.f32 %v8668_v60, %v3113_v49  ;;  %v2856_v62 = vsel %vm6898_vm1, %v2822_v18, 0.0  ;;  %v3073_v15 = vadd.f32 %v3057_v42, %v3021_v36  ;;  %v8883_v19 = vmul.f32 %v8622_v40, %v8545_v16 }
 0x3ea   : > { %3491 = vrot.lane.b32.xlu1 %v3356_v59, %s11821_s15  ;;  %v3023_v60 = vadd.f32 %v8676_v61, %v2971_v37  ;;  %v3303_v20 = vadd.f32 %v8688_v39, %v3251_v52  ;;  %v8888_v51 = vmul.f32 %v8614_v21, %v2933_v57  ;;  %v3337_v41 = vmul.f32 %v8527_v29, %v2933_v57 }
 0x3eb   : > { %v2802_v11 = vpop.permute.xlu0 %2801  ;;  %v8893_v7 = vmul.f32 %v8614_v21, %v8800_v43  ;;  %v3301_v24 = vadd.f32 %v8657_v25, %v3249_v3  ;;  %v2900_v13 = vsel %vm12030_vm11, %v2874_v27, %v2876_v58  ;;  %v2976_v39 = vmul.f32 %v8465_v28, %v2856_v62  ;;  %vm12032_vm11 = vmmov %vm12015_vm3 }
 0x3ec   : > { %v2820_v16 = vsel %vm11593_vm0, %v8774_v50, %v2802_v11  ;;  %v2880_v40 = vpop.permute.xlu1 %2879  ;;  %3397 = vrot.lane.b32.xlu0 %v3073_v15, %s11796_s20  ;;  %v2821_v29 = vsel %vm11593_vm0, %v2802_v11, %v8810_v48  ;;  %v3075_v57 = vadd.f32 %v3059_v38, %v3023_v60  ;;  %v2973_v21 = vmul.f32 %v8465_v28, %v2853_v56  ;;  %v12036_v11 = vld [vmem:[#allocation11_spill] sm:$0xff] }
 0x3ed   : > { %v2930_v61 = vsel %vm12015_vm3, %v2880_v40, %v2874_v27  ;;  %v8906_v25 = vmul.f32 %v8608_v1, %v2856_v62  ;;  %v2855_v43 = vsel %vm6933_vm7, %v2821_v29, 0.0  ;;  %v3355_v50 = vadd.f32 %v3339_v32, %v3303_v20  ;;  %v12035_v20 = vld [vmem:[#allocation14_spill] sm:$0xff] }
 0x3ee   : > { %v2901_v12 = vsel %vm12031_vm10, %v2876_v58, %v2878_v45  ;;  %v2937_v22 = vsel %vm6914_vm4, %v2900_v13, 0.0  ;;  %v2854_v48 = vsel %vm6929_vm6, %v2820_v16, 0.0  ;;  %v3115_v27 = vmul.f32 %v8608_v1, %v2855_v43  ;;  %v12033_v58 = vld [vmem:[#allocation7_spill] sm:$0xff]  ;;  %v12038_v29 = vld [vmem:[#allocation10_spill] sm:$0xff]  ;;  %vm12046_vm10 = vmmov %vm12015_vm3 }
 0x3ef   : > { %v8916_v44 = vpop.permute.xlu0 %2805  ;;  %v3253_v2 = vmul.f32 %v8491_v55, %v2853_v56  ;;  %v3256_v36 = vmul.f32 %v8491_v55, %v2856_v62  ;;  %v2940_v26 = vsel %vm6923_vm5, %v2930_v61, 0.0  ;;  %v3353_v52 = vadd.f32 %v3337_v41, %v3301_v24 }
 0x3f0   : > { %v2808_v37 = vpop.permute.xlu1 %2807  ;;  %3401 = vrot.lane.b32.xlu0 %v3075_v57, %s11796_s20  ;;  %v3028_v18 = vadd.f32 %v8700_v8, %v2976_v39  ;;  %v3167_v49 = vadd.f32 %v8716_v53, %v3115_v27  ;;  %v2902_v42 = vsel %vm12032_vm11, %v2878_v45, %v2880_v40  ;;  %v3064_v3 = vmul.f32 %v8517_v35, %v2940_v26  ;;  %v12039_v57 = vld [vmem:[#allocation36_spill] sm:$0xff]  ;;  %v12040_v27 = vld [vmem:[#allocation45_spill] sm:$0xff]  ;;  %vm12049_vm11 = vmmov %vm12015_vm3 }
 0x3f1   : > { %v3025_v59 = vadd.f32 %v12033_v58, %v2973_v21  ;;  %v2938_v38 = vsel %vm6981_vm9, %v2901_v12, 0.0  ;;  %v3061_v32 = vmul.f32 %v8517_v35, %v2937_v22  ;;  %v2974_v62 = vmul.f32 %v8465_v28, %v2854_v48  ;;  %v12043_v58 = vld [vmem:[#allocation53_spill] sm:$0xff] }
 0x3f2   : > { %v2975_v15 = vmul.f32 %v8465_v28, %v2855_v43  ;;  %v3254_v60 = vmul.f32 %v8491_v55, %v2854_v48  ;;  %v2823_v53 = vsel %vm11593_vm0, %v8916_v44, %v2808_v37  ;;  %v3080_v8 = vadd.f32 %v3064_v3, %v3028_v18 }
 0x3f3   : > { %v8936_v45 = vpop.permute.xlu0 %2809  ;;  %v3305_v41 = vadd.f32 %v12035_v20, %v3253_v2  ;;  %v8940_v24 = vadd.f32 %v12036_v11, %v3256_v36  ;;  %v2939_v16 = vsel %vm6943_vm8, %v2902_v42, 0.0  ;;  %v3062_v39 = vmul.f32 %v8517_v35, %v2938_v38  ;;  %v12042_v42 = vld [vmem:[#allocation43_spill] sm:$0xff] }
 0x3f4   : > { %v2824_v40 = vsel %vm11593_vm0, %v2808_v37, %v8936_v45  ;;  %v8946_v28 = vpop.permute.xlu1 %2883  ;;  %3485 = vrot.lane.b32.xlu0 %v3353_v52, %s11821_s15  ;;  %v3201_v61 = vmul.f32 %v12038_v29, %v2937_v22  ;;  %v3341_v21 = vmul.f32 %v12039_v57, %v2937_v22  ;;  %3375 = vrot.lane.b32.xlu1 %v3080_v8, %s11796_s20  ;;  %v2858_v37 = vsel %vm6929_vm6, %v2823_v53, 0.0  ;;  %v12041_v52 = vld [vmem:[#allocation82_spill] sm:$0xff] }
 0x3f5   : > { %v8955_v12 = vsel %vm6933_vm7, %v2824_v40, 0.0  ;;  %v3026_v2 = vadd.f32 %v12040_v27, %v2974_v62  ;;  %v3255_v36 = vmul.f32 %v8491_v55, %v2855_v43  ;;  %v3027_v3 = vadd.f32 %v12042_v42, %v2975_v15  ;;  %v12044_v43 = vld [vmem:[#allocation55_spill] sm:$0xff] }
 0x3f6   : > { %v3119_v18 = vmul.f32 %v12041_v52, %v8955_v12  ;;  %v3306_v22 = vadd.f32 %v12043_v58, %v3254_v60  ;;  %v3063_v8 = vmul.f32 %v8517_v35, %v2939_v16  ;;  %v3077_v20 = vadd.f32 %v3061_v32, %v3025_v59 }
 0x3f7   : > { %v2882_v11 = vpop.permute.xlu0 %2881  ;;  %v3202_v40 = vmul.f32 %v12038_v29, %v2938_v38  ;;  %v3342_v62 = vmul.f32 %v12039_v57, %v2938_v38  ;;  %v3114_v55 = vmul.f32 %v8608_v1, %v2854_v48  ;;  %v3203_v9 = vmul.f32 %v12038_v29, %v2939_v16  ;;  %v12045_v1 = vld [vmem:[#allocation51_spill] sm:$0xff] }
 0x3f8   : > { %v3171_v27 = vadd.f32 %v12044_v43, %v3119_v18  ;;  %v2888_v53 = vpop.permute.xlu1 %2887  ;;  %3489 = vrot.lane.b32.xlu0 %v3355_v50, %s11821_s15  ;;  %v3118_v15 = vmul.f32 %v12041_v52, %v2858_v37  ;;  %3403 = vrot.lane.b32.xlu1 %v3077_v20, %s11796_s20  ;;  %v8976_v35 = vadd.f32 %v8888_v51, %v8832_v17 }
 0x3f9   : > { %v8980_v59 = vadd.f32 %v8893_v7, %v8834_v23  ;;  %v3307_v48 = vadd.f32 %v12045_v1, %v3255_v36  ;;  %v3204_v38 = vmul.f32 %v12038_v29, %v2940_v26  ;;  %v3343_v50 = vmul.f32 %v12039_v57, %v2939_v16 }
 0x3fa   : > { %v3078_v32 = vadd.f32 %v3062_v39, %v3026_v2  ;;  %v3344_v60 = vmul.f32 %v12039_v57, %v2940_v26  ;;  %v3079_v18 = vadd.f32 %v3063_v8, %v3027_v3  ;;  %v3358_v58 = vadd.f32 %v3342_v62, %v3306_v22  ;;  %v12048_v2 = vld [vmem:[#allocation15_spill] sm:$0xff] }
 0x3fb   : > { %v2886_v42 = vpop.permute.xlu0 %2885  ;;  %v8987_v20 = vadd.f32 %v3201_v61, %v8867_v30  ;;  %v3168_v7 = vadd.f32 %v8863_v46, %v8906_v25  ;;  %v3166_v26 = vadd.f32 %v8871_v47, %v3114_v55  ;;  %v9005_v39 = vadd.f32 %v3203_v9, %v3167_v49  ;;  %v12047_v61 = vld [vmem:[#allocation17_spill] sm:$0xff]  ;;  %v12050_v25 = vld [vmem:[#allocation84_spill] sm:$0xff] }
 0x3fc   : > { %v2904_v17 = vsel %vm12015_vm3, %v8946_v28, %v2886_v42  ;;  %v2905_v23 = vsel %vm12046_vm10, %v2886_v42, %v2888_v53  ;;  %v8992_v51 = vpop.permute.xlu1 %2811  ;;  %3405 = vrot.lane.b32.xlu0 %v3078_v32, %s11796_s20  ;;  %3407 = vrot.lane.b32.xlu1 %v3079_v18, %s11796_s20  ;;  %v3170_v29 = vadd.f32 %v8875_v31, %v3118_v15  ;;  %v12052_v42 = vld [vmem:[#allocation63_spill] sm:$0xff]  ;;  %vm12064_vm10 = vmmov %vm12015_vm3 }
 0x3fd   : > { %v2942_v30 = vsel %vm6981_vm9, %v2904_v17, 0.0  ;;  %v9003_v16 = vsel %vm6943_vm8, %v2905_v23, 0.0  ;;  %v2978_v57 = vmul.f32 %v12047_v61, %v2858_v37  ;;  %v3258_v36 = vmul.f32 %v12048_v2, %v2858_v37  ;;  %v12053_v17 = vld [vmem:[#allocation61_spill] sm:$0xff] }
 0x3fe   : > { %v2931_v46 = vsel %vm12049_vm11, %v2888_v53, %v2882_v11  ;;  %v3357_v47 = vadd.f32 %v3341_v21, %v3305_v41  ;;  %v3206_v3 = vmul.f32 %v12050_v25, %v2942_v30  ;;  %v3207_v22 = vmul.f32 %v12050_v25, %v9003_v16  ;;  %vm12066_vm11 = vmmov %vm12015_vm3 }
 0x3ff   : > { %v2774_v8 = vpop.permute.xlu0 %2773  ;;  %v9014_v62 = vadd.f32 %v3204_v38, %v3168_v7  ;;  %v9016_v55 = vadd.f32 %v3202_v40, %v3166_v26  ;;  %v2979_v9 = vmul.f32 %v12047_v61, %v8955_v12  ;;  %v3359_v21 = vadd.f32 %v3343_v50, %v3307_v48  ;;  %v12054_v26 = vld [vmem:[#allocation50_spill] sm:$0xff] }
 0x400   : > { %v2825_v31 = vsel %vm11593_vm0, %v8936_v45, %v2774_v8  ;;  %v2847_v49 = vsel %vm11593_vm0, %v2774_v8, %v8916_v44  ;;  %v9024_v41 = vpop.permute.xlu1 %2815  ;;  %3493 = vrot.lane.b32.xlu0 %v3357_v47, %s11821_s15  ;;  %v2903_v37 = vsel %vm12015_vm3, %v2882_v11, %v8946_v28  ;;  %v2944_v40 = vsel %vm6923_vm5, %v2931_v46, 0.0  ;;  %3495 = vrot.lane.b32.xlu1 %v3358_v58, %s11821_s15  ;;  %v12051_v28 = vld [vmem:[#allocation22_spill] sm:$0xff]  ;;  %v12057_v8 = vld [vmem:[#allocation13_spill] sm:$0xff] }
 0x401   : > { %v2857_v43 = vsel %vm6903_vm2, %v2847_v49, 0.0  ;;  %v2860_v45 = vsel %vm6898_vm1, %v2825_v31, 0.0  ;;  %v3066_v11 = vmul.f32 %v12051_v28, %v2942_v30  ;;  %v3360_v48 = vadd.f32 %v3344_v60, %v8940_v24 }
 0x402   : > { %v2977_v44 = vmul.f32 %v12047_v61, %v2857_v43  ;;  %v2980_v53 = vmul.f32 %v12047_v61, %v2860_v45  ;;  %v3117_v15 = vmul.f32 %v12041_v52, %v2857_v43  ;;  %v3120_v1 = vmul.f32 %v12041_v52, %v2860_v45  ;;  %v12055_v61 = vld [vmem:[#allocation56_spill] sm:$0xff] }
 0x403   : > { %v2890_v38 = vpop.permute.xlu0 %2889  ;;  %v9042_v50 = vadd.f32 %v3206_v3, %v3170_v29  ;;  %v9044_v32 = vadd.f32 %v3207_v22, %v3171_v27  ;;  %v3068_v18 = vmul.f32 %v12051_v28, %v2944_v40  ;;  %v3030_v24 = vadd.f32 %v12054_v26, %v2978_v57  ;;  %v12056_v3 = vld [vmem:[#allocation69_spill] sm:$0xff] }
 0x404   : > { %v3032_v58 = vadd.f32 %v12052_v42, %v2980_v53  ;;  %v9049_v23 = vadd.f32 %v12053_v17, %v3117_v15  ;;  %v2776_v7 = vpop.permute.xlu1 %2775  ;;  %3497 = vrot.lane.b32.xlu0 %v3359_v21, %s11821_s15  ;;  %v9053_v52 = vadd.f32 %v8883_v19, %v3120_v1  ;;  %v3259_v60 = vmul.f32 %v12048_v2, %v8955_v12  ;;  %v12060_v42 = vld [vmem:[#allocation19_spill] sm:$0xff] }
 0x405   : > { %v2941_v27 = vsel %vm6914_vm4, %v2903_v37, 0.0  ;;  %3499 = vrot.lane.b32.xlu1 %v3360_v48, %s11821_s15  ;;  %v2848_v29 = vsel %vm11593_vm0, %v2776_v7, %v8992_v51  ;;  %v3029_v46 = vadd.f32 %v12055_v61, %v2977_v44  ;;  %v2828_v47 = vsel %vm11593_vm0, %v9024_v41, %v2776_v7  ;;  %v12058_v37 = vld [vmem:[#allocation59_spill] sm:$0xff]  ;;  %v12059_v44 = vld [vmem:[#allocation52_spill] sm:$0xff] }
 0x406   : > { %v9068_v19 = vsel %vm6903_vm2, %v2848_v29, 0.0  ;;  %v3084_v57 = vadd.f32 %v3068_v18, %v3032_v58  ;;  %v3346_v12 = vmul.f32 %v12056_v3, %v2942_v30  ;;  %v3260_v22 = vmul.f32 %v12048_v2, %v2860_v45  ;;  %v12061_v30 = vld [vmem:[#allocation57_spill] sm:$0xff] }
 0x407   : > { %v3121_v31 = vmul.f32 %v12057_v8, %v9068_v19  ;;  %v3082_v49 = vadd.f32 %v3066_v11, %v3030_v24  ;;  %v2894_v21 = vpop.permute.xlu0 %2893  ;;  %v3310_v53 = vadd.f32 %v12058_v37, %v3258_v36  ;;  %v3031_v15 = vadd.f32 %v12059_v44, %v2979_v9  ;;  %v12062_v36 = vld [vmem:[#allocation67_spill] sm:$0xff]  ;;  %v12063_v29 = vld [vmem:[#allocation65_spill] sm:$0xff] }
 0x408   : > { %v3065_v1 = vmul.f32 %v12051_v28, %v2941_v27  ;;  %v2892_v48 = vpop.permute.xlu1 %2891  ;;  %3377 = vrot.lane.b32.xlu0 %v3084_v57, %s11796_s20  ;;  %v3160_v18 = vmul.f32 %v8624_v10, %v12060_v42  ;;  %v3311_v58 = vadd.f32 %v12061_v30, %v3259_v60  ;;  %v3067_v45 = vmul.f32 %v12051_v28, %v9003_v16  ;;  %v12069_v30 = vld [vmem:[#allocation70_spill] sm:$0xff] }
 0x409   : > { %v9085_v11 = vsel %vm6898_vm1, %v2828_v47, 0.0  ;;  %v3173_v17 = vadd.f32 %v12062_v36, %v3121_v31  ;;  %3411 = vrot.lane.b32.xlu1 %v3082_v49, %s11796_s20  ;;  %v3205_v9 = vmul.f32 %v12050_v25, %v2941_v27  ;;  %v3345_v7 = vmul.f32 %v12056_v3, %v2941_v27  ;;  %v12065_v49 = vld [vmem:[#allocation58_spill] sm:$0xff] }
 0x40a   : > { %v3257_v26 = vmul.f32 %v12048_v2, %v2857_v43  ;;  %v3081_v24 = vadd.f32 %v3065_v1, %v3029_v46  ;;  %v3208_v60 = vmul.f32 %v12050_v25, %v2944_v40  ;;  %v3312_v61 = vadd.f32 %v12063_v29, %v3260_v22 }
 0x40b   : > { %v2906_v28 = vsel %vm12064_vm10, %v2890_v38, %v2892_v48  ;;  %v3362_v57 = vadd.f32 %v3346_v12, %v3310_v53  ;;  %v2814_v47 = vpop.permute.xlu0 %2813  ;;  %v3348_v37 = vmul.f32 %v12056_v3, %v2944_v40  ;;  %v3347_v31 = vmul.f32 %v12056_v3, %v9003_v16  ;;  %v12067_v16 = vld [vmem:[#allocation68_spill] sm:$0xff]  ;;  %vm12068_vm10 = vmmov %vm12015_vm3 }
 0x40c   : > { %v2984_v44 = vmul.f32 %v12065_v49, %v9085_v11  ;;  %v2826_v2 = vsel %vm11593_vm0, %v8992_v51, %v2814_v47  ;;  %v2896_v43 = vpop.permute.xlu1 %2895  ;;  %3409 = vrot.lane.b32.xlu0 %v3081_v24, %s11796_s20  ;;  %v2827_v25 = vsel %vm11593_vm0, %v2814_v47, %v9024_v41  ;;  %v3083_v46 = vadd.f32 %v3067_v45, %v3031_v15 }
 0x40d   : > { %3503 = vrot.lane.b32.xlu1 %v3362_v57, %s11821_s15  ;;  %v2908_v27 = vsel %vm12066_vm11, %v2894_v21, %v2896_v43  ;;  %v2932_v40 = vsel %vm12015_vm3, %v2896_v43, %v2890_v38  ;;  %v3309_v3 = vadd.f32 %v12067_v16, %v3257_v26  ;;  %v2907_v12 = vsel %vm12068_vm10, %v2892_v48, %v2894_v21  ;;  %v12070_v26 = vld [vmem:[#allocation12_spill] sm:$0xff] }
 0x40e   : > { %v2945_v51 = vsel %vm6914_vm4, %v2906_v28, 0.0  ;;  %v2863_v22 = vsel %vm6933_vm7, %v2827_v25, 0.0  ;;  %v2862_v53 = vsel %vm6929_vm6, %v2826_v2, 0.0  ;;  %v2947_v1 = vsel %vm6943_vm8, %v2908_v27, 0.0 }
 0x40f   : > { %v3123_v41 = vmul.f32 %v12057_v8, %v2863_v22  ;;  %v3364_v38 = vadd.f32 %v3348_v37, %v3312_v61  ;;  %v2981_v15 = vmul.f32 %v12065_v49, %v9068_v19  ;;  %v3036_v21 = vadd.f32 %v12069_v30, %v2984_v44  ;;  %v12071_v61 = vld [vmem:[#allocation60_spill] sm:$0xff]  ;;  %v12075_v30 = vld [vmem:[#allocation81_spill] sm:$0xff] }
 0x410   : > { %v3124_v48 = vmul.f32 %v12057_v8, %v9085_v11  ;;  %v2948_v45 = vsel %vm6923_vm5, %v2932_v40, 0.0  ;;  %3413 = vrot.lane.b32.xlu0 %v3083_v46, %s11796_s20  ;;  %v2946_v36 = vsel %vm6981_vm9, %v2907_v12, 0.0  ;;  %v3209_v24 = vmul.f32 %v12070_v26, %v2945_v51  ;;  %v12072_v40 = vld [vmem:[#allocation66_spill] sm:$0xff]  ;;  %v12073_v12 = vld [vmem:[#allocation20_spill] sm:$0xff] }
 0x411   : > { %v3175_v29 = vadd.f32 %v8843_v63, %v3123_v41  ;;  %v3072_v28 = vmul.f32 %v12071_v61, %v2948_v45  ;;  %3507 = vrot.lane.b32.xlu1 %v3364_v38, %s11821_s15  ;;  %v2982_v57 = vmul.f32 %v12065_v49, %v2862_v53  ;;  %v3122_v47 = vmul.f32 %v12057_v8, %v2862_v53  ;;  %v12074_v38 = vld [vmem:[#allocation30_spill] sm:$0xff] }
 0x412   : > { %v3211_v37 = vmul.f32 %v12070_v26, %v2947_v1  ;;  %v3361_v44 = vadd.f32 %v3345_v7, %v3309_v3  ;;  %v3069_v2 = vmul.f32 %v12071_v61, %v2945_v51  ;;  %v2983_v43 = vmul.f32 %v12065_v49, %v2863_v22 }
 0x413   : > { %v3212_v25 = vmul.f32 %v12070_v26, %v2948_v45  ;;  %v3088_v27 = vadd.f32 %v3072_v28, %v3036_v21  ;;  %v3033_v63 = vadd.f32 %v12072_v40, %v2981_v15  ;;  %v3210_v46 = vmul.f32 %v12070_v26, %v2946_v36 }
 0x414   : > { %3501 = vrot.lane.b32.xlu0 %v3361_v44, %s11821_s15  ;;  %v3363_v16 = vadd.f32 %v3347_v31, %v3311_v58  ;;  %v3158_v8 = vmul.f32 %v8624_v10, %v12073_v12  ;;  %v9146_v7 = vadd.f32 %v3205_v9, %v9049_v23  ;;  %v9149_v49 = vadd.f32 %v3208_v60, %v9053_v52  ;;  %v12076_v31 = vld [vmem:[#allocation73_spill] sm:$0xff] }
 0x415   : > { %3379 = vrot.lane.b32.xlu1 %v3088_v27, %s11796_s20  ;;  %v9151_v3 = vadd.f32 %v3209_v24, %v3173_v17  ;;  %v3176_v41 = vadd.f32 %v3160_v18, %v3124_v48  ;;  %v3034_v15 = vadd.f32 %v12074_v38, %v2982_v57  ;;  %v3262_v21 = vmul.f32 %v12075_v30, %v2862_v53  ;;  %v12077_v9 = vld [vmem:[#allocation37_spill] sm:$0xff]  ;;  %v12078_v53 = vld [vmem:[#allocation18_spill] sm:$0xff]  ;;  %v12079_v24 = vld [vmem:[#allocation83_spill] sm:$0xff] }
 0x416   : > { %v3174_v26 = vadd.f32 %v3158_v8, %v3122_v47  ;;  %v9155_v58 = vadd.f32 %v3211_v37, %v3175_v29  ;;  %v3035_v10 = vadd.f32 %v12076_v31, %v2983_v43  ;;  %v3071_v28 = vmul.f32 %v12071_v61, %v2947_v1  ;;  %v6162_v8 = vld [vmem:[%s11355_s6 + $0x308] sm:$0xff]  ;;  %v6139_v31 = vld [vmem:[%s11355_s6 + $0x250] sm:$0xff] }
 0x417   : > { %v3085_v44 = vadd.f32 %v3069_v2, %v3033_v63  ;;  %v9159_v23 = vadd.f32 %v3212_v25, %v3176_v41  ;;  %v3261_v52 = vmul.f32 %v12075_v30, %v9068_v19  ;;  %v3070_v17 = vmul.f32 %v12071_v61, %v2946_v36  ;;  %v6165_v41 = vld [vmem:[%s11355_s6 + $0x320] sm:$0xff]  ;;  %v6166_v38 = vld [vmem:[%s11355_s6 + $0x328] sm:$0xff] }
 0x418   : > { %3505 = vrot.lane.b32.xlu0 %v3363_v16, %s11821_s15  ;;  %v9165_v18 = vadd.f32 %v3210_v46, %v3174_v26  ;;  %v3298_v60 = vmul.f32 %v12077_v9, %v12073_v12  ;;  %v3297_v48 = vmul.f32 %v12077_v9, %v12078_v53  ;;  %v3349_v29 = vmul.f32 %v12079_v24, %v2945_v51  ;;  %v6161_v12 = vld [vmem:[%s11355_s6 + $0x300] sm:$0xff]  ;;  %v6170_v26 = vld [vmem:[%s11355_s6 + $0x348] sm:$0xff]  ;;  %v6147_v53 = vld [vmem:[%s11355_s6 + $0x290] sm:$0xff] }
 0x419   : > { %3415 = vrot.lane.b32.xlu1 %v3085_v44, %s11796_s20  ;;  %v3263_v57 = vmul.f32 %v12075_v30, %v2863_v22  ;;  %v3086_v47 = vadd.f32 %v3070_v17, %v3034_v15  ;;  %v3087_v37 = vadd.f32 %v3071_v28, %v3035_v10  ;;  %v3299_v2 = vmul.f32 %v12077_v9, %v8561_v54  ;;  %v6145_v15 = vld [vmem:[%s11355_s6 + $0x280] sm:$0xff]  ;;  %v6140_v10 = vld [vmem:[%s11355_s6 + $0x258] sm:$0xff]  ;;  %v6143_v28 = vld [vmem:[%s11355_s6 + $0x270] sm:$0xff] }
 0x41a   : > { %v3314_v19 = vadd.f32 %v3298_v60, %v3262_v21  ;;  %v3313_v61 = vadd.f32 %v3297_v48, %v3261_v52  ;;  %v3264_v43 = vmul.f32 %v12075_v30, %v9085_v11  ;;  %v3350_v25 = vmul.f32 %v12079_v24, %v2946_v36  ;;  %v6142_v36 = vld [vmem:[%s11355_s6 + $0x268] sm:$0xff]  ;;  %v6169_v21 = vld [vmem:[%s11355_s6 + $0x340] sm:$0xff]  ;;  %v6144_v44 = vld [vmem:[%s11355_s6 + $0x278] sm:$0xff] }
 0x41b   : > { %v3315_v27 = vadd.f32 %v3299_v2, %v3263_v57  ;;  %v3351_v51 = vmul.f32 %v12079_v24, %v2947_v1  ;;  %v3300_v40 = vmul.f32 %v12077_v9, %v12060_v42  ;;  %v3352_v63 = vmul.f32 %v12079_v24, %v2948_v45  ;;  %v6137_v1 = vld [vmem:[%s11355_s6 + $0x240] sm:$0xff]  ;;  %v6138_v42 = vld [vmem:[%s11355_s6 + $0x248] sm:$0xff]  ;;  %v6163_v52 = vld [vmem:[%s11355_s6 + $0x310] sm:$0xff] }
 0x41c   : > { %3417 = vrot.lane.b32.xlu0 %v3086_v47, %s11796_s20  ;;  %v3365_v22 = vadd.f32 %v3349_v29, %v3313_v61  ;;  %v3366_v46 = vadd.f32 %v3350_v25, %v3314_v19  ;;  %v6141_v45 = vld [vmem:[%s11355_s6 + $0x260] sm:$0xff]  ;;  %v6146_v30 = vld [vmem:[%s11355_s6 + $0x288] sm:$0xff]  ;;  %v6164_v17 = vld [vmem:[%s11355_s6 + $0x318] sm:$0xff]  ;;  %v9266_v19 = vpop.permute.xlu0 %3618  ;;  %vm12080_vm11 = vcmask 130048   ;;  %vm12086_vm4 = vcmask 916480  }
 0x41d   : > { %3419 = vrot.lane.b32.xlu1 %v3087_v37, %s11796_s20  ;;  %v3316_v54 = vadd.f32 %v3300_v40, %v3264_v43  ;;  %v3367_v11 = vadd.f32 %v3351_v51, %v3315_v27  ;;  %v6167_v9 = vld [vmem:[%s11355_s6 + $0x330] sm:$0xff]  ;;  %v6168_v60 = vld [vmem:[%s11355_s6 + $0x338] sm:$0xff]  ;;  %v9261_v57 = vpop.permute.xlu1 %3623  ;;  %v6149_v47 = vld [vmem:[%s11355_s6 + $0x2a0] sm:$0xff] }
 0x41e   : > { %v6148_v48 = vld [vmem:[%s11355_s6 + $0x298] sm:$0xff]  ;;  %v6171_v24 = vld [vmem:[%s11355_s6 + $0x350] sm:$0xff]  ;;  %v6150_v37 = vld [vmem:[%s11355_s6 + $0x2a8] sm:$0xff] }
 0x41f   : > { %v3368_v16 = vadd.f32 %v3352_v63, %v3316_v54  ;;  %v6172_v29 = vld [vmem:[%s11355_s6 + $0x358] sm:$0xff]  ;;  %v6153_v2 = vld [vmem:[%s11355_s6 + $0x2c0] sm:$0xff]  ;;  %v6154_v25 = vld [vmem:[%s11355_s6 + $0x2c8] sm:$0xff] }
 0x420   : > { %3509 = vrot.lane.b32.xlu0 %v3365_v22, %s11821_s15  ;;  %v6157_v51 = vld [vmem:[%s11355_s6 + $0x2e0] sm:$0xff]  ;;  %v6158_v40 = vld [vmem:[%s11355_s6 + $0x2e8] sm:$0xff]  ;;  %v6151_v63 = vld [vmem:[%s11355_s6 + $0x2b0] sm:$0xff] }
 0x421   : > { %3511 = vrot.lane.b32.xlu1 %v3366_v46, %s11821_s15  ;;  %v6152_v54 = vld [vmem:[%s11355_s6 + $0x2b8] sm:$0xff]  ;;  %vm12082_vm3 = vmmov %vm12080_vm11 }
 0x422   : > { %vm12083_vm10 = vmmov %vm12082_vm3 }
 0x423   : > { %vm12085_vm0 = vmmov %vm12082_vm3 }
 0x424   : > { %3513 = vrot.lane.b32.xlu0 %v3367_v11, %s11821_s15  ;;  %vm12090_vm1 = vmmov %vm12085_vm0 }
 0x425   : > { %3515 = vrot.lane.b32.xlu1 %v3368_v16, %s11821_s15  ;;  %v6155_v16 = vld [vmem:[%s11355_s6 + $0x2d0] sm:$0xff] }
 0x428   : > { %4032 = vperm.xlu0 %6247, %v6137_v1  }
 0x429   : > { %4037 = vperm.xlu1 %6248, %v6138_v42   ;;  %v6156_v42 = vld [vmem:[%s11355_s6 + $0x2d8] sm:$0xff] }
 0x42c   : > { %4068 = vperm.xlu0 %6247, %v6141_v45  }
 0x42d   : > { %4073 = vperm.xlu1 %6248, %v6142_v36   ;;  %v6159_v36 = vld [vmem:[%s11355_s6 + $0x2f0] sm:$0xff] }
 0x430   : > { %4312 = vperm.xlu0 %6247, %v6161_v12  }
 0x431   : > { %4317 = vperm.xlu1 %6248, %v6162_v8  }
 0x434   : > { %4348 = vperm.xlu0 %6247, %v6165_v41   ;;  %v6160_v41 = vld [vmem:[%s11355_s6 + $0x2f8] sm:$0xff] }
 0x435   : > { %4353 = vperm.xlu1 %6248, %v6166_v38  }
 0x438   : > { %4120 = vperm.xlu0 %6247, %v6145_v15  }
 0x439   : > { %4125 = vperm.xlu1 %6248, %v6146_v30  }
 0x43c   : > { %4400 = vperm.xlu0 %6247, %v6169_v21  }
 0x43d   : > { %4405 = vperm.xlu1 %6248, %v6170_v26   ;;  %v6173_v26 = vld [vmem:[%s11356_s7 + $0x40] sm:$0xff] }
 0x440   : > { %4042 = vperm.xlu0 %6247, %v6139_v31  }
 0x441   : > { %4047 = vperm.xlu1 %6248, %v6140_v10  }
 0x444   : > { %4078 = vperm.xlu0 %6247, %v6143_v28   ;;  %v6174_v28 = vld [vmem:[%s11356_s7 + $0x48] sm:$0xff] }
 0x445   : > { %4083 = vperm.xlu1 %6248, %v6144_v44  }
 0x448   : > { %4322 = vperm.xlu0 %6247, %v6163_v52  }
 0x449   : > { %4327 = vperm.xlu1 %6248, %v6164_v17  }
 0x44c   : > { %4358 = vperm.xlu0 %6247, %v6167_v9  }
 0x44d   : > { %4363 = vperm.xlu1 %6248, %v6168_v60  }
 0x450   : > { %4130 = vperm.xlu0 %6247, %v6147_v53  }
 0x451   : > { %4135 = vperm.xlu1 %6248, %v6148_v48  }
 0x454   : > { %4410 = vperm.xlu0 %6247, %v6171_v24   ;;  %v3400_v61 = vpop.permute.xlu1 %3399 }
 0x455   : > { %4415 = vperm.xlu1 %6248, %v6172_v29  }
 0x458   : > { %4172 = vperm.xlu0 %6247, %v6149_v47   ;;  %v3488_v27 = vpop.permute.xlu1 %3487 }
 0x459   : > { %4177 = vperm.xlu1 %6248, %v6150_v37  }
 0x45a   : > { %v3374_v43 = vpop.permute.xlu0 %3373 }
 0x45c   : > { %4208 = vperm.xlu0 %6247, %v6153_v2   ;;  %v3492_v11 = vpop.permute.xlu1 %3491 }
 0x45d   : > { %4213 = vperm.xlu1 %6248, %v6154_v25  }
 0x45e   : > { %v3398_v22 = vpop.permute.xlu0 %3397 }
 0x45f   : > { %v3449_v12 = vsel %vm12080_vm11, %v3374_v43, %v3398_v22  ;;  %vm12084_vm11 = vmmov %vm12082_vm3 }
 0x460   : > { %4260 = vperm.xlu0 %6247, %v6157_v51   ;;  %v3453_v30 = vsel %vm7703_vm12, %v3449_v12, 0.0  ;;  %v3421_v44 = vsel %vm12084_vm11, %v3398_v22, %v3400_v61  ;;  %vm12096_vm11 = vmmov %vm12090_vm1 }
 0x461   : > { %4265 = vperm.xlu1 %6248, %v6158_v40   ;;  %v3569_v60 = vadd.f32 %v3453_v30, %v8976_v35 }
 0x462   : > { %v3402_v46 = vpop.permute.xlu0 %3401 }
 0x463   : > { %v3422_v31 = vsel %vm12083_vm10, %v3400_v61, %v3402_v46  ;;  %v3423_v52 = vsel %vm12085_vm0, %v3402_v46, %v3374_v43  ;;  %v3570_v61 = vadd.f32 %v3421_v44, %v8827_v4 }
 0x464   : > { %4182 = vperm.xlu0 %6247, %v6151_v63   ;;  %v3455_v47 = vsel %vm7755_vm14, %v3422_v31, 0.0  ;;  %v3572_v2 = vadd.f32 %v3423_v52, %v8980_v59  ;;  %v12098_v31 = vld [vmem:[#allocation9_spill] sm:$0xff] }
 0x465   : > { %4187 = vperm.xlu1 %6248, %v6152_v54   ;;  %v12094_v54 = vld [vmem:[#allocation29_spill] sm:$0xff] }
 0x466   : > { %v3486_v1 = vpop.permute.xlu0 %3485  ;;  %v3376_v45 = vpop.permute.xlu1 %3375 }
 0x467   : > { %v3517_v17 = vsel %vm12086_vm4, %v3486_v1, %v3488_v27 }
 0x468   : > { %4218 = vperm.xlu0 %6247, %v6155_v16   ;;  %v3585_v43 = vadd.f32 %v3569_v60, %v3517_v17  ;;  %v3571_v16 = vadd.f32 %v3455_v47, %v12094_v54 }
 0x469   : > { %4223 = vperm.xlu1 %6248, %v6156_v42  }
 0x46a   : > { %v3490_v8 = vpop.permute.xlu0 %3489  ;;  %v3404_v38 = vpop.permute.xlu1 %3403 }
 0x46b   : > { %v3450_v21 = vsel %vm12082_vm3, %v3376_v45, %v3404_v38  ;;  %vm12087_vm3 = vmmov %vm12086_vm4 }
 0x46c   : > { %4270 = vperm.xlu0 %6247, %v6159_v36   ;;  %v3549_v53 = vsel %vm12087_vm3, %v3492_v11, %v3486_v1  ;;  %v3457_v48 = vsel %vm7703_vm12, %v3450_v21, 0.0  ;;  %vm12088_vm10 = vmmov %vm12087_vm3 }
 0x46d   : > { %4275 = vperm.xlu1 %6248, %v6160_v41   ;;  %v3518_v24 = vsel %vm12088_vm10, %v3488_v27, %v3490_v8  ;;  %v3556_v51 = vsel %vm7772_vm15, %v3549_v53, 0.0  ;;  %v3573_v22 = vadd.f32 %v3457_v48, %v8987_v20  ;;  %vm12092_vm0 = vmmov %vm12087_vm3  ;;  %v12097_v20 = vld [vmem:[#allocation8_spill] sm:$0xff] }
 0x46e   : > { %v3406_v10 = vpop.permute.xlu0 %3405  ;;  %v3408_v9 = vpop.permute.xlu1 %3407  ;;  %v3519_v27 = vsel %vm12092_vm0, %v3490_v8, %v3492_v11  ;;  %v3554_v63 = vsel %vm7731_vm13, %v3518_v24, 0.0  ;;  %vm12095_vm4 = vmmov %vm12092_vm0  ;;  %v3588_v12 = vadd.f32 %v3572_v2, %v3556_v51  ;;  %v3626_v41 = vadd.f32 %v12097_v20, %v3585_v43 }
 0x46f   : > { %v3425_v37 = vsel %vm12090_vm1, %v3406_v10, %v3408_v9  ;;  %v3424_v1 = vsel %vm12090_vm1, %v3404_v38, %v3406_v10  ;;  %v3426_v42 = vsel %vm12096_vm11, %v3408_v9, %v3376_v45  ;;  %v3586_v11 = vadd.f32 %v3570_v61, %v3554_v63  ;;  %vm12099_vm3 = vmmov %vm12092_vm0 }
 0x470   : > { %4689 = vperm.xlu0 %6247, %v6173_v26   ;;  %v3459_v4 = vsel %vm7755_vm14, %v3425_v37, 0.0  ;;  %v3587_v8 = vadd.f32 %v3571_v16, %v3519_v27  ;;  %v3574_v21 = vadd.f32 %v3424_v1, %v9016_v55  ;;  %v3576_v44 = vadd.f32 %v3426_v42, %v9014_v62  ;;  %vm12100_vm10 = vmmov %vm12092_vm0 }
 0x471   : > { %4694 = vperm.xlu1 %6248, %v6174_v28   ;;  %v3575_v26 = vadd.f32 %v3459_v4, %v9005_v39  ;;  %v3627_v37 = vadd.f32 %v12097_v20, %v3586_v11  ;;  %v3629_v2 = vadd.f32 %v12097_v20, %v3588_v12  ;;  %vm12102_vm11 = vmmov %vm12090_vm1 }
 0x472   : > { %v3494_v35 = vpop.permute.xlu0 %3493  ;;  %v3496_v46 = vpop.permute.xlu1 %3495  ;;  %v3628_v24 = vadd.f32 %v12097_v20, %v3587_v8  ;;  %vm12106_vm2 = vmmov %vm12092_vm0 }
 0x473   : > { %v3520_v59 = vsel %vm12095_vm4, %v3494_v35, %v3496_v46  ;;  %vm12101_vm4 = vmmov %vm12090_vm1 }
 0x474   : > { %v3589_v36 = vadd.f32 %v3573_v22, %v3520_v59 }
 0x476   : > { %v3498_v30 = vpop.permute.xlu0 %3497  ;;  %v3630_v38 = vadd.f32 %v12098_v31, %v3589_v36 }
 0x477   : > { %v3500_v10 = vpop.permute.xlu1 %3499  ;;  %v3521_v28 = vsel %vm12099_vm3, %v3496_v46, %v3498_v30  ;;  %vm12103_vm3 = vmmov %vm12090_vm1 }
 0x478   : > { %v3550_v45 = vsel %vm12100_vm10, %v3500_v10, %v3494_v35  ;;  %v3522_v52 = vsel %vm12092_vm0, %v3498_v30, %v3500_v10  ;;  %v3558_v17 = vsel %vm7731_vm13, %v3521_v28, 0.0  ;;  %v3647_v39 = vpack.c.bf16 %v3630_v38, %v3626_v41  ;;  %vm12104_vm10 = vmmov %vm12090_vm1 }
 0x479   : > { %v3560_v9 = vsel %vm7772_vm15, %v3550_v45, 0.0  ;;  %v3590_v55 = vadd.f32 %v3574_v21, %v3558_v17  ;;  %v3591_v60 = vadd.f32 %v3575_v26, %v3522_v52 }
 0x47a   : > { %v3592_v53 = vadd.f32 %v3576_v44, %v3560_v9  ;;  %v3378_v48 = vpop.permute.xlu0 %3377 }
 0x47b   : > { %v3632_v47 = vadd.f32 %v12098_v31, %v3591_v60  ;;  %v3412_v62 = vpop.permute.xlu1 %3411  ;;  %v3631_v61 = vadd.f32 %v12098_v31, %v3590_v55 }
 0x47c   : > { %v3633_v43 = vadd.f32 %v12098_v31, %v3592_v53 }
 0x47d   : > { %v3648_v35 = vpack.c.bf16 %v3631_v61, %v3627_v37  ;;  %v3649_v51 = vpack.c.bf16 %v3632_v47, %v3628_v24 }
 0x47e   : > { %v3650_v22 = vpack.c.bf16 %v3633_v43, %v3629_v2  ;;  %v3410_v27 = vpop.permute.xlu0 %3409 }
 0x47f   : > { %v3504_v63 = vpop.permute.xlu1 %3503  ;;  %3671 = vmatprep.subr.bf16.mxu0 %v3648_v35  ;;  %v3451_v4 = vsel %vm12090_vm1, %v3378_v48, %v3410_v27  ;;  %v3427_v11 = vsel %vm12103_vm3, %v3410_v27, %v3412_v62  ;;  %vm12105_vm1 = vmmov %vm12092_vm0 }
 0x480   : > { %3724 = vmatprep.subr.bf16.mxu1 %v3650_v22  ;;  %3672 = vmatpush1.bf16.msra.mxu0 %v3647_v39  ;;  %v3461_v36 = vsel %vm7703_vm12, %v3451_v4, 0.0  ;;  %v3578_v45 = vadd.f32 %v3427_v11, %v9042_v50 }
 0x481   : > { %3725 = vmatpush1.bf16.msra.mxu1 %v3649_v51  ;;  %v3577_v26 = vadd.f32 %v3461_v36, %v9146_v7 }
 0x482   : > { %v3414_v46 = vpop.permute.xlu0 %3413 }
 0x483   : > { %v3508_v54 = vpop.permute.xlu1 %3507  ;;  %v3428_v20 = vsel %vm12102_vm11, %v3412_v62, %v3414_v46  ;;  %v3429_v8 = vsel %vm12104_vm10, %v3414_v46, %v3378_v48  ;;  %vm12108_vm11 = vmmov %vm12092_vm0 }
 0x484   : > { %v3463_v28 = vsel %vm7755_vm14, %v3428_v20, 0.0  ;;  %v3580_v52 = vadd.f32 %v3429_v8, %v9149_v49 }
 0x485   : > { %v3579_v48 = vadd.f32 %v3463_v28, %v9044_v32 }
 0x486   : > { %v3502_v16 = vpop.permute.xlu0 %3501 }
 0x487   : > { %v3380_v1 = vpop.permute.xlu1 %3379  ;;  %v3523_v30 = vsel %vm12092_vm0, %v3502_v16, %v3504_v63  ;;  %v3551_v31 = vsel %vm12105_vm1, %v3508_v54, %v3502_v16  ;;  %vm12112_vm1 = vmmov %vm12092_vm0 }
 0x488   : > { %v3593_v17 = vadd.f32 %v3577_v26, %v3523_v30  ;;  %v3564_v7 = vsel %vm7772_vm15, %v3551_v31, 0.0  ;;  %v12116_v26 = vmov 0  }
 0x489   : > { %v3596_v37 = vadd.f32 %v3580_v52, %v3564_v7 }
 0x48a   : > { %v3506_v59 = vpop.permute.xlu0 %3505 }
 0x48b   : > { %v3416_v42 = vpop.permute.xlu1 %3415  ;;  %v3524_v10 = vsel %vm12106_vm2, %v3504_v63, %v3506_v59  ;;  %v3525_v60 = vsel %vm12108_vm11, %v3506_v59, %v3508_v54  ;;  %vm12109_vm2 = vmmov %vm12103_vm3  ;;  %v3637_v20 = vadd.f32 %v9266_v19, %v3596_v37  ;;  %vm12114_vm11 = vcmask 261120  }
 0x48c   : > { %v3452_v12 = vsel %vm12101_vm4, %v3380_v1, %v3416_v42  ;;  %vm12107_vm4 = vmmov %vm12103_vm3  ;;  %v3562_v39 = vsel %vm7731_vm13, %v3524_v10, 0.0  ;;  %v3595_v2 = vadd.f32 %v3579_v48, %v3525_v60 }
 0x48d   : > { %v3465_v38 = vsel %vm7703_vm12, %v3452_v12, 0.0  ;;  %vm12110_vm3 = vmmov %vm12092_vm0  ;;  %v3594_v61 = vadd.f32 %v3578_v45, %v3562_v39 }
 0x48e   : > { %v3418_v41 = vpop.permute.xlu0 %3417  ;;  %v3581_v55 = vadd.f32 %v3465_v38, %v9151_v3  ;;  %vm12111_vm10 = vmmov %vm12109_vm2  ;;  %v3634_v3 = vadd.f32 %v9266_v19, %v3593_v17 }
 0x48f   : > { %v3420_v21 = vpop.permute.xlu1 %3419  ;;  %v3430_v24 = vsel %vm12109_vm2, %v3416_v42, %v3418_v41  ;;  %v3636_v42 = vadd.f32 %v9266_v19, %v3595_v2  ;;  %vm12115_vm2 = vmmov %vm12114_vm11 }
 0x490   : > { %v3431_v44 = vsel %vm12107_vm4, %v3418_v41, %v3420_v21  ;;  %v3432_v47 = vsel %vm12111_vm10, %v3420_v21, %v3380_v1  ;;  %v3582_v35 = vadd.f32 %v3430_v24, %v9165_v18  ;;  %vm12113_vm4 = vmmov %vm12092_vm0  ;;  %v6253_v21 = vld [vmem:[%s11357_s8 + $0x10] sm:$0xff]  }
 0x491   : > { %v3467_v50 = vsel %vm7755_vm14, %v3431_v44, 0.0  ;;  %v3584_v63 = vadd.f32 %v3432_v47, %v9159_v23  ;;  %v3635_v23 = vadd.f32 %v9266_v19, %v3594_v61  ;;  %vm12118_vm10 = vmmov %vm12115_vm2 }
 0x492   : > { %v3510_v9 = vpop.permute.xlu0 %3509  ;;  %v3583_v32 = vadd.f32 %v3467_v50, %v9155_v58 }
 0x493   : > { %v3512_v53 = vpop.permute.xlu1 %3511 }
 0x494   : > { %v3526_v49 = vsel %vm12110_vm3, %v3510_v9, %v3512_v53  ;;  %vm12117_vm3 = vmmov %vm12115_vm2 }
 0x495   : > { %v3597_v62 = vadd.f32 %v3581_v55, %v3526_v49 }
 0x496   : > { %v3514_v43 = vpop.permute.xlu0 %3513 }
 0x497   : > { %v3638_v51 = vadd.f32 %v9261_v57, %v3597_v62  ;;  %v3516_v22 = vpop.permute.xlu1 %3515  ;;  %v3527_v27 = vsel %vm12092_vm0, %v3512_v53, %v3514_v43  ;;  %vm12141_vm0 = vcmask 7168  }
 0x498   : > { %v3552_v46 = vsel %vm12112_vm1, %v3516_v22, %v3510_v9  ;;  %v3528_v54 = vsel %vm12113_vm4, %v3514_v43, %v3516_v22  ;;  %v3566_v16 = vsel %vm7731_vm13, %v3527_v27, 0.0  ;;  %vm12142_vm1 = vmmov %vm12141_vm0  ;;  %vm12160_vm4 = vcmask 1039360  }
 0x499   : > { %v3568_v1 = vsel %vm7772_vm15, %v3552_v46, 0.0  ;;  %v3598_v18 = vadd.f32 %v3582_v35, %v3566_v16  ;;  %v3599_v4 = vadd.f32 %v3583_v32, %v3528_v54  ;;  %v3651_v58 = vpack.c.bf16 %v3638_v51, %v3634_v3 }
 0x49a   : > { %v3600_v59 = vadd.f32 %v3584_v63, %v3568_v1 }
 0x49b   : > { %v3640_v36 = vadd.f32 %v9261_v57, %v3599_v4  ;;  %v3639_v12 = vadd.f32 %v9261_v57, %v3598_v18 }
 0x49c   : > { %v3641_v41 = vadd.f32 %v9261_v57, %v3600_v59  ;;  %v6254_v57 = vld [vmem:[%s11357_s8 + $0x18] sm:$0xff]  }
 0x49d   : > { %v3652_v11 = vpack.c.bf16 %v3639_v12, %v3635_v23  ;;  %v3653_v8 = vpack.c.bf16 %v3640_v36, %v3636_v42 }
 0x49e   : > { %v3654_v30 = vpack.c.bf16 %v3641_v41, %v3637_v20 }
 0x49f   : > { %3673 = vmatprep.subr.bf16.mxu0 %v3652_v11 }
 0x4a0   : > { %3726 = vmatprep.subr.bf16.mxu1 %v3654_v30  ;;  %3674 = vmatpush1.bf16.msra.mxu0 %v3651_v58 }
 0x4a1   : > { %3727 = vmatpush1.bf16.msra.mxu1 %v3653_v8 }
 0x4a3   : > { %6133 = vmatmul.mubr.msk.bf16.vlgmr.msra.gmra.mrb[16].mxu0 %vm12114_vm11, %v6253_v21  ;;  %vm12161_vm11 = vmmov %vm12160_vm4 }
 0x4a4   : > { %6135 = vmatmul.mubr.msk.bf16.vlgmr.msra.gmra.mrb[16].mxu1 %vm12115_vm2, %v6253_v21  ;;  %3713 = vmatprep.mubr.bf16.mxu0 %v12116_v26  ;;  %vm12162_vm2 = vmmov %vm12160_vm4 }
 0x4a5   : > { %3766 = vmatprep.mubr.bf16.mxu1 %v12116_v26 }
 0x4a7   : > { %v9425_v39 = vpop.permute.xlu0 %4032 }
 0x4a8   : > { %v9429_v48 = vpop.permute.xlu1 %4037 }
 0x4ab   : > { %6134 = vmatmul.mubr.msk.bf16.gmra.mrb[20].mxu0 %vm12117_vm3, %v6254_v57  ;;  %v9439_v32 = vpop.permute.xlu0 %4068  ;;  %vm12167_vm3 = vmmov %vm12141_vm0 }
 0x4ac   : > { %6136 = vmatmul.mubr.msk.bf16.gmra.mrb[20].mxu1 %vm12118_vm10, %v6254_v57  ;;  %4784 = vmatprep.mubr.bf16.mxu0 %v12116_v26  ;;  %v9443_v51 = vpop.permute.xlu1 %4073  ;;  %vm12168_vm10 = vmmov %vm12141_vm0 }
 0x4ad   : > { %4837 = vmatprep.mubr.bf16.mxu1 %v12116_v26 }
 0x4af   : > { %v9453_v63 = vpop.permute.xlu0 %4312 }
 0x4b0   : > { %v9455_v46 = vpop.permute.xlu1 %4317 }
 0x4b1   : > { %12119 = vst [vmem:[#allocation23_spill] sm:$0xff] %v9455_v46 }
 0x4b3   : > { %v9465_v4 = vpop.permute.xlu0 %4348 }
 0x4b4   : > { %v9469_v58 = vpop.permute.xlu1 %4353 }
 0x4b7   : > { %v9479_v42 = vpop.permute.xlu0 %4120 }
 0x4b8   : > { %v9481_v23 = vpop.permute.xlu1 %4125 }
 0x4b9   : > { %12120 = vst [vmem:[#allocation16_spill] sm:$0xff] %v9481_v23 }
 0x4bb   : > { %v9491_v8 = vpop.permute.xlu0 %4400 }
 0x4bc   : > { %v9495_v30 = vpop.permute.xlu1 %4405 }
 0x4bd   : > { %12121 = vst [vmem:[#allocation72_spill] sm:$0xff] %v9495_v30 }
 0x576   : > { %v3705_v19 = vpop.f32.mrb[16].mxu0 }
 0x577   : > { %v3758_v31 = vpop.f32.mrb[16].mxu1  ;;  %v3777_v38 = vmax.f32 %v3705_v19, 0.0  ;;  %v3707_v10 = vpop.f32.mrb[17].mxu0 }
 0x578   : > { %v3760_v28 = vpop.f32.mrb[17].mxu1  ;;  %v3778_v44 = vmax.f32 %v3707_v10, 0.0  ;;  %v3709_v45 = vpop.f32.mrb[18].mxu0  ;;  %v3779_v52 = vmax.f32 %v3758_v31, 0.0 }
 0x579   : > { %v9417_v17 = vmin.f32 %v3777_v38, 6.0  ;;  %v3762_v9 = vpop.f32.mrb[18].mxu1  ;;  %v3711_v7 = vpop.f32.mrb[19].mxu0  ;;  %v3780_v24 = vmax.f32 %v3760_v28, 0.0  ;;  %v3781_v43 = vmax.f32 %v3709_v45, 0.0 }
 0x57a   : > { %v9419_v55 = vmin.f32 %v3778_v44, 6.0  ;;  %v3764_v60 = vpop.f32.mrb[19].mxu1  ;;  %v9427_v53 = vmin.f32 %v3779_v52, 6.0  ;;  %v3783_v22 = vmax.f32 %v3762_v9, 0.0  ;;  %v3782_v18 = vmax.f32 %v3711_v7, 0.0  ;;  %v9505_v19 = vpop.permute.xlu0 %4042 }
 0x57b   : > { %3874 = vrot.lane.b32.xlu0 %v9417_v17, %s11973_s0  ;;  %v9437_v2 = vmin.f32 %v3780_v24, 6.0  ;;  %v9447_v27 = vmin.f32 %v3781_v43, 6.0  ;;  %v3784_v16 = vmax.f32 %v3764_v60, 0.0  ;;  %12122 = vst [vmem:[#allocation78_spill] sm:$0xff] %v9505_v19  ;;  %v9507_v31 = vpop.permute.xlu1 %4047  ;;  %v6176_v43 = vld [vmem:[%s11356_s7 + $0x58] sm:$0xff] }
 0x57c   : > { %3876 = vrot.lane.b32.xlu1 %v9419_v55, %s11973_s0  ;;  %v9457_v54 = vmin.f32 %v3783_v22, 6.0  ;;  %v9473_v59 = vmin.f32 %v3782_v18, 6.0  ;;  %12123 = vst [vmem:[#allocation24_spill] sm:$0xff] %v9507_v31 }
 0x57d   : > { %v9463_v1 = vmin.f32 %v3784_v16, 6.0 }
 0x57e   : > { %v3715_v50 = vpop.f32.mrb[20].mxu0  ;;  %v9517_v45 = vpop.permute.xlu0 %4078  ;;  %v9686_v46 = vmul.f32 %v9469_v58, %v9473_v59 }
 0x57f   : > { %v3768_v49 = vpop.f32.mrb[20].mxu1  ;;  %3878 = vrot.lane.b32.xlu0 %v9427_v53, %s11973_s0  ;;  %v3717_v47 = vpop.f32.mrb[21].mxu0  ;;  %v3785_v36 = vmax.f32 %v3715_v50, 0.0  ;;  %v9654_v30 = vmul.f32 %v9443_v51, %v9463_v1 }
 0x580   : > { %v3770_v62 = vpop.f32.mrb[21].mxu1  ;;  %3948 = vrot.lane.b32.xlu1 %v9419_v55, %s11974_s1  ;;  %v3719_v37 = vpop.f32.mrb[22].mxu0  ;;  %v3786_v12 = vmax.f32 %v3717_v47, 0.0  ;;  %v3787_v20 = vmax.f32 %v3768_v49, 0.0  ;;  %12147 = vst [vmem:[#allocation84_spill] sm:$0xff] %v9686_v46 }
 0x581   : > { %v3772_v3 = vpop.f32.mrb[22].mxu1  ;;  %v9435_v61 = vpop.f32.mrb[23].mxu0  ;;  %v9487_v41 = vmin.f32 %v3785_v36, 6.0  ;;  %v3788_v57 = vmax.f32 %v3770_v62, 0.0  ;;  %v3789_v10 = vmax.f32 %v3719_v37, 0.0  ;;  %12143 = vst [vmem:[#allocation55_spill] sm:$0xff] %v9654_v30 }
 0x582   : > { %v3774_v35 = vpop.f32.mrb[23].mxu1  ;;  %v9489_v11 = vmin.f32 %v3786_v12, 6.0  ;;  %v9499_v21 = vmin.f32 %v3787_v20, 6.0  ;;  %v3791_v28 = vmax.f32 %v3772_v3, 0.0  ;;  %v9521_v52 = vpop.permute.xlu1 %4083  ;;  %v3790_v49 = vmax.f32 %v9435_v61, 0.0  ;;  %v6175_v3 = vld [vmem:[%s11356_s7 + $0x50] sm:$0xff] }
 0x583   : > { %3946 = vrot.lane.b32.xlu0 %v9417_v17, %s11974_s1  ;;  %v9509_v38 = vmin.f32 %v3788_v57, 6.0  ;;  %v9515_v44 = vmin.f32 %v3789_v10, 6.0  ;;  %v3792_v7 = vmax.f32 %v3774_v35, 0.0  ;;  %v9531_v60 = vpop.permute.xlu0 %4322 }
 0x584   : > { %3952 = vrot.lane.b32.xlu1 %v9437_v2, %s11974_s1  ;;  %v9525_v9 = vmin.f32 %v3791_v28, 6.0  ;;  %12125 = vst [vmem:[#allocation71_spill] sm:$0xff] %v9531_v60  ;;  %v9542_v47 = vmin.f32 %v3790_v49, 6.0  ;;  %v9630_v60 = vmul.f32 %v9439_v32, %v9437_v2 }
 0x585   : > { %12124 = vst [vmem:[#allocation25_spill] sm:$0xff] %v9515_v44  ;;  %v9535_v50 = vmin.f32 %v3792_v7, 6.0 }
 0x586   : > { %v9533_v24 = vpop.permute.xlu1 %4327  ;;  %12128 = vst [vmem:[#allocation42_spill] sm:$0xff] %v9542_v47 }
 0x587   : > { %3950 = vrot.lane.b32.xlu0 %v9427_v53, %s11974_s1  ;;  %12126 = vst [vmem:[#allocation48_spill] sm:$0xff] %v9533_v24  ;;  %12127 = vst [vmem:[#allocation46_spill] sm:$0xff] %v9535_v50  ;;  %v9544_v62 = vpop.permute.xlu0 %4358  ;;  %v4087_v24 = vmul.f32 %v9439_v32, %v9419_v55 }
 0x588   : > { %3880 = vrot.lane.b32.xlu1 %v9447_v27, %s11973_s0 }
 0x58a   : > { %v9548_v37 = vpop.permute.xlu1 %4363 }
 0x58b   : > { %3850 = vrot.lane.b32.xlu0 %v9437_v2, %s11973_s0  ;;  %12129 = vst [vmem:[#allocation41_spill] sm:$0xff] %v9548_v37  ;;  %v9559_v61 = vpop.permute.xlu0 %4130 }
 0x58c   : > { %3884 = vrot.lane.b32.xlu1 %v9457_v54, %s11973_s0  ;;  %12130 = vst [vmem:[#allocation44_spill] sm:$0xff] %v9559_v61 }
 0x58e   : > { %v9564_v35 = vpop.permute.xlu1 %4135 }
 0x58f   : > { %3954 = vrot.lane.b32.xlu0 %v9447_v27, %s11974_s1  ;;  %12131 = vst [vmem:[#allocation7_spill] sm:$0xff] %v9564_v35  ;;  %v9566_v22 = vpop.permute.xlu0 %4410  ;;  %v9608_v35 = vmul.f32 %v9465_v4, %v9419_v55 }
 0x590   : > { %3852 = vrot.lane.b32.xlu1 %v9463_v1, %s11973_s0  ;;  %12132 = vst [vmem:[#allocation54_spill] sm:$0xff] %v9566_v22  ;;  %v9625_v22 = vmul.f32 %v9465_v4, %v9427_v53 }
 0x592   : > { %v9568_v16 = vpop.permute.xlu1 %4415 }
 0x593   : > { %3958 = vrot.lane.b32.xlu0 %v9457_v54, %s11974_s1  ;;  %12133 = vst [vmem:[#allocation14_spill] sm:$0xff] %v9568_v16  ;;  %v9570_v18 = vpop.permute.xlu0 %4172 }
 0x594   : > { %3956 = vrot.lane.b32.xlu1 %v9473_v59, %s11974_s1 }
 0x596   : > { %v9572_v36 = vpop.permute.xlu1 %4177 }
 0x597   : > { %3882 = vrot.lane.b32.xlu0 %v9473_v59, %s11973_s0  ;;  %v9574_v12 = vpop.permute.xlu0 %4208 }
 0x598   : > { %3960 = vrot.lane.b32.xlu1 %v9463_v1, %s11974_s1  ;;  %v9634_v19 = vmul.f32 %v9574_v12, %v9417_v17 }
 0x59a   : > { %v9576_v20 = vpop.permute.xlu1 %4213 }
 0x59b   : > { %3886 = vrot.lane.b32.xlu0 %v9487_v41, %s11973_s0  ;;  %v9578_v57 = vpop.permute.xlu0 %4260 }
 0x59c   : > { %3888 = vrot.lane.b32.xlu1 %v9489_v11, %s11973_s0 }
 0x59e   : > { %v9580_v10 = vpop.permute.xlu1 %4265 }
 0x59f   : > { %3890 = vrot.lane.b32.xlu0 %v9499_v21, %s11973_s0  ;;  %12134 = vst [vmem:[#allocation11_spill] sm:$0xff] %v9580_v10  ;;  %v9582_v28 = vpop.permute.xlu0 %4182 }
 0x5a0   : > { %3964 = vrot.lane.b32.xlu1 %v9489_v11, %s11974_s1  ;;  %12135 = vst [vmem:[#allocation10_spill] sm:$0xff] %v9582_v28 }
 0x5a2   : > { %v9584_v7 = vpop.permute.xlu1 %4187 }
 0x5a3   : > { %3962 = vrot.lane.b32.xlu0 %v9487_v41, %s11974_s1  ;;  %12136 = vst [vmem:[#allocation36_spill] sm:$0xff] %v9584_v7  ;;  %v9586_v49 = vpop.permute.xlu0 %4218  ;;  %v4227_v7 = vmul.f32 %v9574_v12, %v9419_v55  ;;  %v9642_v55 = vmul.f32 %v9465_v4, %v9417_v17 }
 0x5a4   : > { %3968 = vrot.lane.b32.xlu1 %v9509_v38, %s11974_s1 }
 0x5a7   : > { %3966 = vrot.lane.b32.xlu0 %v9499_v21, %s11974_s1 }
 0x5a8   : > { %3892 = vrot.lane.b32.xlu1 %v9515_v44, %s11973_s0 }
 0x5ab   : > { %3854 = vrot.lane.b32.xlu0 %v9509_v38, %s11973_s0 }
 0x5ac   : > { %3896 = vrot.lane.b32.xlu1 %v9525_v9, %s11973_s0 }
 0x5af   : > { %3970 = vrot.lane.b32.xlu0 %v9515_v44, %s11974_s1 }
 0x5b0   : > { %3856 = vrot.lane.b32.xlu1 %v9535_v50, %s11973_s0 }
 0x5b3   : > { %3974 = vrot.lane.b32.xlu0 %v9525_v9, %s11974_s1 }
 0x5b4   : > { %3972 = vrot.lane.b32.xlu1 %v9542_v47, %s11974_s1 }
 0x5b7   : > { %3894 = vrot.lane.b32.xlu0 %v9542_v47, %s11973_s0 }
 0x5b8   : > { %3976 = vrot.lane.b32.xlu1 %v9535_v50, %s11974_s1 }
 0x5bb   : > { %4699 = vperm.xlu0 %6247, %v6175_v3   ;;  %v9588_v3 = vpop.permute.xlu1 %4223 }
 0x5bc   : > { %4704 = vperm.xlu1 %6248, %v6176_v43   ;;  %v9590_v43 = vpop.permute.xlu0 %4270 }
 0x5bd   : > { %12137 = vst [vmem:[#allocation45_spill] sm:$0xff] %v9590_v43 }
 0x5bf   : > { %v9592_v26 = vpop.permute.xlu1 %4275 }
 0x5c0   : > { %12138 = vst [vmem:[#allocation82_spill] sm:$0xff] %v9592_v26  ;;  %v9594_v40 = vpop.permute.xlu0 %4689  ;;  %v9617_v26 = vmul.f32 %v9439_v32, %v9427_v53 }
 0x5c1   : > { %12139 = vst [vmem:[#allocation43_spill] sm:$0xff] %v9594_v40  ;;  %v9612_v40 = vmul.f32 %v9439_v32, %v9417_v17  ;;  %v9662_v17 = vmul.f32 %v9443_v51, %v9447_v27 }
 0x5c3   : > { %v9596_v25 = vpop.permute.xlu1 %4694  ;;  %12145 = vst [vmem:[#allocation17_spill] sm:$0xff] %v9662_v17  ;;  %v9682_v17 = vmul.f32 %v9576_v20, %v9457_v54 }
 0x5c4   : > { %12140 = vst [vmem:[#allocation53_spill] sm:$0xff] %v9596_v25 }
 0x5ed   : > { %v9598_v29 = vpop.permute.xlu0 %3874 }
 0x5ee   : > { %v3877_v15 = vpop.permute.xlu1 %3876 }
 0x5ef   : > { %v3898_v16 = vsel %vm12141_vm0, %v9598_v29, %v3877_v15  ;;  %vm12169_vm0 = vmmov %vm12162_vm2 }
 0x5f0   : > { %v3931_v37 = vsel %vm6929_vm6, %v3898_v16, 0.0  ;;  %v4228_v16 = vmul.f32 %v9574_v12, %v9427_v53 }
 0x5f1   : > { %v4191_v25 = vmul.f32 %v9570_v18, %v3931_v37  ;;  %v3879_v31 = vpop.permute.xlu0 %3878  ;;  %v4051_v46 = vmul.f32 %v9425_v39, %v3931_v37 }
 0x5f2   : > { %v3899_v61 = vsel %vm12142_vm1, %v3877_v15, %v3879_v31  ;;  %v3949_v43 = vpop.permute.xlu1 %3948  ;;  %v9646_v15 = vmul.f32 %v9465_v4, %v9437_v2  ;;  %v9670_v4 = vmul.f32 %v9469_v58, %v9447_v27  ;;  %vm12170_vm1 = vnez %v12026_v34 }
 0x5f3   : > { %v9638_v28 = vsel %vm6933_vm7, %v3899_v61, 0.0  ;;  %v9648_v53 = vadd.f32 %v4227_v7, %v4191_v25  ;;  %v9658_v61 = vmul.f32 %v9469_v58, %v9463_v1  ;;  %v9666_v25 = vmul.f32 %v9576_v20, %v9447_v27 }
 0x5f4   : > { %v4192_v32 = vmul.f32 %v9570_v18, %v9638_v28  ;;  %v9674_v7 = vmul.f32 %v9443_v51, %v9473_v59  ;;  %v9690_v27 = vmul.f32 %v9469_v58, %v9457_v54  ;;  %v9715_v58 = vmul.f32 %v9517_v45, %v9487_v41 }
 0x5f5   : > { %12144 = vst [vmem:[#allocation51_spill] sm:$0xff] %v9658_v61  ;;  %v3947_v10 = vpop.permute.xlu0 %3946  ;;  %v9678_v61 = vmul.f32 %v9443_v51, %v9457_v54  ;;  %v9698_v51 = vmul.f32 %v9544_v62, %v9489_v11  ;;  %v9711_v54 = vmul.f32 %v9544_v62, %v9499_v21 }
 0x5f6   : > { %12146 = vst [vmem:[#allocation15_spill] sm:$0xff] %v9674_v7  ;;  %v4244_v23 = vadd.f32 %v4228_v16, %v4192_v32  ;;  %v3953_v30 = vpop.permute.xlu1 %3952  ;;  %12148 = vst [vmem:[#allocation22_spill] sm:$0xff] %v9690_v27  ;;  %v9694_v7 = vmul.f32 %v9517_v45, %v9489_v11  ;;  %v9702_v16 = vmul.f32 %v9517_v45, %v9499_v21 }
 0x5f7   : > { %12150 = vst [vmem:[#allocation61_spill] sm:$0xff] %v9698_v51  ;;  %v9706_v32 = vmul.f32 %v9586_v49, %v9499_v21  ;;  %12153 = vst [vmem:[#allocation69_spill] sm:$0xff] %v9711_v54  ;;  %v9719_v51 = vmul.f32 %v9517_v45, %v9509_v38  ;;  %v9727_v27 = vmul.f32 %v9544_v62, %v9487_v41 }
 0x5f8   : > { %12149 = vst [vmem:[#allocation63_spill] sm:$0xff] %v9694_v7  ;;  %12151 = vst [vmem:[#allocation50_spill] sm:$0xff] %v9702_v16  ;;  %v9723_v16 = vmul.f32 %v9586_v49, %v9487_v41  ;;  %v9731_v21 = vmul.f32 %v9544_v62, %v9509_v38  ;;  %v9735_v54 = vmul.f32 %v9521_v52, %v9535_v50 }
 0x5f9   : > { %12152 = vst [vmem:[#allocation56_spill] sm:$0xff] %v9706_v32  ;;  %12154 = vst [vmem:[#allocation13_spill] sm:$0xff] %v9715_v58  ;;  %v3951_v7 = vpop.permute.xlu0 %3950  ;;  %v4010_v45 = vsel %vm12160_vm4, %v3953_v30, %v3947_v10  ;;  %v9744_v41 = vmul.f32 %v9521_v52, %v9515_v44  ;;  %v4103_v50 = vadd.f32 %v4087_v24, %v4051_v46  ;;  %vm12171_vm4 = vnez %v12027_v14 }
 0x5fa   : > { %12155 = vst [vmem:[#allocation59_spill] sm:$0xff] %v9719_v51  ;;  %12156 = vst [vmem:[#allocation52_spill] sm:$0xff] %v9723_v16  ;;  %v3979_v58 = vsel %vm12161_vm11, %v3949_v43, %v3951_v7  ;;  %v3980_v51 = vsel %vm12162_vm2, %v3951_v7, %v3953_v30  ;;  %v9740_v32 = vpop.permute.xlu1 %3880  ;;  %v9758_v7 = vmul.f32 %v9521_v52, %v9542_v47  ;;  %vm12173_vm11 = vnez %v12029_v5 }
 0x5fb   : > { %12157 = vst [vmem:[#allocation19_spill] sm:$0xff] %v9727_v27  ;;  %12158 = vst [vmem:[#allocation57_spill] sm:$0xff] %v9731_v21  ;;  %v4331_v27 = vmul.f32 %v9453_v63, %v3931_v37  ;;  %v4015_v62 = vsel %vm6981_vm9, %v3979_v58, 0.0  ;;  %v9753_v21 = vmul.f32 %v9588_v3, %v9515_v44  ;;  %v9762_v37 = vmul.f32 %v9521_v52, %v9525_v9 }
 0x5fc   : > { %12159 = vst [vmem:[#allocation67_spill] sm:$0xff] %v9735_v54  ;;  %12163 = vst [vmem:[#allocation65_spill] sm:$0xff] %v9744_v41  ;;  %v4016_v54 = vsel %vm6943_vm8, %v3980_v51, 0.0  ;;  %v4139_v30 = vmul.f32 %v9479_v42, %v4015_v62  ;;  %v9766_v58 = vsel %vm6923_vm5, %v4010_v45, 0.0  ;;  %v4279_v51 = vmul.f32 %v9578_v57, %v4015_v62 }
 0x5fd   : > { %12164 = vst [vmem:[#allocation58_spill] sm:$0xff] %v9753_v21  ;;  %12165 = vst [vmem:[#allocation68_spill] sm:$0xff] %v9758_v7  ;;  %v4280_v44 = vmul.f32 %v9578_v57, %v4016_v54  ;;  %v3851_v41 = vpop.permute.xlu0 %3850  ;;  %v4229_v46 = vmul.f32 %v9574_v12, %v9437_v2  ;;  %v4419_v24 = vmul.f32 %v9491_v8, %v4015_v62 }
 0x5fe   : > { %12166 = vst [vmem:[#allocation70_spill] sm:$0xff] %v9762_v37  ;;  %v3900_v7 = vsel %vm12167_vm3, %v3879_v31, %v3851_v41  ;;  %v3926_v52 = vsel %vm12168_vm10, %v3851_v41, %v9598_v29  ;;  %v9776_v37 = vpop.permute.xlu1 %3884  ;;  %v4155_v47 = vadd.f32 %v4139_v30, %v4103_v50  ;;  %v4383_v45 = vadd.f32 %v9608_v35, %v4331_v27  ;;  %vm12174_vm2 = vmmov %vm12167_vm3 }
 0x5ff   : > { %v3978_v21 = vsel %vm12169_vm0, %v3947_v10, %v3949_v43  ;;  %v3930_v16 = vsel %vm12170_vm1, %v3926_v52, 0.0  ;;  %v3933_v2 = vsel %vm12171_vm4, %v3900_v7, 0.0  ;;  %v4141_v50 = vmul.f32 %v9479_v42, %v9766_v58  ;;  %vm12175_vm3 = vmmov %vm12174_vm2 }
 0x600   : > { %v4050_v12 = vmul.f32 %v9425_v39, %v3930_v16  ;;  %v4053_v31 = vmul.f32 %v9425_v39, %v3933_v2  ;;  %v4190_v62 = vmul.f32 %v9570_v18, %v3930_v16  ;;  %v4193_v29 = vmul.f32 %v9570_v18, %v3933_v2  ;;  %4480 = vrot.lane.b32.xlu1 %v4155_v47, %s11796_s20  ;;  %vm12176_vm10 = vmmov %vm12169_vm0 }
 0x601   : > { %v4333_v35 = vmul.f32 %v9453_v63, %v3933_v2  ;;  %v3955_v10 = vpop.permute.xlu0 %3954  ;;  %v9793_v43 = vadd.f32 %v4279_v51, %v9648_v53  ;;  %v9795_v27 = vadd.f32 %v4280_v44, %v4244_v23  ;;  %v4435_v18 = vadd.f32 %v4419_v24, %v4383_v45  ;;  %vm12177_vm0 = vmmov %vm12174_vm2 }
 0x602   : > { %v4105_v41 = vadd.f32 %v9630_v60, %v4053_v31  ;;  %v9799_v30 = vadd.f32 %v9634_v19, %v4190_v62  ;;  %v3853_v7 = vpop.permute.xlu1 %3852  ;;  %v9801_v52 = vadd.f32 %v4229_v46, %v4193_v29  ;;  %v4014_v47 = vsel %vm12173_vm11, %v3978_v21, 0.0 }
 0x603   : > { %12172 = vst [vmem:[#allocation12_spill] sm:$0xff] %v9795_v27  ;;  %v4385_v2 = vadd.f32 %v9646_v15, %v4333_v35  ;;  %v3927_v53 = vsel %vm12174_vm2, %v3853_v7, %v9740_v32  ;;  %v9810_v23 = vmul.f32 %v9588_v3, %v9525_v9  ;;  %v4421_v19 = vmul.f32 %v9491_v8, %v9766_v58  ;;  %vm12178_vm2 = vmmov %vm12177_vm0 }
 0x604   : > { %v4102_v44 = vadd.f32 %v9612_v40, %v4050_v12  ;;  %v3934_v60 = vsel %vm12170_vm1, %v3927_v53, 0.0  ;;  %4568 = vrot.lane.b32.xlu1 %v4435_v18, %s11821_s15  ;;  %v4157_v21 = vadd.f32 %v4141_v50, %v4105_v41  ;;  %v4052_v15 = vmul.f32 %v9425_v39, %v9638_v28 }
 0x605   : > { %v4332_v51 = vmul.f32 %v9453_v63, %v9638_v28  ;;  %v3903_v46 = vsel %vm12175_vm3, %v9776_v37, %v3853_v7  ;;  %v4194_v24 = vmul.f32 %v9572_v36, %v3934_v60  ;;  %v3959_v45 = vpop.permute.xlu0 %3958  ;;  %v4138_v40 = vmul.f32 %v9479_v42, %v4014_v47  ;;  %vm12179_vm3 = vmmov %vm12176_vm10 }
 0x606   : > { %v4330_v12 = vmul.f32 %v9453_v63, %v3930_v16  ;;  %v3957_v31 = vpop.permute.xlu1 %3956  ;;  %4454 = vrot.lane.b32.xlu0 %v4157_v21, %s11796_s20  ;;  %v4437_v62 = vadd.f32 %v4421_v19, %v4385_v2  ;;  %v9830_v39 = vmul.f32 %v9576_v20, %v9463_v1  ;;  %v4140_v28 = vmul.f32 %v9479_v42, %v4016_v54 }
 0x607   : > { %v9834_v29 = vadd.f32 %v9666_v25, %v4194_v24  ;;  %v9838_v50 = vmul.f32 %v9576_v20, %v9473_v59  ;;  %v9842_v63 = vmul.f32 %v9586_v49, %v9489_v11  ;;  %v4420_v16 = vmul.f32 %v9491_v8, %v4016_v54 }
 0x608   : > { %v3937_v35 = vsel %vm12171_vm4, %v3903_v46, 0.0  ;;  %4572 = vrot.lane.b32.xlu1 %v4437_v62, %s11821_s15  ;;  %v4154_v1 = vadd.f32 %v4138_v40, %v4102_v44  ;;  %v9850_v42 = vmul.f32 %v9586_v49, %v9509_v38  ;;  %v4104_v25 = vadd.f32 %v9617_v26, %v4052_v15  ;;  %v12181_v44 = vld [vmem:[#allocation23_spill] sm:$0xff] }
 0x609   : > { %v4384_v59 = vadd.f32 %v9625_v22, %v4332_v51  ;;  %v9855_v20 = vmul.f32 %v9578_v57, %v4014_v47  ;;  %v4418_v11 = vmul.f32 %v9491_v8, %v4014_v47  ;;  %v3883_v54 = vpop.permute.xlu0 %3882  ;;  %v9860_v41 = vmul.f32 %v9578_v57, %v9766_v58  ;;  %v12182_v40 = vld [vmem:[#allocation55_spill] sm:$0xff] }
 0x60a   : > { %v4382_v7 = vadd.f32 %v9642_v55, %v4330_v12  ;;  %v3981_v18 = vsel %vm12176_vm10, %v3955_v10, %v3957_v31  ;;  %v3901_v38 = vsel %vm12177_vm0, %v9740_v32, %v3883_v54  ;;  %v3961_v26 = vpop.permute.xlu1 %3960  ;;  %4478 = vrot.lane.b32.xlu0 %v4154_v1, %s11796_s20  ;;  %v4057_v22 = vmul.f32 %v9429_v48, %v3937_v35  ;;  %vm12180_vm10 = vmmov %vm12179_vm3  ;;  %v12185_v1 = vld [vmem:[#allocation17_spill] sm:$0xff] }
 0x60b   : > { %v3902_v8 = vsel %vm12178_vm2, %v3883_v54, %v9776_v37  ;;  %v4011_v49 = vsel %vm12179_vm3, %v3961_v26, %v3955_v10  ;;  %v4156_v47 = vadd.f32 %v4140_v28, %v4104_v25  ;;  %v4054_v57 = vmul.f32 %v9429_v48, %v3934_v60  ;;  %vm12183_vm0 = vmmov %vm12179_vm3  ;;  %v12184_v28 = vld [vmem:[#allocation16_spill] sm:$0xff] }
 0x60c   : > { %v9873_v55 = vmul.f32 %v9572_v36, %v3937_v35  ;;  %v3936_v58 = vsel %vm6933_vm7, %v3902_v8, 0.0  ;;  %v4436_v32 = vadd.f32 %v4420_v16, %v4384_v59  ;;  %v3982_v2 = vsel %vm12180_vm10, %v3957_v31, %v3959_v45  ;;  %vm12187_vm3 = vmmov %vm12178_vm2 }
 0x60d   : > { %v4018_v53 = vsel %vm12173_vm11, %v3981_v18, 0.0  ;;  %v3935_v37 = vsel %vm6929_vm6, %v3901_v38, 0.0  ;;  %v4196_v10 = vmul.f32 %v9572_v36, %v3936_v58  ;;  %v9883_v19 = vpop.permute.xlu0 %3886  ;;  %v4334_v21 = vmul.f32 %v12181_v44, %v3934_v60  ;;  %v12186_v38 = vld [vmem:[#allocation51_spill] sm:$0xff]  ;;  %vm12195_vm10 = vmmov %vm12183_vm0 }
 0x60e   : > { %v4337_v15 = vmul.f32 %v12181_v44, %v3937_v35  ;;  %v4021_v51 = vsel %vm6923_vm5, %v4011_v49, 0.0  ;;  %v3889_v46 = vpop.permute.xlu1 %3888  ;;  %4482 = vrot.lane.b32.xlu0 %v4156_v47, %s11796_s20  ;;  %v4434_v24 = vadd.f32 %v4418_v11, %v4382_v7  ;;  %v4109_v12 = vadd.f32 %v12182_v40, %v4057_v22  ;;  %v12188_v47 = vld [vmem:[#allocation11_spill] sm:$0xff] }
 0x60f   : > { %v4248_v31 = vadd.f32 %v9682_v17, %v4196_v10  ;;  %v3983_v62 = vsel %vm12183_vm0, %v3959_v45, %v3961_v26  ;;  %v4145_v16 = vmul.f32 %v12184_v28, %v4021_v51  ;;  %v4106_v25 = vadd.f32 %v12185_v1, %v4054_v57 }
 0x610   : > { %v4019_v60 = vsel %vm6981_vm9, %v3982_v2, 0.0  ;;  %v4142_v35 = vmul.f32 %v12184_v28, %v4018_v53  ;;  %v4055_v59 = vmul.f32 %v9429_v48, %v3935_v37  ;;  %v4056_v54 = vmul.f32 %v9429_v48, %v3936_v58  ;;  %v12189_v2 = vld [vmem:[#allocation72_spill] sm:$0xff] }
 0x611   : > { %v4335_v11 = vmul.f32 %v12181_v44, %v3935_v37  ;;  %v3904_v17 = vsel %vm12178_vm2, %v9883_v19, %v3889_v46  ;;  %v4161_v7 = vadd.f32 %v4145_v16, %v4109_v12  ;;  %v9903_v45 = vpop.permute.xlu0 %3890  ;;  %v4386_v18 = vadd.f32 %v9670_v4, %v4334_v21  ;;  %v12190_v21 = vld [vmem:[#allocation15_spill] sm:$0xff]  ;;  %v12192_v16 = vld [vmem:[#allocation84_spill] sm:$0xff]  ;;  %vm12198_vm2 = vmmov %vm12183_vm0 }
 0x612   : > { %v9907_v26 = vadd.f32 %v12186_v38, %v4337_v15  ;;  %v4020_v22 = vsel %vm6943_vm8, %v3983_v62, 0.0  ;;  %v3905_v8 = vsel %vm12187_vm3, %v3889_v46, %v9903_v45  ;;  %v9913_v48 = vpop.permute.xlu1 %3964  ;;  %4566 = vrot.lane.b32.xlu0 %v4434_v24, %s11821_s15  ;;  %v4143_v49 = vmul.f32 %v12184_v28, %v4019_v60  ;;  %v12191_v24 = vld [vmem:[#allocation10_spill] sm:$0xff] }
 0x613   : > { %v4282_v57 = vmul.f32 %v12188_v47, %v4018_v53  ;;  %v4422_v10 = vmul.f32 %v12189_v2, %v4018_v53  ;;  %4456 = vrot.lane.b32.xlu1 %v4161_v7, %s11796_s20  ;;  %v9922_v4 = vsel %vm6933_vm7, %v3905_v8, 0.0  ;;  %v4107_v15 = vadd.f32 %v12190_v21, %v4055_v59 }
 0x614   : > { %v4336_v46 = vmul.f32 %v12181_v44, %v3936_v58  ;;  %v3939_v40 = vsel %vm6929_vm6, %v3904_v17, 0.0  ;;  %v4200_v12 = vmul.f32 %v12191_v24, %v9922_v4  ;;  %v4108_v62 = vadd.f32 %v9678_v61, %v4056_v54  ;;  %v12193_v44 = vld [vmem:[#allocation56_spill] sm:$0xff] }
 0x615   : > { %v4387_v53 = vadd.f32 %v12192_v16, %v4335_v11  ;;  %v4144_v1 = vmul.f32 %v12184_v28, %v4020_v22  ;;  %v4158_v7 = vadd.f32 %v4142_v35, %v4106_v25  ;;  %v3963_v38 = vpop.permute.xlu0 %3962  ;;  %v4283_v8 = vmul.f32 %v12188_v47, %v4019_v60 }
 0x616   : > { %v4423_v59 = vmul.f32 %v12189_v2, %v4019_v60  ;;  %v4195_v58 = vmul.f32 %v9572_v36, %v3935_v37  ;;  %v4252_v21 = vadd.f32 %v12193_v44, %v4200_v12  ;;  %v3969_v17 = vpop.permute.xlu1 %3968  ;;  %4570 = vrot.lane.b32.xlu0 %v4436_v32, %s11821_s15  ;;  %v4284_v27 = vmul.f32 %v12188_v47, %v4020_v22  ;;  %v12194_v36 = vld [vmem:[#allocation22_spill] sm:$0xff] }
 0x617   : > { %v4199_v61 = vmul.f32 %v12191_v24, %v3939_v40  ;;  %4484 = vrot.lane.b32.xlu1 %v4158_v7, %s11796_s20  ;;  %v9943_v28 = vadd.f32 %v9855_v20, %v9799_v30  ;;  %v9947_v25 = vadd.f32 %v9860_v41, %v9801_v52  ;;  %v4388_v37 = vadd.f32 %v12194_v36, %v4336_v46 }
 0x618   : > { %v4285_v60 = vmul.f32 %v12188_v47, %v4021_v51  ;;  %v4424_v32 = vmul.f32 %v12189_v2, %v4020_v22  ;;  %v4159_v35 = vadd.f32 %v4143_v49, %v4107_v15  ;;  %v4425_v54 = vmul.f32 %v12189_v2, %v4021_v51  ;;  %v12197_v15 = vld [vmem:[#allocation71_spill] sm:$0xff] }
 0x619   : > { %v4160_v11 = vadd.f32 %v4144_v1, %v4108_v62  ;;  %v3967_v12 = vpop.permute.xlu0 %3966  ;;  %v4439_v16 = vadd.f32 %v4423_v59, %v4387_v53  ;;  %v9954_v7 = vadd.f32 %v4282_v57, %v9834_v29  ;;  %v4249_v41 = vadd.f32 %v9830_v39, %v9873_v55  ;;  %v12196_v57 = vld [vmem:[#allocation78_spill] sm:$0xff]  ;;  %v12199_v55 = vld [vmem:[#allocation45_spill] sm:$0xff] }
 0x61a   : > { %v3985_v30 = vsel %vm12195_vm10, %v9913_v48, %v3967_v12  ;;  %v3986_v52 = vsel %vm12183_vm0, %v3967_v12, %v3969_v17  ;;  %v9959_v20 = vpop.permute.xlu1 %3892  ;;  %4486 = vrot.lane.b32.xlu0 %v4159_v35, %s11796_s20  ;;  %v4247_v51 = vadd.f32 %v9838_v50, %v4195_v58  ;;  %v9972_v49 = vadd.f32 %v4284_v27, %v4248_v31  ;;  %vm12200_vm10 = vmmov %vm12187_vm3  ;;  %v12202_v12 = vld [vmem:[#allocation59_spill] sm:$0xff] }
 0x61b   : > { %4488 = vrot.lane.b32.xlu1 %v4160_v11, %s11796_s20  ;;  %v4023_v29 = vsel %vm6981_vm9, %v3985_v30, 0.0  ;;  %v9970_v22 = vsel %vm6943_vm8, %v3986_v52, 0.0  ;;  %v4251_v47 = vadd.f32 %v9842_v63, %v4199_v61  ;;  %v4059_v2 = vmul.f32 %v12196_v57, %v3939_v40  ;;  %v12203_v30 = vld [vmem:[#allocation52_spill] sm:$0xff] }
 0x61c   : > { %v4339_v46 = vmul.f32 %v12197_v15, %v3939_v40  ;;  %v4012_v39 = vsel %vm12198_vm2, %v3969_v17, %v3963_v38  ;;  %v4438_v50 = vadd.f32 %v4422_v10, %v4386_v18  ;;  %v4287_v62 = vmul.f32 %v12199_v55, %v4023_v29  ;;  %vm12205_vm2 = vmmov %vm12187_vm3 }
 0x61d   : > { %v4288_v53 = vmul.f32 %v12199_v55, %v9970_v22  ;;  %v3855_v1 = vpop.permute.xlu0 %3854  ;;  %v9981_v59 = vadd.f32 %v4285_v60, %v4249_v41  ;;  %v9983_v58 = vadd.f32 %v4283_v8, %v4247_v51  ;;  %v4060_v27 = vmul.f32 %v12196_v57, %v9922_v4  ;;  %v12204_v51 = vld [vmem:[#allocation63_spill] sm:$0xff] }
 0x61e   : > { %v3906_v63 = vsel %vm12187_vm3, %v9903_v45, %v3855_v1  ;;  %v3928_v31 = vsel %vm12200_vm10, %v3855_v1, %v9883_v19  ;;  %v9991_v18 = vpop.permute.xlu1 %3896  ;;  %4574 = vrot.lane.b32.xlu0 %v4438_v50, %s11821_s15  ;;  %v4440_v10 = vadd.f32 %v4424_v32, %v4388_v37  ;;  %v3984_v40 = vsel %vm12183_vm0, %v3963_v38, %v9913_v48  ;;  %v12201_v48 = vld [vmem:[#allocation44_spill] sm:$0xff]  ;;  %vm12207_vm3 = vmmov %vm12205_vm2 }
 0x61f   : > { %v4025_v8 = vsel %vm6923_vm5, %v4012_v39, 0.0  ;;  %4576 = vrot.lane.b32.xlu1 %v4439_v16, %s11821_s15  ;;  %v3938_v44 = vsel %vm12170_vm1, %v3928_v31, 0.0  ;;  %v3941_v45 = vsel %vm12171_vm4, %v3906_v63, 0.0  ;;  %v4147_v38 = vmul.f32 %v12201_v48, %v4023_v29  ;;  %v12209_v1 = vld [vmem:[#allocation36_spill] sm:$0xff]  ;;  %vm12216_vm10 = vmmov %vm12183_vm0 }
 0x620   : > { %v4058_v19 = vmul.f32 %v12196_v57, %v3938_v44  ;;  %v4061_v17 = vmul.f32 %v12196_v57, %v3941_v45  ;;  %v4198_v61 = vmul.f32 %v12191_v24, %v3938_v44  ;;  %v4201_v36 = vmul.f32 %v12191_v24, %v3941_v45  ;;  %v12206_v57 = vld [vmem:[#allocation13_spill] sm:$0xff]  ;;  %vm12218_vm0 = vmmov %vm12205_vm2 }
 0x621   : > { %v4441_v37 = vadd.f32 %v4425_v54, %v9907_v26  ;;  %v3971_v60 = vpop.permute.xlu0 %3970  ;;  %v10009_v32 = vadd.f32 %v4287_v62, %v4251_v47  ;;  %v10011_v35 = vadd.f32 %v4288_v53, %v4252_v21  ;;  %v4149_v11 = vmul.f32 %v12201_v48, %v4025_v8  ;;  %v12208_v62 = vld [vmem:[#allocation54_spill] sm:$0xff] }
 0x622   : > { %v4113_v16 = vadd.f32 %v12202_v12, %v4061_v17  ;;  %v10016_v52 = vadd.f32 %v12203_v30, %v4198_v61  ;;  %v3857_v41 = vpop.permute.xlu1 %3856  ;;  %4578 = vrot.lane.b32.xlu0 %v4440_v10, %s11821_s15  ;;  %v10020_v24 = vadd.f32 %v9850_v42, %v4201_v36  ;;  %v4111_v26 = vadd.f32 %v12204_v51, %v4059_v2  ;;  %v12212_v12 = vld [vmem:[#allocation46_spill] sm:$0xff] }
 0x623   : > { %v4340_v54 = vmul.f32 %v12197_v15, %v9922_v4  ;;  %v4022_v21 = vsel %vm12173_vm11, %v3984_v40, 0.0  ;;  %4580 = vrot.lane.b32.xlu1 %v4441_v37, %s11821_s15  ;;  %v3929_v47 = vsel %vm12205_vm2, %v3857_v41, %v9959_v20  ;;  %v4110_v39 = vadd.f32 %v12206_v57, %v4058_v19  ;;  %v12210_v40 = vld [vmem:[#allocation61_spill] sm:$0xff]  ;;  %v12211_v19 = vld [vmem:[#allocation50_spill] sm:$0xff]  ;;  %vm12219_vm2 = vmmov %vm12218_vm0 }
 0x624   : > { %v3909_v50 = vsel %vm12207_vm3, %v9991_v18, %v3857_v41  ;;  %v10035_v42 = vsel %vm12170_vm1, %v3929_v47, 0.0  ;;  %v4165_v2 = vadd.f32 %v4149_v11, %v4113_v16  ;;  %v4427_v4 = vmul.f32 %v12208_v62, %v4023_v29  ;;  %v12213_v29 = vld [vmem:[#allocation69_spill] sm:$0xff]  ;;  %vm12220_vm3 = vmmov %vm12216_vm10 }
 0x625   : > { %v4341_v53 = vmul.f32 %v12197_v15, %v3941_v45  ;;  %v4202_v63 = vmul.f32 %v12209_v1, %v10035_v42  ;;  %v4163_v31 = vadd.f32 %v4147_v38, %v4111_v26  ;;  %v3975_v10 = vpop.permute.xlu0 %3974  ;;  %v4391_v17 = vadd.f32 %v12210_v40, %v4339_v46  ;;  %v12214_v46 = vld [vmem:[#allocation58_spill] sm:$0xff]  ;;  %v12215_v47 = vld [vmem:[#allocation57_spill] sm:$0xff] }
 0x626   : > { %v4112_v61 = vadd.f32 %v12211_v19, %v4060_v27  ;;  %v4146_v36 = vmul.f32 %v12201_v48, %v4022_v21  ;;  %v3973_v37 = vpop.permute.xlu1 %3972  ;;  %4458 = vrot.lane.b32.xlu0 %v4165_v2, %s11796_s20  ;;  %v4241_v11 = vmul.f32 %v9588_v3, %v12212_v12  ;;  %v4392_v16 = vadd.f32 %v12213_v29, %v4340_v54  ;;  %v12224_v29 = vld [vmem:[#allocation67_spill] sm:$0xff] }
 0x627   : > { %v4148_v45 = vmul.f32 %v12201_v48, %v9970_v22  ;;  %v10052_v38 = vsel %vm12171_vm4, %v3909_v50, 0.0  ;;  %v4254_v30 = vadd.f32 %v12214_v46, %v4202_v63  ;;  %4492 = vrot.lane.b32.xlu1 %v4163_v31, %s11796_s20  ;;  %v4286_v27 = vmul.f32 %v12199_v55, %v4022_v21  ;;  %v12217_v31 = vld [vmem:[#allocation24_spill] sm:$0xff]  ;;  %vm12223_vm4 = vmmov %vm12220_vm3 }
 0x628   : > { %v4426_v41 = vmul.f32 %v12208_v62, %v4022_v21  ;;  %v4338_v51 = vmul.f32 %v12197_v15, %v3938_v44  ;;  %v4162_v26 = vadd.f32 %v4146_v36, %v4110_v39  ;;  %v4289_v54 = vmul.f32 %v12199_v55, %v4025_v8 }
 0x629   : > { %v4393_v57 = vadd.f32 %v12215_v47, %v4341_v53  ;;  %v3987_v48 = vsel %vm12216_vm10, %v3971_v60, %v3973_v37  ;;  %v4443_v2 = vadd.f32 %v4427_v4, %v4391_v17  ;;  %v3895_v50 = vpop.permute.xlu0 %3894  ;;  %v4429_v40 = vmul.f32 %v12208_v62, %v4025_v8  ;;  %vm12221_vm10 = vmmov %vm12220_vm3 }
 0x62a   : > { %v4428_v63 = vmul.f32 %v12208_v62, %v9970_v22  ;;  %v4065_v19 = vmul.f32 %v12217_v31, %v10052_v38  ;;  %v3907_v15 = vsel %vm12218_vm0, %v9959_v20, %v3895_v50  ;;  %v3977_v44 = vpop.permute.xlu1 %3976  ;;  %4490 = vrot.lane.b32.xlu0 %v4162_v26, %s11796_s20  ;;  %v3908_v55 = vsel %vm12219_vm2, %v3895_v50, %v9991_v18  ;;  %v12222_v22 = vld [vmem:[#allocation19_spill] sm:$0xff] }
 0x62b   : > { %4584 = vrot.lane.b32.xlu1 %v4443_v2, %s11821_s15  ;;  %v3989_v21 = vsel %vm12220_vm3, %v3975_v10, %v3977_v44  ;;  %v4013_v8 = vsel %vm12221_vm10, %v3977_v44, %v3971_v60  ;;  %v4164_v39 = vadd.f32 %v4148_v45, %v4112_v61  ;;  %v4390_v62 = vadd.f32 %v12222_v22, %v4338_v51  ;;  %v12225_v51 = vld [vmem:[#allocation82_spill] sm:$0xff] }
 0x62c   : > { %v3988_v4 = vsel %vm12223_vm4, %v3973_v37, %v3975_v10  ;;  %v4026_v20 = vsel %vm12173_vm11, %v3987_v48, 0.0  ;;  %v3944_v53 = vsel %vm6933_vm7, %v3908_v55, 0.0  ;;  %v3943_v17 = vsel %vm6929_vm6, %v3907_v15, 0.0 }
 0x62d   : > { %v4204_v18 = vmul.f32 %v12209_v1, %v3944_v53  ;;  %v4028_v36 = vsel %vm6943_vm8, %v3989_v21, 0.0  ;;  %v4445_v60 = vadd.f32 %v4429_v40, %v4393_v57  ;;  %v4062_v61 = vmul.f32 %v12217_v31, %v10035_v42  ;;  %v12226_v57 = vld [vmem:[#allocation7_spill] sm:$0xff] }
 0x62e   : > { %v4117_v10 = vadd.f32 %v12224_v29, %v4065_v19  ;;  %v4205_v37 = vmul.f32 %v12209_v1, %v10052_v38  ;;  %v4029_v45 = vsel %vm6923_vm5, %v4013_v8, 0.0  ;;  %4494 = vrot.lane.b32.xlu0 %v4164_v39, %s11796_s20  ;;  %v4027_v46 = vsel %vm6981_vm9, %v3988_v4, 0.0  ;;  %v12227_v8 = vld [vmem:[#allocation65_spill] sm:$0xff]  ;;  %v12228_v4 = vld [vmem:[#allocation42_spill] sm:$0xff]  ;;  %v12230_v29 = vld [vmem:[#allocation48_spill] sm:$0xff] }
 0x62f   : > { %v4290_v26 = vmul.f32 %v12225_v51, %v4026_v20  ;;  %v4256_v47 = vadd.f32 %v9810_v23, %v4204_v18  ;;  %v4153_v48 = vmul.f32 %v12226_v57, %v4029_v45  ;;  %4588 = vrot.lane.b32.xlu1 %v4445_v60, %s11821_s15  ;;  %v4063_v2 = vmul.f32 %v12217_v31, %v3943_v17  ;;  %v12229_v60 = vld [vmem:[#allocation68_spill] sm:$0xff] }
 0x630   : > { %v4203_v50 = vmul.f32 %v12209_v1, %v3943_v17  ;;  %v4292_v40 = vmul.f32 %v12225_v51, %v4028_v36  ;;  %v4442_v19 = vadd.f32 %v4426_v41, %v4390_v62  ;;  %v4150_v15 = vmul.f32 %v12226_v57, %v4026_v20 }
 0x631   : > { %v4064_v44 = vmul.f32 %v12217_v31, %v3944_v53  ;;  %v4293_v55 = vmul.f32 %v12225_v51, %v4029_v45  ;;  %v4169_v21 = vadd.f32 %v4153_v48, %v4117_v10  ;;  %v4114_v23 = vadd.f32 %v12227_v8, %v4062_v61 }
 0x632   : > { %v4291_v39 = vmul.f32 %v12225_v51, %v4027_v46  ;;  %4582 = vrot.lane.b32.xlu0 %v4442_v19, %s11821_s15  ;;  %v4444_v22 = vadd.f32 %v4428_v63, %v4392_v16  ;;  %v4239_v1 = vmul.f32 %v9588_v3, %v12228_v4  ;;  %v10113_v41 = vadd.f32 %v4286_v27, %v10016_v52  ;;  %v12231_v63 = vld [vmem:[#allocation70_spill] sm:$0xff]  ;;  %v12232_v27 = vld [vmem:[#allocation41_spill] sm:$0xff] }
 0x633   : > { %4460 = vrot.lane.b32.xlu1 %v4169_v21, %s11796_s20  ;;  %v10116_v31 = vadd.f32 %v4289_v54, %v10020_v24  ;;  %v10118_v62 = vadd.f32 %v4290_v26, %v4254_v30  ;;  %v4257_v18 = vadd.f32 %v4241_v11, %v4205_v37  ;;  %v4115_v61 = vadd.f32 %v12229_v60, %v4063_v2  ;;  %v12234_v26 = vld [vmem:[#allocation14_spill] sm:$0xff]  ;;  %v4935_v60 = vld [vmem:[%s11358_s9 + $0xe8] sm:$0xff] }
 0x634   : > { %v4343_v10 = vmul.f32 %v12230_v29, %v3943_v17  ;;  %v4255_v51 = vadd.f32 %v4239_v1, %v4203_v50  ;;  %v10122_v16 = vadd.f32 %v4292_v40, %v4256_v47  ;;  %v4116_v3 = vadd.f32 %v12231_v63, %v4064_v44  ;;  %v12233_v17 = vld [vmem:[#allocation25_spill] sm:$0xff]  ;;  %v4931_v1 = vld [vmem:[%s11358_s9 + $0xc8] sm:$0xff] }
 0x635   : > { %v4152_v48 = vmul.f32 %v12226_v57, %v4028_v36  ;;  %v4166_v19 = vadd.f32 %v4150_v15, %v4114_v23  ;;  %v10126_v52 = vadd.f32 %v4293_v55, %v4257_v18  ;;  %v4342_v24 = vmul.f32 %v12230_v29, %v10035_v42  ;;  %v4934_v18 = vld [vmem:[%s11358_s9 + $0xe0] sm:$0xff]  ;;  %v4908_v63 = vld [vmem:[%s11358_s9 + $0x10] sm:$0xff] }
 0x636   : > { %v4151_v30 = vmul.f32 %v12226_v57, %v4027_v46  ;;  %4586 = vrot.lane.b32.xlu0 %v4444_v22, %s11821_s15  ;;  %v10132_v11 = vadd.f32 %v4291_v39, %v4255_v51  ;;  %v4379_v54 = vmul.f32 %v12232_v27, %v12228_v4  ;;  %v4378_v37 = vmul.f32 %v12232_v27, %v12233_v17  ;;  %v4930_v4 = vld [vmem:[%s11358_s9 + $0xc0] sm:$0xff]  ;;  %v4939_v51 = vld [vmem:[%s11358_s9 + $0x108] sm:$0xff]  ;;  %v4916_v17 = vld [vmem:[%s11358_s9 + $0x50] sm:$0xff] }
 0x637   : > { %4496 = vrot.lane.b32.xlu1 %v4166_v19, %s11796_s20  ;;  %v4430_v47 = vmul.f32 %v12234_v26, %v4026_v20  ;;  %v4344_v2 = vmul.f32 %v12230_v29, %v3944_v53  ;;  %v4168_v40 = vadd.f32 %v4152_v48, %v4116_v3  ;;  %v4380_v15 = vmul.f32 %v12232_v27, %v9525_v9  ;;  %v4909_v3 = vld [vmem:[%s11358_s9 + $0x18] sm:$0xff]  ;;  %v4912_v48 = vld [vmem:[%s11358_s9 + $0x30] sm:$0xff] }
 0x638   : > { %v4167_v50 = vadd.f32 %v4151_v30, %v4115_v61  ;;  %v4395_v42 = vadd.f32 %v4379_v54, %v4343_v10  ;;  %v4394_v57 = vadd.f32 %v4378_v37, %v4342_v24  ;;  %v4345_v44 = vmul.f32 %v12230_v29, %v10052_v38  ;;  %v4914_v61 = vld [vmem:[%s11358_s9 + $0x40] sm:$0xff]  ;;  %v4915_v29 = vld [vmem:[%s11358_s9 + $0x48] sm:$0xff]  ;;  %v4913_v19 = vld [vmem:[%s11358_s9 + $0x38] sm:$0xff] }
 0x639   : > { %v4431_v55 = vmul.f32 %v12234_v26, %v4027_v46  ;;  %v4396_v21 = vadd.f32 %v4380_v15, %v4344_v2  ;;  %v4432_v20 = vmul.f32 %v12234_v26, %v4028_v36  ;;  %v4381_v8 = vmul.f32 %v12232_v27, %v12212_v12  ;;  %v4906_v36 = vld [vmem:[%s11358_s9] sm:$0xff]  ;;  %v4907_v12 = vld [vmem:[%s11358_s9 + $0x8] sm:$0xff]  ;;  %v4932_v24 = vld [vmem:[%s11358_s9 + $0xd0] sm:$0xff] }
 0x63a   : > { %4498 = vrot.lane.b32.xlu0 %v4167_v50, %s11796_s20  ;;  %v4446_v53 = vadd.f32 %v4430_v47, %v4394_v57  ;;  %v4433_v23 = vmul.f32 %v12234_v26, %v4029_v45  ;;  %v4910_v45 = vld [vmem:[%s11358_s9 + $0x20] sm:$0xff]  ;;  %v4911_v46 = vld [vmem:[%s11358_s9 + $0x28] sm:$0xff]  ;;  %v4933_v30 = vld [vmem:[%s11358_s9 + $0xd8] sm:$0xff]  ;;  %vm12235_vm4 = vcmask 130048  }
 0x63b   : > { %4500 = vrot.lane.b32.xlu1 %v4168_v40, %s11796_s20  ;;  %v4447_v39 = vadd.f32 %v4431_v55, %v4395_v42  ;;  %v4397_v9 = vadd.f32 %v4381_v8, %v4345_v44  ;;  %v4448_v38 = vadd.f32 %v4432_v20, %v4396_v21  ;;  %v4938_v10 = vld [vmem:[%s11358_s9 + $0x100] sm:$0xff]  ;;  %v4936_v27 = vld [vmem:[%s11358_s9 + $0xf0] sm:$0xff]  ;;  %v4937_v54 = vld [vmem:[%s11358_s9 + $0xf8] sm:$0xff]  ;;  %v10228_v2 = vpop.permute.xlu1 %4704  ;;  %v10233_v42 = vpop.permute.xlu0 %4699 }
 0x63c   : > { %v4917_v37 = vld [vmem:[%s11358_s9 + $0x58] sm:$0xff]  ;;  %v4940_v26 = vld [vmem:[%s11358_s9 + $0x110] sm:$0xff]  ;;  %v4918_v50 = vld [vmem:[%s11358_s9 + $0x60] sm:$0xff] }
 0x63d   : > { %v4449_v22 = vadd.f32 %v4433_v23, %v4397_v9  ;;  %v4941_v47 = vld [vmem:[%s11358_s9 + $0x118] sm:$0xff]  ;;  %v4919_v40 = vld [vmem:[%s11358_s9 + $0x68] sm:$0xff]  ;;  %v4922_v15 = vld [vmem:[%s11358_s9 + $0x80] sm:$0xff] }
 0x63e   : > { %4590 = vrot.lane.b32.xlu0 %v4446_v53, %s11821_s15  ;;  %v4923_v55 = vld [vmem:[%s11358_s9 + $0x88] sm:$0xff]  ;;  %v4926_v20 = vld [vmem:[%s11358_s9 + $0xa0] sm:$0xff]  ;;  %v4920_v23 = vld [vmem:[%s11358_s9 + $0x70] sm:$0xff] }
 0x63f   : > { %4592 = vrot.lane.b32.xlu1 %v4447_v39, %s11821_s15  ;;  %v4927_v8 = vld [vmem:[%s11358_s9 + $0xa8] sm:$0xff]  ;;  %v4921_v9 = vld [vmem:[%s11358_s9 + $0x78] sm:$0xff]  ;;  %vm12237_vm0 = vmmov %vm12235_vm4 }
 0x640   : > { %vm12238_vm2 = vmmov %vm12237_vm0 }
 0x641   : > { %vm12239_vm3 = vmmov %vm12237_vm0 }
 0x642   : > { %4594 = vrot.lane.b32.xlu0 %v4448_v38, %s11821_s15  ;;  %vm12240_vm10 = vmmov %vm12237_vm0 }
 0x643   : > { %4596 = vrot.lane.b32.xlu1 %v4449_v22, %s11821_s15  ;;  %v4924_v22 = vld [vmem:[%s11358_s9 + $0x90] sm:$0xff]  ;;  %vm12245_vm11 = vmmov %vm12239_vm3 }
 0x646   : > { %5128 = vperm.xlu0 %6247, %v4906_v36  }
 0x647   : > { %5133 = vperm.xlu1 %6248, %v4907_v12   ;;  %v4925_v12 = vld [vmem:[%s11358_s9 + $0x98] sm:$0xff] }
 0x64a   : > { %5164 = vperm.xlu0 %6247, %v4910_v45  }
 0x64b   : > { %5169 = vperm.xlu1 %6248, %v4911_v46   ;;  %v4928_v46 = vld [vmem:[%s11358_s9 + $0xb0] sm:$0xff] }
 0x64e   : > { %5408 = vperm.xlu0 %6247, %v4930_v4  }
 0x64f   : > { %5413 = vperm.xlu1 %6248, %v4931_v1  }
 0x652   : > { %5444 = vperm.xlu0 %6247, %v4934_v18   ;;  %v4929_v18 = vld [vmem:[%s11358_s9 + $0xb8] sm:$0xff] }
 0x653   : > { %5449 = vperm.xlu1 %6248, %v4935_v60  }
 0x656   : > { %5216 = vperm.xlu0 %6247, %v4914_v61  }
 0x657   : > { %5221 = vperm.xlu1 %6248, %v4915_v29  }
 0x65a   : > { %5496 = vperm.xlu0 %6247, %v4938_v10  }
 0x65b   : > { %5501 = vperm.xlu1 %6248, %v4939_v51   ;;  %v5778_v51 = vld [vmem:[%s11359_s10] sm:$0xff] }
 0x65e   : > { %5138 = vperm.xlu0 %6247, %v4908_v63  }
 0x65f   : > { %5143 = vperm.xlu1 %6248, %v4909_v3  }
 0x662   : > { %5174 = vperm.xlu0 %6247, %v4912_v48   ;;  %v5779_v48 = vld [vmem:[%s11359_s10 + $0x8] sm:$0xff] }
 0x663   : > { %5179 = vperm.xlu1 %6248, %v4913_v19  }
 0x666   : > { %5418 = vperm.xlu0 %6247, %v4932_v24  }
 0x667   : > { %5423 = vperm.xlu1 %6248, %v4933_v30  }
 0x66a   : > { %5454 = vperm.xlu0 %6247, %v4936_v27  }
 0x66b   : > { %5459 = vperm.xlu1 %6248, %v4937_v54  }
 0x66e   : > { %5226 = vperm.xlu0 %6247, %v4916_v17  }
 0x66f   : > { %5231 = vperm.xlu1 %6248, %v4917_v37  }
 0x672   : > { %5506 = vperm.xlu0 %6247, %v4940_v26   ;;  %v4481_v57 = vpop.permute.xlu1 %4480 }
 0x673   : > { %5511 = vperm.xlu1 %6248, %v4941_v47  }
 0x676   : > { %5268 = vperm.xlu0 %6247, %v4918_v50   ;;  %v4569_v21 = vpop.permute.xlu1 %4568 }
 0x677   : > { %5273 = vperm.xlu1 %6248, %v4919_v40  }
 0x678   : > { %v4455_v44 = vpop.permute.xlu0 %4454 }
 0x67a   : > { %5304 = vperm.xlu0 %6247, %v4922_v15   ;;  %v4573_v38 = vpop.permute.xlu1 %4572 }
 0x67b   : > { %5309 = vperm.xlu1 %6248, %v4923_v55  }
 0x67c   : > { %v4479_v53 = vpop.permute.xlu0 %4478 }
 0x67d   : > { %v4530_v4 = vsel %vm12235_vm4, %v4455_v44, %v4479_v53  ;;  %v4502_v19 = vsel %vm12239_vm3, %v4479_v53, %v4481_v57  ;;  %vm12241_vm4 = vcmask 916480  }
 0x67e   : > { %5356 = vperm.xlu0 %6247, %v4926_v20   ;;  %v4534_v29 = vsel %vm7703_vm12, %v4530_v4, 0.0 }
 0x67f   : > { %5361 = vperm.xlu1 %6248, %v4927_v8   ;;  %v4650_v54 = vadd.f32 %v4534_v29, %v9943_v28 }
 0x680   : > { %v4483_v39 = vpop.permute.xlu0 %4482 }
 0x681   : > { %v4503_v63 = vsel %vm12238_vm2, %v4481_v57, %v4483_v39  ;;  %v4504_v24 = vsel %vm12240_vm10, %v4483_v39, %v4455_v44  ;;  %v4651_v57 = vadd.f32 %v4502_v19, %v9793_v43 }
 0x682   : > { %5278 = vperm.xlu0 %6247, %v4920_v23   ;;  %v4536_v50 = vsel %vm7755_vm14, %v4503_v63, 0.0  ;;  %v4653_v15 = vadd.f32 %v4504_v24, %v9947_v25  ;;  %v12254_v63 = vld [vmem:[#allocation53_spill] sm:$0xff] }
 0x683   : > { %5283 = vperm.xlu1 %6248, %v4921_v9   ;;  %v12249_v9 = vld [vmem:[#allocation12_spill] sm:$0xff] }
 0x684   : > { %v4567_v36 = vpop.permute.xlu0 %4566 }
 0x685   : > { %v4457_v45 = vpop.permute.xlu1 %4456  ;;  %v4598_v30 = vsel %vm12241_vm4, %v4567_v36, %v4569_v21 }
 0x686   : > { %5314 = vperm.xlu0 %6247, %v4924_v22   ;;  %v4666_v44 = vadd.f32 %v4650_v54, %v4598_v30  ;;  %v4652_v22 = vadd.f32 %v4536_v50, %v12249_v9 }
 0x687   : > { %5319 = vperm.xlu1 %6248, %v4925_v12  }
 0x688   : > { %v4571_v1 = vpop.permute.xlu0 %4570 }
 0x689   : > { %v4485_v60 = vpop.permute.xlu1 %4484 }
 0x68a   : > { %5366 = vperm.xlu0 %6247, %v4928_v46   ;;  %v4531_v10 = vsel %vm12237_vm0, %v4457_v45, %v4485_v60  ;;  %vm12242_vm0 = vmmov %vm12241_vm4 }
 0x68b   : > { %5371 = vperm.xlu1 %6248, %v4929_v18   ;;  %v4630_v17 = vsel %vm12242_vm0, %v4573_v38, %v4567_v36  ;;  %v4538_v37 = vsel %vm7703_vm12, %v4531_v10, 0.0  ;;  %vm12243_vm2 = vmmov %vm12242_vm0 }
 0x68c   : > { %v4487_v3 = vpop.permute.xlu0 %4486  ;;  %v4599_v26 = vsel %vm12243_vm2, %v4569_v21, %v4571_v1  ;;  %v4637_v20 = vsel %vm7772_vm15, %v4630_v17, 0.0  ;;  %v4654_v53 = vadd.f32 %v4538_v37, %v9954_v7  ;;  %vm12247_vm3 = vmmov %vm12242_vm0  ;;  %v12253_v7 = vld [vmem:[#allocation43_spill] sm:$0xff] }
 0x68d   : > { %v4489_v27 = vpop.permute.xlu1 %4488  ;;  %v4600_v21 = vsel %vm12247_vm3, %v4571_v1, %v4573_v38  ;;  %v4635_v23 = vsel %vm7731_vm13, %v4599_v26, 0.0  ;;  %v4669_v4 = vadd.f32 %v4653_v15, %v4637_v20  ;;  %v4707_v18 = vadd.f32 %v12253_v7, %v4666_v44  ;;  %vm12255_vm2 = vmmov %vm12242_vm0 }
 0x68e   : > { %5784 = vperm.xlu0 %6247, %v5778_v51   ;;  %v4506_v40 = vsel %vm12245_vm11, %v4487_v3, %v4489_v27  ;;  %vm12250_vm11 = vmmov %vm12240_vm10  ;;  %v4667_v38 = vadd.f32 %v4651_v57, %v4635_v23  ;;  %v4668_v1 = vadd.f32 %v4652_v22, %v4600_v21 }
 0x68f   : > { %5789 = vperm.xlu1 %6248, %v5779_v48   ;;  %v4505_v36 = vsel %vm12250_vm11, %v4485_v60, %v4487_v3  ;;  %v4540_v43 = vsel %vm7755_vm14, %v4506_v40, 0.0  ;;  %vm12251_vm10 = vmmov %vm12242_vm0  ;;  %v4710_v15 = vadd.f32 %v12253_v7, %v4669_v4 }
 0x690   : > { %v4575_v28 = vpop.permute.xlu0 %4574  ;;  %vm12252_vm4 = vmmov %vm12250_vm11  ;;  %v4655_v10 = vadd.f32 %v4505_v36, %v9983_v58  ;;  %v4656_v51 = vadd.f32 %v4540_v43, %v9972_v49  ;;  %v4709_v26 = vadd.f32 %v12253_v7, %v4668_v1  ;;  %v4708_v40 = vadd.f32 %v12253_v7, %v4667_v38 }
 0x691   : > { %v4577_v39 = vpop.permute.xlu1 %4576  ;;  %v4507_v12 = vsel %vm12252_vm4, %v4489_v27, %v4457_v45  ;;  %vm12256_vm3 = vmmov %vm12242_vm0 }
 0x692   : > { %v4601_v25 = vsel %vm12251_vm10, %v4575_v28, %v4577_v39  ;;  %v4657_v19 = vadd.f32 %v4507_v12, %v9981_v59  ;;  %vm12257_vm11 = vmmov %vm12252_vm4 }
 0x693   : > { %v4670_v46 = vadd.f32 %v4654_v53, %v4601_v25  ;;  %vm12258_vm10 = vmmov %vm12252_vm4 }
 0x694   : > { %v4579_v29 = vpop.permute.xlu0 %4578  ;;  %vm12262_vm1 = vmmov %vm12256_vm3 }
 0x695   : > { %v4711_v60 = vadd.f32 %v12254_v63, %v4670_v46  ;;  %v4581_v3 = vpop.permute.xlu1 %4580  ;;  %v4602_v48 = vsel %vm12242_vm0, %v4577_v39, %v4579_v29  ;;  %vm12259_vm0 = vmmov %vm12252_vm4 }
 0x696   : > { %v4631_v45 = vsel %vm12255_vm2, %v4581_v3, %v4575_v28  ;;  %v4603_v24 = vsel %vm12256_vm3, %v4579_v29, %v4581_v3  ;;  %v4639_v30 = vsel %vm7731_vm13, %v4602_v48, 0.0  ;;  %vm12260_vm2 = vmmov %vm12259_vm0 }
 0x697   : > { %v4641_v27 = vsel %vm7772_vm15, %v4631_v45, 0.0  ;;  %v4671_v58 = vadd.f32 %v4655_v10, %v4639_v30  ;;  %v4672_v54 = vadd.f32 %v4656_v51, %v4603_v24  ;;  %v4728_v49 = vpack.c.bf16 %v4711_v60, %v4707_v18 }
 0x698   : > { %v4673_v17 = vadd.f32 %v4657_v19, %v4641_v27  ;;  %v4459_v37 = vpop.permute.xlu0 %4458 }
 0x699   : > { %v4713_v50 = vadd.f32 %v12254_v63, %v4672_v54  ;;  %v4493_v59 = vpop.permute.xlu1 %4492  ;;  %v4712_v57 = vadd.f32 %v12254_v63, %v4671_v58 }
 0x69a   : > { %v4714_v44 = vadd.f32 %v12254_v63, %v4673_v17 }
 0x69b   : > { %v4729_v28 = vpack.c.bf16 %v4712_v57, %v4708_v40  ;;  %v4730_v20 = vpack.c.bf16 %v4713_v50, %v4709_v26 }
 0x69c   : > { %v4731_v53 = vpack.c.bf16 %v4714_v44, %v4710_v15  ;;  %v4491_v21 = vpop.permute.xlu0 %4490 }
 0x69d   : > { %v4585_v23 = vpop.permute.xlu1 %4584  ;;  %4752 = vmatprep.subr.bf16.mxu0 %v4729_v28  ;;  %v4532_v43 = vsel %vm12257_vm11, %v4459_v37, %v4491_v21  ;;  %v4508_v38 = vsel %vm12259_vm0, %v4491_v21, %v4493_v59  ;;  %vm12261_vm11 = vmmov %vm12256_vm3 }
 0x69e   : > { %4805 = vmatprep.subr.bf16.mxu1 %v4731_v53  ;;  %4753 = vmatpush1.bf16.msra.mxu0 %v4728_v49  ;;  %v4542_v46 = vsel %vm7703_vm12, %v4532_v43, 0.0  ;;  %v4659_v45 = vadd.f32 %v4508_v38, %v10009_v32 }
 0x69f   : > { %4806 = vmatpush1.bf16.msra.mxu1 %v4730_v20  ;;  %v4658_v51 = vadd.f32 %v4542_v46, %v10113_v41 }
 0x6a0   : > { %v4495_v39 = vpop.permute.xlu0 %4494 }
 0x6a1   : > { %v4589_v9 = vpop.permute.xlu1 %4588  ;;  %v4509_v7 = vsel %vm12252_vm4, %v4493_v59, %v4495_v39  ;;  %v4510_v1 = vsel %vm12260_vm2, %v4495_v39, %v4459_v37  ;;  %vm12264_vm4 = vmmov %vm12262_vm1 }
 0x6a2   : > { %v4544_v48 = vsel %vm7755_vm14, %v4509_v7, 0.0  ;;  %v4661_v24 = vadd.f32 %v4510_v1, %v10116_v31 }
 0x6a3   : > { %v4660_v37 = vadd.f32 %v4544_v48, %v10011_v35 }
 0x6a4   : > { %v4583_v22 = vpop.permute.xlu0 %4582 }
 0x6a5   : > { %v4461_v36 = vpop.permute.xlu1 %4460  ;;  %v4604_v29 = vsel %vm12256_vm3, %v4583_v22, %v4585_v23  ;;  %v4632_v63 = vsel %vm12261_vm11, %v4589_v9, %v4583_v22 }
 0x6a6   : > { %v4674_v30 = vadd.f32 %v4658_v51, %v4604_v29  ;;  %v4645_v41 = vsel %vm7772_vm15, %v4632_v63, 0.0  ;;  %v12273_v51 = vmov 0  }
 0x6a7   : > { %v4677_v40 = vadd.f32 %v4661_v24, %v4645_v41 }
 0x6a8   : > { %v4587_v25 = vpop.permute.xlu0 %4586 }
 0x6a9   : > { %v4497_v12 = vpop.permute.xlu1 %4496  ;;  %v4605_v3 = vsel %vm12262_vm1, %v4585_v23, %v4587_v25  ;;  %v4606_v54 = vsel %vm12264_vm4, %v4587_v25, %v4589_v9  ;;  %vm12265_vm1 = vmmov %vm12259_vm0  ;;  %v4718_v7 = vadd.f32 %v10233_v42, %v4677_v40  ;;  %vm12271_vm4 = vcmask 261120  }
 0x6aa   : > { %v4533_v4 = vsel %vm12258_vm10, %v4461_v36, %v4497_v12  ;;  %vm12263_vm10 = vmmov %vm12259_vm0  ;;  %v4643_v49 = vsel %vm7731_vm13, %v4605_v3, 0.0  ;;  %v4676_v15 = vadd.f32 %v4660_v37, %v4606_v54 }
 0x6ab   : > { %v4546_v60 = vsel %vm7703_vm12, %v4533_v4, 0.0  ;;  %vm12266_vm0 = vmmov %vm12256_vm3  ;;  %v4675_v57 = vadd.f32 %v4659_v45, %v4643_v49 }
 0x6ac   : > { %v4499_v18 = vpop.permute.xlu0 %4498  ;;  %v4662_v58 = vadd.f32 %v4546_v60, %v10118_v62  ;;  %vm12267_vm2 = vmmov %vm12265_vm1  ;;  %v4715_v62 = vadd.f32 %v10233_v42, %v4674_v30 }
 0x6ad   : > { %v4501_v10 = vpop.permute.xlu1 %4500  ;;  %v4511_v26 = vsel %vm12265_vm1, %v4497_v12, %v4499_v18  ;;  %vm12268_vm3 = vmmov %vm12266_vm0  ;;  %v4717_v12 = vadd.f32 %v10233_v42, %v4676_v15 }
 0x6ae   : > { %v4512_v19 = vsel %vm12263_vm10, %v4499_v18, %v4501_v10  ;;  %v4513_v50 = vsel %vm12267_vm2, %v4501_v10, %v4461_v36  ;;  %v4663_v28 = vadd.f32 %v4511_v26, %v10132_v11  ;;  %vm12269_vm11 = vmmov %vm12266_vm0  ;;  %v6255_v10 = vld [vmem:[%s11357_s8 + $0x20] sm:$0xff]  }
 0x6af   : > { %v4548_v32 = vsel %vm7755_vm14, %v4512_v19, 0.0  ;;  %v4665_v23 = vadd.f32 %v4513_v50, %v10126_v52  ;;  %vm12270_vm10 = vmmov %vm12266_vm0  ;;  %v4716_v52 = vadd.f32 %v10233_v42, %v4675_v57  ;;  %v12277_v57 = vld [vmem:[#allocation33_spill] sm:$0xff] }
 0x6b0   : > { %v4591_v27 = vpop.permute.xlu0 %4590  ;;  %v4664_v35 = vadd.f32 %v4548_v32, %v10122_v16  ;;  %vm12272_vm1 = vmmov %vm12271_vm4 }
 0x6b1   : > { %v4593_v17 = vpop.permute.xlu1 %4592 }
 0x6b2   : > { %v4607_v31 = vsel %vm12266_vm0, %v4591_v27, %v4593_v17  ;;  %vm12274_vm0 = vmmov %vm12272_vm1 }
 0x6b3   : > { %v4678_v59 = vadd.f32 %v4662_v58, %v4607_v31  ;;  %vm12275_vm2 = vmmov %vm12274_vm0  ;;  %v12276_v31 = vld [vmem:[#allocation35_spill] sm:$0xff] }
 0x6b4   : > { %v4595_v44 = vpop.permute.xlu0 %4594 }
 0x6b5   : > { %v4719_v20 = vadd.f32 %v10228_v2, %v4678_v59  ;;  %v4597_v53 = vpop.permute.xlu1 %4596  ;;  %v4608_v21 = vsel %vm12268_vm3, %v4593_v17, %v4595_v44  ;;  %vm12312_vm3 = vcmask 7168  }
 0x6b6   : > { %v4633_v39 = vsel %vm12269_vm11, %v4597_v53, %v4591_v27  ;;  %v4609_v9 = vsel %vm12270_vm10, %v4595_v44, %v4597_v53  ;;  %v4647_v22 = vsel %vm7731_vm13, %v4608_v21, 0.0  ;;  %v12278_v44 = vld [vmem:[#allocation39_spill] sm:$0xff]  ;;  %v12279_v21 = vld [vmem:[#allocation40_spill] sm:$0xff]  ;;  %vm12313_vm11 = vmmov %vm12312_vm3  ;;  %vm12331_vm10 = vcmask 1039360  }
 0x6b7   : > { %v4649_v36 = vsel %vm7772_vm15, %v4633_v39, 0.0  ;;  %v4679_v11 = vadd.f32 %v4663_v28, %v4647_v22  ;;  %v4680_v43 = vadd.f32 %v4664_v35, %v4609_v9  ;;  %v4732_v16 = vpack.c.bf16 %v4719_v20, %v4715_v62  ;;  %v12280_v39 = vld [vmem:[#allocation79_spill] sm:$0xff] }
 0x6b8   : > { %v4681_v25 = vadd.f32 %v4665_v23, %v4649_v36 }
 0x6b9   : > { %v4721_v46 = vadd.f32 %v10228_v2, %v4680_v43  ;;  %v4720_v4 = vadd.f32 %v10228_v2, %v4679_v11  ;;  %v12281_v11 = vld [vmem:[#allocation38_spill] sm:$0xff] }
 0x6ba   : > { %v4722_v18 = vadd.f32 %v10228_v2, %v4681_v25  ;;  %v6256_v2 = vld [vmem:[%s11357_s8 + $0x28] sm:$0xff]  }
 0x6bb   : > { %v4733_v38 = vpack.c.bf16 %v4720_v4, %v4716_v52  ;;  %v4734_v1 = vpack.c.bf16 %v4721_v46, %v4717_v12  ;;  %v12283_v46 = vld [vmem:[#allocation34_spill] sm:$0xff] }
 0x6bc   : > { %v4735_v29 = vpack.c.bf16 %v4722_v18, %v4718_v7 }
 0x6bd   : > { %4754 = vmatprep.subr.bf16.mxu0 %v4733_v38 }
 0x6be   : > { %4807 = vmatprep.subr.bf16.mxu1 %v4735_v29  ;;  %4755 = vmatpush1.bf16.msra.mxu0 %v4732_v16  ;;  %v12282_v16 = vld [vmem:[#allocation80_spill] sm:$0xff] }
 0x6bf   : > { %4808 = vmatpush1.bf16.msra.mxu1 %v4734_v1 }
 0x6c1   : > { %6183 = vmatmul.mubr.msk.bf16.vlgmr.msra.gmra.mrb[24].mxu0 %vm12271_vm4, %v6255_v10  ;;  %vm12332_vm4 = vmmov %vm12331_vm10 }
 0x6c2   : > { %6185 = vmatmul.mubr.msk.bf16.vlgmr.msra.gmra.mrb[24].mxu1 %vm12272_vm1, %v6255_v10  ;;  %4794 = vmatprep.mubr.bf16.mxu0 %v12273_v51  ;;  %vm12333_vm1 = vmmov %vm12332_vm4 }
 0x6c3   : > { %4847 = vmatprep.mubr.bf16.mxu1 %v12273_v51 }
 0x6c5   : > { %v10393_v53 = vpop.permute.xlu0 %5128 }
 0x6c6   : > { %v10403_v36 = vpop.permute.xlu1 %5133 }
 0x6c9   : > { %6184 = vmatmul.mubr.msk.bf16.gmra.mrb[28].mxu0 %vm12274_vm0, %v6256_v2  ;;  %vm12338_vm0 = vmmov %vm12312_vm3 }
 0x6ca   : > { %6186 = vmatmul.mubr.msk.bf16.gmra.mrb[28].mxu1 %vm12275_vm2, %v6256_v2  ;;  %5878 = vmatprep.mubr.bf16.mxu0 %v12273_v51  ;;  %vm12339_vm2 = vmmov %vm12338_vm0 }
 0x6cb   : > { %5931 = vmatprep.mubr.bf16.mxu1 %v12273_v51 }
 0x794   : > { %v4786_v42 = vpop.f32.mrb[24].mxu0 }
 0x795   : > { %v4839_v63 = vpop.f32.mrb[24].mxu1  ;;  %v4858_v60 = vmax.f32 %v4786_v42, 0.0  ;;  %v4788_v3 = vpop.f32.mrb[25].mxu0 }
 0x796   : > { %v4860_v48 = vmax.f32 %v4839_v63, 0.0  ;;  %v4841_v19 = vpop.f32.mrb[25].mxu1  ;;  %v4859_v45 = vmax.f32 %v4788_v3, 0.0  ;;  %v4790_v24 = vpop.f32.mrb[26].mxu0 }
 0x797   : > { %v4874_v30 = vmin.f32 %v4858_v60, 6.0  ;;  %v4861_v27 = vmax.f32 %v4841_v19, 0.0  ;;  %v4843_v41 = vpop.f32.mrb[26].mxu1  ;;  %v4862_v58 = vmax.f32 %v4790_v24, 0.0  ;;  %v4792_v54 = vpop.f32.mrb[27].mxu0 }
 0x798   : > { %v4876_v49 = vmin.f32 %v4860_v48, 6.0  ;;  %v4875_v17 = vmin.f32 %v4859_v45, 6.0  ;;  %v4864_v37 = vmax.f32 %v4843_v41, 0.0  ;;  %v4845_v26 = vpop.f32.mrb[27].mxu1  ;;  %v4863_v32 = vmax.f32 %v4792_v54, 0.0  ;;  %v12284_v41 = vld [vmem:[#allocation62_spill] sm:$0xff] }
 0x799   : > { %v10385_v50 = vadd.f32 %v4874_v30, %v12276_v31  ;;  %v4877_v59 = vmin.f32 %v4861_v27, 6.0  ;;  %v4878_v40 = vmin.f32 %v4862_v58, 6.0  ;;  %v4865_v62 = vmax.f32 %v4845_v26, 0.0  ;;  %v12286_v26 = vld [vmem:[#allocation27_spill] sm:$0xff] }
 0x79a   : > { %v10388_v15 = vadd.f32 %v4876_v49, %v12277_v57  ;;  %v10391_v28 = vadd.f32 %v4875_v17, %v12278_v44  ;;  %v4880_v35 = vmin.f32 %v4864_v37, 6.0  ;;  %v4879_v20 = vmin.f32 %v4863_v32, 6.0  ;;  %v12285_v17 = vld [vmem:[#allocation28_spill] sm:$0xff]  ;;  %v12288_v44 = vld [vmem:[#allocation31_spill] sm:$0xff] }
 0x79b   : > { %v10396_v23 = vadd.f32 %v4877_v59, %v12279_v21  ;;  %v10399_v9 = vadd.f32 %v4878_v40, %v12280_v39  ;;  %v4881_v22 = vmin.f32 %v4865_v62, 6.0  ;;  %4970 = vrot.lane.b32.xlu0 %v10385_v50, %s11973_s0  ;;  %v10429_v40 = vpop.permute.xlu0 %5164  ;;  %v12287_v62 = vld [vmem:[#allocation26_spill] sm:$0xff]  ;;  %v10439_v21 = vpop.permute.xlu1 %5169 }
 0x79c   : > { %v10406_v43 = vadd.f32 %v4880_v35, %v12281_v11  ;;  %v10409_v25 = vadd.f32 %v4879_v20, %v12282_v16  ;;  %4972 = vrot.lane.b32.xlu1 %v10391_v28, %s11973_s0  ;;  %v4796_v12 = vpop.f32.mrb[28].mxu0  ;;  %v12290_v39 = vld [vmem:[#allocation74_spill] sm:$0xff]  ;;  %v12291_v11 = vld [vmem:[#allocation21_spill] sm:$0xff] }
 0x79d   : > { %v10414_v52 = vadd.f32 %v4881_v22, %v12283_v46  ;;  %v4849_v4 = vpop.f32.mrb[28].mxu1  ;;  %v4866_v7 = vmax.f32 %v4796_v12, 0.0  ;;  %v4798_v18 = vpop.f32.mrb[29].mxu0  ;;  %v12293_v12 = vld [vmem:[#allocation64_spill] sm:$0xff] }
 0x79e   : > { %v4868_v38 = vmax.f32 %v4849_v4, 0.0  ;;  %v4851_v1 = vpop.f32.mrb[29].mxu1  ;;  %v4867_v29 = vmax.f32 %v4798_v18, 0.0  ;;  %v4800_v10 = vpop.f32.mrb[30].mxu0 }
 0x79f   : > { %v4869_v2 = vmax.f32 %v4851_v1, 0.0  ;;  %v4882_v42 = vmin.f32 %v4866_v7, 6.0  ;;  %v4853_v63 = vpop.f32.mrb[30].mxu1  ;;  %v4870_v60 = vmax.f32 %v4800_v10, 0.0  ;;  %4974 = vrot.lane.b32.xlu0 %v10388_v15, %s11973_s0  ;;  %v4802_v3 = vpop.f32.mrb[31].mxu0 }
 0x7a0   : > { %v4884_v48 = vmin.f32 %v4868_v38, 6.0  ;;  %v4883_v19 = vmin.f32 %v4867_v29, 6.0  ;;  %v4872_v45 = vmax.f32 %v4853_v63, 0.0  ;;  %v4855_v24 = vpop.f32.mrb[31].mxu1  ;;  %v4871_v30 = vmax.f32 %v4802_v3, 0.0  ;;  %5044 = vrot.lane.b32.xlu1 %v10391_v28, %s11974_s1  ;;  %v10456_v4 = vpop.permute.xlu0 %5408 }
 0x7a1   : > { %v4885_v27 = vmin.f32 %v4869_v2, 6.0  ;;  %v10421_v58 = vadd.f32 %v4882_v42, %v12284_v41  ;;  %v4886_v54 = vmin.f32 %v4870_v60, 6.0  ;;  %v4873_v49 = vmax.f32 %v4855_v24, 0.0  ;;  %v10458_v7 = vpop.permute.xlu1 %5413  ;;  %v5781_v41 = vld [vmem:[%s11359_s10 + $0x18] sm:$0xff] }
 0x7a2   : > { %v10424_v37 = vadd.f32 %v4884_v48, %v12285_v17  ;;  %v10427_v32 = vadd.f32 %v4883_v19, %v12286_v26  ;;  %v4888_v31 = vmin.f32 %v4872_v45, 6.0  ;;  %v4887_v59 = vmin.f32 %v4871_v30, 6.0  ;;  %v5780_v30 = vld [vmem:[%s11359_s10 + $0x10] sm:$0xff] }
 0x7a3   : > { %v10432_v57 = vadd.f32 %v4885_v27, %v12287_v62  ;;  %v10435_v35 = vadd.f32 %v4886_v54, %v12288_v44  ;;  %v4889_v20 = vmin.f32 %v4873_v49, 6.0  ;;  %5042 = vrot.lane.b32.xlu0 %v10385_v50, %s11974_s1 }
 0x7a4   : > { %v10442_v22 = vadd.f32 %v4888_v31, %v12290_v39  ;;  %v10445_v16 = vadd.f32 %v4887_v59, %v12291_v11  ;;  %5048 = vrot.lane.b32.xlu1 %v10396_v23, %s11974_s1  ;;  %v10464_v18 = vpop.permute.xlu0 %5444 }
 0x7a5   : > { %12289 = vst [vmem:[#allocation60_spill] sm:$0xff] %v10435_v35  ;;  %v10450_v46 = vadd.f32 %v4889_v20, %v12293_v12  ;;  %v10468_v38 = vpop.permute.xlu1 %5449 }
 0x7a6   : > { %12292 = vst [vmem:[#allocation66_spill] sm:$0xff] %v10445_v16  ;;  %v10666_v0 = vmul.f32 %v10468_v38, %v10409_v25 }
 0x7a7   : > { %5046 = vrot.lane.b32.xlu0 %v10388_v15, %s11974_s1 }
 0x7a8   : > { %4976 = vrot.lane.b32.xlu1 %v10399_v9, %s11973_s0  ;;  %v10476_v1 = vpop.permute.xlu0 %5216  ;;  %12319 = vst [vmem:[#allocation71_spill] sm:$0xff] %v10666_v0 }
 0x7a9   : > { %v10478_v29 = vpop.permute.xlu1 %5221 }
 0x7aa   : > { %12294 = vst [vmem:[#allocation20_spill] sm:$0xff] %v10478_v29 }
 0x7ab   : > { %4946 = vrot.lane.b32.xlu0 %v10396_v23, %s11973_s0 }
 0x7ac   : > { %4980 = vrot.lane.b32.xlu1 %v10406_v43, %s11973_s0  ;;  %v10484_v10 = vpop.permute.xlu0 %5496 }
 0x7ad   : > { %v10488_v2 = vpop.permute.xlu1 %5501 }
 0x7ae   : > { %12295 = vst [vmem:[#allocation30_spill] sm:$0xff] %v10488_v2  ;;  %v10622_v2 = vmul.f32 %v10464_v18, %v10385_v50 }
 0x7af   : > { %5050 = vrot.lane.b32.xlu0 %v10399_v9, %s11974_s1 }
 0x7b0   : > { %4948 = vrot.lane.b32.xlu1 %v10414_v52, %s11973_s0  ;;  %v10496_v42 = vpop.permute.xlu0 %5138 }
 0x7b1   : > { %12296 = vst [vmem:[#allocation81_spill] sm:$0xff] %v10496_v42  ;;  %v10498_v63 = vpop.permute.xlu1 %5143  ;;  %v10610_v42 = vmul.f32 %v10429_v40, %v10396_v23 }
 0x7b2   : > { %12297 = vst [vmem:[#allocation73_spill] sm:$0xff] %v10498_v63 }
 0x7b3   : > { %5054 = vrot.lane.b32.xlu0 %v10406_v43, %s11974_s1 }
 0x7b4   : > { %5052 = vrot.lane.b32.xlu1 %v10409_v25, %s11974_s1  ;;  %v10504_v60 = vpop.permute.xlu0 %5174 }
 0x7b5   : > { %v10508_v3 = vpop.permute.xlu1 %5179 }
 0x7b7   : > { %4978 = vrot.lane.b32.xlu0 %v10409_v25, %s11973_s0 }
 0x7b8   : > { %5056 = vrot.lane.b32.xlu1 %v10414_v52, %s11974_s1  ;;  %v10516_v48 = vpop.permute.xlu0 %5418 }
 0x7b9   : > { %12298 = vst [vmem:[#allocation37_spill] sm:$0xff] %v10516_v48  ;;  %v10518_v19 = vpop.permute.xlu1 %5423 }
 0x7ba   : > { %12299 = vst [vmem:[#allocation18_spill] sm:$0xff] %v10518_v19  ;;  %v5183_v19 = vmul.f32 %v10429_v40, %v10391_v28 }
 0x7bb   : > { %4982 = vrot.lane.b32.xlu0 %v10421_v58, %s11973_s0 }
 0x7bc   : > { %4984 = vrot.lane.b32.xlu1 %v10427_v32, %s11973_s0  ;;  %v10524_v45 = vpop.permute.xlu0 %5454 }
 0x7bd   : > { %v10528_v24 = vpop.permute.xlu1 %5459 }
 0x7be   : > { %12300 = vst [vmem:[#allocation83_spill] sm:$0xff] %v10528_v24 }
 0x7bf   : > { %4986 = vrot.lane.b32.xlu0 %v10424_v37, %s11973_s0 }
 0x7c0   : > { %5060 = vrot.lane.b32.xlu1 %v10427_v32, %s11974_s1  ;;  %v10539_v27 = vpop.permute.xlu0 %5226 }
 0x7c1   : > { %12301 = vst [vmem:[#allocation29_spill] sm:$0xff] %v10539_v27  ;;  %v10544_v54 = vpop.permute.xlu1 %5231 }
 0x7c2   : > { %12302 = vst [vmem:[#allocation8_spill] sm:$0xff] %v10544_v54  ;;  %v10588_v54 = vmul.f32 %v10429_v40, %v10385_v50 }
 0x7c3   : > { %5058 = vrot.lane.b32.xlu0 %v10421_v58, %s11974_s1 }
 0x7c4   : > { %5064 = vrot.lane.b32.xlu1 %v10432_v57, %s11974_s1  ;;  %v10546_v49 = vpop.permute.xlu0 %5506 }
 0x7c5   : > { %12303 = vst [vmem:[#allocation9_spill] sm:$0xff] %v10546_v49  ;;  %v10548_v17 = vpop.permute.xlu1 %5511 }
 0x7c6   : > { %12304 = vst [vmem:[#allocation23_spill] sm:$0xff] %v10548_v17 }
 0x7c7   : > { %5062 = vrot.lane.b32.xlu0 %v10424_v37, %s11974_s1 }
 0x7c8   : > { %4988 = vrot.lane.b32.xlu1 %v10435_v35, %s11973_s0  ;;  %v10550_v26 = vpop.permute.xlu0 %5268 }
 0x7c9   : > { %v10552_v31 = vpop.permute.xlu1 %5273 }
 0x7cb   : > { %4950 = vrot.lane.b32.xlu0 %v10432_v57, %s11973_s0 }
 0x7cc   : > { %4992 = vrot.lane.b32.xlu1 %v10442_v22, %s11973_s0  ;;  %v10554_v59 = vpop.permute.xlu0 %5304 }
 0x7cd   : > { %v10556_v62 = vpop.permute.xlu1 %5309  ;;  %v5324_v49 = vmul.f32 %v10554_v59, %v10388_v15 }
 0x7cf   : > { %5066 = vrot.lane.b32.xlu0 %v10435_v35, %s11974_s1 }
 0x7d0   : > { %4952 = vrot.lane.b32.xlu1 %v10450_v46, %s11973_s0  ;;  %v10558_v44 = vpop.permute.xlu0 %5356 }
 0x7d1   : > { %v10560_v20 = vpop.permute.xlu1 %5361 }
 0x7d2   : > { %12305 = vst [vmem:[#allocation55_spill] sm:$0xff] %v10560_v20 }
 0x7d3   : > { %5070 = vrot.lane.b32.xlu0 %v10442_v22, %s11974_s1 }
 0x7d4   : > { %5068 = vrot.lane.b32.xlu1 %v10445_v16, %s11974_s1  ;;  %v10562_v39 = vpop.permute.xlu0 %5278 }
 0x7d5   : > { %12306 = vst [vmem:[#allocation16_spill] sm:$0xff] %v10562_v39  ;;  %v10564_v11 = vpop.permute.xlu1 %5283  ;;  %v10638_v39 = vmul.f32 %v10468_v38, %v10414_v52 }
 0x7d6   : > { %12307 = vst [vmem:[#allocation17_spill] sm:$0xff] %v10564_v11  ;;  %v10605_v11 = vmul.f32 %v10464_v18, %v10388_v15 }
 0x7d7   : > { %4990 = vrot.lane.b32.xlu0 %v10445_v16, %s11973_s0  ;;  %12315 = vst [vmem:[#allocation84_spill] sm:$0xff] %v10638_v39  ;;  %v10658_v39 = vmul.f32 %v10439_v21, %v10406_v43 }
 0x7d8   : > { %5072 = vrot.lane.b32.xlu1 %v10450_v46, %s11974_s1  ;;  %v10566_v12 = vpop.permute.xlu0 %5314 }
 0x7d9   : > { %12318 = vst [vmem:[#allocation78_spill] sm:$0xff] %v10658_v39  ;;  %v10687_v0 = vmul.f32 %v10566_v12, %v10424_v37 }
 0x7db   : > { %5794 = vperm.xlu0 %6247, %v5780_v30   ;;  %v10568_v30 = vpop.permute.xlu1 %5319  ;;  %12324 = vst [vmem:[#allocation63_spill] sm:$0xff] %v10687_v0 }
 0x7dc   : > { %5799 = vperm.xlu1 %6248, %v5781_v41   ;;  %v10570_v41 = vpop.permute.xlu0 %5366 }
 0x7dd   : > { %12308 = vst [vmem:[#allocation51_spill] sm:$0xff] %v10570_v41 }
 0x7df   : > { %v10572_v51 = vpop.permute.xlu1 %5371 }
 0x7e0   : > { %12309 = vst [vmem:[#allocation11_spill] sm:$0xff] %v10572_v51  ;;  %v10574_v8 = vpop.permute.xlu0 %5784  ;;  %v10597_v51 = vmul.f32 %v10429_v40, %v10388_v15  ;;  %v10630_v40 = vmul.f32 %v10464_v18, %v10396_v23 }
 0x7e1   : > { %12310 = vst [vmem:[#allocation72_spill] sm:$0xff] %v10574_v8 }
 0x7e3   : > { %v10576_v55 = vpop.permute.xlu1 %5789 }
 0x7e4   : > { %12311 = vst [vmem:[#allocation15_spill] sm:$0xff] %v10576_v55  ;;  %v10593_v55 = vmul.f32 %v10464_v18, %v10391_v28  ;;  %v10650_v18 = vmul.f32 %v10468_v38, %v10399_v9 }
 0x80d   : > { %v10578_v47 = vpop.permute.xlu0 %4970 }
 0x80e   : > { %v4973_v61 = vpop.permute.xlu1 %4972 }
 0x80f   : > { %v4994_v17 = vsel %vm12312_vm3, %v10578_v47, %v4973_v61  ;;  %vm12340_vm3 = vmmov %vm12333_vm1 }
 0x810   : > { %v5027_v24 = vsel %vm6929_vm6, %v4994_v17, 0.0  ;;  %v5323_v17 = vmul.f32 %v10554_v59, %v10391_v28  ;;  %v10618_v28 = vmul.f32 %v10554_v59, %v10385_v50  ;;  %v10646_v50 = vmul.f32 %v10556_v62, %v10399_v9 }
 0x811   : > { %v5287_v8 = vmul.f32 %v10550_v26, %v5027_v24  ;;  %v4975_v63 = vpop.permute.xlu0 %4974  ;;  %v5147_v39 = vmul.f32 %v10393_v53, %v5027_v24 }
 0x812   : > { %v4995_v48 = vsel %vm12313_vm11, %v4973_v61, %v4975_v63  ;;  %v5045_v27 = vpop.permute.xlu1 %5044  ;;  %vm12341_vm11 = vnez %v12026_v34  ;;  %v12382_v34 = vld [vmem:[#allocation9_spill] sm:$0xff] }
 0x813   : > { %v10614_v41 = vsel %vm6933_vm7, %v4995_v48, 0.0  ;;  %v10624_v15 = vadd.f32 %v5323_v17, %v5287_v8  ;;  %v10634_v48 = vmul.f32 %v10439_v21, %v10414_v52  ;;  %v10642_v8 = vmul.f32 %v10439_v21, %v10399_v9 }
 0x814   : > { %v5288_v61 = vmul.f32 %v10550_v26, %v10614_v41  ;;  %v10654_v17 = vmul.f32 %v10439_v21, %v10409_v25  ;;  %v10670_v9 = vmul.f32 %v10468_v38, %v10406_v43  ;;  %v10678_v21 = vmul.f32 %v10524_v45, %v10427_v32 }
 0x815   : > { %12314 = vst [vmem:[#allocation10_spill] sm:$0xff] %v10634_v48  ;;  %v5043_v20 = vpop.permute.xlu0 %5042  ;;  %12316 = vst [vmem:[#allocation56_spill] sm:$0xff] %v10642_v8  ;;  %v10662_v8 = vmul.f32 %v10556_v62, %v10406_v43  ;;  %v10691_v43 = vmul.f32 %v10524_v45, %v10424_v37  ;;  %v10695_v38 = vmul.f32 %v10504_v60, %v10421_v58 }
 0x816   : > { %12317 = vst [vmem:[#allocation22_spill] sm:$0xff] %v10654_v17  ;;  %v5340_v48 = vadd.f32 %v5324_v49, %v5288_v61  ;;  %v5049_v29 = vpop.permute.xlu1 %5048  ;;  %12320 = vst [vmem:[#allocation45_spill] sm:$0xff] %v10670_v9  ;;  %v10674_v49 = vmul.f32 %v10504_v60, %v10427_v32  ;;  %v10682_v61 = vmul.f32 %v10504_v60, %v10424_v37 }
 0x817   : > { %12322 = vst [vmem:[#allocation59_spill] sm:$0xff] %v10678_v21  ;;  %12325 = vst [vmem:[#allocation13_spill] sm:$0xff] %v10691_v43  ;;  %v10699_v21 = vmul.f32 %v10504_v60, %v10432_v57  ;;  %v10707_v9 = vmul.f32 %v10524_v45, %v10421_v58  ;;  %v10711_v37 = vmul.f32 %v10524_v45, %v10432_v57 }
 0x818   : > { %12321 = vst [vmem:[#allocation44_spill] sm:$0xff] %v10674_v49  ;;  %12323 = vst [vmem:[#allocation52_spill] sm:$0xff] %v10682_v61  ;;  %v10703_v61 = vmul.f32 %v10566_v12, %v10421_v58  ;;  %v5106_v43 = vsel %vm12331_vm10, %v5049_v29, %v5043_v20  ;;  %v5074_v17 = vsel %vm12340_vm3, %v5043_v20, %v5045_v27  ;;  %vm12342_vm10 = vnez %v12027_v14 }
 0x819   : > { %12326 = vst [vmem:[#allocation54_spill] sm:$0xff] %v10695_v38  ;;  %v5047_v49 = vpop.permute.xlu0 %5046  ;;  %12327 = vst [vmem:[#allocation36_spill] sm:$0xff] %v10699_v21  ;;  %v10720_v21 = vmul.f32 %v10508_v3, %v10450_v46 }
 0x81a   : > { %12328 = vst [vmem:[#allocation61_spill] sm:$0xff] %v10703_v61  ;;  %12329 = vst [vmem:[#allocation50_spill] sm:$0xff] %v10707_v9  ;;  %v5075_v38 = vsel %vm12332_vm4, %v5045_v27, %v5047_v49  ;;  %v5076_v0 = vsel %vm12333_vm1, %v5047_v49, %v5049_v29  ;;  %v10716_v60 = vpop.permute.xlu1 %4976  ;;  %v5427_v61 = vmul.f32 %v10456_v4, %v5027_v24  ;;  %vm12344_vm4 = vnez %v12029_v5 }
 0x81b   : > { %12330 = vst [vmem:[#allocation46_spill] sm:$0xff] %v10711_v37  ;;  %12334 = vst [vmem:[#allocation69_spill] sm:$0xff] %v10720_v21  ;;  %v5111_v58 = vsel %vm6981_vm9, %v5075_v38, 0.0  ;;  %v10727_v45 = vsel %vm6943_vm8, %v5076_v0, 0.0  ;;  %v10731_v9 = vmul.f32 %v10508_v3, %v10435_v35  ;;  %v5199_v29 = vadd.f32 %v5183_v19, %v5147_v39 }
 0x81c   : > { %v5235_v49 = vmul.f32 %v10476_v1, %v5111_v58  ;;  %v10736_v37 = vmul.f32 %v10568_v30, %v10435_v35  ;;  %v10740_v24 = vmul.f32 %v10508_v3, %v10445_v16  ;;  %v10744_v38 = vsel %vm6923_vm5, %v5106_v43, 0.0  ;;  %vm12345_vm1 = vmmov %vm12338_vm0 }
 0x81d   : > { %12335 = vst [vmem:[#allocation58_spill] sm:$0xff] %v10731_v9  ;;  %v5375_v0 = vmul.f32 %v10558_v44, %v5111_v58  ;;  %v5376_v9 = vmul.f32 %v10558_v44, %v10727_v45  ;;  %v4947_v19 = vpop.permute.xlu0 %4946  ;;  %v5325_v39 = vmul.f32 %v10554_v59, %v10396_v23  ;;  %v5515_v35 = vmul.f32 %v10484_v10, %v5111_v58 }
 0x81e   : > { %12336 = vst [vmem:[#allocation57_spill] sm:$0xff] %v10736_v37  ;;  %12337 = vst [vmem:[#allocation24_spill] sm:$0xff] %v10740_v24  ;;  %v5251_v21 = vadd.f32 %v5235_v49, %v5199_v29  ;;  %v4996_v37 = vsel %vm12338_vm0, %v4975_v63, %v4947_v19  ;;  %v5022_v24 = vsel %vm12339_vm2, %v4947_v19, %v10578_v47  ;;  %v10755_v16 = vpop.permute.xlu1 %4980  ;;  %v5110_v19 = vsel %vm12344_vm4, %v5074_v17, 0.0 }
 0x81f   : > { %v5479_v43 = vadd.f32 %v10593_v55, %v5427_v61  ;;  %v5026_v13 = vsel %vm12341_vm11, %v5022_v24, 0.0  ;;  %v5029_v23 = vsel %vm12342_vm10, %v4996_v37, 0.0  ;;  %v5237_v55 = vmul.f32 %v10476_v1, %v10744_v38  ;;  %vm12346_vm2 = vmmov %vm12340_vm3 }
 0x820   : > { %v5146_v59 = vmul.f32 %v10393_v53, %v5026_v13  ;;  %v5149_v58 = vmul.f32 %v10393_v53, %v5029_v23  ;;  %v5286_v63 = vmul.f32 %v10550_v26, %v5026_v13  ;;  %v5289_v47 = vmul.f32 %v10550_v26, %v5029_v23  ;;  %5576 = vrot.lane.b32.xlu1 %v5251_v21, %s11796_s20  ;;  %vm12347_vm3 = vmmov %vm12338_vm0 }
 0x821   : > { %v5429_v27 = vmul.f32 %v10456_v4, %v5029_v23  ;;  %v10771_v20 = vpop.permute.xlu0 %5050  ;;  %v10774_v61 = vadd.f32 %v5375_v0, %v10624_v15  ;;  %v10776_v37 = vadd.f32 %v5376_v9, %v5340_v48  ;;  %v5531_v29 = vadd.f32 %v5515_v35, %v5479_v43 }
 0x822   : > { %v5201_v49 = vadd.f32 %v10610_v42, %v5149_v58  ;;  %v10780_v24 = vadd.f32 %v10618_v28, %v5286_v63  ;;  %v4949_v26 = vpop.permute.xlu1 %4948  ;;  %v10782_v21 = vadd.f32 %v5325_v39, %v5289_v47  ;;  %v10791_v48 = vmul.f32 %v10508_v3, %v10442_v22 }
 0x823   : > { %12343 = vst [vmem:[#allocation19_spill] sm:$0xff] %v10776_v37  ;;  %v5481_v23 = vadd.f32 %v10630_v40, %v5429_v27  ;;  %v5023_v15 = vsel %vm12345_vm1, %v4949_v26, %v10716_v60  ;;  %v5517_v35 = vmul.f32 %v10484_v10, %v10744_v38  ;;  %v5198_v42 = vadd.f32 %v10588_v54, %v5146_v59  ;;  %vm12348_vm1 = vmmov %vm12338_vm0 }
 0x824   : > { %v5030_v28 = vsel %vm12341_vm11, %v5023_v15, 0.0  ;;  %5664 = vrot.lane.b32.xlu1 %v5531_v29, %s11821_s15  ;;  %v5253_v17 = vadd.f32 %v5237_v55, %v5201_v49  ;;  %v5148_v40 = vmul.f32 %v10393_v53, %v10614_v41  ;;  %v5428_v9 = vmul.f32 %v10456_v4, %v10614_v41 }
 0x825   : > { %v5290_v3 = vmul.f32 %v10552_v31, %v5030_v28  ;;  %v5055_v0 = vpop.permute.xlu0 %5054  ;;  %v10806_v39 = vmul.f32 %v10568_v30, %v10442_v22  ;;  %v5234_v54 = vmul.f32 %v10476_v1, %v5110_v19  ;;  %v5426_v43 = vmul.f32 %v10456_v4, %v5026_v13 }
 0x826   : > { %v4999_v59 = vsel %vm12338_vm0, %v10755_v16, %v4949_v26  ;;  %v5053_v58 = vpop.permute.xlu1 %5052  ;;  %5550 = vrot.lane.b32.xlu0 %v5253_v17, %s11796_s20  ;;  %v5533_v53 = vadd.f32 %v5517_v35, %v5481_v23  ;;  %v5236_v41 = vmul.f32 %v10476_v1, %v10727_v45  ;;  %v10820_v47 = vmul.f32 %v10556_v62, %v10414_v52  ;;  %vm12349_vm0 = vmmov %vm12346_vm2 }
 0x827   : > { %v10816_v63 = vadd.f32 %v10646_v50, %v5290_v3  ;;  %v10824_v13 = vmul.f32 %v10556_v62, %v10409_v25  ;;  %v5250_v4 = vadd.f32 %v5234_v54, %v5198_v42  ;;  %v10829_v55 = vmul.f32 %v10566_v12, %v10427_v32 }
 0x828   : > { %5668 = vrot.lane.b32.xlu1 %v5533_v53, %s11821_s15  ;;  %v10833_v1 = vmul.f32 %v10566_v12, %v10432_v57  ;;  %v10837_v50 = vmul.f32 %v10568_v30, %v10450_v46  ;;  %v5200_v52 = vadd.f32 %v10597_v51, %v5148_v40  ;;  %v5480_v25 = vadd.f32 %v10605_v11, %v5428_v9 }
 0x829   : > { %v5033_v62 = vsel %vm12342_vm10, %v4999_v59, 0.0  ;;  %v5077_v27 = vsel %vm12346_vm2, %v10771_v20, %v5053_v58  ;;  %v4979_v32 = vpop.permute.xlu0 %4978  ;;  %v5374_v29 = vmul.f32 %v10558_v44, %v5110_v19  ;;  %v5516_v57 = vmul.f32 %v10484_v10, %v10727_v45  ;;  %vm12351_vm2 = vmmov %vm12349_vm0 }
 0x82a   : > { %v5478_v12 = vadd.f32 %v10622_v2, %v5426_v43  ;;  %v4997_v49 = vsel %vm12347_vm3, %v10716_v60, %v4979_v32  ;;  %v5057_v51 = vpop.permute.xlu1 %5056  ;;  %5574 = vrot.lane.b32.xlu0 %v5250_v4, %s11796_s20  ;;  %v5514_v11 = vmul.f32 %v10484_v10, %v5110_v19  ;;  %v5377_v26 = vmul.f32 %v10558_v44, %v10744_v38  ;;  %vm12353_vm3 = vmmov %vm12349_vm0  ;;  %v12395_v19 = vld [vmem:[#allocation11_spill] sm:$0xff] }
 0x82b   : > { %v5252_v23 = vadd.f32 %v5236_v41, %v5200_v52  ;;  %v4998_v15 = vsel %vm12348_vm1, %v4979_v32, %v10755_v16  ;;  %v5150_v35 = vmul.f32 %v10403_v36, %v5030_v28  ;;  %v5153_v45 = vmul.f32 %v10403_v36, %v5033_v62  ;;  %v12354_v41 = vld [vmem:[#allocation10_spill] sm:$0xff] }
 0x82c   : > { %v5114_v2 = vsel %vm12344_vm4, %v5077_v27, 0.0  ;;  %v5032_v60 = vsel %vm6933_vm7, %v4998_v15, 0.0  ;;  %v5430_v42 = vmul.f32 %v10458_v7, %v5030_v28  ;;  %v5078_v10 = vsel %vm12349_vm0, %v5053_v58, %v5055_v0  ;;  %v12352_v28 = vld [vmem:[#allocation20_spill] sm:$0xff]  ;;  %vm12358_vm0 = vmmov %vm12348_vm1 }
 0x82d   : > { %v5031_v44 = vsel %vm6929_vm6, %v4997_v49, 0.0  ;;  %v5292_v38 = vmul.f32 %v10552_v31, %v5032_v60  ;;  %v10868_v16 = vpop.permute.xlu0 %4982  ;;  %v5532_v17 = vadd.f32 %v5516_v57, %v5480_v25  ;;  %v5293_v40 = vmul.f32 %v10552_v31, %v5033_v62  ;;  %v12355_v27 = vld [vmem:[#allocation56_spill] sm:$0xff]  ;;  %v12356_v49 = vld [vmem:[#allocation55_spill] sm:$0xff] }
 0x82e   : > { %v5107_v9 = vsel %vm12351_vm2, %v5057_v51, %v10771_v20  ;;  %v4985_v3 = vpop.permute.xlu1 %4984  ;;  %5578 = vrot.lane.b32.xlu0 %v5252_v23, %s11796_s20  ;;  %v5530_v54 = vadd.f32 %v5514_v11, %v5478_v12  ;;  %v5238_v43 = vmul.f32 %v12352_v28, %v5114_v2  ;;  %v5079_v58 = vsel %vm12353_vm3, %v5055_v0, %v5057_v51  ;;  %vm12367_vm3 = vmmov %vm12351_vm2 }
 0x82f   : > { %v5344_v59 = vadd.f32 %v10662_v8, %v5292_v38  ;;  %v5117_v53 = vsel %vm6923_vm5, %v5107_v9, 0.0  ;;  %v5205_v4 = vadd.f32 %v12354_v41, %v5153_v45  ;;  %v5115_v52 = vsel %vm6981_vm9, %v5078_v10, 0.0  ;;  %v12360_v41 = vld [vmem:[#allocation78_spill] sm:$0xff] }
 0x830   : > { %v5151_v20 = vmul.f32 %v10403_v36, %v5031_v44  ;;  %v5241_v25 = vmul.f32 %v12352_v28, %v5117_v53  ;;  %v5202_v32 = vadd.f32 %v12355_v27, %v5150_v35  ;;  %v5433_v57 = vmul.f32 %v10458_v7, %v5033_v62 }
 0x831   : > { %v5482_v8 = vadd.f32 %v10650_v18, %v5430_v42  ;;  %v5152_v0 = vmul.f32 %v10403_v36, %v5032_v60  ;;  %v10888_v12 = vpop.permute.xlu0 %4986  ;;  %v5378_v51 = vmul.f32 %v12356_v49, %v5114_v2  ;;  %v5116_v23 = vsel %vm6943_vm8, %v5079_v58, 0.0  ;;  %v12359_v42 = vld [vmem:[#allocation22_spill] sm:$0xff] }
 0x832   : > { %v5257_v15 = vadd.f32 %v5241_v25, %v5205_v4  ;;  %v5001_v45 = vsel %vm12348_vm1, %v4985_v3, %v10888_v12  ;;  %v10895_v10 = vpop.permute.xlu1 %5060  ;;  %5662 = vrot.lane.b32.xlu0 %v5530_v54, %s11821_s15  ;;  %v5239_v62 = vmul.f32 %v12352_v28, %v5115_v52  ;;  %v5254_v18 = vadd.f32 %v5238_v43, %v5202_v32  ;;  %vm12368_vm1 = vmmov %vm12351_vm2 }
 0x833   : > { %v5291_v36 = vmul.f32 %v10552_v31, %v5031_v44  ;;  %v5000_v35 = vsel %vm12358_vm0, %v10868_v16, %v4985_v3  ;;  %v5203_v38 = vadd.f32 %v12359_v42, %v5151_v20  ;;  %v5432_v9 = vmul.f32 %v10458_v7, %v5032_v60  ;;  %v12361_v3 = vld [vmem:[#allocation16_spill] sm:$0xff] }
 0x834   : > { %5552 = vrot.lane.b32.xlu1 %v5257_v15, %s11796_s20  ;;  %v10907_v58 = vsel %vm6933_vm7, %v5001_v45, 0.0  ;;  %v10910_v54 = vadd.f32 %v5374_v29, %v10780_v24  ;;  %v5204_v43 = vadd.f32 %v12360_v41, %v5152_v0  ;;  %v5431_v31 = vmul.f32 %v10458_v7, %v5031_v44  ;;  %v12362_v29 = vld [vmem:[#allocation84_spill] sm:$0xff]  ;;  %v12363_v0 = vld [vmem:[#allocation30_spill] sm:$0xff]  ;;  %v12365_v41 = vld [vmem:[#allocation45_spill] sm:$0xff] }
 0x835   : > { %v5380_v4 = vmul.f32 %v12356_v49, %v5116_v23  ;;  %v5296_v20 = vmul.f32 %v12361_v3, %v10907_v58  ;;  %v5059_v25 = vpop.permute.xlu0 %5058  ;;  %v5240_v60 = vmul.f32 %v12352_v28, %v5116_v23  ;;  %v10920_v27 = vsel %vm6929_vm6, %v5000_v35, 0.0  ;;  %v12364_v28 = vld [vmem:[#allocation63_spill] sm:$0xff] }
 0x836   : > { %v5065_v32 = vpop.permute.xlu1 %5064  ;;  %5666 = vrot.lane.b32.xlu0 %v5532_v17, %s11821_s15  ;;  %v10924_v24 = vadd.f32 %v5377_v26, %v10782_v21  ;;  %v10927_v7 = vadd.f32 %v5378_v51, %v10816_v63  ;;  %v5485_v44 = vadd.f32 %v12362_v29, %v5433_v57  ;;  %v5518_v15 = vmul.f32 %v12363_v0, %v5114_v2 }
 0x837   : > { %v5381_v45 = vmul.f32 %v12356_v49, %v5117_v53  ;;  %v5348_v42 = vadd.f32 %v12364_v28, %v5296_v20  ;;  %v5379_v35 = vmul.f32 %v12356_v49, %v5115_v52  ;;  %v5484_v37 = vadd.f32 %v12365_v41, %v5432_v9  ;;  %v12366_v20 = vld [vmem:[#allocation71_spill] sm:$0xff] }
 0x838   : > { %v5520_v17 = vmul.f32 %v12363_v0, %v5116_v23  ;;  %5580 = vrot.lane.b32.xlu1 %v5254_v18, %s11796_s20  ;;  %v5255_v21 = vadd.f32 %v5239_v62, %v5203_v38  ;;  %v5295_v63 = vmul.f32 %v12361_v3, %v10920_v27  ;;  %v5345_v57 = vadd.f32 %v10820_v47, %v5293_v40 }
 0x839   : > { %v5063_v26 = vpop.permute.xlu0 %5062  ;;  %v5343_v2 = vadd.f32 %v10824_v13, %v5291_v36  ;;  %v10941_v51 = vadd.f32 %v5380_v4, %v5344_v59  ;;  %v5483_v29 = vadd.f32 %v12366_v20, %v5431_v31  ;;  %v5256_v49 = vadd.f32 %v5240_v60, %v5204_v43  ;;  %v12369_v4 = vld [vmem:[#allocation51_spill] sm:$0xff] }
 0x83a   : > { %v5108_v9 = vsel %vm12351_vm2, %v5065_v32, %v5059_v25  ;;  %v5081_v23 = vsel %vm12367_vm3, %v10895_v10, %v5063_v26  ;;  %v10947_v18 = vpop.permute.xlu1 %4988  ;;  %5582 = vrot.lane.b32.xlu0 %v5255_v21, %s11796_s20  ;;  %v5082_v62 = vsel %vm12368_vm1, %v5063_v26, %v5065_v32  ;;  %v10953_v13 = vadd.f32 %v5381_v45, %v5345_v57  ;;  %vm12370_vm2 = vmmov %vm12358_vm0  ;;  %v12373_v57 = vld [vmem:[#allocation29_spill] sm:$0xff] }
 0x83b   : > { %v5119_v47 = vsel %vm6981_vm9, %v5081_v23, 0.0  ;;  %v10955_v40 = vadd.f32 %v5379_v35, %v5343_v2  ;;  %v5519_v59 = vmul.f32 %v12363_v0, %v5115_v52  ;;  %v5534_v36 = vadd.f32 %v5518_v15, %v5482_v8  ;;  %vm12372_vm3 = vmmov %vm12368_vm1  ;;  %v12375_v23 = vld [vmem:[#allocation61_spill] sm:$0xff] }
 0x83c   : > { %v5521_v38 = vmul.f32 %v12363_v0, %v5117_v53  ;;  %5584 = vrot.lane.b32.xlu1 %v5256_v49, %s11796_s20  ;;  %v10962_v43 = vsel %vm6943_vm8, %v5082_v62, 0.0  ;;  %v5536_v31 = vadd.f32 %v5520_v17, %v5484_v37  ;;  %v5383_v60 = vmul.f32 %v12369_v4, %v5119_v47  ;;  %v12371_v37 = vld [vmem:[#allocation81_spill] sm:$0xff]  ;;  %v12374_v49 = vld [vmem:[#allocation36_spill] sm:$0xff]  ;;  %vm12378_vm1 = vmmov %vm12358_vm0 }
 0x83d   : > { %v5384_v32 = vmul.f32 %v12369_v4, %v10962_v43  ;;  %v4951_v45 = vpop.permute.xlu0 %4950  ;;  %v5347_v28 = vadd.f32 %v10829_v55, %v5295_v63  ;;  %v5121_v52 = vsel %vm6923_vm5, %v5108_v9, 0.0  ;;  %v5535_v8 = vadd.f32 %v5519_v59, %v5483_v29 }
 0x83e   : > { %v5002_v53 = vsel %vm12358_vm0, %v10888_v12, %v4951_v45  ;;  %v5024_v0 = vsel %vm12370_vm2, %v4951_v45, %v10868_v16  ;;  %v10974_v15 = vpop.permute.xlu1 %4992  ;;  %5670 = vrot.lane.b32.xlu0 %v5534_v36, %s11821_s15  ;;  %v5155_v35 = vmul.f32 %v12371_v37, %v10920_v27  ;;  %v5080_v55 = vsel %vm12372_vm3, %v5059_v25, %v10895_v10  ;;  %vm12391_vm2 = vmmov %vm12358_vm0 }
 0x83f   : > { %v5034_v41 = vsel %vm12341_vm11, %v5024_v0, 0.0  ;;  %v5037_v17 = vsel %vm12342_vm10, %v5002_v53, 0.0  ;;  %v5537_v26 = vadd.f32 %v5521_v38, %v5485_v44  ;;  %v5245_v2 = vmul.f32 %v12373_v57, %v5121_v52  ;;  %v12376_v44 = vld [vmem:[#allocation44_spill] sm:$0xff]  ;;  %v12377_v38 = vld [vmem:[#allocation37_spill] sm:$0xff] }
 0x840   : > { %5672 = vrot.lane.b32.xlu1 %v5535_v8, %s11821_s15  ;;  %v5154_v16 = vmul.f32 %v12371_v37, %v5034_v41  ;;  %v5157_v12 = vmul.f32 %v12371_v37, %v5037_v17  ;;  %v5294_v21 = vmul.f32 %v12361_v3, %v5034_v41  ;;  %v5297_v63 = vmul.f32 %v12361_v3, %v5037_v17  ;;  %v12380_v0 = vld [vmem:[#allocation17_spill] sm:$0xff] }
 0x841   : > { %v10991_v10 = vpop.permute.xlu0 %5066  ;;  %v10993_v25 = vadd.f32 %v5383_v60, %v5347_v28  ;;  %v10995_v20 = vadd.f32 %v5384_v32, %v5348_v42  ;;  %v5243_v29 = vmul.f32 %v12373_v57, %v5119_v47  ;;  %v5207_v36 = vadd.f32 %v12376_v44, %v5155_v35  ;;  %v12379_v28 = vld [vmem:[#allocation54_spill] sm:$0xff]  ;;  %v12385_v44 = vld [vmem:[#allocation52_spill] sm:$0xff] }
 0x842   : > { %v5209_v9 = vadd.f32 %v12374_v49, %v5157_v12  ;;  %v11000_v62 = vadd.f32 %v12375_v23, %v5294_v21  ;;  %v4953_v59 = vpop.permute.xlu1 %4952  ;;  %5674 = vrot.lane.b32.xlu0 %v5536_v31, %s11821_s15  ;;  %v11004_v3 = vadd.f32 %v10833_v1, %v5297_v63  ;;  %v5435_v60 = vmul.f32 %v12377_v38, %v10920_v27  ;;  %v12381_v12 = vld [vmem:[#allocation66_spill] sm:$0xff] }
 0x843   : > { %v5118_v42 = vsel %vm12344_vm4, %v5080_v55, 0.0  ;;  %v5025_v32 = vsel %vm12378_vm1, %v4953_v59, %v10947_v18  ;;  %v5156_v45 = vmul.f32 %v12371_v37, %v10907_v58  ;;  %v5206_v8 = vadd.f32 %v12379_v28, %v5154_v16  ;;  %vm12392_vm1 = vmmov %vm12372_vm3 }
 0x844   : > { %5676 = vrot.lane.b32.xlu1 %v5537_v26, %s11821_s15  ;;  %v11019_v1 = vsel %vm12341_vm11, %v5025_v32, 0.0  ;;  %v5261_v31 = vadd.f32 %v5245_v2, %v5209_v9  ;;  %v5437_v27 = vmul.f32 %v12377_v38, %v5037_v17  ;;  %v5005_v53 = vsel %vm12358_vm0, %v10974_v15, %v4953_v59  ;;  %v12383_v17 = vld [vmem:[#allocation59_spill] sm:$0xff]  ;;  %vm12387_vm11 = vmmov %vm12372_vm3 }
 0x845   : > { %v5298_v35 = vmul.f32 %v12380_v0, %v11019_v1  ;;  %v5071_v55 = vpop.permute.xlu0 %5070  ;;  %v11028_v37 = vmul.f32 %v10568_v30, %v12381_v12  ;;  %v5242_v16 = vmul.f32 %v12373_v57, %v5118_v42  ;;  %v5259_v21 = vadd.f32 %v5243_v29, %v5207_v36  ;;  %v12384_v30 = vld [vmem:[#allocation57_spill] sm:$0xff] }
 0x846   : > { %v5523_v63 = vmul.f32 %v12382_v34, %v5119_v47  ;;  %v5434_v26 = vmul.f32 %v12377_v38, %v5034_v41  ;;  %v5069_v2 = vpop.permute.xlu1 %5068  ;;  %5554 = vrot.lane.b32.xlu0 %v5261_v31, %s11796_s20  ;;  %v5487_v49 = vadd.f32 %v12383_v17, %v5435_v60  ;;  %v5436_v9 = vmul.f32 %v12377_v38, %v10907_v58  ;;  %v12386_v38 = vld [vmem:[#allocation46_spill] sm:$0xff] }
 0x847   : > { %v5244_v23 = vmul.f32 %v12373_v57, %v10962_v43  ;;  %v5350_v59 = vadd.f32 %v12384_v30, %v5298_v35  ;;  %v5208_v32 = vadd.f32 %v12385_v44, %v5156_v45  ;;  %v5382_v29 = vmul.f32 %v12369_v4, %v5118_v42  ;;  %v12388_v35 = vld [vmem:[#allocation50_spill] sm:$0xff]  ;;  %v12394_v30 = vld [vmem:[#allocation69_spill] sm:$0xff] }
 0x848   : > { %v11044_v47 = vsel %vm12342_vm10, %v5005_v53, 0.0  ;;  %5588 = vrot.lane.b32.xlu1 %v5259_v21, %s11796_s20  ;;  %v5258_v41 = vadd.f32 %v5242_v16, %v5206_v8  ;;  %v5522_v36 = vmul.f32 %v12382_v34, %v5118_v42  ;;  %v5385_v58 = vmul.f32 %v12369_v4, %v5121_v52  ;;  %vm12389_vm10 = vmmov %vm12358_vm0  ;;  %v12390_v8 = vld [vmem:[#allocation73_spill] sm:$0xff] }
 0x849   : > { %v5489_v60 = vadd.f32 %v12386_v38, %v5437_v27  ;;  %v5083_v57 = vsel %vm12387_vm11, %v10991_v10, %v5069_v2  ;;  %v4991_v28 = vpop.permute.xlu0 %4990  ;;  %v5525_v45 = vmul.f32 %v12382_v34, %v5121_v52  ;;  %v5539_v31 = vadd.f32 %v5523_v63, %v5487_v49  ;;  %vm12393_vm0 = vmmov %vm12392_vm1 }
 0x84a   : > { %v5486_v14 = vadd.f32 %v12388_v35, %v5434_v26  ;;  %v5003_v53 = vsel %vm12389_vm10, %v10947_v18, %v4991_v28  ;;  %v5073_v21 = vpop.permute.xlu1 %5072  ;;  %5586 = vrot.lane.b32.xlu0 %v5258_v41, %s11796_s20  ;;  %v5260_v42 = vadd.f32 %v5244_v23, %v5208_v32  ;;  %v5524_v4 = vmul.f32 %v12382_v34, %v10962_v43 }
 0x84b   : > { %v5161_v27 = vmul.f32 %v12390_v8, %v11044_v47  ;;  %v5004_v16 = vsel %vm12391_vm2, %v4991_v28, %v10974_v15  ;;  %v5158_v52 = vmul.f32 %v12390_v8, %v11019_v1  ;;  %v5301_v63 = vmul.f32 %v12380_v0, %v11044_v47 }
 0x84c   : > { %v5122_v18 = vsel %vm12344_vm4, %v5083_v57, 0.0  ;;  %5680 = vrot.lane.b32.xlu1 %v5539_v31, %s11821_s15  ;;  %v5040_v43 = vsel %vm6933_vm7, %v5004_v16, 0.0  ;;  %v5039_v34 = vsel %vm6929_vm6, %v5003_v53, 0.0  ;;  %v5085_v15 = vsel %vm12372_vm3, %v5071_v55, %v5073_v21 }
 0x84d   : > { %v5300_v26 = vmul.f32 %v12380_v0, %v5040_v43  ;;  %v5541_v17 = vadd.f32 %v5525_v45, %v5489_v60  ;;  %v5084_v49 = vsel %vm12392_vm1, %v5069_v2, %v5071_v55  ;;  %v5109_v23 = vsel %vm12393_vm0, %v5073_v21, %v10991_v10  ;;  %v12396_v10 = vld [vmem:[#allocation8_spill] sm:$0xff] }
 0x84e   : > { %v5124_v5 = vsel %vm6943_vm8, %v5085_v15, 0.0  ;;  %5590 = vrot.lane.b32.xlu0 %v5260_v42, %s11796_s20  ;;  %v5538_v33 = vadd.f32 %v5522_v36, %v5486_v14  ;;  %v5213_v44 = vadd.f32 %v12394_v30, %v5161_v27  ;;  %v5386_v32 = vmul.f32 %v12395_v19, %v5122_v18  ;;  %v12397_v36 = vld [vmem:[#allocation13_spill] sm:$0xff]  ;;  %v12399_v27 = vld [vmem:[#allocation24_spill] sm:$0xff]  ;;  %v12402_v15 = vld [vmem:[#allocation83_spill] sm:$0xff] }
 0x84f   : > { %v5352_v41 = vadd.f32 %v10806_v39, %v5300_v26  ;;  %v5125_v38 = vsel %vm6923_vm5, %v5109_v23, 0.0  ;;  %v5159_v55 = vmul.f32 %v12390_v8, %v5039_v34  ;;  %v5299_v2 = vmul.f32 %v12380_v0, %v5039_v34 }
 0x850   : > { %v5249_v60 = vmul.f32 %v12396_v10, %v5125_v38  ;;  %v5388_v11 = vmul.f32 %v12395_v19, %v5124_v5  ;;  %5684 = vrot.lane.b32.xlu1 %v5541_v17, %s11821_s15  ;;  %v5488_v57 = vadd.f32 %v12397_v36, %v5436_v9  ;;  %v5123_v28 = vsel %vm6981_vm9, %v5084_v49, 0.0  ;;  %v12398_v9 = vld [vmem:[#allocation58_spill] sm:$0xff]  ;;  %v12403_v49 = vld [vmem:[#allocation23_spill] sm:$0xff] }
 0x851   : > { %v5246_v39 = vmul.f32 %v12396_v10, %v5122_v18  ;;  %v5389_v6 = vmul.f32 %v12395_v19, %v5125_v38  ;;  %v5160_v45 = vmul.f32 %v12390_v8, %v5040_v43  ;;  %v11100_v0 = vadd.f32 %v5382_v29, %v11000_v62 }
 0x852   : > { %v5265_v31 = vadd.f32 %v5249_v60, %v5213_v44  ;;  %5678 = vrot.lane.b32.xlu0 %v5538_v33, %s11821_s15  ;;  %v11103_v35 = vadd.f32 %v5385_v58, %v11004_v3  ;;  %v5540_v14 = vadd.f32 %v5524_v4, %v5488_v57  ;;  %v5210_v53 = vadd.f32 %v12398_v9, %v5158_v52  ;;  %v12400_v3 = vld [vmem:[#allocation18_spill] sm:$0xff] }
 0x853   : > { %v11106_v56 = vadd.f32 %v5386_v32, %v5350_v59  ;;  %v5353_v21 = vadd.f32 %v10837_v50, %v5301_v63  ;;  %v5387_v42 = vmul.f32 %v12395_v19, %v5123_v28  ;;  %v5211_v8 = vadd.f32 %v12399_v27, %v5159_v55 }
 0x854   : > { %5556 = vrot.lane.b32.xlu1 %v5265_v31, %s11796_s20  ;;  %v5351_v16 = vadd.f32 %v11028_v37, %v5299_v2  ;;  %v11113_v62 = vadd.f32 %v5388_v11, %v5352_v41  ;;  %v5438_v29 = vmul.f32 %v12400_v3, %v11019_v1  ;;  %v5247_v58 = vmul.f32 %v12396_v10, %v5123_v28  ;;  %v12401_v37 = vld [vmem:[#allocation60_spill] sm:$0xff] }
 0x855   : > { %v5262_v4 = vadd.f32 %v5246_v39, %v5210_v53  ;;  %v11118_v59 = vadd.f32 %v5389_v6, %v5353_v21  ;;  %v5212_v50 = vadd.f32 %v10791_v48, %v5160_v45  ;;  %v5439_v52 = vmul.f32 %v12400_v3, %v5039_v34 }
 0x856   : > { %v5248_v63 = vmul.f32 %v12396_v10, %v5124_v5  ;;  %5682 = vrot.lane.b32.xlu0 %v5540_v14, %s11821_s15  ;;  %v11124_v26 = vadd.f32 %v5387_v42, %v5351_v16  ;;  %v5474_v17 = vmul.f32 %v12402_v15, %v12401_v37  ;;  %v5526_v1 = vmul.f32 %v12403_v49, %v5122_v18 }
 0x857   : > { %v5475_v23 = vmul.f32 %v12402_v15, %v12381_v12  ;;  %v5440_v33 = vmul.f32 %v12400_v3, %v5040_v43  ;;  %v5263_v48 = vadd.f32 %v5247_v58, %v5211_v8  ;;  %v5476_v30 = vmul.f32 %v12402_v15, %v10442_v22 }
 0x858   : > { %5592 = vrot.lane.b32.xlu1 %v5262_v4, %s11796_s20  ;;  %v5490_v34 = vadd.f32 %v5474_v17, %v5438_v29  ;;  %v5264_v19 = vadd.f32 %v5248_v63, %v5212_v50  ;;  %v5441_v32 = vmul.f32 %v12400_v3, %v11044_v47  ;;  %v5527_v18 = vmul.f32 %v12403_v49, %v5123_v28 }
 0x859   : > { %v5491_v44 = vadd.f32 %v5475_v23, %v5439_v52  ;;  %v5492_v12 = vadd.f32 %v5476_v30, %v5440_v33  ;;  %v5528_v43 = vmul.f32 %v12403_v49, %v5124_v5  ;;  %v5477_v55 = vmul.f32 %v12402_v15, %v10450_v46 }
 0x85a   : > { %5594 = vrot.lane.b32.xlu0 %v5263_v48, %s11796_s20  ;;  %v5542_v41 = vadd.f32 %v5526_v1, %v5490_v34  ;;  %v5529_v22 = vmul.f32 %v12403_v49, %v5125_v38  ;;  %v11150_v11 = vpop.permute.xlu0 %5794  ;;  %vm12404_vm5 = vcmask 130048   ;;  %vm12408_vm8 = vcmask 916480  }
 0x85b   : > { %v5543_v2 = vadd.f32 %v5527_v18, %v5491_v44  ;;  %v5493_v10 = vadd.f32 %v5477_v55, %v5441_v32  ;;  %v5544_v60 = vadd.f32 %v5528_v43, %v5492_v12  ;;  %v11148_v5 = vpop.permute.xlu1 %5799  ;;  %vm12406_vm6 = vmmov %vm12404_vm5  ;;  %v12420_v43 = vld [vmem:[#allocation19_spill] sm:$0xff]  ;;  %v12442_v1 = vmov 0  }
 0x85c   : > { %5596 = vrot.lane.b32.xlu1 %v5264_v19, %s11796_s20  ;;  %vm12407_vm7 = vmmov %vm12404_vm5  ;;  %s6279_s20 = sshll.u32 %s6344_s3, 4  ;;  %s6280_s20 = int_to_ptr.vmem [resolvable:$false] %s6279_s20 }
 0x85d   : > { %v5545_v47 = vadd.f32 %v5529_v22, %v5493_v10  ;;  %vm12409_vm9 = vmmov %vm12408_vm8  ;;  %v12422_v10 = vld [vmem:[#allocation72_spill] sm:$0xff]  ;;  %p6282_p2 = scmp.lt.s32.totalorder %s11298_s19, %s6280_s20 }
 0x85e   : > { %5686 = vrot.lane.b32.xlu0 %v5542_v41, %s11821_s15  ;;  %vm12410_vm4 = vmmov %vm12404_vm5 }
 0x85f   : > { %vm12411_vm11 = vmmov %vm12408_vm8 }
 0x860   : > { %5688 = vrot.lane.b32.xlu1 %v5543_v2, %s11821_s15  ;;  %vm12412_vm10 = vmmov %vm12410_vm4 }
 0x861   : > { %vm12413_vm2 = vmmov %vm12410_vm4 }
 0x862   : > { %5690 = vrot.lane.b32.xlu0 %v5544_v60, %s11821_s15  ;;  %vm12417_vm3 = vmmov %vm12413_vm2 }
 0x863   : > { %vm12418_vm1 = vmmov %vm12408_vm8 }
 0x864   : > { %5692 = vrot.lane.b32.xlu1 %v5545_v47, %s11821_s15  ;;  %vm12419_vm0 = vmmov %vm12418_vm1  ;;  %s6281_s15 = scalar_lea.vmem %s6280_s20, 4096 }
 0x865   : > { %p6283_p3 = scmp.lt.s32.totalorder %s6281_s15, %s6275_s2 }
 0x867   : > { %p6284_p4 = por %p6283_p3, %p6282_p2 }
 0x869   : > { %p6285_p5 = pnand %p6284_p4, %p6278_p1 }
 0x892   : > { %v5577_v36 = vpop.permute.xlu1 %5576 }
 0x896   : > { %v5665_v57 = vpop.permute.xlu1 %5664 }
 0x898   : > { %v5551_v46 = vpop.permute.xlu0 %5550 }
 0x89a   : > { %v5669_v39 = vpop.permute.xlu1 %5668 }
 0x89c   : > { %v5575_v38 = vpop.permute.xlu0 %5574 }
 0x89d   : > { %v5626_v14 = vsel %vm12404_vm5, %v5551_v46, %v5575_v38  ;;  %v5598_v63 = vsel %vm12412_vm10, %v5575_v38, %v5577_v36  ;;  %vm12421_vm5 = vmmov %vm12413_vm2  ;;  %v12424_v38 = vld [vmem:[#allocation15_spill] sm:$0xff] }
 0x89e   : > { %v5630_v21 = vsel %vm7703_vm12, %v5626_v14, 0.0  ;;  %v5747_v32 = vadd.f32 %v5598_v63, %v10774_v61  ;;  %vm12430_vm10 = vmmov %vm12419_vm0 }
 0x89f   : > { %v5746_v58 = vadd.f32 %v5630_v21, %v10910_v54 }
 0x8a0   : > { %v5579_v28 = vpop.permute.xlu0 %5578 }
 0x8a1   : > { %v5599_v8 = vsel %vm12407_vm7, %v5577_v36, %v5579_v28  ;;  %v5600_v4 = vsel %vm12410_vm4, %v5579_v28, %v5551_v46  ;;  %vm12425_vm7 = vmmov %vm12419_vm0 }
 0x8a2   : > { %v5632_v49 = vsel %vm7755_vm14, %v5599_v8, 0.0  ;;  %v5749_v54 = vadd.f32 %v5600_v4, %v10924_v24  ;;  %vm12428_vm4 = vmmov %vm12413_vm2 }
 0x8a3   : > { %v5748_v55 = vadd.f32 %v5632_v49, %v12420_v43 }
 0x8a4   : > { %v5663_v6 = vpop.permute.xlu0 %5662 }
 0x8a5   : > { %v5694_v16 = vsel %vm12408_vm8, %v5663_v6, %v5665_v57  ;;  %v5726_v3 = vsel %vm12409_vm9, %v5669_v39, %v5663_v6  ;;  %vm12426_vm8 = vmmov %vm12419_vm0 }
 0x8a6   : > { %v5553_v45 = vpop.permute.xlu1 %5552  ;;  %v5733_v23 = vsel %vm7772_vm15, %v5726_v3, 0.0  ;;  %v5762_v33 = vadd.f32 %v5746_v58, %v5694_v16  ;;  %vm12427_vm9 = vmmov %vm12413_vm2 }
 0x8a7   : > { %v5765_v24 = vadd.f32 %v5749_v54, %v5733_v23 }
 0x8a8   : > { %v5667_v31 = vpop.permute.xlu0 %5666  ;;  %v5802_v60 = vadd.f32 %v12422_v10, %v5762_v33 }
 0x8a9   : > { %v5695_v52 = vsel %vm12411_vm11, %v5665_v57, %v5667_v31  ;;  %v5696_v18 = vsel %vm12418_vm1, %v5667_v31, %v5669_v39  ;;  %v5805_v58 = vadd.f32 %v12422_v10, %v5765_v24  ;;  %vm12429_vm11 = vmmov %vm12413_vm2 }
 0x8aa   : > { %v5581_v9 = vpop.permute.xlu1 %5580  ;;  %v5731_v30 = vsel %vm7731_vm13, %v5695_v52, 0.0  ;;  %v5764_v46 = vadd.f32 %v5748_v55, %v5696_v18  ;;  %vm12432_vm1 = vmmov %vm12419_vm0 }
 0x8ab   : > { %v5627_v42 = vsel %vm12406_vm6, %v5553_v45, %v5581_v9  ;;  %v5763_v47 = vadd.f32 %v5747_v32, %v5731_v30  ;;  %vm12423_vm6 = vmmov %vm12419_vm0 }
 0x8ac   : > { %v5583_v27 = vpop.permute.xlu0 %5582  ;;  %v5634_v50 = vsel %vm7703_vm12, %v5627_v42, 0.0  ;;  %v5804_v3 = vadd.f32 %v12422_v10, %v5764_v46 }
 0x8ad   : > { %v5750_v48 = vadd.f32 %v5634_v50, %v10927_v7  ;;  %v5601_v44 = vsel %vm12417_vm3, %v5581_v9, %v5583_v27 }
 0x8ae   : > { %v5585_v29 = vpop.permute.xlu1 %5584  ;;  %v5751_v36 = vadd.f32 %v5601_v44, %v10955_v40 }
 0x8af   : > { %v5602_v37 = vsel %vm12413_vm2, %v5583_v27, %v5585_v29  ;;  %v5603_v7 = vsel %vm12421_vm5, %v5585_v29, %v5553_v45  ;;  %vm12431_vm2 = vmmov %vm12419_vm0 }
 0x8b0   : > { %v5671_v15 = vpop.permute.xlu0 %5670  ;;  %v5636_v41 = vsel %vm7755_vm14, %v5602_v37, 0.0  ;;  %v5753_v45 = vadd.f32 %v5603_v7, %v10953_v13  ;;  %vm12433_vm5 = vmmov %vm12417_vm3 }
 0x8b1   : > { %v5752_v57 = vadd.f32 %v5636_v41, %v10941_v51  ;;  %v5803_v51 = vadd.f32 %v12422_v10, %v5763_v47 }
 0x8b2   : > { %v5673_v19 = vpop.permute.xlu1 %5672 }
 0x8b3   : > { %v5697_v12 = vsel %vm12419_vm0, %v5671_v15, %v5673_v19 }
 0x8b4   : > { %v5766_v22 = vadd.f32 %v5750_v48, %v5697_v12  ;;  %v5675_v2 = vpop.permute.xlu0 %5674 }
 0x8b5   : > { %v5698_v61 = vsel %vm12423_vm6, %v5673_v19, %v5675_v2  ;;  %vm12434_vm6 = vmmov %vm12417_vm3 }
 0x8b6   : > { %v5806_v28 = vadd.f32 %v12424_v38, %v5766_v22  ;;  %v5677_v39 = vpop.permute.xlu1 %5676  ;;  %v5735_v6 = vsel %vm7731_vm13, %v5698_v61, 0.0 }
 0x8b7   : > { %v5727_v31 = vsel %vm12425_vm7, %v5677_v39, %v5671_v15  ;;  %v5699_v14 = vsel %vm12426_vm8, %v5675_v2, %v5677_v39  ;;  %v5767_v9 = vadd.f32 %v5751_v36, %v5735_v6  ;;  %vm12435_vm7 = vmmov %vm12417_vm3 }
 0x8b8   : > { %v5822_v21 = vpack.c.bf16 %v5806_v28, %v5802_v60  ;;  %v5737_v40 = vsel %vm7772_vm15, %v5727_v31, 0.0  ;;  %v5768_v42 = vadd.f32 %v5752_v57, %v5699_v14  ;;  %v5555_v27 = vpop.permute.xlu0 %5554  ;;  %vm12436_vm8 = vmmov %vm12419_vm0 }
 0x8b9   : > { %v5769_v8 = vadd.f32 %v5753_v45, %v5737_v40  ;;  %v5807_v16 = vadd.f32 %v12424_v38, %v5767_v9 }
 0x8ba   : > { %v5808_v13 = vadd.f32 %v12424_v38, %v5768_v42  ;;  %v5589_v29 = vpop.permute.xlu1 %5588 }
 0x8bb   : > { %v5809_v4 = vadd.f32 %v12424_v38, %v5769_v8  ;;  %v5823_v50 = vpack.c.bf16 %v5807_v16, %v5803_v51 }
 0x8bc   : > { %v5824_v52 = vpack.c.bf16 %v5808_v13, %v5804_v3  ;;  %v5587_v63 = vpop.permute.xlu0 %5586 }
 0x8bd   : > { %v5825_v37 = vpack.c.bf16 %v5809_v4, %v5805_v58  ;;  %5846 = vmatprep.subr.bf16.mxu0 %v5823_v50  ;;  %v5628_v49 = vsel %vm12427_vm9, %v5555_v27, %v5587_v63  ;;  %v5604_v43 = vsel %vm12417_vm3, %v5587_v63, %v5589_v29  ;;  %vm12437_vm9 = vmmov %vm12417_vm3 }
 0x8be   : > { %v5681_v15 = vpop.permute.xlu1 %5680  ;;  %5847 = vmatpush1.bf16.msra.mxu0 %v5822_v21  ;;  %v5638_v33 = vsel %vm7703_vm12, %v5628_v49, 0.0  ;;  %v5755_v60 = vadd.f32 %v5604_v43, %v10993_v25 }
 0x8bf   : > { %5899 = vmatprep.subr.bf16.mxu1 %v5825_v37  ;;  %v5754_v44 = vadd.f32 %v5638_v33, %v11100_v0  ;;  %v6257_v33 = vld [vmem:[%s11360_s11] sm:$0xff]  }
 0x8c0   : > { %5900 = vmatpush1.bf16.msra.mxu1 %v5824_v52  ;;  %v5591_v23 = vpop.permute.xlu0 %5590 }
 0x8c1   : > { %v5605_v48 = vsel %vm12428_vm4, %v5589_v29, %v5591_v23  ;;  %v5606_v30 = vsel %vm12429_vm11, %v5591_v23, %v5555_v27  ;;  %vm12440_vm4 = vmmov %vm12419_vm0 }
 0x8c2   : > { %v5685_v54 = vpop.permute.xlu1 %5684  ;;  %v5640_v32 = vsel %vm7755_vm14, %v5605_v48, 0.0  ;;  %v5757_v18 = vadd.f32 %v5606_v30, %v11103_v35  ;;  %v6259_v48 = vld [vmem:[%s6605_s18] sm:$0xff] }
 0x8c3   : > { %v5756_v0 = vadd.f32 %v5640_v32, %v10995_v20  ;;  %v6260_v32 = vld [vmem:[%s6605_s18 + $0x8] sm:$0xff] }
 0x8c4   : > { %v5679_v19 = vpop.permute.xlu0 %5678 }
 0x8c5   : > { %v5700_v41 = vsel %vm12430_vm10, %v5679_v19, %v5681_v15  ;;  %v5728_v12 = vsel %vm12431_vm2, %v5685_v54, %v5679_v19 }
 0x8c6   : > { %v5557_v55 = vpop.permute.xlu1 %5556  ;;  %v5741_v24 = vsel %vm7772_vm15, %v5728_v12, 0.0  ;;  %v5770_v7 = vadd.f32 %v5754_v44, %v5700_v41  ;;  %v6261_v12 = vld [vmem:[%s6605_s18 + $0x10] sm:$0xff] }
 0x8c7   : > { %v5773_v22 = vadd.f32 %v5757_v18, %v5741_v24  ;;  %v6262_v24 = vld [vmem:[%s6605_s18 + $0x20] sm:$0xff] }
 0x8c8   : > { %v5810_v2 = vadd.f32 %v11150_v11, %v5770_v7  ;;  %v5683_v10 = vpop.permute.xlu0 %5682 }
 0x8c9   : > { %v5813_v35 = vadd.f32 %v11150_v11, %v5773_v22  ;;  %v5701_v47 = vsel %vm12432_vm1, %v5681_v15, %v5683_v10  ;;  %v5702_v36 = vsel %vm12419_vm0, %v5683_v10, %v5685_v54 }
 0x8ca   : > { %v5593_v61 = vpop.permute.xlu1 %5592  ;;  %v5739_v46 = vsel %vm7731_vm13, %v5701_v47, 0.0  ;;  %v5772_v57 = vadd.f32 %v5756_v0, %v5702_v36  ;;  %v6263_v0 = vld [vmem:[%s6605_s18 + $0x18] sm:$0xff]  ;;  %v6265_v47 = vld [vmem:[%s6605_s18 + $0x30] sm:$0xff] }
 0x8cb   : > { %v5771_v38 = vadd.f32 %v5755_v60, %v5739_v46  ;;  %v5629_v28 = vsel %vm12433_vm5, %v5557_v55, %v5593_v61  ;;  %v6264_v60 = vld [vmem:[%s6605_s18 + $0x28] sm:$0xff]  ;;  %v6266_v46 = vld [vmem:[%s6605_s18 + $0x38] sm:$0xff] }
 0x8cc   : > { %v5812_v20 = vadd.f32 %v11150_v11, %v5772_v57  ;;  %v5595_v39 = vpop.permute.xlu0 %5594  ;;  %v5642_v45 = vsel %vm7703_vm12, %v5629_v28, 0.0  ;;  %vm12438_vm12 = vmmov %vm12419_vm0  ;;  %v6267_v28 = vld [vmem:[%s6605_s18 + $0x40] sm:$0xff] }
 0x8cd   : > { %v5811_v6 = vadd.f32 %v11150_v11, %v5771_v38  ;;  %v5758_v9 = vadd.f32 %v5642_v45, %v11106_v56  ;;  %v5607_v21 = vsel %vm12435_vm7, %v5593_v61, %v5595_v39 }
 0x8ce   : > { %v5597_v25 = vpop.permute.xlu1 %5596  ;;  %v5759_v53 = vadd.f32 %v5607_v21, %v11124_v26 }
 0x8cf   : > { %v5608_v31 = vsel %vm12434_vm6, %v5595_v39, %v5597_v25  ;;  %v5609_v51 = vsel %vm12437_vm9, %v5597_v25, %v5557_v55  ;;  %v6268_v25 = vld [vmem:[%s6605_s18 + $0x48] sm:$0xff] }
 0x8d0   : > { %v5687_v14 = vpop.permute.xlu0 %5686  ;;  %v5644_v42 = vsel %vm7755_vm14, %v5608_v31, 0.0  ;;  %v5761_v17 = vadd.f32 %v5609_v51, %v11118_v59  ;;  %vm12439_vm14 = vmmov %vm12419_vm0  ;;  %v6271_v51 = vld [vmem:[%s6605_s18 + $0x58] sm:$0xff] }
 0x8d1   : > { %v5760_v3 = vadd.f32 %v5644_v42, %v11113_v62 }
 0x8d2   : > { %v5689_v40 = vpop.permute.xlu1 %5688 }
 0x8d3   : > { %v5703_v27 = vsel %vm12436_vm8, %v5687_v14, %v5689_v40 }
 0x8d4   : > { %v5774_v11 = vadd.f32 %v5758_v9, %v5703_v27  ;;  %v5691_v8 = vpop.permute.xlu0 %5690 }
 0x8d5   : > { %v5704_v16 = vsel %vm12438_vm12, %v5689_v40, %v5691_v8  ;;  %v6270_v40 = vld [vmem:[%s6605_s18 + $0x60] sm:$0xff] }
 0x8d6   : > { %v5814_v56 = vadd.f32 %v11148_v5, %v5774_v11  ;;  %v5693_v13 = vpop.permute.xlu1 %5692  ;;  %v5743_v29 = vsel %vm7731_vm13, %v5704_v16, 0.0  ;;  %vm12441_vm13 = vcmask 261120  }
 0x8d7   : > { %v5729_v58 = vsel %vm12439_vm14, %v5693_v13, %v5687_v14  ;;  %v5705_v4 = vsel %vm12440_vm4, %v5691_v8, %v5693_v13  ;;  %v5775_v50 = vadd.f32 %v5759_v53, %v5743_v29  ;;  %vm12444_vm11 = vmmov %vm12441_vm13  ;;  %v6269_v14 = vld [vmem:[%s6605_s18 + $0x50] sm:$0xff]  ;;  %v6272_v53 = vld [vmem:[%s6605_s18 + $0x68] sm:$0xff] }
 0x8d8   : > { %v5826_v52 = vpack.c.bf16 %v5814_v56, %v5810_v2  ;;  %v5745_v26 = vsel %vm7772_vm15, %v5729_v58, 0.0  ;;  %v5776_v63 = vadd.f32 %v5760_v3, %v5705_v4  ;;  %vm12443_vm15 = vmmov %vm12441_vm13  ;;  %v6273_v3 = vld [vmem:[%s6605_s18 + $0x70] sm:$0xff]  ;;  %v6274_v29 = vld [vmem:[%s6605_s18 + $0x78] sm:$0xff] }
 0x8d9   : > { %v5777_v37 = vadd.f32 %v5761_v17, %v5745_v26  ;;  %v5815_v62 = vadd.f32 %v11148_v5, %v5775_v50  ;;  %vm12445_vm10 = vmmov %vm12444_vm11 }
 0x8da   : > { %v5816_v15 = vadd.f32 %v11148_v5, %v5776_v63 }
 0x8db   : > { %v5817_v34 = vadd.f32 %v11148_v5, %v5777_v37  ;;  %v5827_v49 = vpack.c.bf16 %v5815_v62, %v5811_v6  ;;  %v6258_v5 = vld [vmem:[%s11360_s11 + $0x8] sm:$0xff]  }
 0x8dc   : > { %v5828_v59 = vpack.c.bf16 %v5816_v15, %v5812_v20 }
 0x8dd   : > { %v5829_v23 = vpack.c.bf16 %v5817_v34, %v5813_v35  ;;  %5848 = vmatprep.subr.bf16.mxu0 %v5827_v49 }
 0x8de   : > { %5849 = vmatpush1.bf16.msra.mxu0 %v5826_v52 }
 0x8df   : > { %5901 = vmatprep.subr.bf16.mxu1 %v5829_v23 }
 0x8e0   : > { %5902 = vmatpush1.bf16.msra.mxu1 %v5828_v59 }
 0x8e1   : > { %6189 = vmatmul.mubr.msk.bf16.vlgmr.msra.gmra.mrb[32].mxu0 %vm12441_vm13, %v6257_v33 }
 0x8e2   : > { %5888 = vmatprep.mubr.bf16.mxu0 %v12442_v1 }
 0x8e3   : > { %6191 = vmatmul.mubr.msk.bf16.vlgmr.msra.gmra.mrb[32].mxu1 %vm12443_vm15, %v6257_v33 }
 0x8e4   : > { %5941 = vmatprep.mubr.bf16.mxu1 %v12442_v1 }
 0x8e9   : > { %6190 = vmatmul.mubr.msk.bf16.gmra.mrb[36].mxu0 %vm12444_vm11, %v6258_v5 }
 0x8eb   : > { %6192 = vmatmul.mubr.msk.bf16.gmra.mrb[36].mxu1 %vm12445_vm10, %v6258_v5 }
 0x9b4   : > { %v5880_v54 = vpop.f32.mrb[32].mxu0 }
 0x9b5   : > { %v5952_v30 = vadd.f32 %v6259_v48, %v5880_v54  ;;  %v5882_v44 = vpop.f32.mrb[33].mxu0 }
 0x9b6   : > { %v5933_v19 = vpop.f32.mrb[32].mxu1  ;;  %v5953_v18 = vadd.f32 %v6260_v32, %v5882_v44  ;;  %v5884_v41 = vpop.f32.mrb[34].mxu0 }
 0x9b7   : > { %5968 = vst [vmem:[%s11263_s4] sm:$0xff] %v5952_v30  ;;  %v5954_v43 = vadd.f32 %v6261_v12, %v5933_v19  ;;  %v5935_v55 = vpop.f32.mrb[33].mxu1  ;;  %v5956_v7 = vadd.f32 %v6262_v24, %v5884_v41  ;;  %v5886_v22 = vpop.f32.mrb[35].mxu0 }
 0x9b8   : > { %5969 = vst [vmem:[%s11263_s4 + $0x8] sm:$0xff] %v5953_v18  ;;  %v5955_v2 = vadd.f32 %v6263_v0, %v5935_v55  ;;  %v5937_v10 = vpop.f32.mrb[34].mxu1  ;;  %v5957_v35 = vadd.f32 %v6264_v60, %v5886_v22 }
 0x9b9   : > { %5970 = vst [vmem:[%s11263_s4 + $0x10] sm:$0xff] %v5954_v43  ;;  %5972 = vst [vmem:[%s11263_s4 + $0x20] sm:$0xff] %v5956_v7  ;;  %v5958_v36 = vadd.f32 %v6265_v47, %v5937_v10  ;;  %v5939_v61 = vpop.f32.mrb[35].mxu1 }
 0x9ba   : > { %5971 = vst [vmem:[%s11263_s4 + $0x18] sm:$0xff] %v5955_v2  ;;  %5973 = vst [vmem:[%s11263_s4 + $0x28] sm:$0xff] %v5957_v35  ;;  %v5959_v57 = vadd.f32 %v6266_v46, %v5939_v61 }
 0x9bb   : > { %5974 = vst [vmem:[%s11263_s4 + $0x30] sm:$0xff] %v5958_v36 }
 0x9bc   : > { %5975 = vst [vmem:[%s11263_s4 + $0x38] sm:$0xff] %v5959_v57  ;;  %v5890_v38 = vpop.f32.mrb[36].mxu0 }
 0x9bd   : > { %v5960_v20 = vadd.f32 %v6267_v28, %v5890_v38  ;;  %v5892_v39 = vpop.f32.mrb[37].mxu0 }
 0x9be   : > { %v5943_v6 = vpop.f32.mrb[36].mxu1  ;;  %v5961_v45 = vadd.f32 %v6268_v25, %v5892_v39  ;;  %v5894_v31 = vpop.f32.mrb[38].mxu0 }
 0x9bf   : > { %5976 = vst [vmem:[%s11263_s4 + $0x40] sm:$0xff] %v5960_v20  ;;  %v5962_v9 = vadd.f32 %v6269_v14, %v5943_v6  ;;  %v5945_v21 = vpop.f32.mrb[37].mxu1  ;;  %v5964_v42 = vadd.f32 %v6270_v40, %v5894_v31  ;;  %v5896_v27 = vpop.f32.mrb[39].mxu0 }
 0x9c0   : > { %5977 = vst [vmem:[%s11263_s4 + $0x48] sm:$0xff] %v5961_v45  ;;  %v5963_v11 = vadd.f32 %v6271_v51, %v5945_v21  ;;  %v5947_v8 = vpop.f32.mrb[38].mxu1  ;;  %v5965_v16 = vadd.f32 %v6272_v53, %v5896_v27 }
 0x9c1   : > { %5978 = vst [vmem:[%s11263_s4 + $0x50] sm:$0xff] %v5962_v9  ;;  %5980 = vst [vmem:[%s11263_s4 + $0x60] sm:$0xff] %v5964_v42  ;;  %v5966_v56 = vadd.f32 %v6273_v3, %v5947_v8  ;;  %v5949_v13 = vpop.f32.mrb[39].mxu1 }
 0x9c2   : > { %5979 = vst [vmem:[%s11263_s4 + $0x58] sm:$0xff] %v5963_v11  ;;  %5981 = vst [vmem:[%s11263_s4 + $0x68] sm:$0xff] %v5965_v16  ;;  %v5967_v17 = vadd.f32 %v6274_v29, %v5949_v13 }
 0x9c3   : > { %5982 = vst [vmem:[%s11263_s4 + $0x70] sm:$0xff] %v5966_v56 }
 0x9c4   : > { %5983 = vst [vmem:[%s11263_s4 + $0x78] sm:$0xff] %v5967_v17 }
 0x9c5   : > { %6288 = shalt.err (!%p6285_p5)
}
 0x9c6   : > { %s6289_s18 = scalar_lea.hbm %s11293_s29, 2048  ;;  %s6293_s4 = scalar_lea.hbm %s11361_s12, 4096 }
 0x9c7   : > { %p6290_p7 = scmp.ne.s32.totalorder %s11293_s29, %s6289_s18  ;;  %p6294_p12 = scmp.lt.u32.totalorder %s11293_s29, %s11361_s12 }
 0x9c8   : > { %p6295_p13 = scmp.lt.u32.totalorder %s6293_s4, %s6289_s18  ;;  %p6297_p1 = scmp.lt.u32.totalorder %s6289_s18, %s11293_s29 }
 0x9c9   : > { %p6291_p10 = pnand %p6290_p7, %p6451_p6 }
 0x9ca   : > { %p6296_p0 = por %p6295_p13, %p6294_p12 }
 0x9cb   : > { %p6292_p11 = pneg %p6291_p10 }
 0x9cc   : > { %p6298_p2 = por %p6297_p1, %p6296_p0 }
 0x9ce   : > { %p6299_p3 = pnand %p6298_p2, %p6292_p11 }
 0x9d0   : > { %6302 = shalt.err (!%p6299_p3)
}
 0x9d1   : > { %s6345_s25 = smov 512   ;;  %s6346_s28 = smov 1024  }
 0x9d2   : > { %s6347_s26 = smov 32  }
 0x9d3   : > { %6200 = dma.vmem_to_hbm [thread:$0]  (%p6451_p6), %s11298_s19, 2048, %s11293_s29, %s11307_s16, %s6345_s25, %s6346_s28, %s6347_s26  }
 0x9d4 PF: > { %s6013_s2 = sand.u32 1, %s6325_s21   ;;  %p6203_p4 = pnand %p6068_p9, %p6455_p8 }
 0x9d5   : > { %s6014_s3 = scalar_lea.sflag [#allocation5], %s6013_s2 }
 0x9d6   : > { %6320 = dma.done.wait (!%p6203_p4), %s6014_s3, 2048  }
 0x9d7   : > { %6322 = vsyncadd (!%p6203_p4), %s6014_s3, 4294965248  ;;  %p22_p5 = scmp.ge.s32.totalorder %s6436_s27, 4   ;;  %s12448_s21 = smov %s6329_s22 }
 0x9d8   : > { %s12449_s22 = smov %s6333_s23  ;;  %s12450_s23 = smov %s6449_s30 }
 0x9d9   : > { %s12451_s24 = smov %s6436_s27  ;;  %24 = sbr.rel (!%p22_p5) target bundleno = 10 (0xa), region = 137 }
 0x9e0   :  { %6019 = vsyncpa [#allocation5], 1 }
 0x9e1   :  { %6021 = vsyncpa [#allocation5 + $0x1], 1 }

</bundles_post_ra>
